<compile_context>
chip_gen: v6e
topology: v6e:2x2x1
jax: 0.10.0
libtpu: 0.0.40
codegen_flags: <defaults>
</compile_context>

<pallas_src>
import functools

import jax
import jax.numpy as jnp
from jax.experimental import pallas as pl
from jax.experimental.pallas import tpu as pltpu

_HIGHEST = jax.lax.Precision.HIGHEST
_BF16 = jnp.bfloat16
_F32 = jnp.float32


# ------------------------------ fused kernel -------------------------------

def _residual_block_kernel(
    # per-batch-block inputs
    x_ref, t_ref,
    # norm1 / conv1 / time-MLP params
    n1g_ref, n1b_ref, m1_ref, m1t_ref, w1_ref, b1_ref, tw_ref, tb_ref,
    # norm2 / conv2 params
    n2g_ref, n2b_ref, m2_ref, m2t_ref, w2_ref, b2_ref,
    # residual 1x1 conv params
    rw_ref, rb_ref,
    # attention params
    ang_ref, anb_ref, qkvw_ref, qkvb_ref, ow_ref, ob_ref,
    # output
    o_ref,
    # VMEM scratch: zero-padded images for the two 3x3 convs
    pad1_ref, pad2_ref,
    *, H, W, G, eps, has_res_proj, use_attention):
  Bblk = x_ref.shape[0]
  HW = H * W
  rows = Bblk * HW
  Cin = x_ref.shape[-1]
  Cout = o_ref.shape[-1]

  def mxu_dot(a, b):
    # big matmuls: bf16 operands, f32 accumulate (single MXU pass per tile)
    return jnp.dot(a.astype(_BF16), b, preferred_element_type=_F32)

  def f32_dot(a, b):
    # tiny exact matmuls (group stats, time MLP)
    return jnp.dot(a, b, precision=_HIGHEST, preferred_element_type=_F32)

  def group_norm(v, m_ref, mt_ref, g_ref, b_ref, apply_silu):
    # v: (Bblk, HW, C) f32.  Per-sample, per-group stats via one-hot group
    # matmuls.  Two-pass (centered) variance: avoids the E[x^2]-E[x]^2
    # cancellation flagged in the correctness review.
    C = v.shape[-1]
    n = float(HW * (C // G))
    s1 = jnp.sum(v, axis=1)                                  # (Bblk, C)
    if C == G:                                               # 1 channel / group
      mean_c = s1 / n
    else:
      mean_g = f32_dot(s1, m_ref[...]) / n                   # (Bblk, G)
      mean_c = f32_dot(mean_g, mt_ref[...])                  # (Bblk, C)
    cen = v - mean_c[:, None, :]
    s2 = jnp.sum(cen * cen, axis=1)                          # (Bblk, C)
    if C == G:
      rstd_c = jax.lax.rsqrt(s2 / n + eps)
    else:
      var_g = f32_dot(s2, m_ref[...]) / n
      rstd_c = f32_dot(jax.lax.rsqrt(var_g + eps), mt_ref[...])
    y = cen * rstd_c[:, None, :] * g_ref[...] + b_ref[...]
    if apply_silu:
      y = y * jax.nn.sigmoid(y)
    return y

  def conv3x3(v, pad_ref, w_ref, b_ref):
    # v: (Bblk, HW, C) f32 -> (rows, Co) f32.  'SAME' zero padding via a
    # (H+2, W+2) padded image in VMEM; conv = 9 shifted (rows, C) x (C, Co)
    # bf16 matmuls accumulated in f32 (no im2col buffer, no misaligned taps).
    C = v.shape[-1]
    Co = w_ref.shape[-1]
    v4 = v.reshape(Bblk, H, W, C)
    # Zero only the 1-pixel halo strips.  Re-done every grid step (a few KiB)
    # so the kernel stays correct when the 'parallel' batch axis is split
    # across TensorCores (scratch is per-core, so a one-shot init is unsafe).
    pad_ref[:, 0:1, :, :] = jnp.zeros((Bblk, 1, W + 2, C), _F32)
    pad_ref[:, H + 1:H + 2, :, :] = jnp.zeros((Bblk, 1, W + 2, C), _F32)
    pad_ref[:, :, 0:1, :] = jnp.zeros((Bblk, H + 2, 1, C), _F32)
    pad_ref[:, :, W + 1:W + 2, :] = jnp.zeros((Bblk, H + 2, 1, C), _F32)
    pad_ref[:, 1:H + 1, 1:W + 1, :] = v4
    acc = jnp.zeros((rows, Co), _F32)
    for dy in range(3):
      for dx in range(3):
        tap = pad_ref[:, dy:dy + H, dx:dx + W, :]            # (Bblk, H, W, C)
        acc = acc + mxu_dot(tap.reshape(rows, C), w_ref[3 * dy + dx])
    return acc + b_ref[...]

  x3 = x_ref[...].reshape(Bblk, HW, Cin).astype(_F32)        # (Bblk, HW, Cin)

  # time MLP: SiLU(t) @ W_t + b_t -> per-sample additive channel vector
  te = t_ref[...].reshape(Bblk, -1).astype(_F32)             # (Bblk, Tdim)
  te = te * jax.nn.sigmoid(te)
  tvec = f32_dot(te, tw_ref[...]) + tb_ref[...]              # (Bblk, Cout)

  h = group_norm(x3, m1_ref, m1t_ref, n1g_ref, n1b_ref, True)
  h = conv3x3(h, pad1_ref, w1_ref, b1_ref)                   # (rows, Cout)
  h = h.reshape(Bblk, HW, Cout) + tvec[:, None, :]
  h = group_norm(h, m2_ref, m2t_ref, n2g_ref, n2b_ref, True)
  # TODO(synk): nn.Dropout(0.3) is identity in eval mode; a training path
  # would need pltpu.prng_seed / prng_random_bits masking here.
  h = conv3x3(h, pad2_ref, w2_ref, b2_ref)                   # (rows, Cout)

  if has_res_proj:
    res = mxu_dot(x3.reshape(rows, Cin), rw_ref[...]) + rb_ref[...]
  else:
    res = x3.reshape(rows, Cout)
  out = h + res                                              # (rows, Cout) f32

  if use_attention:
    an = group_norm(out.reshape(Bblk, HW, Cout),
                    m2_ref, m2t_ref, ang_ref, anb_ref, False)
    # fused (C, 3C) qkv projection: one well-filled MXU pass, slice after
    qkv = mxu_dot(an.reshape(rows, Cout), qkvw_ref[...]) + qkvb_ref[...]
    scale = float(Cout) ** -0.5
    q = (qkv[:, :Cout] * scale).reshape(Bblk, HW, Cout)      # scale folded in q
    k = qkv[:, Cout:2 * Cout].reshape(Bblk, HW, Cout)
    v = qkv[:, 2 * Cout:].reshape(Bblk, HW, Cout)
    s = jnp.einsum("bqc,bkc->bqk", q.astype(_BF16), k.astype(_BF16),
                   preferred_element_type=_F32)              # (Bblk, HW, HW)
    s = s - jnp.max(s, axis=-1, keepdims=True)
    p = jnp.exp(s)
    p = p * pl.reciprocal(jnp.sum(p, axis=-1, keepdims=True), approx=True)
    ao = jnp.einsum("bqk,bkc->bqc", p.astype(_BF16), v.astype(_BF16),
                    preferred_element_type=_F32)             # (Bblk, HW, Cout)
    out = out + mxu_dot(ao.reshape(rows, Cout), ow_ref[...]) + ob_ref[...]

  o_ref[...] = out.reshape(Bblk, H, W, Cout).astype(o_ref.dtype)


# ------------------------------- wrapper ------------------------------------

def _onehot_group_map(C, G):
  cg = C // G
  m = (jnp.arange(C)[:, None] // cg == jnp.arange(G)[None, :]).astype(jnp.float32)
  return m, m.T


def _pick_block_b(B, HW):
  # Enough rows per grid step to fill the MXU (~256), but keep >=2 grid steps
  # (when B allows) so both v7x TensorCores get work under 'parallel'.
  target = max(1, -(-256 // HW))
  best = 1
  for d in range(1, B + 1):
    if B % d == 0 and d <= target and (B // d >= 2 or B == 1):
      best = d
  return best


def residual_block_forward(x_nchw, time_emb, p, use_attention=True):
  x = jnp.transpose(x_nchw, (0, 2, 3, 1))                    # NCHW -> NHWC
  B, H, W, Cin = x.shape
  Cout = p["conv1_w"].shape[-1]
  Tdim = time_emb.shape[-1]
  G = 32
  has_res_proj = (Cin != Cout)
  Bblk = _pick_block_b(B, H * W)

  m1, m1t = _onehot_group_map(Cin, G)
  m2, m2t = _onehot_group_map(Cout, G)
  row = lambda v: v.reshape(1, -1).astype(jnp.float32)
  b16 = lambda v: v.astype(jnp.bfloat16)

  # Constant operands (same block every grid step), kernel-signature order.
  consts = [
      row(p["norm1_g"]), row(p["norm1_b"]), m1, m1t,
      b16(p["conv1_w"].reshape(9, Cin, Cout)), row(p["conv1_b"]),
      p["time_w"].astype(jnp.float32), row(p["time_b"]),
      row(p["norm2_g"]), row(p["norm2_b"]), m2, m2t,
      b16(p["conv2_w"].reshape(9, Cout, Cout)), row(p["conv2_b"]),
      b16(p["res_w"]), row(p["res_b"]),
      row(p["attn_norm_g"]), row(p["attn_norm_b"]),
      b16(p["attn_qkv_w"]), row(p["attn_qkv_b"]),
      b16(p["attn_out_w"]), row(p["attn_out_b"]),
  ]

  def const_spec(arr):
    nd = arr.ndim
    # TODO(synk): pipeline_mode=pl.Buffered(1) would single-buffer these
    # constants (VMEM saving at real channel counts); left at the default to
    # keep the lowering path conservative.
    return pl.BlockSpec(arr.shape, lambda b, _nd=nd: (0,) * _nd)

  kernel = functools.partial(
      _residual_block_kernel, H=H, W=W, G=G, eps=1e-5,
      has_res_proj=has_res_proj, use_attention=use_attention)

  out = pl.pallas_call(
      kernel,
      out_shape=jax.ShapeDtypeStruct((B, H, W, Cout), x.dtype),
      grid=(B // Bblk,),
      in_specs=[
          pl.BlockSpec((Bblk, H, W, Cin), lambda b: (b, 0, 0, 0)),
          pl.BlockSpec((Bblk, 1, Tdim), lambda b: (b, 0, 0)),
      ] + [const_spec(a) for a in consts],
      out_specs=pl.BlockSpec((Bblk, H, W, Cout), lambda b: (b, 0, 0, 0)),
      scratch_shapes=[
          pltpu.VMEM((Bblk, H + 2, W + 2, Cin), jnp.float32),   # padded img 1
          pltpu.VMEM((Bblk, H + 2, W + 2, Cout), jnp.float32),  # padded img 2
      ],
      compiler_params=pltpu.CompilerParams(
          dimension_semantics=("parallel",),          # v7x megacore over batch
          vmem_limit_bytes=32 * 1024 * 1024),
  )(x, time_emb.reshape(B, 1, Tdim), *consts)

  return jnp.transpose(out, (0, 3, 1, 2))                     # NHWC -> NCHW


# ----------------------------- pure-JAX reference ----------------------------

def _silu(x):
  return x * jax.nn.sigmoid(x)


def _ref_group_norm(x, g, b, G, eps=1e-5):
  B, H, W, C = x.shape
  xr = x.reshape(B, H, W, G, C // G)
  mean = xr.mean(axis=(1, 2, 4), keepdims=True)
  var = xr.var(axis=(1, 2, 4), keepdims=True)
  xn = (xr - mean) / jnp.sqrt(var + eps)
  return xn.reshape(B, H, W, C) * g + b


def _ref_conv3x3(x, w, b):
  y = jax.lax.conv_general_dilated(
      x, w, (1, 1), "SAME",
      dimension_numbers=("NHWC", "HWIO", "NHWC"),
      precision=jax.lax.Precision.HIGHEST)
  return y + b


def ref_forward(x_nchw, t, p, use_attention=True):
  with jax.default_matmul_precision("highest"):
    x = jnp.transpose(x_nchw, (0, 2, 3, 1))
    B, H, W, Cin = x.shape
    Cout = p["conv1_w"].shape[-1]
    h = _ref_conv3x3(_silu(_ref_group_norm(x, p["norm1_g"], p["norm1_b"], 32)),
                     p["conv1_w"], p["conv1_b"])
    tv = _silu(t) @ p["time_w"] + p["time_b"]
    h = h + tv[:, None, None, :]
    h = _silu(_ref_group_norm(h, p["norm2_g"], p["norm2_b"], 32))
    h = _ref_conv3x3(h, p["conv2_w"], p["conv2_b"])
    res = (x.reshape(B * H * W, Cin) @ p["res_w"] + p["res_b"]).reshape(B, H, W, Cout) \
        if Cin != Cout else x
    out = h + res
    if use_attention:
      an = _ref_group_norm(out, p["attn_norm_g"], p["attn_norm_b"], 32)
      qkv = an.reshape(B * H * W, Cout) @ p["attn_qkv_w"] + p["attn_qkv_b"]
      qkv = qkv.reshape(B, H * W, 3 * Cout)
      q, k, v = qkv[..., :Cout], qkv[..., Cout:2 * Cout], qkv[..., 2 * Cout:]
      s = jnp.einsum("bic,bjc->bij", q, k) * (Cout ** (-0.5))
      a = jax.nn.softmax(s, axis=-1)
      o = jnp.einsum("bij,bjc->bic", a, v).reshape(B * H * W, Cout)
      o = (o @ p["attn_out_w"] + p["attn_out_b"]).reshape(B, H, W, Cout)
      out = o + out
    return jnp.transpose(out, (0, 3, 1, 2))


# ----------------------------------- main ------------------------------------

def init_params(key, Cin, Cout, Tdim):
  ks = jax.random.split(key, 18)
  r = lambda k, s, sc=0.1: sc * jax.random.normal(k, s, jnp.float32)
  return {
      "norm1_g": 1.0 + r(ks[0], (Cin,)),
      "norm1_b": r(ks[1], (Cin,)),
      "conv1_w": r(ks[2], (3, 3, Cin, Cout)),
      "conv1_b": r(ks[3], (Cout,)),
      "time_w": r(ks[4], (Tdim, Cout)),
      "time_b": r(ks[5], (Cout,)),
      "norm2_g": 1.0 + r(ks[6], (Cout,)),
      "norm2_b": r(ks[7], (Cout,)),
      "conv2_w": r(ks[8], (3, 3, Cout, Cout)),
      "conv2_b": r(ks[9], (Cout,)),
      "res_w": r(ks[10], (Cin, Cout)),
      "res_b": r(ks[11], (Cout,)),
      "attn_norm_g": 1.0 + r(ks[12], (Cout,)),
      "attn_norm_b": r(ks[13], (Cout,)),
      "attn_qkv_w": r(ks[14], (Cout, 3 * Cout)),
      "attn_qkv_b": r(ks[15], (3 * Cout,)),
      "attn_out_w": r(ks[16], (Cout, Cout)),
      "attn_out_b": r(ks[17], (Cout,)),
  }


if __name__ == "__main__":
  # GroupNorm(32, C) => C % 32 == 0; B=4 so row-batching (Bblk=2) still leaves
  # a 2-step grid for v7x megacore.
  B, Cin, Cout, Tdim, H, W = 4, 32, 64, 16, 8, 8
  key = jax.random.PRNGKey(0)
  kx, kt, kp = jax.random.split(key, 3)
  x = jax.random.normal(kx, (B, Cin, H, W), jnp.float32)      # NCHW like PyTorch
  time_emb = jax.random.normal(kt, (B, Tdim), jnp.float32)
  params = init_params(kp, Cin, Cout, Tdim)

  fwd = jax.jit(residual_block_forward, static_argnames="use_attention")
  out = fwd(x, time_emb, params, use_attention=True)
  out = jax.block_until_ready(out)
  assert out.shape == (B, Cout, H, W)

  ref = ref_forward(x, time_emb, params, use_attention=True)
  err = float(jnp.max(jnp.abs(out - ref)))
  rel = float(jnp.linalg.norm(out - ref) / jnp.linalg.norm(ref))
  # bf16 MXU operands (perf-review item) => tolerance relaxed vs f32 reference.
  assert err < 3e-1 and rel < 4e-2, f"max abs err {err}, rel err {rel}"
  print("KERNEL_OK")
</pallas_src>

<mosaic_0001>
module attributes {stable_mosaic.version = 11 : i64} {
  func.func @_residual_block_kernel(%arg0: i32, %arg1: memref<2x8x8x32xf32, #tpu.memory_space<vmem>>, %arg2: memref<2x1x16xf32, #tpu.memory_space<vmem>>, %arg3: memref<1x32xf32, #tpu.memory_space<vmem>>, %arg4: memref<1x32xf32, #tpu.memory_space<vmem>>, %arg5: memref<32x32xf32, #tpu.memory_space<vmem>>, %arg6: memref<32x32xf32, #tpu.memory_space<vmem>>, %arg7: memref<9x32x64xbf16, #tpu.memory_space<vmem>>, %arg8: memref<1x64xf32, #tpu.memory_space<vmem>>, %arg9: memref<16x64xf32, #tpu.memory_space<vmem>>, %arg10: memref<1x64xf32, #tpu.memory_space<vmem>>, %arg11: memref<1x64xf32, #tpu.memory_space<vmem>>, %arg12: memref<1x64xf32, #tpu.memory_space<vmem>>, %arg13: memref<64x32xf32, #tpu.memory_space<vmem>>, %arg14: memref<32x64xf32, #tpu.memory_space<vmem>>, %arg15: memref<9x64x64xbf16, #tpu.memory_space<vmem>>, %arg16: memref<1x64xf32, #tpu.memory_space<vmem>>, %arg17: memref<32x64xbf16, #tpu.memory_space<vmem>>, %arg18: memref<1x64xf32, #tpu.memory_space<vmem>>, %arg19: memref<1x64xf32, #tpu.memory_space<vmem>>, %arg20: memref<1x64xf32, #tpu.memory_space<vmem>>, %arg21: memref<64x192xbf16, #tpu.memory_space<vmem>>, %arg22: memref<1x192xf32, #tpu.memory_space<vmem>>, %arg23: memref<64x64xbf16, #tpu.memory_space<vmem>>, %arg24: memref<1x64xf32, #tpu.memory_space<vmem>>, %arg25: memref<2x8x8x64xf32, #tpu.memory_space<vmem>>, %arg26: memref<2x10x10x32xf32, #tpu.memory_space<vmem>>, %arg27: memref<2x10x10x64xf32, #tpu.memory_space<vmem>>) attributes {dimension_semantics = [#tpu.dimension_semantics<parallel>], iteration_bounds = array<i64: 2>, scalar_prefetch = 0 : i64, scratch_operands = 2 : i64, tpu.core_type = #tpu.core_type<tc>, window_params = [{transform_indices = @transform_0, window_bounds = array<i64: 2, 8, 8, 32>}, {transform_indices = @transform_1, window_bounds = array<i64: 2, 1, 16>}, {pipeline_mode = #tpu.pipeline_mode<synchronous>, transform_indices = @transform_2, window_bounds = array<i64: 1, 32>}, {pipeline_mode = #tpu.pipeline_mode<synchronous>, transform_indices = @transform_3, window_bounds = array<i64: 1, 32>}, {pipeline_mode = #tpu.pipeline_mode<synchronous>, transform_indices = @transform_4, window_bounds = array<i64: 32, 32>}, {pipeline_mode = #tpu.pipeline_mode<synchronous>, transform_indices = @transform_5, window_bounds = array<i64: 32, 32>}, {pipeline_mode = #tpu.pipeline_mode<synchronous>, transform_indices = @transform_6, window_bounds = array<i64: 9, 32, 64>}, {pipeline_mode = #tpu.pipeline_mode<synchronous>, transform_indices = @transform_7, window_bounds = array<i64: 1, 64>}, {pipeline_mode = #tpu.pipeline_mode<synchronous>, transform_indices = @transform_8, window_bounds = array<i64: 16, 64>}, {pipeline_mode = #tpu.pipeline_mode<synchronous>, transform_indices = @transform_9, window_bounds = array<i64: 1, 64>}, {pipeline_mode = #tpu.pipeline_mode<synchronous>, transform_indices = @transform_10, window_bounds = array<i64: 1, 64>}, {pipeline_mode = #tpu.pipeline_mode<synchronous>, transform_indices = @transform_11, window_bounds = array<i64: 1, 64>}, {pipeline_mode = #tpu.pipeline_mode<synchronous>, transform_indices = @transform_12, window_bounds = array<i64: 64, 32>}, {pipeline_mode = #tpu.pipeline_mode<synchronous>, transform_indices = @transform_13, window_bounds = array<i64: 32, 64>}, {pipeline_mode = #tpu.pipeline_mode<synchronous>, transform_indices = @transform_14, window_bounds = array<i64: 9, 64, 64>}, {pipeline_mode = #tpu.pipeline_mode<synchronous>, transform_indices = @transform_15, window_bounds = array<i64: 1, 64>}, {pipeline_mode = #tpu.pipeline_mode<synchronous>, transform_indices = @transform_16, window_bounds = array<i64: 32, 64>}, {pipeline_mode = #tpu.pipeline_mode<synchronous>, transform_indices = @transform_17, window_bounds = array<i64: 1, 64>}, {pipeline_mode = #tpu.pipeline_mode<synchronous>, transform_indices = @transform_18, window_bounds = array<i64: 1, 64>}, {pipeline_mode = #tpu.pipeline_mode<synchronous>, transform_indices = @transform_19, window_bounds = array<i64: 1, 64>}, {pipeline_mode = #tpu.pipeline_mode<synchronous>, transform_indices = @transform_20, window_bounds = array<i64: 64, 192>}, {pipeline_mode = #tpu.pipeline_mode<synchronous>, transform_indices = @transform_21, window_bounds = array<i64: 1, 192>}, {pipeline_mode = #tpu.pipeline_mode<synchronous>, transform_indices = @transform_22, window_bounds = array<i64: 64, 64>}, {pipeline_mode = #tpu.pipeline_mode<synchronous>, transform_indices = @transform_23, window_bounds = array<i64: 1, 64>}, {transform_indices = @transform_24, window_bounds = array<i64: 2, 8, 8, 64>}]} {
    %c0 = arith.constant 0 : index
    %c0_0 = arith.constant 0 : index
    %c0_1 = arith.constant 0 : index
    %c0_2 = arith.constant 0 : index
    %0 = vector.load %arg1[%c0, %c0_0, %c0_1, %c0_2] : memref<2x8x8x32xf32, #tpu.memory_space<vmem>>, vector<2x8x8x32xf32>
    %1 = vector.shape_cast %0 : vector<2x8x8x32xf32> to vector<2x64x32xf32>
    %c0_3 = arith.constant 0 : index
    %c0_4 = arith.constant 0 : index
    %c0_5 = arith.constant 0 : index
    %2 = vector.load %arg2[%c0_3, %c0_4, %c0_5] : memref<2x1x16xf32, #tpu.memory_space<vmem>>, vector<2x1x16xf32>
    %3 = vector.shape_cast %2 : vector<2x1x16xf32> to vector<2x16xf32>
    %4 = arith.negf %3 : vector<2x16xf32>
    %5 = math.exp %4 : vector<2x16xf32>
    %cst = arith.constant 1.000000e+00 : f32
    %6 = vector.broadcast %cst : f32 to vector<2x16xf32>
    %7 = arith.addf %6, %5 : vector<2x16xf32>
    %8 = arith.divf %6, %7 : vector<2x16xf32>
    %9 = arith.mulf %3, %8 : vector<2x16xf32>
    %c0_6 = arith.constant 0 : index
    %c0_7 = arith.constant 0 : index
    %10 = vector.load %arg9[%c0_6, %c0_7] : memref<16x64xf32, #tpu.memory_space<vmem>>, vector<16x64xf32>
    %cst_8 = arith.constant dense<0.000000e+00> : vector<2x64xf32>
    %11 = tpu.matmul %9, %10, %cst_8 {dimension_numbers = #tpu.dot_dimension_numbers<[1], [0], [0], [1], [0, 0, 1, 1], [], []>, precision = #tpu.contract_precision<fp32>} : vector<2x16xf32>, vector<16x64xf32>, vector<2x64xf32> -> vector<2x64xf32>
    %c0_9 = arith.constant 0 : index
    %c0_10 = arith.constant 0 : index
    %12 = vector.load %arg10[%c0_9, %c0_10] : memref<1x64xf32, #tpu.memory_space<vmem>>, vector<1x64xf32>
    %13 = vector.broadcast %12 : vector<1x64xf32> to vector<2x64xf32>
    %14 = arith.addf %11, %13 : vector<2x64xf32>
    %cst_11 = arith.constant dense<0.000000e+00> : vector<2x32xf32>
    %15 = vector.multi_reduction <add>, %1, %cst_11 [1] : vector<2x64x32xf32> to vector<2x32xf32>
    %cst_12 = arith.constant 6.400000e+01 : f32
    %16 = vector.broadcast %cst_12 : f32 to vector<2x32xf32>
    %17 = arith.divf %15, %16 : vector<2x32xf32>
    %18 = vector.shape_cast %17 : vector<2x32xf32> to vector<2x1x32xf32>
    %19 = vector.broadcast %18 : vector<2x1x32xf32> to vector<2x64x32xf32>
    %20 = arith.subf %1, %19 : vector<2x64x32xf32>
    %21 = arith.mulf %20, %20 : vector<2x64x32xf32>
    %cst_13 = arith.constant dense<0.000000e+00> : vector<2x32xf32>
    %22 = vector.multi_reduction <add>, %21, %cst_13 [1] : vector<2x64x32xf32> to vector<2x32xf32>
    %cst_14 = arith.constant 6.400000e+01 : f32
    %23 = vector.broadcast %cst_14 : f32 to vector<2x32xf32>
    %24 = arith.divf %22, %23 : vector<2x32xf32>
    %cst_15 = arith.constant 9.99999974E-6 : f32
    %25 = vector.broadcast %cst_15 : f32 to vector<2x32xf32>
    %26 = arith.addf %24, %25 : vector<2x32xf32>
    %27 = math.rsqrt %26 : vector<2x32xf32>
    %28 = vector.shape_cast %27 : vector<2x32xf32> to vector<2x1x32xf32>
    %29 = vector.broadcast %28 : vector<2x1x32xf32> to vector<2x64x32xf32>
    %30 = arith.mulf %20, %29 : vector<2x64x32xf32>
    %c0_16 = arith.constant 0 : index
    %c0_17 = arith.constant 0 : index
    %31 = vector.load %arg3[%c0_16, %c0_17] : memref<1x32xf32, #tpu.memory_space<vmem>>, vector<1x32xf32>
    %32 = vector.shape_cast %31 : vector<1x32xf32> to vector<1x1x32xf32>
    %33 = vector.broadcast %32 : vector<1x1x32xf32> to vector<2x64x32xf32>
    %34 = arith.mulf %30, %33 : vector<2x64x32xf32>
    %c0_18 = arith.constant 0 : index
    %c0_19 = arith.constant 0 : index
    %35 = vector.load %arg4[%c0_18, %c0_19] : memref<1x32xf32, #tpu.memory_space<vmem>>, vector<1x32xf32>
    %36 = vector.shape_cast %35 : vector<1x32xf32> to vector<1x1x32xf32>
    %37 = vector.broadcast %36 : vector<1x1x32xf32> to vector<2x64x32xf32>
    %38 = arith.addf %34, %37 : vector<2x64x32xf32>
    %39 = arith.negf %38 : vector<2x64x32xf32>
    %40 = math.exp %39 : vector<2x64x32xf32>
    %cst_20 = arith.constant 1.000000e+00 : f32
    %41 = vector.broadcast %cst_20 : f32 to vector<2x64x32xf32>
    %42 = arith.addf %41, %40 : vector<2x64x32xf32>
    %43 = arith.divf %41, %42 : vector<2x64x32xf32>
    %44 = arith.mulf %38, %43 : vector<2x64x32xf32>
    %45 = vector.shape_cast %44 : vector<2x64x32xf32> to vector<2x8x8x32xf32>
    %cst_21 = arith.constant 0.000000e+00 : f32
    %46 = vector.broadcast %cst_21 : f32 to vector<2x1x10x32xf32>
    %c0_22 = arith.constant 0 : index
    %c0_23 = arith.constant 0 : index
    %c0_24 = arith.constant 0 : index
    %c0_25 = arith.constant 0 : index
    %47 = vector.load %arg26[%c0_22, %c0_23, %c0_24, %c0_25] : memref<2x10x10x32xf32, #tpu.memory_space<vmem>>, vector<2x1x10x32xf32>
    tpu.vector_store %arg26[%c0_22, %c0_23, %c0_24, %c0_25], %46 {strides = array<i32>} : memref<2x10x10x32xf32, #tpu.memory_space<vmem>>, vector<2x1x10x32xf32>,
    %cst_26 = arith.constant 0.000000e+00 : f32
    %48 = vector.broadcast %cst_26 : f32 to vector<2x1x10x32xf32>
    %c0_27 = arith.constant 0 : index
    %c9 = arith.constant 9 : index
    %c0_28 = arith.constant 0 : index
    %c0_29 = arith.constant 0 : index
    %49 = vector.load %arg26[%c0_27, %c9, %c0_28, %c0_29] : memref<2x10x10x32xf32, #tpu.memory_space<vmem>>, vector<2x1x10x32xf32>
    tpu.vector_store %arg26[%c0_27, %c9, %c0_28, %c0_29], %48 {strides = array<i32>} : memref<2x10x10x32xf32, #tpu.memory_space<vmem>>, vector<2x1x10x32xf32>,
    %cst_30 = arith.constant 0.000000e+00 : f32
    %50 = vector.broadcast %cst_30 : f32 to vector<2x10x1x32xf32>
    %c0_31 = arith.constant 0 : index
    %c0_32 = arith.constant 0 : index
    %c0_33 = arith.constant 0 : index
    %c0_34 = arith.constant 0 : index
    %51 = vector.load %arg26[%c0_31, %c0_32, %c0_33, %c0_34] : memref<2x10x10x32xf32, #tpu.memory_space<vmem>>, vector<2x10x1x32xf32>
    tpu.vector_store %arg26[%c0_31, %c0_32, %c0_33, %c0_34], %50 {strides = array<i32>} : memref<2x10x10x32xf32, #tpu.memory_space<vmem>>, vector<2x10x1x32xf32>,
    %cst_35 = arith.constant 0.000000e+00 : f32
    %52 = vector.broadcast %cst_35 : f32 to vector<2x10x1x32xf32>
    %c0_36 = arith.constant 0 : index
    %c0_37 = arith.constant 0 : index
    %c9_38 = arith.constant 9 : index
    %c0_39 = arith.constant 0 : index
    %53 = vector.load %arg26[%c0_36, %c0_37, %c9_38, %c0_39] : memref<2x10x10x32xf32, #tpu.memory_space<vmem>>, vector<2x10x1x32xf32>
    tpu.vector_store %arg26[%c0_36, %c0_37, %c9_38, %c0_39], %52 {strides = array<i32>} : memref<2x10x10x32xf32, #tpu.memory_space<vmem>>, vector<2x10x1x32xf32>,
    %c0_40 = arith.constant 0 : index
    %c1 = arith.constant 1 : index
    %c1_41 = arith.constant 1 : index
    %c0_42 = arith.constant 0 : index
    %54 = vector.load %arg26[%c0_40, %c1, %c1_41, %c0_42] : memref<2x10x10x32xf32, #tpu.memory_space<vmem>>, vector<2x8x8x32xf32>
    tpu.vector_store %arg26[%c0_40, %c1, %c1_41, %c0_42], %45 {strides = array<i32>} : memref<2x10x10x32xf32, #tpu.memory_space<vmem>>, vector<2x8x8x32xf32>,
    %cst_43 = arith.constant 0.000000e+00 : f32
    %55 = vector.broadcast %cst_43 : f32 to vector<128x64xf32>
    %c0_44 = arith.constant 0 : index
    %c0_45 = arith.constant 0 : index
    %c0_46 = arith.constant 0 : index
    %c0_47 = arith.constant 0 : index
    %56 = vector.load %arg26[%c0_44, %c0_45, %c0_46, %c0_47] : memref<2x10x10x32xf32, #tpu.memory_space<vmem>>, vector<2x8x8x32xf32>
    %57 = vector.shape_cast %56 : vector<2x8x8x32xf32> to vector<128x32xf32>
    %c0_48 = arith.constant 0 : index
    %c0_49 = arith.constant 0 : index
    %c0_50 = arith.constant 0 : index
    %58 = vector.load %arg7[%c0_48, %c0_49, %c0_50] : memref<9x32x64xbf16, #tpu.memory_space<vmem>>, vector<1x32x64xbf16>
    %59 = vector.shape_cast %58 : vector<1x32x64xbf16> to vector<32x64xbf16>
    %60 = arith.truncf %57 : vector<128x32xf32> to vector<128x32xbf16>
    %cst_51 = arith.constant dense<0.000000e+00> : vector<128x64xf32>
    %61 = tpu.matmul %60, %59, %cst_51 {dimension_numbers = #tpu.dot_dimension_numbers<[1], [0], [0], [1], [0, 0, 1, 1], [], []>} : vector<128x32xbf16>, vector<32x64xbf16>, vector<128x64xf32> -> vector<128x64xf32>
    %62 = arith.addf %55, %61 : vector<128x64xf32>
    %c0_52 = arith.constant 0 : index
    %c0_53 = arith.constant 0 : index
    %c1_54 = arith.constant 1 : index
    %c0_55 = arith.constant 0 : index
    %63 = vector.load %arg26[%c0_52, %c0_53, %c1_54, %c0_55] : memref<2x10x10x32xf32, #tpu.memory_space<vmem>>, vector<2x8x8x32xf32>
    %64 = vector.shape_cast %63 : vector<2x8x8x32xf32> to vector<128x32xf32>
    %c1_56 = arith.constant 1 : index
    %c0_57 = arith.constant 0 : index
    %c0_58 = arith.constant 0 : index
    %65 = vector.load %arg7[%c1_56, %c0_57, %c0_58] : memref<9x32x64xbf16, #tpu.memory_space<vmem>>, vector<1x32x64xbf16>
    %66 = vector.shape_cast %65 : vector<1x32x64xbf16> to vector<32x64xbf16>
    %67 = arith.truncf %64 : vector<128x32xf32> to vector<128x32xbf16>
    %cst_59 = arith.constant dense<0.000000e+00> : vector<128x64xf32>
    %68 = tpu.matmul %67, %66, %cst_59 {dimension_numbers = #tpu.dot_dimension_numbers<[1], [0], [0], [1], [0, 0, 1, 1], [], []>} : vector<128x32xbf16>, vector<32x64xbf16>, vector<128x64xf32> -> vector<128x64xf32>
    %69 = arith.addf %62, %68 : vector<128x64xf32>
    %c0_60 = arith.constant 0 : index
    %c0_61 = arith.constant 0 : index
    %c2 = arith.constant 2 : index
    %c0_62 = arith.constant 0 : index
    %70 = vector.load %arg26[%c0_60, %c0_61, %c2, %c0_62] : memref<2x10x10x32xf32, #tpu.memory_space<vmem>>, vector<2x8x8x32xf32>
    %71 = vector.shape_cast %70 : vector<2x8x8x32xf32> to vector<128x32xf32>
    %c2_63 = arith.constant 2 : index
    %c0_64 = arith.constant 0 : index
    %c0_65 = arith.constant 0 : index
    %72 = vector.load %arg7[%c2_63, %c0_64, %c0_65] : memref<9x32x64xbf16, #tpu.memory_space<vmem>>, vector<1x32x64xbf16>
    %73 = vector.shape_cast %72 : vector<1x32x64xbf16> to vector<32x64xbf16>
    %74 = arith.truncf %71 : vector<128x32xf32> to vector<128x32xbf16>
    %cst_66 = arith.constant dense<0.000000e+00> : vector<128x64xf32>
    %75 = tpu.matmul %74, %73, %cst_66 {dimension_numbers = #tpu.dot_dimension_numbers<[1], [0], [0], [1], [0, 0, 1, 1], [], []>} : vector<128x32xbf16>, vector<32x64xbf16>, vector<128x64xf32> -> vector<128x64xf32>
    %76 = arith.addf %69, %75 : vector<128x64xf32>
    %c0_67 = arith.constant 0 : index
    %c1_68 = arith.constant 1 : index
    %c0_69 = arith.constant 0 : index
    %c0_70 = arith.constant 0 : index
    %77 = vector.load %arg26[%c0_67, %c1_68, %c0_69, %c0_70] : memref<2x10x10x32xf32, #tpu.memory_space<vmem>>, vector<2x8x8x32xf32>
    %78 = vector.shape_cast %77 : vector<2x8x8x32xf32> to vector<128x32xf32>
    %c3 = arith.constant 3 : index
    %c0_71 = arith.constant 0 : index
    %c0_72 = arith.constant 0 : index
    %79 = vector.load %arg7[%c3, %c0_71, %c0_72] : memref<9x32x64xbf16, #tpu.memory_space<vmem>>, vector<1x32x64xbf16>
    %80 = vector.shape_cast %79 : vector<1x32x64xbf16> to vector<32x64xbf16>
    %81 = arith.truncf %78 : vector<128x32xf32> to vector<128x32xbf16>
    %cst_73 = arith.constant dense<0.000000e+00> : vector<128x64xf32>
    %82 = tpu.matmul %81, %80, %cst_73 {dimension_numbers = #tpu.dot_dimension_numbers<[1], [0], [0], [1], [0, 0, 1, 1], [], []>} : vector<128x32xbf16>, vector<32x64xbf16>, vector<128x64xf32> -> vector<128x64xf32>
    %83 = arith.addf %76, %82 : vector<128x64xf32>
    %c0_74 = arith.constant 0 : index
    %c1_75 = arith.constant 1 : index
    %c1_76 = arith.constant 1 : index
    %c0_77 = arith.constant 0 : index
    %84 = vector.load %arg26[%c0_74, %c1_75, %c1_76, %c0_77] : memref<2x10x10x32xf32, #tpu.memory_space<vmem>>, vector<2x8x8x32xf32>
    %85 = vector.shape_cast %84 : vector<2x8x8x32xf32> to vector<128x32xf32>
    %c4 = arith.constant 4 : index
    %c0_78 = arith.constant 0 : index
    %c0_79 = arith.constant 0 : index
    %86 = vector.load %arg7[%c4, %c0_78, %c0_79] : memref<9x32x64xbf16, #tpu.memory_space<vmem>>, vector<1x32x64xbf16>
    %87 = vector.shape_cast %86 : vector<1x32x64xbf16> to vector<32x64xbf16>
    %88 = arith.truncf %85 : vector<128x32xf32> to vector<128x32xbf16>
    %cst_80 = arith.constant dense<0.000000e+00> : vector<128x64xf32>
    %89 = tpu.matmul %88, %87, %cst_80 {dimension_numbers = #tpu.dot_dimension_numbers<[1], [0], [0], [1], [0, 0, 1, 1], [], []>} : vector<128x32xbf16>, vector<32x64xbf16>, vector<128x64xf32> -> vector<128x64xf32>
    %90 = arith.addf %83, %89 : vector<128x64xf32>
    %c0_81 = arith.constant 0 : index
    %c1_82 = arith.constant 1 : index
    %c2_83 = arith.constant 2 : index
    %c0_84 = arith.constant 0 : index
    %91 = vector.load %arg26[%c0_81, %c1_82, %c2_83, %c0_84] : memref<2x10x10x32xf32, #tpu.memory_space<vmem>>, vector<2x8x8x32xf32>
    %92 = vector.shape_cast %91 : vector<2x8x8x32xf32> to vector<128x32xf32>
    %c5 = arith.constant 5 : index
    %c0_85 = arith.constant 0 : index
    %c0_86 = arith.constant 0 : index
    %93 = vector.load %arg7[%c5, %c0_85, %c0_86] : memref<9x32x64xbf16, #tpu.memory_space<vmem>>, vector<1x32x64xbf16>
    %94 = vector.shape_cast %93 : vector<1x32x64xbf16> to vector<32x64xbf16>
    %95 = arith.truncf %92 : vector<128x32xf32> to vector<128x32xbf16>
    %cst_87 = arith.constant dense<0.000000e+00> : vector<128x64xf32>
    %96 = tpu.matmul %95, %94, %cst_87 {dimension_numbers = #tpu.dot_dimension_numbers<[1], [0], [0], [1], [0, 0, 1, 1], [], []>} : vector<128x32xbf16>, vector<32x64xbf16>, vector<128x64xf32> -> vector<128x64xf32>
    %97 = arith.addf %90, %96 : vector<128x64xf32>
    %c0_88 = arith.constant 0 : index
    %c2_89 = arith.constant 2 : index
    %c0_90 = arith.constant 0 : index
    %c0_91 = arith.constant 0 : index
    %98 = vector.load %arg26[%c0_88, %c2_89, %c0_90, %c0_91] : memref<2x10x10x32xf32, #tpu.memory_space<vmem>>, vector<2x8x8x32xf32>
    %99 = vector.shape_cast %98 : vector<2x8x8x32xf32> to vector<128x32xf32>
    %c6 = arith.constant 6 : index
    %c0_92 = arith.constant 0 : index
    %c0_93 = arith.constant 0 : index
    %100 = vector.load %arg7[%c6, %c0_92, %c0_93] : memref<9x32x64xbf16, #tpu.memory_space<vmem>>, vector<1x32x64xbf16>
    %101 = vector.shape_cast %100 : vector<1x32x64xbf16> to vector<32x64xbf16>
    %102 = arith.truncf %99 : vector<128x32xf32> to vector<128x32xbf16>
    %cst_94 = arith.constant dense<0.000000e+00> : vector<128x64xf32>
    %103 = tpu.matmul %102, %101, %cst_94 {dimension_numbers = #tpu.dot_dimension_numbers<[1], [0], [0], [1], [0, 0, 1, 1], [], []>} : vector<128x32xbf16>, vector<32x64xbf16>, vector<128x64xf32> -> vector<128x64xf32>
    %104 = arith.addf %97, %103 : vector<128x64xf32>
    %c0_95 = arith.constant 0 : index
    %c2_96 = arith.constant 2 : index
    %c1_97 = arith.constant 1 : index
    %c0_98 = arith.constant 0 : index
    %105 = vector.load %arg26[%c0_95, %c2_96, %c1_97, %c0_98] : memref<2x10x10x32xf32, #tpu.memory_space<vmem>>, vector<2x8x8x32xf32>
    %106 = vector.shape_cast %105 : vector<2x8x8x32xf32> to vector<128x32xf32>
    %c7 = arith.constant 7 : index
    %c0_99 = arith.constant 0 : index
    %c0_100 = arith.constant 0 : index
    %107 = vector.load %arg7[%c7, %c0_99, %c0_100] : memref<9x32x64xbf16, #tpu.memory_space<vmem>>, vector<1x32x64xbf16>
    %108 = vector.shape_cast %107 : vector<1x32x64xbf16> to vector<32x64xbf16>
    %109 = arith.truncf %106 : vector<128x32xf32> to vector<128x32xbf16>
    %cst_101 = arith.constant dense<0.000000e+00> : vector<128x64xf32>
    %110 = tpu.matmul %109, %108, %cst_101 {dimension_numbers = #tpu.dot_dimension_numbers<[1], [0], [0], [1], [0, 0, 1, 1], [], []>} : vector<128x32xbf16>, vector<32x64xbf16>, vector<128x64xf32> -> vector<128x64xf32>
    %111 = arith.addf %104, %110 : vector<128x64xf32>
    %c0_102 = arith.constant 0 : index
    %c2_103 = arith.constant 2 : index
    %c2_104 = arith.constant 2 : index
    %c0_105 = arith.constant 0 : index
    %112 = vector.load %arg26[%c0_102, %c2_103, %c2_104, %c0_105] : memref<2x10x10x32xf32, #tpu.memory_space<vmem>>, vector<2x8x8x32xf32>
    %113 = vector.shape_cast %112 : vector<2x8x8x32xf32> to vector<128x32xf32>
    %c8 = arith.constant 8 : index
    %c0_106 = arith.constant 0 : index
    %c0_107 = arith.constant 0 : index
    %114 = vector.load %arg7[%c8, %c0_106, %c0_107] : memref<9x32x64xbf16, #tpu.memory_space<vmem>>, vector<1x32x64xbf16>
    %115 = vector.shape_cast %114 : vector<1x32x64xbf16> to vector<32x64xbf16>
    %116 = arith.truncf %113 : vector<128x32xf32> to vector<128x32xbf16>
    %cst_108 = arith.constant dense<0.000000e+00> : vector<128x64xf32>
    %117 = tpu.matmul %116, %115, %cst_108 {dimension_numbers = #tpu.dot_dimension_numbers<[1], [0], [0], [1], [0, 0, 1, 1], [], []>} : vector<128x32xbf16>, vector<32x64xbf16>, vector<128x64xf32> -> vector<128x64xf32>
    %118 = arith.addf %111, %117 : vector<128x64xf32>
    %c0_109 = arith.constant 0 : index
    %c0_110 = arith.constant 0 : index
    %119 = vector.load %arg8[%c0_109, %c0_110] : memref<1x64xf32, #tpu.memory_space<vmem>>, vector<1x64xf32>
    %120 = vector.broadcast %119 : vector<1x64xf32> to vector<128x64xf32>
    %121 = arith.addf %118, %120 : vector<128x64xf32>
    %122 = vector.shape_cast %121 : vector<128x64xf32> to vector<2x64x64xf32>
    %123 = vector.shape_cast %14 : vector<2x64xf32> to vector<2x1x64xf32>
    %124 = vector.broadcast %123 : vector<2x1x64xf32> to vector<2x64x64xf32>
    %125 = arith.addf %122, %124 : vector<2x64x64xf32>
    %cst_111 = arith.constant dense<0.000000e+00> : vector<2x64xf32>
    %126 = vector.multi_reduction <add>, %125, %cst_111 [1] : vector<2x64x64xf32> to vector<2x64xf32>
    %c0_112 = arith.constant 0 : index
    %c0_113 = arith.constant 0 : index
    %127 = vector.load %arg13[%c0_112, %c0_113] : memref<64x32xf32, #tpu.memory_space<vmem>>, vector<64x32xf32>
    %cst_114 = arith.constant dense<0.000000e+00> : vector<2x32xf32>
    %128 = tpu.matmul %126, %127, %cst_114 {dimension_numbers = #tpu.dot_dimension_numbers<[1], [0], [0], [1], [0, 0, 1, 1], [], []>, precision = #tpu.contract_precision<fp32>} : vector<2x64xf32>, vector<64x32xf32>, vector<2x32xf32> -> vector<2x32xf32>
    %cst_115 = arith.constant 1.280000e+02 : f32
    %129 = vector.broadcast %cst_115 : f32 to vector<2x32xf32>
    %130 = arith.divf %128, %129 : vector<2x32xf32>
    %c0_116 = arith.constant 0 : index
    %c0_117 = arith.constant 0 : index
    %131 = vector.load %arg14[%c0_116, %c0_117] : memref<32x64xf32, #tpu.memory_space<vmem>>, vector<32x64xf32>
    %cst_118 = arith.constant dense<0.000000e+00> : vector<2x64xf32>
    %132 = tpu.matmul %130, %131, %cst_118 {dimension_numbers = #tpu.dot_dimension_numbers<[1], [0], [0], [1], [0, 0, 1, 1], [], []>, precision = #tpu.contract_precision<fp32>} : vector<2x32xf32>, vector<32x64xf32>, vector<2x64xf32> -> vector<2x64xf32>
    %133 = vector.shape_cast %132 : vector<2x64xf32> to vector<2x1x64xf32>
    %134 = vector.broadcast %133 : vector<2x1x64xf32> to vector<2x64x64xf32>
    %135 = arith.subf %125, %134 : vector<2x64x64xf32>
    %136 = arith.mulf %135, %135 : vector<2x64x64xf32>
    %cst_119 = arith.constant dense<0.000000e+00> : vector<2x64xf32>
    %137 = vector.multi_reduction <add>, %136, %cst_119 [1] : vector<2x64x64xf32> to vector<2x64xf32>
    %c0_120 = arith.constant 0 : index
    %c0_121 = arith.constant 0 : index
    %138 = vector.load %arg13[%c0_120, %c0_121] : memref<64x32xf32, #tpu.memory_space<vmem>>, vector<64x32xf32>
    %cst_122 = arith.constant dense<0.000000e+00> : vector<2x32xf32>
    %139 = tpu.matmul %137, %138, %cst_122 {dimension_numbers = #tpu.dot_dimension_numbers<[1], [0], [0], [1], [0, 0, 1, 1], [], []>, precision = #tpu.contract_precision<fp32>} : vector<2x64xf32>, vector<64x32xf32>, vector<2x32xf32> -> vector<2x32xf32>
    %cst_123 = arith.constant 1.280000e+02 : f32
    %140 = vector.broadcast %cst_123 : f32 to vector<2x32xf32>
    %141 = arith.divf %139, %140 : vector<2x32xf32>
    %cst_124 = arith.constant 9.99999974E-6 : f32
    %142 = vector.broadcast %cst_124 : f32 to vector<2x32xf32>
    %143 = arith.addf %141, %142 : vector<2x32xf32>
    %144 = math.rsqrt %143 : vector<2x32xf32>
    %c0_125 = arith.constant 0 : index
    %c0_126 = arith.constant 0 : index
    %145 = vector.load %arg14[%c0_125, %c0_126] : memref<32x64xf32, #tpu.memory_space<vmem>>, vector<32x64xf32>
    %cst_127 = arith.constant dense<0.000000e+00> : vector<2x64xf32>
    %146 = tpu.matmul %144, %145, %cst_127 {dimension_numbers = #tpu.dot_dimension_numbers<[1], [0], [0], [1], [0, 0, 1, 1], [], []>, precision = #tpu.contract_precision<fp32>} : vector<2x32xf32>, vector<32x64xf32>, vector<2x64xf32> -> vector<2x64xf32>
    %147 = vector.shape_cast %146 : vector<2x64xf32> to vector<2x1x64xf32>
    %148 = vector.broadcast %147 : vector<2x1x64xf32> to vector<2x64x64xf32>
    %149 = arith.mulf %135, %148 : vector<2x64x64xf32>
    %c0_128 = arith.constant 0 : index
    %c0_129 = arith.constant 0 : index
    %150 = vector.load %arg11[%c0_128, %c0_129] : memref<1x64xf32, #tpu.memory_space<vmem>>, vector<1x64xf32>
    %151 = vector.shape_cast %150 : vector<1x64xf32> to vector<1x1x64xf32>
    %152 = vector.broadcast %151 : vector<1x1x64xf32> to vector<2x64x64xf32>
    %153 = arith.mulf %149, %152 : vector<2x64x64xf32>
    %c0_130 = arith.constant 0 : index
    %c0_131 = arith.constant 0 : index
    %154 = vector.load %arg12[%c0_130, %c0_131] : memref<1x64xf32, #tpu.memory_space<vmem>>, vector<1x64xf32>
    %155 = vector.shape_cast %154 : vector<1x64xf32> to vector<1x1x64xf32>
    %156 = vector.broadcast %155 : vector<1x1x64xf32> to vector<2x64x64xf32>
    %157 = arith.addf %153, %156 : vector<2x64x64xf32>
    %158 = arith.negf %157 : vector<2x64x64xf32>
    %159 = math.exp %158 : vector<2x64x64xf32>
    %cst_132 = arith.constant 1.000000e+00 : f32
    %160 = vector.broadcast %cst_132 : f32 to vector<2x64x64xf32>
    %161 = arith.addf %160, %159 : vector<2x64x64xf32>
    %162 = arith.divf %160, %161 : vector<2x64x64xf32>
    %163 = arith.mulf %157, %162 : vector<2x64x64xf32>
    %164 = vector.shape_cast %163 : vector<2x64x64xf32> to vector<2x8x8x64xf32>
    %cst_133 = arith.constant 0.000000e+00 : f32
    %165 = vector.broadcast %cst_133 : f32 to vector<2x1x10x64xf32>
    %c0_134 = arith.constant 0 : index
    %c0_135 = arith.constant 0 : index
    %c0_136 = arith.constant 0 : index
    %c0_137 = arith.constant 0 : index
    %166 = vector.load %arg27[%c0_134, %c0_135, %c0_136, %c0_137] : memref<2x10x10x64xf32, #tpu.memory_space<vmem>>, vector<2x1x10x64xf32>
    tpu.vector_store %arg27[%c0_134, %c0_135, %c0_136, %c0_137], %165 {strides = array<i32>} : memref<2x10x10x64xf32, #tpu.memory_space<vmem>>, vector<2x1x10x64xf32>,
    %cst_138 = arith.constant 0.000000e+00 : f32
    %167 = vector.broadcast %cst_138 : f32 to vector<2x1x10x64xf32>
    %c0_139 = arith.constant 0 : index
    %c9_140 = arith.constant 9 : index
    %c0_141 = arith.constant 0 : index
    %c0_142 = arith.constant 0 : index
    %168 = vector.load %arg27[%c0_139, %c9_140, %c0_141, %c0_142] : memref<2x10x10x64xf32, #tpu.memory_space<vmem>>, vector<2x1x10x64xf32>
    tpu.vector_store %arg27[%c0_139, %c9_140, %c0_141, %c0_142], %167 {strides = array<i32>} : memref<2x10x10x64xf32, #tpu.memory_space<vmem>>, vector<2x1x10x64xf32>,
    %cst_143 = arith.constant 0.000000e+00 : f32
    %169 = vector.broadcast %cst_143 : f32 to vector<2x10x1x64xf32>
    %c0_144 = arith.constant 0 : index
    %c0_145 = arith.constant 0 : index
    %c0_146 = arith.constant 0 : index
    %c0_147 = arith.constant 0 : index
    %170 = vector.load %arg27[%c0_144, %c0_145, %c0_146, %c0_147] : memref<2x10x10x64xf32, #tpu.memory_space<vmem>>, vector<2x10x1x64xf32>
    tpu.vector_store %arg27[%c0_144, %c0_145, %c0_146, %c0_147], %169 {strides = array<i32>} : memref<2x10x10x64xf32, #tpu.memory_space<vmem>>, vector<2x10x1x64xf32>,
    %cst_148 = arith.constant 0.000000e+00 : f32
    %171 = vector.broadcast %cst_148 : f32 to vector<2x10x1x64xf32>
    %c0_149 = arith.constant 0 : index
    %c0_150 = arith.constant 0 : index
    %c9_151 = arith.constant 9 : index
    %c0_152 = arith.constant 0 : index
    %172 = vector.load %arg27[%c0_149, %c0_150, %c9_151, %c0_152] : memref<2x10x10x64xf32, #tpu.memory_space<vmem>>, vector<2x10x1x64xf32>
    tpu.vector_store %arg27[%c0_149, %c0_150, %c9_151, %c0_152], %171 {strides = array<i32>} : memref<2x10x10x64xf32, #tpu.memory_space<vmem>>, vector<2x10x1x64xf32>,
    %c0_153 = arith.constant 0 : index
    %c1_154 = arith.constant 1 : index
    %c1_155 = arith.constant 1 : index
    %c0_156 = arith.constant 0 : index
    %173 = vector.load %arg27[%c0_153, %c1_154, %c1_155, %c0_156] : memref<2x10x10x64xf32, #tpu.memory_space<vmem>>, vector<2x8x8x64xf32>
    tpu.vector_store %arg27[%c0_153, %c1_154, %c1_155, %c0_156], %164 {strides = array<i32>} : memref<2x10x10x64xf32, #tpu.memory_space<vmem>>, vector<2x8x8x64xf32>,
    %cst_157 = arith.constant 0.000000e+00 : f32
    %174 = vector.broadcast %cst_157 : f32 to vector<128x64xf32>
    %c0_158 = arith.constant 0 : index
    %c0_159 = arith.constant 0 : index
    %c0_160 = arith.constant 0 : index
    %c0_161 = arith.constant 0 : index
    %175 = vector.load %arg27[%c0_158, %c0_159, %c0_160, %c0_161] : memref<2x10x10x64xf32, #tpu.memory_space<vmem>>, vector<2x8x8x64xf32>
    %176 = vector.shape_cast %175 : vector<2x8x8x64xf32> to vector<128x64xf32>
    %c0_162 = arith.constant 0 : index
    %c0_163 = arith.constant 0 : index
    %c0_164 = arith.constant 0 : index
    %177 = vector.load %arg15[%c0_162, %c0_163, %c0_164] : memref<9x64x64xbf16, #tpu.memory_space<vmem>>, vector<1x64x64xbf16>
    %178 = vector.shape_cast %177 : vector<1x64x64xbf16> to vector<64x64xbf16>
    %179 = arith.truncf %176 : vector<128x64xf32> to vector<128x64xbf16>
    %cst_165 = arith.constant dense<0.000000e+00> : vector<128x64xf32>
    %180 = tpu.matmul %179, %178, %cst_165 {dimension_numbers = #tpu.dot_dimension_numbers<[1], [0], [0], [1], [0, 0, 1, 1], [], []>} : vector<128x64xbf16>, vector<64x64xbf16>, vector<128x64xf32> -> vector<128x64xf32>
    %181 = arith.addf %174, %180 : vector<128x64xf32>
    %c0_166 = arith.constant 0 : index
    %c0_167 = arith.constant 0 : index
    %c1_168 = arith.constant 1 : index
    %c0_169 = arith.constant 0 : index
    %182 = vector.load %arg27[%c0_166, %c0_167, %c1_168, %c0_169] : memref<2x10x10x64xf32, #tpu.memory_space<vmem>>, vector<2x8x8x64xf32>
    %183 = vector.shape_cast %182 : vector<2x8x8x64xf32> to vector<128x64xf32>
    %c1_170 = arith.constant 1 : index
    %c0_171 = arith.constant 0 : index
    %c0_172 = arith.constant 0 : index
    %184 = vector.load %arg15[%c1_170, %c0_171, %c0_172] : memref<9x64x64xbf16, #tpu.memory_space<vmem>>, vector<1x64x64xbf16>
    %185 = vector.shape_cast %184 : vector<1x64x64xbf16> to vector<64x64xbf16>
    %186 = arith.truncf %183 : vector<128x64xf32> to vector<128x64xbf16>
    %cst_173 = arith.constant dense<0.000000e+00> : vector<128x64xf32>
    %187 = tpu.matmul %186, %185, %cst_173 {dimension_numbers = #tpu.dot_dimension_numbers<[1], [0], [0], [1], [0, 0, 1, 1], [], []>} : vector<128x64xbf16>, vector<64x64xbf16>, vector<128x64xf32> -> vector<128x64xf32>
    %188 = arith.addf %181, %187 : vector<128x64xf32>
    %c0_174 = arith.constant 0 : index
    %c0_175 = arith.constant 0 : index
    %c2_176 = arith.constant 2 : index
    %c0_177 = arith.constant 0 : index
    %189 = vector.load %arg27[%c0_174, %c0_175, %c2_176, %c0_177] : memref<2x10x10x64xf32, #tpu.memory_space<vmem>>, vector<2x8x8x64xf32>
    %190 = vector.shape_cast %189 : vector<2x8x8x64xf32> to vector<128x64xf32>
    %c2_178 = arith.constant 2 : index
    %c0_179 = arith.constant 0 : index
    %c0_180 = arith.constant 0 : index
    %191 = vector.load %arg15[%c2_178, %c0_179, %c0_180] : memref<9x64x64xbf16, #tpu.memory_space<vmem>>, vector<1x64x64xbf16>
    %192 = vector.shape_cast %191 : vector<1x64x64xbf16> to vector<64x64xbf16>
    %193 = arith.truncf %190 : vector<128x64xf32> to vector<128x64xbf16>
    %cst_181 = arith.constant dense<0.000000e+00> : vector<128x64xf32>
    %194 = tpu.matmul %193, %192, %cst_181 {dimension_numbers = #tpu.dot_dimension_numbers<[1], [0], [0], [1], [0, 0, 1, 1], [], []>} : vector<128x64xbf16>, vector<64x64xbf16>, vector<128x64xf32> -> vector<128x64xf32>
    %195 = arith.addf %188, %194 : vector<128x64xf32>
    %c0_182 = arith.constant 0 : index
    %c1_183 = arith.constant 1 : index
    %c0_184 = arith.constant 0 : index
    %c0_185 = arith.constant 0 : index
    %196 = vector.load %arg27[%c0_182, %c1_183, %c0_184, %c0_185] : memref<2x10x10x64xf32, #tpu.memory_space<vmem>>, vector<2x8x8x64xf32>
    %197 = vector.shape_cast %196 : vector<2x8x8x64xf32> to vector<128x64xf32>
    %c3_186 = arith.constant 3 : index
    %c0_187 = arith.constant 0 : index
    %c0_188 = arith.constant 0 : index
    %198 = vector.load %arg15[%c3_186, %c0_187, %c0_188] : memref<9x64x64xbf16, #tpu.memory_space<vmem>>, vector<1x64x64xbf16>
    %199 = vector.shape_cast %198 : vector<1x64x64xbf16> to vector<64x64xbf16>
    %200 = arith.truncf %197 : vector<128x64xf32> to vector<128x64xbf16>
    %cst_189 = arith.constant dense<0.000000e+00> : vector<128x64xf32>
    %201 = tpu.matmul %200, %199, %cst_189 {dimension_numbers = #tpu.dot_dimension_numbers<[1], [0], [0], [1], [0, 0, 1, 1], [], []>} : vector<128x64xbf16>, vector<64x64xbf16>, vector<128x64xf32> -> vector<128x64xf32>
    %202 = arith.addf %195, %201 : vector<128x64xf32>
    %c0_190 = arith.constant 0 : index
    %c1_191 = arith.constant 1 : index
    %c1_192 = arith.constant 1 : index
    %c0_193 = arith.constant 0 : index
    %203 = vector.load %arg27[%c0_190, %c1_191, %c1_192, %c0_193] : memref<2x10x10x64xf32, #tpu.memory_space<vmem>>, vector<2x8x8x64xf32>
    %204 = vector.shape_cast %203 : vector<2x8x8x64xf32> to vector<128x64xf32>
    %c4_194 = arith.constant 4 : index
    %c0_195 = arith.constant 0 : index
    %c0_196 = arith.constant 0 : index
    %205 = vector.load %arg15[%c4_194, %c0_195, %c0_196] : memref<9x64x64xbf16, #tpu.memory_space<vmem>>, vector<1x64x64xbf16>
    %206 = vector.shape_cast %205 : vector<1x64x64xbf16> to vector<64x64xbf16>
    %207 = arith.truncf %204 : vector<128x64xf32> to vector<128x64xbf16>
    %cst_197 = arith.constant dense<0.000000e+00> : vector<128x64xf32>
    %208 = tpu.matmul %207, %206, %cst_197 {dimension_numbers = #tpu.dot_dimension_numbers<[1], [0], [0], [1], [0, 0, 1, 1], [], []>} : vector<128x64xbf16>, vector<64x64xbf16>, vector<128x64xf32> -> vector<128x64xf32>
    %209 = arith.addf %202, %208 : vector<128x64xf32>
    %c0_198 = arith.constant 0 : index
    %c1_199 = arith.constant 1 : index
    %c2_200 = arith.constant 2 : index
    %c0_201 = arith.constant 0 : index
    %210 = vector.load %arg27[%c0_198, %c1_199, %c2_200, %c0_201] : memref<2x10x10x64xf32, #tpu.memory_space<vmem>>, vector<2x8x8x64xf32>
    %211 = vector.shape_cast %210 : vector<2x8x8x64xf32> to vector<128x64xf32>
    %c5_202 = arith.constant 5 : index
    %c0_203 = arith.constant 0 : index
    %c0_204 = arith.constant 0 : index
    %212 = vector.load %arg15[%c5_202, %c0_203, %c0_204] : memref<9x64x64xbf16, #tpu.memory_space<vmem>>, vector<1x64x64xbf16>
    %213 = vector.shape_cast %212 : vector<1x64x64xbf16> to vector<64x64xbf16>
    %214 = arith.truncf %211 : vector<128x64xf32> to vector<128x64xbf16>
    %cst_205 = arith.constant dense<0.000000e+00> : vector<128x64xf32>
    %215 = tpu.matmul %214, %213, %cst_205 {dimension_numbers = #tpu.dot_dimension_numbers<[1], [0], [0], [1], [0, 0, 1, 1], [], []>} : vector<128x64xbf16>, vector<64x64xbf16>, vector<128x64xf32> -> vector<128x64xf32>
    %216 = arith.addf %209, %215 : vector<128x64xf32>
    %c0_206 = arith.constant 0 : index
    %c2_207 = arith.constant 2 : index
    %c0_208 = arith.constant 0 : index
    %c0_209 = arith.constant 0 : index
    %217 = vector.load %arg27[%c0_206, %c2_207, %c0_208, %c0_209] : memref<2x10x10x64xf32, #tpu.memory_space<vmem>>, vector<2x8x8x64xf32>
    %218 = vector.shape_cast %217 : vector<2x8x8x64xf32> to vector<128x64xf32>
    %c6_210 = arith.constant 6 : index
    %c0_211 = arith.constant 0 : index
    %c0_212 = arith.constant 0 : index
    %219 = vector.load %arg15[%c6_210, %c0_211, %c0_212] : memref<9x64x64xbf16, #tpu.memory_space<vmem>>, vector<1x64x64xbf16>
    %220 = vector.shape_cast %219 : vector<1x64x64xbf16> to vector<64x64xbf16>
    %221 = arith.truncf %218 : vector<128x64xf32> to vector<128x64xbf16>
    %cst_213 = arith.constant dense<0.000000e+00> : vector<128x64xf32>
    %222 = tpu.matmul %221, %220, %cst_213 {dimension_numbers = #tpu.dot_dimension_numbers<[1], [0], [0], [1], [0, 0, 1, 1], [], []>} : vector<128x64xbf16>, vector<64x64xbf16>, vector<128x64xf32> -> vector<128x64xf32>
    %223 = arith.addf %216, %222 : vector<128x64xf32>
    %c0_214 = arith.constant 0 : index
    %c2_215 = arith.constant 2 : index
    %c1_216 = arith.constant 1 : index
    %c0_217 = arith.constant 0 : index
    %224 = vector.load %arg27[%c0_214, %c2_215, %c1_216, %c0_217] : memref<2x10x10x64xf32, #tpu.memory_space<vmem>>, vector<2x8x8x64xf32>
    %225 = vector.shape_cast %224 : vector<2x8x8x64xf32> to vector<128x64xf32>
    %c7_218 = arith.constant 7 : index
    %c0_219 = arith.constant 0 : index
    %c0_220 = arith.constant 0 : index
    %226 = vector.load %arg15[%c7_218, %c0_219, %c0_220] : memref<9x64x64xbf16, #tpu.memory_space<vmem>>, vector<1x64x64xbf16>
    %227 = vector.shape_cast %226 : vector<1x64x64xbf16> to vector<64x64xbf16>
    %228 = arith.truncf %225 : vector<128x64xf32> to vector<128x64xbf16>
    %cst_221 = arith.constant dense<0.000000e+00> : vector<128x64xf32>
    %229 = tpu.matmul %228, %227, %cst_221 {dimension_numbers = #tpu.dot_dimension_numbers<[1], [0], [0], [1], [0, 0, 1, 1], [], []>} : vector<128x64xbf16>, vector<64x64xbf16>, vector<128x64xf32> -> vector<128x64xf32>
    %230 = arith.addf %223, %229 : vector<128x64xf32>
    %c0_222 = arith.constant 0 : index
    %c2_223 = arith.constant 2 : index
    %c2_224 = arith.constant 2 : index
    %c0_225 = arith.constant 0 : index
    %231 = vector.load %arg27[%c0_222, %c2_223, %c2_224, %c0_225] : memref<2x10x10x64xf32, #tpu.memory_space<vmem>>, vector<2x8x8x64xf32>
    %232 = vector.shape_cast %231 : vector<2x8x8x64xf32> to vector<128x64xf32>
    %c8_226 = arith.constant 8 : index
    %c0_227 = arith.constant 0 : index
    %c0_228 = arith.constant 0 : index
    %233 = vector.load %arg15[%c8_226, %c0_227, %c0_228] : memref<9x64x64xbf16, #tpu.memory_space<vmem>>, vector<1x64x64xbf16>
    %234 = vector.shape_cast %233 : vector<1x64x64xbf16> to vector<64x64xbf16>
    %235 = arith.truncf %232 : vector<128x64xf32> to vector<128x64xbf16>
    %cst_229 = arith.constant dense<0.000000e+00> : vector<128x64xf32>
    %236 = tpu.matmul %235, %234, %cst_229 {dimension_numbers = #tpu.dot_dimension_numbers<[1], [0], [0], [1], [0, 0, 1, 1], [], []>} : vector<128x64xbf16>, vector<64x64xbf16>, vector<128x64xf32> -> vector<128x64xf32>
    %237 = arith.addf %230, %236 : vector<128x64xf32>
    %c0_230 = arith.constant 0 : index
    %c0_231 = arith.constant 0 : index
    %238 = vector.load %arg16[%c0_230, %c0_231] : memref<1x64xf32, #tpu.memory_space<vmem>>, vector<1x64xf32>
    %239 = vector.broadcast %238 : vector<1x64xf32> to vector<128x64xf32>
    %240 = arith.addf %237, %239 : vector<128x64xf32>
    %241 = vector.shape_cast %1 : vector<2x64x32xf32> to vector<128x32xf32>
    %c0_232 = arith.constant 0 : index
    %c0_233 = arith.constant 0 : index
    %242 = vector.load %arg17[%c0_232, %c0_233] : memref<32x64xbf16, #tpu.memory_space<vmem>>, vector<32x64xbf16>
    %243 = arith.truncf %241 : vector<128x32xf32> to vector<128x32xbf16>
    %cst_234 = arith.constant dense<0.000000e+00> : vector<128x64xf32>
    %244 = tpu.matmul %243, %242, %cst_234 {dimension_numbers = #tpu.dot_dimension_numbers<[1], [0], [0], [1], [0, 0, 1, 1], [], []>} : vector<128x32xbf16>, vector<32x64xbf16>, vector<128x64xf32> -> vector<128x64xf32>
    %c0_235 = arith.constant 0 : index
    %c0_236 = arith.constant 0 : index
    %245 = vector.load %arg18[%c0_235, %c0_236] : memref<1x64xf32, #tpu.memory_space<vmem>>, vector<1x64xf32>
    %246 = vector.broadcast %245 : vector<1x64xf32> to vector<128x64xf32>
    %247 = arith.addf %244, %246 : vector<128x64xf32>
    %248 = arith.addf %240, %247 : vector<128x64xf32>
    %249 = vector.shape_cast %248 : vector<128x64xf32> to vector<2x64x64xf32>
    %cst_237 = arith.constant dense<0.000000e+00> : vector<2x64xf32>
    %250 = vector.multi_reduction <add>, %249, %cst_237 [1] : vector<2x64x64xf32> to vector<2x64xf32>
    %c0_238 = arith.constant 0 : index
    %c0_239 = arith.constant 0 : index
    %251 = vector.load %arg13[%c0_238, %c0_239] : memref<64x32xf32, #tpu.memory_space<vmem>>, vector<64x32xf32>
    %cst_240 = arith.constant dense<0.000000e+00> : vector<2x32xf32>
    %252 = tpu.matmul %250, %251, %cst_240 {dimension_numbers = #tpu.dot_dimension_numbers<[1], [0], [0], [1], [0, 0, 1, 1], [], []>, precision = #tpu.contract_precision<fp32>} : vector<2x64xf32>, vector<64x32xf32>, vector<2x32xf32> -> vector<2x32xf32>
    %cst_241 = arith.constant 1.280000e+02 : f32
    %253 = vector.broadcast %cst_241 : f32 to vector<2x32xf32>
    %254 = arith.divf %252, %253 : vector<2x32xf32>
    %c0_242 = arith.constant 0 : index
    %c0_243 = arith.constant 0 : index
    %255 = vector.load %arg14[%c0_242, %c0_243] : memref<32x64xf32, #tpu.memory_space<vmem>>, vector<32x64xf32>
    %cst_244 = arith.constant dense<0.000000e+00> : vector<2x64xf32>
    %256 = tpu.matmul %254, %255, %cst_244 {dimension_numbers = #tpu.dot_dimension_numbers<[1], [0], [0], [1], [0, 0, 1, 1], [], []>, precision = #tpu.contract_precision<fp32>} : vector<2x32xf32>, vector<32x64xf32>, vector<2x64xf32> -> vector<2x64xf32>
    %257 = vector.shape_cast %256 : vector<2x64xf32> to vector<2x1x64xf32>
    %258 = vector.broadcast %257 : vector<2x1x64xf32> to vector<2x64x64xf32>
    %259 = arith.subf %249, %258 : vector<2x64x64xf32>
    %260 = arith.mulf %259, %259 : vector<2x64x64xf32>
    %cst_245 = arith.constant dense<0.000000e+00> : vector<2x64xf32>
    %261 = vector.multi_reduction <add>, %260, %cst_245 [1] : vector<2x64x64xf32> to vector<2x64xf32>
    %c0_246 = arith.constant 0 : index
    %c0_247 = arith.constant 0 : index
    %262 = vector.load %arg13[%c0_246, %c0_247] : memref<64x32xf32, #tpu.memory_space<vmem>>, vector<64x32xf32>
    %cst_248 = arith.constant dense<0.000000e+00> : vector<2x32xf32>
    %263 = tpu.matmul %261, %262, %cst_248 {dimension_numbers = #tpu.dot_dimension_numbers<[1], [0], [0], [1], [0, 0, 1, 1], [], []>, precision = #tpu.contract_precision<fp32>} : vector<2x64xf32>, vector<64x32xf32>, vector<2x32xf32> -> vector<2x32xf32>
    %cst_249 = arith.constant 1.280000e+02 : f32
    %264 = vector.broadcast %cst_249 : f32 to vector<2x32xf32>
    %265 = arith.divf %263, %264 : vector<2x32xf32>
    %cst_250 = arith.constant 9.99999974E-6 : f32
    %266 = vector.broadcast %cst_250 : f32 to vector<2x32xf32>
    %267 = arith.addf %265, %266 : vector<2x32xf32>
    %268 = math.rsqrt %267 : vector<2x32xf32>
    %c0_251 = arith.constant 0 : index
    %c0_252 = arith.constant 0 : index
    %269 = vector.load %arg14[%c0_251, %c0_252] : memref<32x64xf32, #tpu.memory_space<vmem>>, vector<32x64xf32>
    %cst_253 = arith.constant dense<0.000000e+00> : vector<2x64xf32>
    %270 = tpu.matmul %268, %269, %cst_253 {dimension_numbers = #tpu.dot_dimension_numbers<[1], [0], [0], [1], [0, 0, 1, 1], [], []>, precision = #tpu.contract_precision<fp32>} : vector<2x32xf32>, vector<32x64xf32>, vector<2x64xf32> -> vector<2x64xf32>
    %271 = vector.shape_cast %270 : vector<2x64xf32> to vector<2x1x64xf32>
    %272 = vector.broadcast %271 : vector<2x1x64xf32> to vector<2x64x64xf32>
    %273 = arith.mulf %259, %272 : vector<2x64x64xf32>
    %c0_254 = arith.constant 0 : index
    %c0_255 = arith.constant 0 : index
    %274 = vector.load %arg19[%c0_254, %c0_255] : memref<1x64xf32, #tpu.memory_space<vmem>>, vector<1x64xf32>
    %275 = vector.shape_cast %274 : vector<1x64xf32> to vector<1x1x64xf32>
    %276 = vector.broadcast %275 : vector<1x1x64xf32> to vector<2x64x64xf32>
    %277 = arith.mulf %273, %276 : vector<2x64x64xf32>
    %c0_256 = arith.constant 0 : index
    %c0_257 = arith.constant 0 : index
    %278 = vector.load %arg20[%c0_256, %c0_257] : memref<1x64xf32, #tpu.memory_space<vmem>>, vector<1x64xf32>
    %279 = vector.shape_cast %278 : vector<1x64xf32> to vector<1x1x64xf32>
    %280 = vector.broadcast %279 : vector<1x1x64xf32> to vector<2x64x64xf32>
    %281 = arith.addf %277, %280 : vector<2x64x64xf32>
    %282 = vector.shape_cast %281 : vector<2x64x64xf32> to vector<128x64xf32>
    %c0_258 = arith.constant 0 : index
    %c0_259 = arith.constant 0 : index
    %283 = vector.load %arg21[%c0_258, %c0_259] : memref<64x192xbf16, #tpu.memory_space<vmem>>, vector<64x192xbf16>
    %284 = arith.truncf %282 : vector<128x64xf32> to vector<128x64xbf16>
    %cst_260 = arith.constant dense<0.000000e+00> : vector<128x192xf32>
    %285 = tpu.matmul %284, %283, %cst_260 {dimension_numbers = #tpu.dot_dimension_numbers<[1], [0], [0], [1], [0, 0, 1, 1], [], []>} : vector<128x64xbf16>, vector<64x192xbf16>, vector<128x192xf32> -> vector<128x192xf32>
    %c0_261 = arith.constant 0 : index
    %c0_262 = arith.constant 0 : index
    %286 = vector.load %arg22[%c0_261, %c0_262] : memref<1x192xf32, #tpu.memory_space<vmem>>, vector<1x192xf32>
    %287 = vector.broadcast %286 : vector<1x192xf32> to vector<128x192xf32>
    %288 = arith.addf %285, %287 : vector<128x192xf32>
    %289 = vector.extract_strided_slice %288 {offsets = [0, 0], sizes = [128, 64], strides = [1, 1]} : vector<128x192xf32> to vector<128x64xf32>
    %cst_263 = arith.constant 1.250000e-01 : f32
    %290 = vector.broadcast %cst_263 : f32 to vector<128x64xf32>
    %291 = arith.mulf %289, %290 : vector<128x64xf32>
    %292 = vector.shape_cast %291 : vector<128x64xf32> to vector<2x64x64xf32>
    %293 = vector.extract_strided_slice %288 {offsets = [0, 64], sizes = [128, 64], strides = [1, 1]} : vector<128x192xf32> to vector<128x64xf32>
    %294 = vector.shape_cast %293 : vector<128x64xf32> to vector<2x64x64xf32>
    %295 = vector.extract_strided_slice %288 {offsets = [0, 128], sizes = [128, 64], strides = [1, 1]} : vector<128x192xf32> to vector<128x64xf32>
    %296 = vector.shape_cast %295 : vector<128x64xf32> to vector<2x64x64xf32>
    %297 = arith.truncf %292 : vector<2x64x64xf32> to vector<2x64x64xbf16>
    %298 = arith.truncf %294 : vector<2x64x64xf32> to vector<2x64x64xbf16>
    "tpu.trace_start"() <{level = 10 : i32, message = "bqc,bkc->bqk"}> : () -> ()
    %cst_264 = arith.constant dense<0.000000e+00> : vector<2x64x64xf32>
    %299 = tpu.matmul %297, %298, %cst_264 {dimension_numbers = #tpu.dot_dimension_numbers<[2], [2], [1], [1], [0, 0, 0, 1, 1, 1], [0], [0]>} : vector<2x64x64xbf16>, vector<2x64x64xbf16>, vector<2x64x64xf32> -> vector<2x64x64xf32>
    "tpu.trace_stop"() : () -> ()
    %cst_265 = arith.constant dense<0xFF800000> : vector<2x64xf32>
    %300 = vector.multi_reduction <maximumf>, %299, %cst_265 [2] : vector<2x64x64xf32> to vector<2x64xf32>
    %301 = vector.shape_cast %300 : vector<2x64xf32> to vector<2x64x1xf32>
    %302 = vector.broadcast %301 : vector<2x64x1xf32> to vector<2x64x64xf32>
    %303 = arith.subf %299, %302 : vector<2x64x64xf32>
    %304 = math.exp %303 : vector<2x64x64xf32>
    %cst_266 = arith.constant dense<0.000000e+00> : vector<2x64xf32>
    %305 = vector.multi_reduction <add>, %304, %cst_266 [2] : vector<2x64x64xf32> to vector<2x64xf32>
    %306 = vector.shape_cast %305 : vector<2x64xf32> to vector<2x64x1xf32>
    %307 = tpu.reciprocal %306 {approx = true} : vector<2x64x1xf32> -> vector<2x64x1xf32>
    %308 = vector.broadcast %307 : vector<2x64x1xf32> to vector<2x64x64xf32>
    %309 = arith.mulf %304, %308 : vector<2x64x64xf32>
    %310 = arith.truncf %309 : vector<2x64x64xf32> to vector<2x64x64xbf16>
    %311 = arith.truncf %296 : vector<2x64x64xf32> to vector<2x64x64xbf16>
    "tpu.trace_start"() <{level = 10 : i32, message = "bqk,bkc->bqc"}> : () -> ()
    %cst_267 = arith.constant dense<0.000000e+00> : vector<2x64x64xf32>
    %312 = tpu.matmul %310, %311, %cst_267 {dimension_numbers = #tpu.dot_dimension_numbers<[2], [1], [1], [2], [0, 0, 0, 1, 1, 2], [0], [0]>} : vector<2x64x64xbf16>, vector<2x64x64xbf16>, vector<2x64x64xf32> -> vector<2x64x64xf32>
    "tpu.trace_stop"() : () -> ()
    %313 = vector.shape_cast %312 : vector<2x64x64xf32> to vector<128x64xf32>
    %c0_268 = arith.constant 0 : index
    %c0_269 = arith.constant 0 : index
    %314 = vector.load %arg23[%c0_268, %c0_269] : memref<64x64xbf16, #tpu.memory_space<vmem>>, vector<64x64xbf16>
    %315 = arith.truncf %313 : vector<128x64xf32> to vector<128x64xbf16>
    %cst_270 = arith.constant dense<0.000000e+00> : vector<128x64xf32>
    %316 = tpu.matmul %315, %314, %cst_270 {dimension_numbers = #tpu.dot_dimension_numbers<[1], [0], [0], [1], [0, 0, 1, 1], [], []>} : vector<128x64xbf16>, vector<64x64xbf16>, vector<128x64xf32> -> vector<128x64xf32>
    %317 = arith.addf %248, %316 : vector<128x64xf32>
    %c0_271 = arith.constant 0 : index
    %c0_272 = arith.constant 0 : index
    %318 = vector.load %arg24[%c0_271, %c0_272] : memref<1x64xf32, #tpu.memory_space<vmem>>, vector<1x64xf32>
    %319 = vector.broadcast %318 : vector<1x64xf32> to vector<128x64xf32>
    %320 = arith.addf %317, %319 : vector<128x64xf32>
    %321 = vector.shape_cast %320 : vector<128x64xf32> to vector<2x8x8x64xf32>
    %c0_273 = arith.constant 0 : index
    %c0_274 = arith.constant 0 : index
    %c0_275 = arith.constant 0 : index
    %c0_276 = arith.constant 0 : index
    %322 = vector.load %arg25[%c0_273, %c0_274, %c0_275, %c0_276] : memref<2x8x8x64xf32, #tpu.memory_space<vmem>>, vector<2x8x8x64xf32>
    tpu.vector_store %arg25[%c0_273, %c0_274, %c0_275, %c0_276], %321 {strides = array<i32>} : memref<2x8x8x64xf32, #tpu.memory_space<vmem>>, vector<2x8x8x64xf32>,
    return
  }
  func.func @transform_0(%arg0: i32) -> (i32, i32, i32, i32) {
    %c0_i32 = arith.constant 0 : i32
    %c0_i32_0 = arith.constant 0 : i32
    %c0_i32_1 = arith.constant 0 : i32
    %c0_i32_2 = arith.constant 0 : i32
    return %arg0, %c0_i32, %c0_i32_0, %c0_i32_1 : i32, i32, i32, i32
  }
  func.func @transform_1(%arg0: i32) -> (i32, i32, i32) {
    %c0_i32 = arith.constant 0 : i32
    %c0_i32_0 = arith.constant 0 : i32
    %c0_i32_1 = arith.constant 0 : i32
    return %arg0, %c0_i32, %c0_i32_0 : i32, i32, i32
  }
  func.func @transform_2(%arg0: i32) -> (i32, i32) {
    %c0_i32 = arith.constant 0 : i32
    %c0_i32_0 = arith.constant 0 : i32
    %c0_i32_1 = arith.constant 0 : i32
    return %c0_i32, %c0_i32_0 : i32, i32
  }
  func.func @transform_3(%arg0: i32) -> (i32, i32) {
    %c0_i32 = arith.constant 0 : i32
    %c0_i32_0 = arith.constant 0 : i32
    %c0_i32_1 = arith.constant 0 : i32
    return %c0_i32, %c0_i32_0 : i32, i32
  }
  func.func @transform_4(%arg0: i32) -> (i32, i32) {
    %c0_i32 = arith.constant 0 : i32
    %c0_i32_0 = arith.constant 0 : i32
    %c0_i32_1 = arith.constant 0 : i32
    return %c0_i32, %c0_i32_0 : i32, i32
  }
  func.func @transform_5(%arg0: i32) -> (i32, i32) {
    %c0_i32 = arith.constant 0 : i32
    %c0_i32_0 = arith.constant 0 : i32
    %c0_i32_1 = arith.constant 0 : i32
    return %c0_i32, %c0_i32_0 : i32, i32
  }
  func.func @transform_6(%arg0: i32) -> (i32, i32, i32) {
    %c0_i32 = arith.constant 0 : i32
    %c0_i32_0 = arith.constant 0 : i32
    %c0_i32_1 = arith.constant 0 : i32
    %c0_i32_2 = arith.constant 0 : i32
    return %c0_i32, %c0_i32_0, %c0_i32_1 : i32, i32, i32
  }
  func.func @transform_7(%arg0: i32) -> (i32, i32) {
    %c0_i32 = arith.constant 0 : i32
    %c0_i32_0 = arith.constant 0 : i32
    %c0_i32_1 = arith.constant 0 : i32
    return %c0_i32, %c0_i32_0 : i32, i32
  }
  func.func @transform_8(%arg0: i32) -> (i32, i32) {
    %c0_i32 = arith.constant 0 : i32
    %c0_i32_0 = arith.constant 0 : i32
    %c0_i32_1 = arith.constant 0 : i32
    return %c0_i32, %c0_i32_0 : i32, i32
  }
  func.func @transform_9(%arg0: i32) -> (i32, i32) {
    %c0_i32 = arith.constant 0 : i32
    %c0_i32_0 = arith.constant 0 : i32
    %c0_i32_1 = arith.constant 0 : i32
    return %c0_i32, %c0_i32_0 : i32, i32
  }
  func.func @transform_10(%arg0: i32) -> (i32, i32) {
    %c0_i32 = arith.constant 0 : i32
    %c0_i32_0 = arith.constant 0 : i32
    %c0_i32_1 = arith.constant 0 : i32
    return %c0_i32, %c0_i32_0 : i32, i32
  }
  func.func @transform_11(%arg0: i32) -> (i32, i32) {
    %c0_i32 = arith.constant 0 : i32
    %c0_i32_0 = arith.constant 0 : i32
    %c0_i32_1 = arith.constant 0 : i32
    return %c0_i32, %c0_i32_0 : i32, i32
  }
  func.func @transform_12(%arg0: i32) -> (i32, i32) {
    %c0_i32 = arith.constant 0 : i32
    %c0_i32_0 = arith.constant 0 : i32
    %c0_i32_1 = arith.constant 0 : i32
    return %c0_i32, %c0_i32_0 : i32, i32
  }
  func.func @transform_13(%arg0: i32) -> (i32, i32) {
    %c0_i32 = arith.constant 0 : i32
    %c0_i32_0 = arith.constant 0 : i32
    %c0_i32_1 = arith.constant 0 : i32
    return %c0_i32, %c0_i32_0 : i32, i32
  }
  func.func @transform_14(%arg0: i32) -> (i32, i32, i32) {
    %c0_i32 = arith.constant 0 : i32
    %c0_i32_0 = arith.constant 0 : i32
    %c0_i32_1 = arith.constant 0 : i32
    %c0_i32_2 = arith.constant 0 : i32
    return %c0_i32, %c0_i32_0, %c0_i32_1 : i32, i32, i32
  }
  func.func @transform_15(%arg0: i32) -> (i32, i32) {
    %c0_i32 = arith.constant 0 : i32
    %c0_i32_0 = arith.constant 0 : i32
    %c0_i32_1 = arith.constant 0 : i32
    return %c0_i32, %c0_i32_0 : i32, i32
  }
  func.func @transform_16(%arg0: i32) -> (i32, i32) {
    %c0_i32 = arith.constant 0 : i32
    %c0_i32_0 = arith.constant 0 : i32
    %c0_i32_1 = arith.constant 0 : i32
    return %c0_i32, %c0_i32_0 : i32, i32
  }
  func.func @transform_17(%arg0: i32) -> (i32, i32) {
    %c0_i32 = arith.constant 0 : i32
    %c0_i32_0 = arith.constant 0 : i32
    %c0_i32_1 = arith.constant 0 : i32
    return %c0_i32, %c0_i32_0 : i32, i32
  }
  func.func @transform_18(%arg0: i32) -> (i32, i32) {
    %c0_i32 = arith.constant 0 : i32
    %c0_i32_0 = arith.constant 0 : i32
    %c0_i32_1 = arith.constant 0 : i32
    return %c0_i32, %c0_i32_0 : i32, i32
  }
  func.func @transform_19(%arg0: i32) -> (i32, i32) {
    %c0_i32 = arith.constant 0 : i32
    %c0_i32_0 = arith.constant 0 : i32
    %c0_i32_1 = arith.constant 0 : i32
    return %c0_i32, %c0_i32_0 : i32, i32
  }
  func.func @transform_20(%arg0: i32) -> (i32, i32) {
    %c0_i32 = arith.constant 0 : i32
    %c0_i32_0 = arith.constant 0 : i32
    %c0_i32_1 = arith.constant 0 : i32
    return %c0_i32, %c0_i32_0 : i32, i32
  }
  func.func @transform_21(%arg0: i32) -> (i32, i32) {
    %c0_i32 = arith.constant 0 : i32
    %c0_i32_0 = arith.constant 0 : i32
    %c0_i32_1 = arith.constant 0 : i32
    return %c0_i32, %c0_i32_0 : i32, i32
  }
  func.func @transform_22(%arg0: i32) -> (i32, i32) {
    %c0_i32 = arith.constant 0 : i32
    %c0_i32_0 = arith.constant 0 : i32
    %c0_i32_1 = arith.constant 0 : i32
    return %c0_i32, %c0_i32_0 : i32, i32
  }
  func.func @transform_23(%arg0: i32) -> (i32, i32) {
    %c0_i32 = arith.constant 0 : i32
    %c0_i32_0 = arith.constant 0 : i32
    %c0_i32_1 = arith.constant 0 : i32
    return %c0_i32, %c0_i32_0 : i32, i32
  }
  func.func @transform_24(%arg0: i32) -> (i32, i32, i32, i32) {
    %c0_i32 = arith.constant 0 : i32
    %c0_i32_0 = arith.constant 0 : i32
    %c0_i32_1 = arith.constant 0 : i32
    %c0_i32_2 = arith.constant 0 : i32
    return %arg0, %c0_i32, %c0_i32_0, %c0_i32_1 : i32, i32, i32, i32
  }
}

</mosaic_0001>

<bundles_post_ra>
// kernel: residual_block_forward.1
= control target key start
LH: loop header
LB: loop body
LE: loop exit
PB: predicated region body
PF: predicated region fallthrough
CT: control target
= control target key end

     0   :  { %s18048_s0 = inlined_call_operand.vmem [shape: f32[4,8,8,32], index: 0, kind: input, shape index: {}]   ;;  %s18049_s1 = inlined_call_operand.vmem [shape: f32[4,1,16], index: 1, kind: input, shape index: {}]   ;;  %s18050_s2 = inlined_call_operand.vmem [shape: f32[1,32], index: 2, kind: input, shape index: {}]   ;;  %s18051_s3 = inlined_call_operand.vmem [shape: f32[1,32], index: 3, kind: input, shape index: {}]   ;;  %s18052_s4 = inlined_call_operand.vmem [shape: f32[32,32], index: 4, kind: input, shape index: {}]   ;;  %s18053_s5 = inlined_call_operand.vmem [shape: f32[32,32], index: 5, kind: input, shape index: {}]   ;;  %s18054_s6 = inlined_call_operand.vmem [shape: bf16[9,32,64], index: 6, kind: input, shape index: {}]   ;;  %s18055_s7 = inlined_call_operand.vmem [shape: f32[1,64], index: 7, kind: input, shape index: {}]   ;;  %s18056_s8 = inlined_call_operand.vmem [shape: f32[16,64], index: 8, kind: input, shape index: {}]   ;;  %s18057_s9 = inlined_call_operand.vmem [shape: f32[1,64], index: 9, kind: input, shape index: {}]   ;;  %s18058_s10 = inlined_call_operand.vmem [shape: f32[1,64], index: 10, kind: input, shape index: {}]   ;;  %s18059_s11 = inlined_call_operand.vmem [shape: f32[1,64], index: 11, kind: input, shape index: {}]   ;;  %s18060_s12 = inlined_call_operand.vmem [shape: f32[64,32], index: 12, kind: input, shape index: {}]   ;;  %s18061_s13 = inlined_call_operand.vmem [shape: f32[32,64], index: 13, kind: input, shape index: {}]   ;;  %s18062_s14 = inlined_call_operand.vmem [shape: bf16[9,64,64], index: 14, kind: input, shape index: {}]   ;;  %s18063_s15 = inlined_call_operand.vmem [shape: f32[1,64], index: 15, kind: input, shape index: {}]   ;;  %s18064_s16 = inlined_call_operand.vmem [shape: bf16[32,64], index: 16, kind: input, shape index: {}]   ;;  %s18065_s17 = inlined_call_operand.vmem [shape: f32[1,64], index: 17, kind: input, shape index: {}]   ;;  %s18066_s18 = inlined_call_operand.vmem [shape: f32[1,64], index: 18, kind: input, shape index: {}]   ;;  %s18067_s19 = inlined_call_operand.vmem [shape: f32[1,64], index: 19, kind: input, shape index: {}]   ;;  %s18068_s20 = inlined_call_operand.vmem [shape: bf16[64,192], index: 20, kind: input, shape index: {}]   ;;  %s18069_s21 = inlined_call_operand.vmem [shape: f32[1,192], index: 21, kind: input, shape index: {}]   ;;  %s18070_s22 = inlined_call_operand.vmem [shape: bf16[64,64], index: 22, kind: input, shape index: {}]   ;;  %s18071_s23 = inlined_call_operand.vmem [shape: f32[1,64], index: 23, kind: input, shape index: {}]   ;;  %s18072_s24 = inlined_call_operand.hbm [shape: f32[4,8,8,64], index: 24, kind: output, shape index: {}]  }
   0x1   :  { %18227 = sst [smem:[#allocation63_spill]] %s18048_s0 }
   0x2   :  { %18228 = sst [smem:[#allocation64_spill]] %s18049_s1 }
   0x3   :  { %18229 = sst [smem:[#allocation65_spill]] %s18050_s2 }
   0x4   :  { %18230 = sst [smem:[#allocation66_spill]] %s18051_s3 }
   0x5   :  { %18231 = sst [smem:[#allocation67_spill]] %s18054_s6 }
   0x6   :  { %18232 = sst [smem:[#allocation68_spill]] %s18055_s7 }
   0x7   :  { %18233 = sst [smem:[#allocation69_spill]] %s18056_s8 }
   0x8   :  { %18234 = sst [smem:[#allocation70_spill]] %s18057_s9 }
   0x9   :  { %18235 = sst [smem:[#allocation71_spill]] %s18058_s10 }
   0xa   :  { %29 = vsyncpa [#allocation5], 0 }
   0xb   :  { %31 = vsyncpa [#allocation5 + $0x1], 0  ;;  %s13939_s26 = smov 0   ;;  %s13941_s5 = smov 0  }
   0xc   :  { %s13943_s27 = smov 0   ;;  %s13945_s28 = smov 0  }
   0xd LB: > { %18236 = sst [smem:[#allocation7_spill]] %s13800_s27  ;;  %s13960_s6 = sadd.s32 4294967295, %s13804_s28   ;;  %s13804_s28 = sphi %s13945_s28, %s18531_s28   ;;  %s13800_s27 = sphi %s13943_s27, %s18536_s27   ;;  %s13796_s5 = sphi %s13941_s5, %s18535_s5   ;;  %s13792_s26 = sphi %s13939_s26, %s18534_s26  }
   0xe   : > { %s11107_s2 = sadd.s32 4294967294, %s13804_s28   ;;  %s13964_s29 = sadd.s32 1, %s13804_s28  }
   0xf   : > { %18237 = sst [smem:[#allocation8_spill]] %s13964_s29  ;;  %s558_s0 = sadd.s32 1, %s13800_s27 }
  0x10   : > { %s555_s7 = ssub.s32 %s13804_s28, %s13964_s29  ;;  %p568_p0 = scmp.ne.s32.totalorder %s13800_s27, %s13796_s5 }
  0x11   : > { %p556_p1 = scmp.eq.s32.totalorder %s555_s7, 0  ;;  %p569_p2 = scmp.eq.s32.totalorder %s13960_s6, 1 }
  0x12   : > { %p574_p3 = scmp.ne.s32.totalorder %s13796_s5, %s13792_s26  ;;  %p575_p4 = scmp.eq.s32.totalorder %s11107_s2, 1 }
  0x13   : > { %s13975_s30 = scalar_select %p556_p1, %s13800_s27, %s558_s0  }
  0x14   : > { %p13977_p5 = por %p569_p2, %p568_p0  ;;  %p13981_p6 = por %p575_p4, %p574_p3 }
  0x15   : > { %18238 = sst [smem:[#allocation9_spill]] %s13975_s30  ;;  %p11110_p7 = scmp.ge.s32.totalorder %s13804_s28, 1 }
  0x16   : > { %s18240_s25 = scalar_select %p13981_p6, 1, 0 }
  0x17   : > { %p677_p8 = scmp.lt.s32.totalorder %s13804_s28, 3 }
  0x18   : > { %18241 = sst [smem:[#allocation10_spill]] %s18240_s25 }
  0x19   : > { %p678_p9 = pnand %p11110_p7, %p677_p8 }
  0x1b   : > { %681 = sbr.rel (%p678_p9) target bundleno = 4362 (0x110a), region = 116 }
  0x20   : > { %s18242_s4 = sld [smem:[#allocation69_spill]]  ;;  %s11112_s7 = sshll.u32 %s13960_s6, 1  ;;  %v18080_v2 = vmov 0.0   ;;  %vm13807_vm0 = vmmov 0   ;;  %vm1282_vm1 = vcmask 261120   ;;  %vm1583_vm2 = vcmask 254976  }
  0x21   : > { %12124 = vmatprep.subr.mxu0 %v18080_v2  ;;  %12131 = vmatprep.subr.mxu1 %v18080_v2  ;;  %p749_p10 = scmp.lt.s32.totalorder %s11112_s7, 3  ;;  %1582 = vst.msk [vmem:[#allocation2] sm:$0xff] %vm1282_vm1, %v18080_v2  ;;  %1585 = vst.msk [vmem:[#allocation2 + $0xa0] sm:$0xff] %vm1282_vm1, %v18080_v2  ;;  %s18243_s0 = sld [smem:[#allocation64_spill]]  ;;  %vm1592_vm3 = vcmask 253952   ;;  %vm820_vm4 = vcmask 130048  }
  0x22   : > { %12128 = vmatprep.mubr.msk.f32.mxu0 %vm13807_vm0, %v18080_v2  ;;  %12135 = vmatprep.mubr.msk.f32.mxu1 %vm13807_vm0, %v18080_v2  ;;  %1588 = vst.msk [vmem:[#allocation2 + $0x90] sm:$0xff] %vm1282_vm1, %v18080_v2  ;;  %1590 = vst.msk [vmem:[#allocation2 + $0x130] sm:$0xff] %vm1282_vm1, %v18080_v2  ;;  %s18244_s29 = sld [smem:[#allocation63_spill]]  ;;  %vm3292_vm5 = vcmask 523264   ;;  %vm3345_vm6 = vcmask 1041409   ;;  %vm5728_vm7 = vcmask 517120  }
  0x23   : > { %s18538_s7 = smov (!%p749_p10, %s11112_s7), 3  ;;  %1584 = vst.msk [vmem:[#allocation2 + $0x8] sm:$0x3] %vm1583_vm2, %v18080_v2  ;;  %1586 = vst.msk [vmem:[#allocation2 + $0xa8] sm:$0x3] %vm1583_vm2, %v18080_v2  ;;  %s18247_s30 = sld [smem:[#allocation67_spill]] }
  0x24   : > { %s11515_s8 = sshll.u32 %s18538_s7, 6  ;;  %1589 = vst.msk [vmem:[#allocation2 + $0x98] sm:$0x3] %vm1583_vm2, %v18080_v2  ;;  %1591 = vst.msk [vmem:[#allocation2 + $0x138] sm:$0x3] %vm1583_vm2, %v18080_v2  ;;  %s18249_s1 = sld [smem:[#allocation66_spill]] }
  0x25   : > { %1593 = vst.msk [vmem:[#allocation2] sm:$0x1] %vm1592_vm3, %v18080_v2  ;;  %1594 = vst.msk [vmem:[#allocation2 + $0x10] sm:$0x1] %vm1592_vm3, %v18080_v2  ;;  %s18255_s9 = sld [smem:[#allocation70_spill]]  ;;  %vm5737_vm8 = vcmask 516096  }
  0x26   : > { %v795_v0 = vld [vmem:[%s18242_s4 + $0x8] sm:$0xff]  ;;  %v794_v1 = vld [vmem:[%s18242_s4] sm:$0xff]  ;;  %1595 = vst.msk [vmem:[#allocation2 + $0x20] sm:$0x1] %vm1592_vm3, %v18080_v2  ;;  %1596 = vst.msk [vmem:[#allocation2 + $0x30] sm:$0x1] %vm1592_vm3, %v18080_v2 }
  0x27   : > { %v13996_v3 = vand.u32 4294901760, %v795_v0  ;;  %v13998_v4 = vand.u32 4294901760, %v794_v1  ;;  %s758_s4 = scalar_lea.vmem %s18243_s0, %s18538_s7  ;;  %1597 = vst.msk [vmem:[#allocation2 + $0x40] sm:$0x1] %vm1592_vm3, %v18080_v2  ;;  %1598 = vst.msk [vmem:[#allocation2 + $0x50] sm:$0x1] %vm1592_vm3, %v18080_v2 }
  0x28   : > { %s14033_s25 = scalar_lea.vmem %s18244_s29, %s11515_s8  ;;  %v14035_v9 = vld [vmem:[%s758_s4] sm:$0x1]  ;;  %v14037_v10 = vld [vmem:[%s758_s4 + $0x1] sm:$0x1]  ;;  %1599 = vst.msk [vmem:[#allocation2 + $0x60] sm:$0x1] %vm1592_vm3, %v18080_v2 }
  0x29   : > { %12125 = vmatpush3.msra.mxu0 %v13996_v3  ;;  %v14006_v5 = vsub.f32 %v795_v0, %v13996_v3  ;;  %v14009_v6 = vsub.f32 %v794_v1, %v13998_v4  ;;  %v11116_v13 = vmul.f32 -1.442695, %v14035_v9  ;;  %v11117_v14 = vmul.f32 -1.442695, %v14037_v10  ;;  %v14049_v15 = vld [vmem:[%s14033_s25] sm:$0xff]  ;;  %v14052_v16 = vld [vmem:[%s14033_s25 + $0x8] sm:$0xff] }
  0x2a   : > { %12126 = vmatprep.subr.mxu0 %v18080_v2  ;;  %v14055_v17 = vld [vmem:[%s14033_s25 + $0x10] sm:$0xff]  ;;  %v14058_v18 = vld [vmem:[%s14033_s25 + $0x18] sm:$0xff]  ;;  %v14061_v19 = vld [vmem:[%s14033_s25 + $0x20] sm:$0xff]  ;;  %v1283_v20 = vsel %vm1282_vm1, %v14049_v15, 0.0  ;;  %v1284_v21 = vsel %vm1282_vm1, %v14052_v16, 0.0  ;;  %s18248_s4 = sld [smem:[#allocation65_spill]] }
  0x2b   : > { %v931_v7 = vand.u32 4294901760, %v14006_v5  ;;  %12127 = vmatpush3.msra.mxu0 %v13998_v4  ;;  %v938_v8 = vand.u32 4294901760, %v14009_v6  ;;  %13520 = vpow2.f32 %v11116_v13  ;;  %v14068_v24 = vld [vmem:[%s14033_s25 + $0x28] sm:$0xff]  ;;  %v14071_v25 = vld [vmem:[%s14033_s25 + $0x30] sm:$0xff]  ;;  %v14074_v26 = vld [vmem:[%s14033_s25 + $0x38] sm:$0xff]  ;;  %v1285_v27 = vadd.f32 %v1284_v21, %v1283_v20  ;;  %s18298_s2 = sld [smem:[#allocation68_spill]] }
  0x2c   : > { %12138 = vmatprep.subr.mxu0 %v18080_v2  ;;  %13522 = vpow2.f32 %v11117_v14  ;;  %v1286_v28 = vsel %vm1282_vm1, %v14055_v17, 0.0  ;;  %v1288_v29 = vsel %vm1282_vm1, %v14058_v18, 0.0  ;;  %v14081_v30 = vld [vmem:[%s14033_s25 + $0x40] sm:$0xff]  ;;  %v14084_v31 = vld [vmem:[%s14033_s25 + $0x48] sm:$0xff]  ;;  %v14087_v32 = vld [vmem:[%s14033_s25 + $0x50] sm:$0xff]  ;;  %v1290_v34 = vsel %vm1282_vm1, %v14061_v19, 0.0 }
  0x2d   : > { %v932_v11 = vsub.f32 %v14006_v5, %v931_v7  ;;  %v939_v12 = vsub.f32 %v14009_v6, %v938_v8  ;;  %v1287_v33 = vadd.f32 %v1286_v28, %v1285_v27  ;;  %v1292_v35 = vsel %vm1282_vm1, %v14068_v24, 0.0  ;;  %v14094_v36 = vld [vmem:[%s14033_s25 + $0x58] sm:$0xff]  ;;  %v14097_v37 = vld [vmem:[%s14033_s25 + $0x60] sm:$0xff]  ;;  %v14100_v38 = vld [vmem:[%s14033_s25 + $0x68] sm:$0xff]  ;;  %1600 = vst.msk [vmem:[#allocation2 + $0x70] sm:$0x1] %vm1592_vm3, %v18080_v2 }
  0x2e   : > { %v1294_v39 = vsel %vm1282_vm1, %v14071_v25, 0.0  ;;  %v14106_v40 = vld [vmem:[%s14033_s25 + $0x70] sm:$0xff]  ;;  %v1304_v41 = vsel %vm1282_vm1, %v14081_v30, 0.0  ;;  %v1305_v42 = vsel %vm1282_vm1, %v14084_v31, 0.0  ;;  %v1307_v43 = vsel %vm1282_vm1, %v14087_v32, 0.0  ;;  %v14126_v53 = vld [vmem:[%s14033_s25 + $0x78] sm:$0xff] }
  0x2f   : > { %v933_v22 = vand.u32 4294901760, %v932_v11  ;;  %v940_v23 = vand.u32 4294901760, %v939_v12  ;;  %v1289_v44 = vadd.f32 %v1288_v29, %v1287_v33  ;;  %v1296_v45 = vsel %vm1282_vm1, %v14074_v26, 0.0  ;;  %1601 = vst.msk [vmem:[#allocation2 + $0x80] sm:$0x1] %vm1592_vm3, %v18080_v2  ;;  %s18376_s10 = sld [smem:[#allocation71_spill]] }
  0x30   : > { %v1306_v46 = vadd.f32 %v1305_v42, %v1304_v41  ;;  %v1309_v47 = vsel %vm1282_vm1, %v14094_v36, 0.0  ;;  %v1311_v48 = vsel %vm1282_vm1, %v14097_v37, 0.0  ;;  %v1313_v49 = vsel %vm1282_vm1, %v14100_v38, 0.0  ;;  %1602 = vst.msk [vmem:[#allocation2 + $0x90] sm:$0x1] %vm1592_vm3, %v18080_v2  ;;  %s13810_s29 = smov 64  }
  0x31   : > { %12132 = vmatpush3.msra.mxu1 %v933_v22  ;;  %v1315_v50 = vsel %vm1282_vm1, %v14106_v40, 0.0  ;;  %v1291_v51 = vadd.f32 %v1290_v34, %v1289_v44  ;;  %v1317_v60 = vsel %vm1282_vm1, %v14126_v53, 0.0  ;;  %v809_v14 = vlaneseq  ;;  %1603 = vst.msk [vmem:[#allocation2 + $0xa0] sm:$0x1] %vm1592_vm3, %v18080_v2  ;;  %1604 = vst.msk [vmem:[#allocation2 + $0xb0] sm:$0x1] %vm1592_vm3, %v18080_v2 }
  0x32   : > { %12133 = vmatprep.subr.mxu1 %v18080_v2  ;;  %v1308_v52 = vadd.f32 %v1307_v43, %v1306_v46  ;;  %v13808_v22 = vmov 1966171168   ;;  %1605 = vst.msk [vmem:[#allocation2 + $0xc0] sm:$0x1] %vm1592_vm3, %v18080_v2  ;;  %1606 = vst.msk [vmem:[#allocation2 + $0xd0] sm:$0x1] %vm1592_vm3, %v18080_v2 }
  0x33   : > { %12134 = vmatpush3.msra.mxu1 %v940_v23  ;;  %v1293_v54 = vadd.f32 %v1292_v35, %v1291_v51  ;;  %v807_v23 = vunpack.c.l.s4 %v13808_v22  ;;  %v14130_v29 = vshrl.u32 %v809_v14, 7  ;;  %1607 = vst.msk [vmem:[#allocation2 + $0xe0] sm:$0x1] %vm1592_vm3, %v18080_v2  ;;  %1608 = vst.msk [vmem:[#allocation2 + $0xf0] sm:$0x1] %vm1592_vm3, %v18080_v2  ;;  %s745_s27 = sand.u32 1, %s13796_s5  }
  0x34   : > { %12145 = vmatprep.subr.mxu1 %v18080_v2  ;;  %v1310_v55 = vadd.f32 %v1309_v47, %v1308_v52  ;;  %1609 = vst.msk [vmem:[#allocation2 + $0x100] sm:$0x1] %vm1592_vm3, %v18080_v2  ;;  %1610 = vst.msk [vmem:[#allocation2 + $0x110] sm:$0x1] %vm1592_vm3, %v18080_v2 }
  0x35   : > { %v1295_v56 = vadd.f32 %v1294_v39, %v1293_v54  ;;  %18245 = vst [vmem:[#allocation11_spill] sm:$0xff] %v14130_v29  ;;  %1611 = vst.msk [vmem:[#allocation2 + $0x120] sm:$0x1] %vm1592_vm3, %v18080_v2  ;;  %v808_v35 = vunpack.c.0.s8 %v807_v23 }
  0x36   : > { %v1312_v57 = vadd.f32 %v1311_v48, %v1310_v55  ;;  %1612 = vst.msk [vmem:[#allocation2 + $0x130] sm:$0x1] %vm1592_vm3, %v18080_v2  ;;  %1613 = vst.msk [vmem:[#allocation2 + $0x9] sm:$0x1] %vm1592_vm3, %v18080_v2 }
  0x37   : > { %v1297_v58 = vadd.f32 %v1296_v45, %v1295_v56  ;;  %1614 = vst.msk [vmem:[#allocation2 + $0x19] sm:$0x1] %vm1592_vm3, %v18080_v2  ;;  %1615 = vst.msk [vmem:[#allocation2 + $0x29] sm:$0x1] %vm1592_vm3, %v18080_v2  ;;  %v14213_v43 = vsub.s32 %v808_v35, %v14130_v29 }
  0x38   : > { %v1314_v59 = vadd.f32 %v1313_v49, %v1312_v57  ;;  %v13521_v61 = vpop.eup %13520  ;;  %1616 = vst.msk [vmem:[#allocation2 + $0x39] sm:$0x1] %vm1592_vm3, %v18080_v2  ;;  %1617 = vst.msk [vmem:[#allocation2 + $0x49] sm:$0x1] %vm1592_vm3, %v18080_v2 }
  0x39   : > { %v13523_v62 = vpop.eup %13522  ;;  %v786_v63 = vadd.f32 1.0, %v13521_v61  ;;  %v1298_v0 = vrot.slane %v1297_v58, 4  ;;  %1618 = vst.msk [vmem:[#allocation2 + $0x59] sm:$0x1] %vm1592_vm3, %v18080_v2  ;;  %1619 = vst.msk [vmem:[#allocation2 + $0x69] sm:$0x1] %vm1592_vm3, %v18080_v2 }
  0x3a   : > { %v1316_v1 = vadd.f32 %v1315_v50, %v1314_v59  ;;  %v787_v11 = vadd.f32 1.0, %v13523_v62  ;;  %1620 = vst.msk [vmem:[#allocation2 + $0x79] sm:$0x1] %vm1592_vm3, %v18080_v2  ;;  %1621 = vst.msk [vmem:[#allocation2 + $0x89] sm:$0x1] %vm1592_vm3, %v18080_v2 }
  0x3b   : > { %13524 = vrcp.f32 %v786_v63  ;;  %v1299_v12 = vadd.f32 %v1298_v0, %v1297_v58  ;;  %1622 = vst.msk [vmem:[#allocation2 + $0x99] sm:$0x1] %vm1592_vm3, %v18080_v2  ;;  %1623 = vst.msk [vmem:[#allocation2 + $0xa9] sm:$0x1] %vm1592_vm3, %v18080_v2 }
  0x3c   : > { %v1318_v13 = vadd.f32 %v1317_v60, %v1316_v1  ;;  %13526 = vrcp.f32 %v787_v11  ;;  %1624 = vst.msk [vmem:[#allocation2 + $0xb9] sm:$0x1] %vm1592_vm3, %v18080_v2  ;;  %1625 = vst.msk [vmem:[#allocation2 + $0xc9] sm:$0x1] %vm1592_vm3, %v18080_v2 }
  0x3d   : > { %v1300_v20 = vrot.slane %v1299_v12, 2  ;;  %1626 = vst.msk [vmem:[#allocation2 + $0xd9] sm:$0x1] %vm1592_vm3, %v18080_v2  ;;  %1627 = vst.msk [vmem:[#allocation2 + $0xe9] sm:$0x1] %vm1592_vm3, %v18080_v2 }
  0x3e   : > { %v1319_v21 = vrot.slane %v1318_v13, 4  ;;  %1628 = vst.msk [vmem:[#allocation2 + $0xf9] sm:$0x1] %vm1592_vm3, %v18080_v2  ;;  %1629 = vst.msk [vmem:[#allocation2 + $0x109] sm:$0x1] %vm1592_vm3, %v18080_v2 }
  0x3f   : > { %v1301_v27 = vadd.f32 %v1300_v20, %v1299_v12  ;;  %1630 = vst.msk [vmem:[#allocation2 + $0x119] sm:$0x1] %vm1592_vm3, %v18080_v2  ;;  %1631 = vst.msk [vmem:[#allocation2 + $0x129] sm:$0x1] %vm1592_vm3, %v18080_v2 }
  0x40   : > { %v1320_v28 = vadd.f32 %v1319_v21, %v1318_v13  ;;  %1632 = vst.msk [vmem:[#allocation2 + $0x139] sm:$0x1] %vm1592_vm3, %v18080_v2  ;;  %18246 = vst [vmem:[#allocation12_spill] sm:$0xff] %v14213_v43 }
  0x41   : > { %v1302_v33 = vrot.slane %v1301_v27, 1 }
  0x42   : > { %v1321_v34 = vrot.slane %v1320_v28, 2 }
  0x43   : > { %v1303_v39 = vadd.f32 %v1302_v33, %v1301_v27 }
  0x44   : > { %v1322_v41 = vadd.f32 %v1321_v34, %v1320_v28 }
  0x45   : > { %v1326_v42 = vmul.f32 0.015625, %v1303_v39 }
  0x47   : > { %v14216_v44 = vsub.f32 %v14049_v15, %v1326_v42  ;;  %v14219_v45 = vsub.f32 %v14052_v16, %v1326_v42  ;;  %v14222_v46 = vsub.f32 %v14055_v17, %v1326_v42  ;;  %v14225_v47 = vsub.f32 %v14058_v18, %v1326_v42 }
  0x48   : > { %v13525_v48 = vpop.eup %13524  ;;  %v14228_v49 = vsub.f32 %v14061_v19, %v1326_v42  ;;  %v14231_v50 = vsub.f32 %v14068_v24, %v1326_v42  ;;  %v14234_v51 = vsub.f32 %v14071_v25, %v1326_v42  ;;  %v1323_v15 = vrot.slane %v1322_v41, 1 }
  0x49   : > { %v13527_v52 = vpop.eup %13526  ;;  %v792_v16 = vmul.f32 %v13525_v48, %v14035_v9  ;;  %v1344_v17 = vmul.f32 %v14216_v44, %v14216_v44  ;;  %v1345_v18 = vmul.f32 %v14219_v45, %v14219_v45  ;;  %v1346_v19 = vmul.f32 %v14222_v46, %v14222_v46 }
  0x4a   : > { %v793_v54 = vmul.f32 %v13527_v52, %v14037_v10  ;;  %v1347_v24 = vmul.f32 %v14225_v47, %v14225_v47  ;;  %v1348_v25 = vmul.f32 %v14228_v49, %v14228_v49  ;;  %v1349_v9 = vmul.f32 %v14231_v50, %v14231_v50 }
  0x4b   : > { %v1350_v55 = vmul.f32 %v14234_v51, %v14234_v51  ;;  %v1360_v56 = vsel %vm1282_vm1, %v1344_v17, 0.0  ;;  %v1361_v57 = vsel %vm1282_vm1, %v1345_v18, 0.0  ;;  %v14255_v59 = vsub.f32 %v14074_v26, %v1326_v42 }
  0x4c   : > { %v805_v58 = vcombine.low %v792_v16, %v793_v54  ;;  %v1362_v10 = vadd.f32 %v1361_v57, %v1360_v56  ;;  %v1363_v60 = vsel %vm1282_vm1, %v1346_v19, 0.0  ;;  %v1365_v61 = vsel %vm1282_vm1, %v1347_v24, 0.0  ;;  %v13448_v57 = vld [vmem:[%s18247_s30 + $0x18] sm:$0xff]  }
  0x4d   : > { %v1367_v62 = vsel %vm1282_vm1, %v1348_v25, 0.0  ;;  %v1369_v63 = vsel %vm1282_vm1, %v1349_v9, 0.0  ;;  %v1371_v0 = vsel %vm1282_vm1, %v1350_v55, 0.0  ;;  %v1324_v12 = vadd.f32 %v1323_v15, %v1322_v41 }
  0x4e   : > { %v812_v1 = vrot.slane %v805_v58, %v14213_v43  ;;  %v1364_v11 = vadd.f32 %v1363_v60, %v1362_v10  ;;  %v1351_v26 = vmul.f32 %v14255_v59, %v14255_v59  ;;  %v13449_v60 = vld [vmem:[%s18247_s30 + $0x10] sm:$0xff]  }
  0x4f   : > { %v1327_v20 = vmul.f32 0.015625, %v1324_v12 }
  0x50   : > { %v819_v13 = vrot.slane %v812_v1, %v14213_v43  ;;  %v1366_v14 = vadd.f32 %v1365_v61, %v1364_v11  ;;  %v1373_v41 = vsel %vm1282_vm1, %v1351_v26, 0.0 }
  0x51   : > { %v14268_v23 = vsub.f32 %v14081_v30, %v1327_v20  ;;  %v14271_v27 = vsub.f32 %v14084_v31, %v1327_v20  ;;  %v14276_v33 = vsub.f32 %v14087_v32, %v1327_v20  ;;  %v14279_v34 = vsub.f32 %v14094_v36, %v1327_v20 }
  0x52   : > { %v821_v21 = vsel %vm820_vm4, %v819_v13, 0  ;;  %v1368_v22 = vadd.f32 %v1367_v62, %v1366_v14  ;;  %v14282_v35 = vsub.f32 %v14097_v37, %v1327_v20  ;;  %v14297_v42 = vsub.f32 %v14100_v38, %v1327_v20  ;;  %v14351_v14 = vld [vmem:[%s18247_s30 + $0x8] sm:$0xff]  }
  0x53   : > { %v14273_v28 = vand.u32 4294901760, %v821_v21  ;;  %v1352_v31 = vmul.f32 %v14268_v23, %v14268_v23  ;;  %v1353_v32 = vmul.f32 %v14271_v27, %v14271_v27  ;;  %v1354_v36 = vmul.f32 %v14276_v33, %v14276_v33 }
  0x54   : > { %v1370_v39 = vadd.f32 %v1369_v63, %v1368_v22  ;;  %v1355_v48 = vmul.f32 %v14279_v34, %v14279_v34  ;;  %v14303_v52 = vsub.f32 %v14106_v40, %v1327_v20  ;;  %v1356_v16 = vmul.f32 %v14282_v35, %v14282_v35 }
  0x55   : > { %v891_v30 = vsub.f32 %v821_v21, %v14273_v28  ;;  %12136 = vmatmul.mubr.f32.vlgmr.msra.gmra.mxu1 %v14273_v28  ;;  %v1381_v18 = vsel %vm1282_vm1, %v1352_v31, 0.0  ;;  %v1382_v38 = vsel %vm1282_vm1, %v1353_v32, 0.0  ;;  %v1384_v19 = vsel %vm1282_vm1, %v1354_v36, 0.0 }
  0x56   : > { %12146 = vmatpush3.msra.mxu1 %v13996_v3  ;;  %12149 = vmatprep.mubr.msk.f32.mxu1 %vm13807_vm0, %v18080_v2  ;;  %v1372_v37 = vadd.f32 %v1371_v0, %v1370_v39  ;;  %v1383_v24 = vadd.f32 %v1382_v38, %v1381_v18  ;;  %v14316_v25 = vsub.f32 %v14126_v53, %v1327_v20  ;;  %v1386_v55 = vsel %vm1282_vm1, %v1355_v48, 0.0  ;;  %v14361_v39 = vld [vmem:[%s18247_s30 + $0x28] sm:$0xff]   ;;  %v14367_v48 = vld [vmem:[%s18248_s4] ss:$0 sm:$0xff]  ;;  %s13811_s4 = smov [#allocation4]  }
  0x57   : > { %v892_v15 = vand.u32 4294901760, %v891_v30  ;;  %12147 = vmatprep.subr.mxu1 %v18080_v2  ;;  %v1357_v9 = vmul.f32 %v14297_v42, %v14297_v42  ;;  %v1358_v53 = vmul.f32 %v14303_v52, %v14303_v52  ;;  %v1388_v10 = vsel %vm1282_vm1, %v1356_v16, 0.0  ;;  %v14376_v38 = vld [vmem:[%s18249_s1] ss:$0 sm:$0xff]  ;;  %s13748_s7 = sshll.u32 %s13811_s4, 4  ;;  %s13749_s7 = int_to_ptr.vmem [resolvable:$false] %s13748_s7 }
  0x58   : > { %12148 = vmatpush3.msra.mxu1 %v13998_v4  ;;  %v1374_v17 = vadd.f32 %v1373_v41, %v1372_v37  ;;  %v1359_v62 = vmul.f32 %v14316_v25, %v14316_v25 }
  0x59   : > { %v893_v54 = vsub.f32 %v891_v30, %v892_v15  ;;  %12150 = vmatmul.mubr.f32.vlgmr.msra.gmra.mxu1 %v892_v15  ;;  %12159 = vmatprep.subr.mxu1 %v18080_v2  ;;  %v1390_v63 = vsel %vm1282_vm1, %v1357_v9, 0.0  ;;  %v1392_v11 = vsel %vm1282_vm1, %v1358_v53, 0.0 }
  0x5a   : > { %12160 = vmatpush3.msra.mxu1 %v13996_v3  ;;  %12163 = vmatprep.mubr.msk.f32.mxu1 %vm13807_vm0, %v18080_v2  ;;  %v1375_v40 = vrot.slane %v1374_v17, 4  ;;  %v1385_v3 = vadd.f32 %v1384_v19, %v1383_v24  ;;  %v1394_v26 = vsel %vm1282_vm1, %v1359_v62, 0.0 }
  0x5b   : > { %v894_v56 = vand.u32 4294901760, %v893_v54  ;;  %12161 = vmatprep.subr.mxu1 %v18080_v2 }
  0x5c   : > { %12162 = vmatpush3.msra.mxu1 %v13998_v4  ;;  %v1376_v58 = vadd.f32 %v1375_v40, %v1374_v17  ;;  %v1387_v61 = vadd.f32 %v1386_v55, %v1385_v3 }
  0x5d   : > { %12129 = vmatmul.mubr.f32.vlgmr.msra.gmra.mxu0 %v894_v56  ;;  %12164 = vmatmul.mubr.f32.vlgmr.msra.gmra.mxu1 %v14273_v28 }
  0x5e   : > { %12139 = vmatpush3.msra.mxu0 %v14006_v5  ;;  %12142 = vmatprep.mubr.msk.f32.mxu0 %vm13807_vm0, %v18080_v2  ;;  %v1377_v4 = vrot.slane %v1376_v58, 2  ;;  %v1389_v0 = vadd.f32 %v1388_v10, %v1387_v61 }
  0x5f   : > { %12140 = vmatprep.subr.mxu0 %v18080_v2  ;;  %13390 = vmatprep.subr.bf16.mxu1 %v13448_v57 }
  0x60   : > { %12141 = vmatpush3.msra.mxu0 %v14009_v6  ;;  %13392 = vmatpush3.bf16.msra.mxu1 %v13448_v57  ;;  %v1378_v1 = vadd.f32 %v1377_v4, %v1376_v58  ;;  %v1391_v12 = vadd.f32 %v1390_v63, %v1389_v0 }
  0x61   : > { %12143 = vmatmul.mubr.f32.vlgmr.msra.gmra.mxu0 %v891_v30  ;;  %12152 = vmatprep.subr.mxu0 %v18080_v2 }
  0x62   : > { %12153 = vmatpush3.msra.mxu0 %v931_v7  ;;  %12156 = vmatprep.mubr.msk.f32.mxu0 %vm13807_vm0, %v18080_v2  ;;  %v1379_v13 = vrot.slane %v1378_v1, 1  ;;  %v1393_v20 = vadd.f32 %v1392_v11, %v1391_v12 }
  0x63   : > { %12154 = vmatprep.subr.mxu0 %v18080_v2  ;;  %13391 = vmatprep.subr.bf16.mxu1 %v13449_v60 }
  0x64   : > { %12155 = vmatpush3.msra.mxu0 %v938_v8  ;;  %13393 = vmatpush3.bf16.msra.mxu1 %v13449_v60  ;;  %v1380_v5 = vadd.f32 %v1379_v13, %v1378_v1  ;;  %v1395_v7 = vadd.f32 %v1394_v26, %v1393_v20 }
  0x65   : > { %12157 = vmatmul.mubr.f32.vlgmr.msra.gmra.mxu0 %v14273_v28  ;;  %12166 = vmatprep.subr.bf16.mxu0 %v13448_v57 }
  0x66   : > { %12167 = vmatpush3.bf16.msra.mxu0 %v13448_v57  ;;  %v1402_v21 = vmul.f32 0.015625, %v1380_v5  ;;  %12186 = vmatprep.subr.bf16.mxu1 %v14351_v14  ;;  %v1396_v22 = vrot.slane %v1395_v7, 4 }
  0x67   : > { %12168 = vmatprep.subr.bf16.mxu0 %v13449_v60 }
  0x68   : > { %v1404_v41 = vadd.f32 1e-05, %v1402_v21  ;;  %v1397_v6 = vadd.f32 %v1396_v22, %v1395_v7 }
  0x6a   : > { %12169 = vmatpush3.bf16.msra.mxu0 %v13449_v60  ;;  %13528 = vrsqrt.f32 %v1404_v41  ;;  %v1398_v8 = vrot.slane %v1397_v6, 2 }
  0x6b   : > { %12206 = vmatprep.subr.bf16.mxu0 %v14361_v39 }
  0x6c   : > { %v1399_v28 = vadd.f32 %v1398_v8, %v1397_v6 }
  0x6e   : > { %v1400_v30 = vrot.slane %v1399_v28, 1 }
  0x70   : > { %v1401_v31 = vadd.f32 %v1400_v30, %v1399_v28 }
  0x72   : > { %v1403_v32 = vmul.f32 0.015625, %v1401_v31 }
  0x74   : > { %v1405_v36 = vadd.f32 1e-05, %v1403_v32 }
  0x76   : > { %13530 = vrsqrt.f32 %v1405_v36 }
  0x77   : > { %v13529_v37 = vpop.eup %13528 }
  0x78   : > { %v1408_v15 = vmul.f32 %v13529_v37, %v14216_v44  ;;  %v1409_v16 = vmul.f32 %v13529_v37, %v14219_v45  ;;  %v1410_v17 = vmul.f32 %v13529_v37, %v14222_v46  ;;  %v1411_v18 = vmul.f32 %v13529_v37, %v14225_v47 }
  0x79   : > { %v1412_v19 = vmul.f32 %v13529_v37, %v14228_v49  ;;  %v1413_v54 = vmul.f32 %v13529_v37, %v14231_v50  ;;  %v1414_v24 = vmul.f32 %v13529_v37, %v14234_v51  ;;  %v1415_v40 = vmul.f32 %v13529_v37, %v14255_v59 }
  0x7a   : > { %v1431_v44 = vmul.f32 %v14367_v48, %v1408_v15  ;;  %v1432_v45 = vmul.f32 %v14367_v48, %v1409_v16  ;;  %v1433_v46 = vmul.f32 %v14367_v48, %v1410_v17  ;;  %v1434_v47 = vmul.f32 %v14367_v48, %v1411_v18 }
  0x7b   : > { %v1435_v9 = vmul.f32 %v14367_v48, %v1412_v19  ;;  %v1436_v55 = vmul.f32 %v14367_v48, %v1413_v54  ;;  %v1437_v49 = vmul.f32 %v14367_v48, %v1414_v24  ;;  %v1438_v3 = vmul.f32 %v14367_v48, %v1415_v40 }
  0x7c   : > { %v14390_v50 = vadd.f32 %v14376_v38, %v1431_v44  ;;  %v14393_v51 = vadd.f32 %v14376_v38, %v1432_v45  ;;  %v14396_v59 = vadd.f32 %v14376_v38, %v1433_v46  ;;  %v14399_v56 = vadd.f32 %v14376_v38, %v1434_v47 }
  0x7d   : > { %v14402_v57 = vadd.f32 %v14376_v38, %v1435_v9  ;;  %v14409_v60 = vadd.f32 %v14376_v38, %v1436_v55  ;;  %v14414_v62 = vadd.f32 %v14376_v38, %v1437_v49  ;;  %v14418_v0 = vadd.f32 %v14376_v38, %v1438_v3 }
  0x7e   : > { %v11121_v58 = vmul.f32 -1.442695, %v14390_v50  ;;  %v11122_v53 = vmul.f32 -1.442695, %v14393_v51  ;;  %v11123_v10 = vmul.f32 -1.442695, %v14396_v59 }
  0x7f   : > { %v11124_v61 = vmul.f32 -1.442695, %v14399_v56  ;;  %v11125_v4 = vmul.f32 -1.442695, %v14402_v57  ;;  %v11126_v63 = vmul.f32 -1.442695, %v14409_v60 }
  0x80   : > { %13532 = vpow2.f32 %v11121_v58  ;;  %v11127_v11 = vmul.f32 -1.442695, %v14414_v62  ;;  %v11128_v7 = vmul.f32 -1.442695, %v14418_v0 }
  0x81   : > { %13534 = vpow2.f32 %v11122_v53 }
  0x82   : > { %13536 = vpow2.f32 %v11123_v10 }
  0x83   : > { %13538 = vpow2.f32 %v11124_v61  ;;  %v13531_v1 = vpop.eup %13530 }
  0x84   : > { %13540 = vpow2.f32 %v11125_v4  ;;  %v1416_v12 = vmul.f32 %v13531_v1, %v14268_v23  ;;  %v1417_v13 = vmul.f32 %v13531_v1, %v14271_v27  ;;  %v1418_v26 = vmul.f32 %v13531_v1, %v14276_v33 }
  0x85   : > { %v1419_v20 = vmul.f32 %v13531_v1, %v14279_v34  ;;  %v1420_v5 = vmul.f32 %v13531_v1, %v14282_v35  ;;  %13542 = vpow2.f32 %v11126_v63  ;;  %v1421_v23 = vmul.f32 %v13531_v1, %v14297_v42 }
  0x86   : > { %v1439_v21 = vmul.f32 %v14367_v48, %v1416_v12  ;;  %v1440_v22 = vmul.f32 %v14367_v48, %v1417_v13  ;;  %v1441_v41 = vmul.f32 %v14367_v48, %v1418_v26  ;;  %13544 = vpow2.f32 %v11127_v11 }
  0x87   : > { %v1442_v35 = vmul.f32 %v14367_v48, %v1419_v20  ;;  %v1443_v6 = vmul.f32 %v14367_v48, %v1420_v5  ;;  %v1422_v8 = vmul.f32 %v13531_v1, %v14303_v52  ;;  %13546 = vpow2.f32 %v11128_v7 }
  0x88   : > { %v14432_v27 = vadd.f32 %v14376_v38, %v1439_v21  ;;  %v14435_v33 = vadd.f32 %v14376_v38, %v1440_v22  ;;  %v14438_v34 = vadd.f32 %v14376_v38, %v1441_v41  ;;  %v1423_v31 = vmul.f32 %v13531_v1, %v14316_v25 }
  0x89   : > { %v14448_v36 = vadd.f32 %v14376_v38, %v1442_v35  ;;  %v1444_v37 = vmul.f32 %v14367_v48, %v1421_v23  ;;  %v14452_v52 = vadd.f32 %v14376_v38, %v1443_v6  ;;  %v1445_v17 = vmul.f32 %v14367_v48, %v1422_v8 }
  0x8a   : > { %v11129_v28 = vmul.f32 -1.442695, %v14432_v27  ;;  %v11130_v42 = vmul.f32 -1.442695, %v14435_v33  ;;  %v11131_v30 = vmul.f32 -1.442695, %v14438_v34  ;;  %v1446_v24 = vmul.f32 %v14367_v48, %v1423_v31 }
  0x8b   : > { %v11132_v45 = vmul.f32 -1.442695, %v14448_v36  ;;  %v14458_v46 = vadd.f32 %v14376_v38, %v1444_v37  ;;  %v11133_v9 = vmul.f32 -1.442695, %v14452_v52  ;;  %v14462_v55 = vadd.f32 %v14376_v38, %v1445_v17 }
  0x8c   : > { %13548 = vpow2.f32 %v11129_v28  ;;  %v14465_v48 = vadd.f32 %v14376_v38, %v1446_v24 }
  0x8d   : > { %v13533_v32 = vpop.eup %13532  ;;  %13550 = vpow2.f32 %v11130_v42  ;;  %v11134_v53 = vmul.f32 -1.442695, %v14458_v46  ;;  %v11135_v61 = vmul.f32 -1.442695, %v14462_v55 }
  0x8e   : > { %v13535_v15 = vpop.eup %13534  ;;  %v1518_v16 = vadd.f32 1.0, %v13533_v32  ;;  %13552 = vpow2.f32 %v11131_v30  ;;  %v11136_v1 = vmul.f32 -1.442695, %v14465_v48 }
  0x8f   : > { %v13537_v18 = vpop.eup %13536  ;;  %v1519_v19 = vadd.f32 1.0, %v13535_v15 }
  0x90   : > { %v13539_v54 = vpop.eup %13538  ;;  %13554 = vrcp.f32 %v1518_v16  ;;  %v1520_v25 = vadd.f32 1.0, %v13537_v18 }
  0x91   : > { %v13541_v40 = vpop.eup %13540  ;;  %13556 = vrcp.f32 %v1519_v19  ;;  %v1521_v44 = vadd.f32 1.0, %v13539_v54 }
  0x92   : > { %13558 = vrcp.f32 %v1520_v25  ;;  %v1522_v47 = vadd.f32 1.0, %v13541_v40  ;;  %v13543_v49 = vpop.eup %13542 }
  0x93   : > { %13560 = vrcp.f32 %v1521_v44  ;;  %v1523_v3 = vadd.f32 1.0, %v13543_v49  ;;  %v13545_v58 = vpop.eup %13544 }
  0x94   : > { %13562 = vrcp.f32 %v1522_v47  ;;  %v1524_v10 = vadd.f32 1.0, %v13545_v58  ;;  %v13547_v4 = vpop.eup %13546  ;;  %v13453_v47 = vld [vmem:[%s18247_s30 + $0x20] sm:$0xff]  }
  0x95   : > { %13564 = vpow2.f32 %v11132_v45  ;;  %v1525_v63 = vadd.f32 1.0, %v13547_v4 }
  0x96   : > { %13566 = vpow2.f32 %v11133_v9 }
  0x97   : > { %13568 = vrcp.f32 %v1523_v3 }
  0x98   : > { %13570 = vrcp.f32 %v1524_v10 }
  0x99   : > { %13572 = vpow2.f32 %v11134_v53  ;;  %v13549_v11 = vpop.eup %13548 }
  0x9a   : > { %13574 = vpow2.f32 %v11135_v61  ;;  %v13551_v12 = vpop.eup %13550  ;;  %v1526_v38 = vadd.f32 1.0, %v13549_v11  ;;  %v1973_v11 = vld [vmem:[#allocation2 + $0x2] sm:$0xff] }
  0x9b   : > { %13576 = vrcp.f32 %v1525_v63  ;;  %v13553_v13 = vpop.eup %13552  ;;  %v1527_v26 = vadd.f32 1.0, %v13551_v12 }
  0x9c   : > { %13578 = vpow2.f32 %v11136_v1  ;;  %v1528_v5 = vadd.f32 1.0, %v13553_v13 }
  0x9d   : > { %v13555_v20 = vpop.eup %13554  ;;  %13580 = vrcp.f32 %v1526_v38 }
  0x9e   : > { %v13557_v7 = vpop.eup %13556  ;;  %v1566_v21 = vmul.f32 %v13555_v20, %v14390_v50  ;;  %13582 = vrcp.f32 %v1527_v26 }
  0x9f   : > { %v13559_v22 = vpop.eup %13558  ;;  %v1567_v41 = vmul.f32 %v13557_v7, %v14393_v51  ;;  %13584 = vrcp.f32 %v1528_v5 }
  0xa0   : > { %v13561_v23 = vpop.eup %13560  ;;  %1634 = vst.msk [vmem:[#allocation2 + $0x11] sm:$0xff] %vm1282_vm1, %v1566_v21  ;;  %v1568_v35 = vmul.f32 %v13559_v22, %v14396_v59  ;;  %v1678_v59 = vld [vmem:[#allocation2 + $0x1] sm:$0xff] }
  0xa1   : > { %v13563_v6 = vpop.eup %13562  ;;  %1635 = vst.msk [vmem:[#allocation2 + $0x21] sm:$0xff] %vm1282_vm1, %v1567_v41  ;;  %v1569_v8 = vmul.f32 %v13561_v23, %v14399_v56  ;;  %v1686_v22 = vld [vmem:[#allocation2 + $0xa1] sm:$0xff] }
  0xa2   : > { %v13565_v28 = vpop.eup %13564  ;;  %1636 = vst.msk [vmem:[#allocation2 + $0x31] sm:$0xff] %vm1282_vm1, %v1568_v35  ;;  %v1570_v50 = vmul.f32 %v13563_v6, %v14402_v57 }
  0xa3   : > { %v13567_v42 = vpop.eup %13566  ;;  %1637 = vst.msk [vmem:[#allocation2 + $0x41] sm:$0xff] %vm1282_vm1, %v1569_v8  ;;  %v1529_v51 = vadd.f32 1.0, %v13565_v28 }
  0xa4   : > { %v13569_v30 = vpop.eup %13568  ;;  %1638 = vst.msk [vmem:[#allocation2 + $0x51] sm:$0xff] %vm1282_vm1, %v1570_v50  ;;  %v1530_v31 = vadd.f32 1.0, %v13567_v42 }
  0xa5   : > { %v13571_v32 = vpop.eup %13570  ;;  %13586 = vrcp.f32 %v1529_v51  ;;  %v1571_v37 = vmul.f32 %v13569_v30, %v14409_v60 }
  0xa6   : > { %v13573_v15 = vpop.eup %13572  ;;  %13588 = vrcp.f32 %v1530_v31  ;;  %v1572_v56 = vmul.f32 %v13571_v32, %v14414_v62  ;;  %v13452_v32 = vld [vmem:[%s18247_s30] sm:$0xff]  }
  0xa7   : > { %v13575_v16 = vpop.eup %13574  ;;  %v14482_v17 = vld [vmem:[#allocation2 + $0x11] sm:$0xff]  ;;  %1639 = vst.msk [vmem:[#allocation2 + $0x61] sm:$0xff] %vm1282_vm1, %v1571_v37  ;;  %v1531_v57 = vadd.f32 1.0, %v13573_v15 }
  0xa8   : > { %v13577_v18 = vpop.eup %13576  ;;  %v1699_v19 = vpack.c.bf16 %v14482_v17, %v1678_v59  ;;  %v14486_v54 = vld [vmem:[#allocation2 + $0x21] sm:$0xff]  ;;  %1640 = vst.msk [vmem:[#allocation2 + $0x71] sm:$0xff] %vm1282_vm1, %v1572_v56  ;;  %v1532_v25 = vadd.f32 1.0, %v13575_v16 }
  0xa9   : > { %v13579_v24 = vpop.eup %13578  ;;  %v14489_v60 = vld [vmem:[#allocation2 + $0x31] sm:$0xff]  ;;  %13590 = vrcp.f32 %v1531_v57  ;;  %v1573_v62 = vmul.f32 %v13577_v18, %v14418_v0  ;;  %v14515_v4 = vld [vmem:[#allocation2 + $0x22] sm:$0xff] }
  0xaa   : > { %v13581_v40 = vpop.eup %13580  ;;  %12170 = vmatprep.mubr.msk.bf16.mxu0 %vm1282_vm1, %v1699_v19  ;;  %v14495_v44 = vpack.c.bf16 %v14489_v60, %v14486_v54  ;;  %v14497_v45 = vld [vmem:[#allocation2 + $0x41] sm:$0xff]  ;;  %13592 = vrcp.f32 %v1532_v25  ;;  %v14505_v0 = vld [vmem:[#allocation2 + $0x12] sm:$0xff]  ;;  %v1533_v58 = vadd.f32 1.0, %v13579_v24 }
  0xab   : > { %v13583_v9 = vpop.eup %13582  ;;  %v1574_v49 = vmul.f32 %v13581_v40, %v14432_v27  ;;  %v14503_v3 = vld [vmem:[#allocation2 + $0x51] sm:$0xff]  ;;  %1641 = vst.msk [vmem:[#allocation2 + $0x81] sm:$0xff] %vm1282_vm1, %v1573_v62  ;;  %v14519_v63 = vld [vmem:[#allocation2 + $0x42] sm:$0xff]  ;;  %v1994_v7 = vpack.c.bf16 %v14505_v0, %v1973_v11 }
  0xac   : > { %v13585_v53 = vpop.eup %13584  ;;  %12171 = vmatmul.mubr.msk.bf16.vlgmr.msra.gmra.mxu0 %vm1282_vm1, %v14495_v44  ;;  %v1575_v10 = vmul.f32 %v13583_v9, %v14435_v33  ;;  %v14513_v61 = vpack.c.bf16 %v14503_v3, %v14497_v45  ;;  %v14517_v27 = vld [vmem:[#allocation2 + $0x32] sm:$0xff]  ;;  %v13455_v33 = vld [vmem:[%s18247_s30 + $0x48] sm:$0xff]   ;;  %13594 = vrcp.f32 %v1533_v58  ;;  %v1650_v24 = vld [vmem:[#allocation2] sm:$0xff] }
  0xad   : > { %1642 = vst.msk [vmem:[#allocation2 + $0xb1] sm:$0xff] %vm1282_vm1, %v1574_v49  ;;  %v1576_v1 = vmul.f32 %v13585_v53, %v14438_v34  ;;  %12207 = vmatpush3.bf16.msra.mxu0 %v14361_v39  ;;  %v14536_v39 = vld [vmem:[#allocation2 + $0x52] sm:$0xff]  ;;  %v14582_v15 = vpack.c.bf16 %v14517_v27, %v14515_v4  ;;  %v1981_v9 = vld [vmem:[#allocation2 + $0xa2] sm:$0xff] }
  0xae   : > { %1643 = vst.msk [vmem:[#allocation2 + $0xc1] sm:$0xff] %vm1282_vm1, %v1575_v10  ;;  %12174 = vmatprep.mubr.msk.bf16.mxu0 %vm1282_vm1, %v14513_v61  ;;  %v14534_v34 = vld [vmem:[#allocation2 + $0x61] sm:$0xff]  ;;  %12208 = vmatprep.subr.bf16.mxu0 %v13453_v47  ;;  %v14589_v56 = vpack.c.bf16 %v14536_v39, %v14519_v63 }
  0xaf   : > { %v14538_v13 = vld [vmem:[#allocation2 + $0x62] sm:$0xff]  ;;  %1644 = vst.msk [vmem:[#allocation2 + $0xd1] sm:$0xff] %vm1282_vm1, %v1576_v1  ;;  %v14541_v26 = vld [vmem:[#allocation2 + $0x71] sm:$0xff] }
  0xb0   : > { %v14547_v5 = vpack.c.bf16 %v14541_v26, %v14534_v34  ;;  %v14612_v62 = vld [vmem:[#allocation2 + $0x72] sm:$0xff]  ;;  %v13459_v49 = vld [vmem:[%s18247_s30 + $0x68] sm:$0xff]  }
  0xb1   : > { %12209 = vmatpush3.bf16.msra.mxu0 %v13453_v47  ;;  %v14621_v47 = vld [vmem:[#allocation2 + $0x10] sm:$0xff]  ;;  %v14632_v53 = vpack.c.bf16 %v14612_v62, %v14538_v13 }
  0xb2   : > { %v13587_v21 = vpop.eup %13586  ;;  %12246 = vmatprep.subr.bf16.mxu0 %v13455_v33 }
  0xb3   : > { %v13589_v41 = vpop.eup %13588  ;;  %v1577_v23 = vmul.f32 %v13587_v21, %v14448_v36 }
  0xb4   : > { %v14551_v35 = vld [vmem:[#allocation2 + $0xb1] sm:$0xff]  ;;  %v1578_v6 = vmul.f32 %v13589_v41, %v14452_v52  ;;  %12175 = vmatmul.mubr.msk.bf16.gmra.mxu0 %vm1282_vm1, %v14547_v5  ;;  %v1652_v41 = vld [vmem:[#allocation2 + $0x20] sm:$0xff] }
  0xb5   : > { %v1703_v8 = vpack.c.bf16 %v14551_v35, %v1686_v22  ;;  %v14557_v28 = vld [vmem:[#allocation2 + $0xc1] sm:$0xff]  ;;  %1645 = vst.msk [vmem:[#allocation2 + $0xe1] sm:$0xff] %vm1282_vm1, %v1577_v23  ;;  %12210 = vmatprep.mubr.msk.bf16.mxu0 %vm1282_vm1, %v1994_v7  ;;  %v14561_v50 = vld [vmem:[#allocation2 + $0xb2] sm:$0xff] }
  0xb6   : > { %v14563_v42 = vld [vmem:[#allocation2 + $0xc2] sm:$0xff]  ;;  %v13591_v36 = vpop.eup %13590  ;;  %v14565_v51 = vld [vmem:[#allocation2 + $0xd1] sm:$0xff]  ;;  %1646 = vst.msk [vmem:[#allocation2 + $0xf1] sm:$0xff] %vm1282_vm1, %v1578_v6  ;;  %v1998_v7 = vpack.c.bf16 %v14561_v50, %v1981_v9  ;;  %v2354_v29 = vpack.c.bf16 %v14557_v28, %v14551_v35 }
  0xb7   : > { %v13593_v30 = vpop.eup %13592  ;;  %12178 = vmatprep.mubr.msk.bf16.mxu1 %vm1282_vm1, %v1703_v8  ;;  %v14573_v31 = vpack.c.bf16 %v14565_v51, %v14557_v28  ;;  %v1579_v59 = vmul.f32 %v13591_v36, %v14458_v46  ;;  %v13457_v46 = vld [vmem:[%s18247_s30 + $0x40] sm:$0xff]   ;;  %v14604_v19 = vld [vmem:[#allocation2 + $0xd2] sm:$0xff] }
  0xb8   : > { %v1580_v37 = vmul.f32 %v13593_v30, %v14462_v55  ;;  %v13454_v55 = vld [vmem:[%s18247_s30 + $0x38] sm:$0xff]   ;;  %v14653_v23 = vld [vmem:[#allocation2 + $0x30] sm:$0xff]  ;;  %v14656_v6 = vld [vmem:[#allocation2 + $0x40] sm:$0xff]  ;;  %v14665_v30 = vpack.c.bf16 %v14604_v19, %v14563_v42 }
  0xb9   : > { %12179 = vmatmul.mubr.msk.bf16.vlgmr.msra.gmra.mxu1 %vm1282_vm1, %v14573_v31  ;;  %1647 = vst.msk [vmem:[#allocation2 + $0x101] sm:$0xff] %vm1282_vm1, %v1579_v59  ;;  %v13595_v16 = vpop.eup %13594  ;;  %v14658_v8 = vld [vmem:[#allocation2 + $0x50] sm:$0xff]  ;;  %v14661_v36 = vpack.c.bf16 %v14653_v23, %v1652_v41  ;;  %v1660_v52 = vld [vmem:[#allocation2 + $0xc0] sm:$0xff] }
  0xba   : > { %12187 = vmatpush3.bf16.msra.mxu1 %v14351_v14  ;;  %1648 = vst.msk [vmem:[#allocation2 + $0x111] sm:$0xff] %vm1282_vm1, %v1580_v37  ;;  %v1581_v57 = vmul.f32 %v13595_v16, %v14465_v48  ;;  %v13456_v59 = vld [vmem:[%s18247_s30 + $0x30] sm:$0xff]   ;;  %v1656_v16 = vld [vmem:[#allocation2 + $0x60] sm:$0xff]  ;;  %v2350_v48 = vpack.c.bf16 %v14486_v54, %v14482_v17  ;;  %v2351_v17 = vpack.c.bf16 %v14497_v45, %v14489_v60  ;;  %v13463_v45 = vld [vmem:[%s18247_s30 + $0x88] sm:$0xff]  }
  0xbb   : > { %12188 = vmatprep.subr.bf16.mxu1 %v13452_v32  ;;  %v14688_v9 = vld [vmem:[#allocation2 + $0xb0] sm:$0xff]  ;;  %v14727_v60 = vld [vmem:[#allocation2 + $0x81] sm:$0xff] }
  0xbc   : > { %v14600_v18 = vld [vmem:[#allocation2 + $0xe1] sm:$0xff]  ;;  %12211 = vmatmul.mubr.msk.bf16.vlgmr.msra.gmra.mxu0 %vm1282_vm1, %v14582_v15  ;;  %1649 = vst.msk [vmem:[#allocation2 + $0x121] sm:$0xff] %vm1282_vm1, %v1581_v57  ;;  %v1661_v20 = vld [vmem:[#allocation2 + $0xd0] sm:$0xff] }
  0xbd   : > { %v14606_v14 = vld [vmem:[#allocation2 + $0xe2] sm:$0xff]  ;;  %v14608_v25 = vld [vmem:[#allocation2 + $0xf1] sm:$0xff]  ;;  %12247 = vmatpush3.bf16.msra.mxu0 %v13455_v33  ;;  %12214 = vmatprep.mubr.msk.bf16.mxu0 %vm1282_vm1, %v14589_v56  ;;  %v1670_v33 = vpack.c.bf16 %v14621_v47, %v1650_v24 }
  0xbe   : > { %v14619_v40 = vpack.c.bf16 %v14608_v25, %v14600_v18  ;;  %12189 = vmatpush3.bf16.msra.mxu1 %v13452_v32  ;;  %12248 = vmatprep.subr.bf16.mxu0 %v13457_v46  ;;  %v14634_v10 = vld [vmem:[#allocation2 + $0xf2] sm:$0xff]  ;;  %v14669_v32 = vpack.c.bf16 %v14658_v8, %v14656_v6  ;;  %v1658_v24 = vld [vmem:[#allocation2 + $0xa0] sm:$0xff] }
  0xbf   : > { %12226 = vmatprep.subr.bf16.mxu1 %v13454_v55  ;;  %v14676_v37 = vpack.c.bf16 %v14634_v10, %v14606_v14  ;;  %v1674_v21 = vpack.c.bf16 %v14688_v9, %v1658_v24  ;;  %v1662_v38 = vld [vmem:[#allocation2 + $0xe0] sm:$0xff]  ;;  %v1663_v12 = vld [vmem:[#allocation2 + $0xf0] sm:$0xff]  ;;  %v14711_v24 = vpack.c.bf16 %v1661_v20, %v1660_v52 }
  0xc0   : > { %12182 = vmatprep.mubr.msk.bf16.mxu1 %vm1282_vm1, %v14619_v40  ;;  %v14628_v58 = vld [vmem:[#allocation2 + $0x101] sm:$0xff]  ;;  %v14715_v54 = vpack.c.bf16 %v1663_v12, %v1662_v38  ;;  %v13460_v35 = vld [vmem:[%s18247_s30 + $0x50] sm:$0xff]  }
  0xc1   : > { %v14636_v1 = vld [vmem:[#allocation2 + $0x102] sm:$0xff]  ;;  %v14638_v11 = vld [vmem:[#allocation2 + $0x111] sm:$0xff]  ;;  %12249 = vmatpush3.bf16.msra.mxu0 %v13457_v46  ;;  %v2356_v28 = vpack.c.bf16 %v14628_v58, %v14608_v25 }
  0xc2   : > { %v14646_v22 = vpack.c.bf16 %v14638_v11, %v14628_v58  ;;  %12286 = vmatprep.subr.bf16.mxu0 %v13459_v49  ;;  %v14684_v46 = vld [vmem:[#allocation2 + $0x70] sm:$0xff]  ;;  %v2176_v58 = vpack.c.bf16 %v1660_v52, %v14688_v9 }
  0xc3   : > { %v14686_v57 = vld [vmem:[#allocation2 + $0x112] sm:$0xff]  ;;  %v2166_v52 = vld [vmem:[#allocation2 + $0x120] sm:$0xff] }
  0xc4   : > { %12183 = vmatmul.mubr.msk.bf16.gmra.mxu1 %vm1282_vm1, %v14646_v22  ;;  %12215 = vmatmul.mubr.msk.bf16.gmra.mxu0 %vm1282_vm1, %v14632_v53  ;;  %v1665_v2 = vld [vmem:[#allocation2 + $0x110] sm:$0xff] }
  0xc5   : > { %12190 = vmatprep.mubr.msk.bf16.mxu1 %vm1282_vm1, %v1670_v33  ;;  %12218 = vmatprep.mubr.msk.bf16.mxu0 %vm1282_vm1, %v1998_v7  ;;  %v13458_v33 = vld [vmem:[%s18247_s30 + $0x58] sm:$0xff]   ;;  %v14700_v7 = vpack.c.bf16 %v14686_v57, %v14636_v1 }
  0xcc   : > { %12191 = vmatmul.mubr.msk.bf16.vlgmr.msra.gmra.mxu1 %vm1282_vm1, %v14661_v36  ;;  %12219 = vmatmul.mubr.msk.bf16.gmra.mxu0 %vm1282_vm1, %v14665_v30 }
  0xcd   : > { %12227 = vmatpush3.bf16.msra.mxu1 %v13454_v55  ;;  %12194 = vmatprep.mubr.msk.bf16.mxu1 %vm1282_vm1, %v14669_v32  ;;  %v14696_v55 = vpack.c.bf16 %v14684_v46, %v1656_v16 }
  0xce   : > { %12228 = vmatprep.subr.bf16.mxu1 %v13456_v59  ;;  %12222 = vmatprep.mubr.msk.bf16.mxu0 %vm1282_vm1, %v14676_v37 }
  0xd1   : > { %12229 = vmatpush3.bf16.msra.mxu1 %v13456_v59  ;;  %v2352_v59 = vpack.c.bf16 %v14534_v34, %v14503_v3  ;;  %v2353_v34 = vpack.c.bf16 %v14727_v60, %v14541_v26  ;;  %v2355_v26 = vpack.c.bf16 %v14600_v18, %v14565_v51  ;;  %v13462_v51 = vld [vmem:[%s18247_s30 + $0x78] sm:$0xff]  }
  0xd2   : > { %12266 = vmatprep.subr.bf16.mxu1 %v13458_v33 }
  0xd4   : > { %12195 = vmatmul.mubr.msk.bf16.gmra.mxu1 %vm1282_vm1, %v14696_v55  ;;  %12223 = vmatmul.mubr.msk.bf16.gmra.mxu0 %vm1282_vm1, %v14700_v7 }
  0xd5   : > { %12198 = vmatprep.mubr.msk.bf16.mxu1 %vm1282_vm1, %v1674_v21  ;;  %12250 = vmatprep.mubr.msk.bf16.mxu0 %vm1282_vm1, %v2350_v48  ;;  %v13461_v21 = vld [vmem:[%s18247_s30 + $0x60] sm:$0xff]  }
  0xd6   : > { %v1664_v48 = vld [vmem:[#allocation2 + $0x100] sm:$0xff] }
  0xd7   : > { %v1677_v3 = vpack.c.bf16 %v1665_v2, %v1664_v48 }
  0xdc   : > { %12199 = vmatmul.mubr.msk.bf16.gmra.mxu1 %vm1282_vm1, %v14711_v24  ;;  %12251 = vmatmul.mubr.msk.bf16.vlgmr.msra.gmra.mxu0 %vm1282_vm1, %v2351_v17  ;;  %v2172_v17 = vpack.c.bf16 %v1652_v41, %v14621_v47  ;;  %v2174_v47 = vpack.c.bf16 %v1656_v16, %v14658_v8  ;;  %v14755_v41 = vld [vmem:[#allocation2 + $0x121] sm:$0xff]  ;;  %v2701_v16 = vld [vmem:[#allocation2 + $0x130] sm:$0xff] }
  0xdd   : > { %12202 = vmatprep.mubr.msk.bf16.mxu1 %vm1282_vm1, %v14715_v54  ;;  %12287 = vmatpush3.bf16.msra.mxu0 %v13459_v49  ;;  %v2173_v49 = vpack.c.bf16 %v14656_v6, %v14653_v23  ;;  %v2357_v25 = vpack.c.bf16 %v14755_v41, %v14638_v11  ;;  %v2177_v23 = vpack.c.bf16 %v1662_v38, %v1661_v20  ;;  %v13465_v8 = vld [vmem:[%s18247_s30 + $0x80] sm:$0xff]   ;;  %v2693_v11 = vld [vmem:[#allocation2 + $0x90] sm:$0xff]  ;;  %v18250_v20 = vmov 0.0  }
  0xde   : > { %12254 = vmatprep.mubr.msk.bf16.mxu0 %vm1282_vm1, %v2352_v59  ;;  %12288 = vmatprep.subr.bf16.mxu0 %v13461_v21  ;;  %v2178_v6 = vpack.c.bf16 %v1664_v48, %v1663_v12  ;;  %v2179_v38 = vpack.c.bf16 %v2166_v52, %v1665_v2  ;;  %v13464_v2 = vld [vmem:[%s18247_s30 + $0x70] sm:$0xff]   ;;  %v2714_v9 = vpack.c.bf16 %v2701_v16, %v2166_v52 }
  0xdf   : > { %5727 = vst.msk [vmem:[#allocation3] sm:$0xff] %vm3292_vm5, %v18250_v20  ;;  %5730 = vst.msk [vmem:[#allocation3 + $0xa0] sm:$0xff] %vm3292_vm5, %v18250_v20 }
  0xe0   : > { %5733 = vst.msk [vmem:[#allocation3 + $0x90] sm:$0xff] %vm3292_vm5, %v18250_v20  ;;  %5735 = vst.msk [vmem:[#allocation3 + $0x130] sm:$0xff] %vm3292_vm5, %v18250_v20 }
  0xe1   : > { %12289 = vmatpush3.bf16.msra.mxu0 %v13461_v21 }
  0xe2   : > { %12326 = vmatprep.subr.bf16.mxu0 %v13463_v45 }
  0xe4   : > { %12203 = vmatmul.mubr.msk.bf16.gmra.mxu1 %vm1282_vm1, %v1677_v3  ;;  %12255 = vmatmul.mubr.msk.bf16.gmra.mxu0 %vm1282_vm1, %v2353_v34 }
  0xe5   : > { %12230 = vmatprep.mubr.msk.bf16.mxu1 %vm1282_vm1, %v2172_v17  ;;  %12258 = vmatprep.mubr.msk.bf16.mxu0 %vm1282_vm1, %v2354_v29  ;;  %v2158_v29 = vld [vmem:[#allocation2 + $0x80] sm:$0xff] }
  0xe6   : > { %v2175_v18 = vpack.c.bf16 %v2158_v29, %v14684_v46  ;;  %v2710_v12 = vpack.c.bf16 %v2693_v11, %v2158_v29 }
  0xec   : > { %12231 = vmatmul.mubr.msk.bf16.vlgmr.msra.gmra.mxu1 %vm1282_vm1, %v2173_v49  ;;  %12259 = vmatmul.mubr.msk.bf16.gmra.mxu0 %vm1282_vm1, %v2355_v26  ;;  %v2871_v49 = vld [vmem:[#allocation2 + $0x91] sm:$0xff] }
  0xed   : > { %12267 = vmatpush3.bf16.msra.mxu1 %v13458_v33  ;;  %12234 = vmatprep.mubr.msk.bf16.mxu1 %vm1282_vm1, %v2174_v47 }
  0xee   : > { %12268 = vmatprep.subr.bf16.mxu1 %v13460_v35  ;;  %12262 = vmatprep.mubr.msk.bf16.mxu0 %vm1282_vm1, %v2356_v28 }
  0xf1   : > { %12269 = vmatpush3.bf16.msra.mxu1 %v13460_v35 }
  0xf2   : > { %12306 = vmatprep.subr.bf16.mxu1 %v13462_v51 }
  0xf4   : > { %12235 = vmatmul.mubr.msk.bf16.gmra.mxu1 %vm1282_vm1, %v2175_v18  ;;  %12263 = vmatmul.mubr.msk.bf16.gmra.mxu0 %vm1282_vm1, %v2357_v25 }
  0xf5   : > { %12238 = vmatprep.mubr.msk.bf16.mxu1 %vm1282_vm1, %v2176_v58  ;;  %12290 = vmatprep.mubr.msk.bf16.mxu0 %vm1282_vm1, %v14661_v36  ;;  %v18251_v36 = vpack.c.bf16 %v14515_v4, %v14505_v0  ;;  %v18253_v0 = vpack.c.bf16 %v14538_v13, %v14536_v39  ;;  %v2514_v4 = vld [vmem:[#allocation2 + $0x82] sm:$0xff] }
  0xf6   : > { %v2531_v46 = vpack.c.bf16 %v2514_v4, %v14612_v62  ;;  %v11118_v62 = vld [vmem:[%s18255_s9] ss:$0 sm:$0xff]  ;;  %s11517_s9 = sshll.u32 %s13960_s6, 11  ;;  %s18008_s6 = scalar_lea.sflag [#allocation5], %s745_s27 }
  0xf7   : > { %s17997_s0 = scalar_lea.hbm %s18072_s24, %s11517_s9  ;;  %s13750_s9 = scalar_lea.vmem %s13749_s7, 4096 }
  0xfc   : > { %12239 = vmatmul.mubr.msk.bf16.gmra.mxu1 %vm1282_vm1, %v2177_v23  ;;  %12291 = vmatmul.mubr.msk.bf16.vlgmr.msra.gmra.mxu0 %vm1282_vm1, %v14669_v32  ;;  %v18252_v32 = vpack.c.bf16 %v14519_v63, %v14517_v27  ;;  %v18254_v27 = vpack.c.bf16 %v14563_v42, %v14561_v50  ;;  %v18257_v50 = vpack.c.bf16 %v14636_v1, %v14634_v10  ;;  %v2522_v42 = vld [vmem:[#allocation2 + $0x122] sm:$0xff] }
  0xfd   : > { %12242 = vmatprep.mubr.msk.bf16.mxu1 %vm1282_vm1, %v2178_v6  ;;  %12327 = vmatpush3.bf16.msra.mxu0 %v13463_v45 }
  0xfe   : > { %12294 = vmatprep.mubr.msk.bf16.mxu0 %vm1282_vm1, %v14696_v55  ;;  %12328 = vmatprep.subr.bf16.mxu0 %v13465_v8  ;;  %v18256_v55 = vpack.c.bf16 %v14606_v14, %v14604_v19  ;;  %v2535_v14 = vpack.c.bf16 %v2522_v42, %v14686_v57 }
 0x101   : > { %12329 = vmatpush3.bf16.msra.mxu0 %v13465_v8 }
 0x102   : > { %12384 = vmatprep.subr.mxu0 %v18250_v20 }
 0x104   : > { %12243 = vmatmul.mubr.msk.bf16.gmra.mxu1 %vm1282_vm1, %v2179_v38  ;;  %12295 = vmatmul.mubr.msk.bf16.gmra.mxu0 %vm1282_vm1, %v2710_v12 }
 0x105   : > { %12270 = vmatprep.mubr.msk.bf16.mxu1 %vm1282_vm1, %v18251_v36  ;;  %12298 = vmatprep.mubr.msk.bf16.mxu0 %vm1282_vm1, %v14711_v24 }
 0x10c   : > { %12271 = vmatmul.mubr.msk.bf16.vlgmr.msra.gmra.mxu1 %vm1282_vm1, %v18252_v32  ;;  %12299 = vmatmul.mubr.msk.bf16.gmra.mxu0 %vm1282_vm1, %v14715_v54 }
 0x10d   : > { %12307 = vmatpush3.bf16.msra.mxu1 %v13462_v51  ;;  %12274 = vmatprep.mubr.msk.bf16.mxu1 %vm1282_vm1, %v18253_v0 }
 0x10e   : > { %12308 = vmatprep.subr.bf16.mxu1 %v13464_v2  ;;  %12302 = vmatprep.mubr.msk.bf16.mxu0 %vm1282_vm1, %v1677_v3 }
 0x111   : > { %12309 = vmatpush3.bf16.msra.mxu1 %v13464_v2 }
 0x112   : > { %12346 = vmatprep.subr.mxu1 %v18250_v20 }
 0x114   : > { %12275 = vmatmul.mubr.msk.bf16.gmra.mxu1 %vm1282_vm1, %v2531_v46  ;;  %12303 = vmatmul.mubr.msk.bf16.gmra.mxu0 %vm1282_vm1, %v2714_v9 }
 0x115   : > { %12278 = vmatprep.mubr.msk.bf16.mxu1 %vm1282_vm1, %v18254_v27  ;;  %12330 = vmatprep.mubr.msk.bf16.mxu0 %vm1282_vm1, %v14582_v15  ;;  %v977_v63 = vpop.f32.mrf.mxu1  ;;  %v3049_v15 = vld [vmem:[#allocation2 + $0x92] sm:$0xff] }
 0x116   : > { %v3066_v48 = vpack.c.bf16 %v3049_v15, %v2514_v4 }
 0x117   : > { %v12137_v39 = vpop.f32.mrf.mxu1 }
 0x119   : > { %v1128_v13 = vpop.f32.mrf.mxu1 }
 0x11b   : > { %v12151_v33 = vpop.f32.mrf.mxu1 }
 0x11c   : > { %12279 = vmatmul.mubr.msk.bf16.gmra.mxu1 %vm1282_vm1, %v18256_v55  ;;  %12331 = vmatmul.mubr.msk.bf16.vlgmr.msra.gmra.mxu0 %vm1282_vm1, %v14589_v56 }
 0x11d   : > { %12282 = vmatprep.mubr.msk.bf16.mxu1 %vm1282_vm1, %v18257_v50  ;;  %12334 = vmatprep.mubr.msk.bf16.mxu0 %vm1282_vm1, %v14632_v53  ;;  %v896_v24 = vpop.f32.mrf.mxu0  ;;  %v1278_v54 = vpop.f32.mrf.mxu1 }
 0x11e   : > { %v897_v59 = vadd.f32 %v11118_v62, %v896_v24 }
 0x11f   : > { %v12130_v21 = vpop.f32.mrf.mxu0  ;;  %v12165_v19 = vpop.f32.mrf.mxu1 }
 0x120   : > { %v978_v45 = vadd.f32 %v977_v63, %v897_v59 }
 0x121   : > { %v1053_v56 = vpop.f32.mrf.mxu0 }
 0x122   : > { %v1054_v3 = vadd.f32 %v1053_v56, %v978_v45 }
 0x123   : > { %v12144_v34 = vpop.f32.mrf.mxu0 }
 0x124   : > { %12283 = vmatmul.mubr.msk.bf16.gmra.mxu1 %vm1282_vm1, %v2535_v14  ;;  %12335 = vmatmul.mubr.msk.bf16.gmra.mxu0 %vm1282_vm1, %v3066_v48  ;;  %v1129_v10 = vadd.f32 %v1128_v13, %v1054_v3  ;;  %v3342_v48 = vld [vmem:[%s18060_s12 + $0x38] sm:$0xff] }
 0x125   : > { %12310 = vmatprep.mubr.msk.bf16.mxu1 %vm1282_vm1, %v14495_v44  ;;  %12338 = vmatprep.mubr.msk.bf16.mxu0 %vm1282_vm1, %v14665_v30  ;;  %v1205_v53 = vpop.f32.mrf.mxu0  ;;  %v3057_v44 = vld [vmem:[#allocation2 + $0x132] sm:$0xff]  ;;  %v2888_v30 = vpack.c.bf16 %v2871_v49, %v14727_v60  ;;  %v14916_v56 = vand.u32 4294901760, %v3342_v48 }
 0x126   : > { %v1206_v1 = vadd.f32 %v1205_v53, %v1129_v10  ;;  %v3070_v26 = vpack.c.bf16 %v3057_v44, %v2522_v42  ;;  %v3341_v10 = vld [vmem:[%s18060_s12 + $0x30] sm:$0xff] }
 0x127   : > { %v12158_v17 = vpop.f32.mrf.mxu0  ;;  %18258 = vst [vmem:[#allocation13_spill] sm:$0xff] %v14916_v56  ;;  %v14929_v49 = vsub.f32 %v3342_v48, %v14916_v56 }
 0x128   : > { %v14834_v57 = vadd.f32 %v1278_v54, %v1206_v1  ;;  %v14926_v17 = vand.u32 4294901760, %v3341_v10 }
 0x129   : > { %18260 = vst [vmem:[#allocation15_spill] sm:$0xff] %v14929_v49  ;;  %12385 = vmatpush3.msra.mxu0 %v14929_v49 }
 0x12a   : > { %18259 = vst [vmem:[#allocation14_spill] sm:$0xff] %v14926_v17  ;;  %12386 = vmatprep.subr.mxu0 %v18250_v20 }
 0x12c   : > { %12311 = vmatmul.mubr.msk.bf16.vlgmr.msra.gmra.mxu1 %vm1282_vm1, %v14513_v61  ;;  %12339 = vmatmul.mubr.msk.bf16.gmra.mxu0 %vm1282_vm1, %v14676_v37  ;;  %v2879_v61 = vld [vmem:[#allocation2 + $0x131] sm:$0xff] }
 0x12d   : > { %12314 = vmatprep.mubr.msk.bf16.mxu1 %vm1282_vm1, %v14547_v5  ;;  %12342 = vmatprep.mubr.msk.bf16.mxu0 %vm1282_vm1, %v14700_v7  ;;  %v2892_v5 = vpack.c.bf16 %v2879_v61, %v14755_v41 }
 0x12e   : > { %12347 = vmatpush3.msra.mxu1 %v14916_v56 }
 0x12f   : > { %12348 = vmatprep.subr.mxu1 %v18250_v20 }
 0x130   : > { %12349 = vmatpush3.msra.mxu1 %v14926_v17 }
 0x131   : > { %12350 = vmatprep.subr.mxu1 %v18250_v20 }
 0x134   : > { %12315 = vmatmul.mubr.msk.bf16.gmra.mxu1 %vm1282_vm1, %v2888_v30  ;;  %12343 = vmatmul.mubr.msk.bf16.gmra.mxu0 %vm1282_vm1, %v3070_v26  ;;  %v3340_v26 = vld [vmem:[%s18060_s12 + $0x28] sm:$0xff] }
 0x135   : > { %12318 = vmatprep.mubr.msk.bf16.mxu1 %vm1282_vm1, %v14573_v31  ;;  %12400 = vmatprep.mubr.msk.f32.mxu0 %vm13807_vm0, %v18250_v20 }
 0x13c   : > { %12319 = vmatmul.mubr.msk.bf16.gmra.mxu1 %vm1282_vm1, %v14619_v40 }
 0x13d   : > { %12322 = vmatprep.mubr.msk.bf16.mxu1 %vm1282_vm1, %v14646_v22 }
 0x144   : > { %12323 = vmatmul.mubr.msk.bf16.gmra.mxu1 %vm1282_vm1, %v2892_v5 }
 0x145   : > { %12362 = vmatprep.mubr.msk.f32.mxu1 %vm13807_vm0, %v18250_v20 }
 0x16c   : > { %v12172_v37 = vpop.f32.mrf.mxu0 }
 0x16e   : > { %v14859_v7 = vpop.f32.mrf.mxu0 }
 0x170   : > { %v12173_v31 = vpop.f32.mrf.mxu0 }
 0x172   : > { %v1780_v60 = vpop.f32.mrf.mxu0 }
 0x174   : > { %v12176_v47 = vpop.f32.mrf.mxu0 }
 0x176   : > { %v14869_v40 = vpop.f32.mrf.mxu0 }
 0x178   : > { %v12177_v22 = vpop.f32.mrf.mxu0 }
 0x179   : > { %v12180_v35 = vpop.f32.mrf.mxu1 }
 0x17a   : > { %v1796_v28 = vpop.f32.mrf.mxu0 }
 0x17b   : > { %v14871_v29 = vpop.f32.mrf.mxu1 }
 0x17c   : > { %v12212_v41 = vpop.f32.mrf.mxu0 }
 0x17d   : > { %v14873_v51 = vpop.f32.mrf.mxu1 }
 0x17e   : > { %v14875_v18 = vpop.f32.mrf.mxu0 }
 0x17f   : > { %v14877_v25 = vpop.f32.mrf.mxu1 }
 0x180   : > { %v12213_v58 = vpop.f32.mrf.mxu0 }
 0x182   : > { %v2075_v23 = vpop.f32.mrf.mxu0 }
 0x184   : > { %v14879_v6 = vpop.f32.mrf.mxu1  ;;  %v12216_v8 = vpop.f32.mrf.mxu0 }
 0x186   : > { %v14881_v52 = vpop.f32.mrf.mxu1  ;;  %v14883_v11 = vpop.f32.mrf.mxu0 }
 0x188   : > { %v14885_v38 = vpop.f32.mrf.mxu1  ;;  %v12217_v12 = vpop.f32.mrf.mxu0 }
 0x18a   : > { %v14887_v36 = vpop.f32.mrf.mxu1  ;;  %v2091_v2 = vpop.f32.mrf.mxu0 }
 0x18c   : > { %v12192_v32 = vpop.f32.mrf.mxu1  ;;  %v12220_v0 = vpop.f32.mrf.mxu0 }
 0x18d   : > { %v1919_v4 = vadd.f32 %v12192_v32, %v12172_v37  ;;  %v14940_v37 = vand.u32 4294901760, %v3340_v26 }
 0x18e   : > { %v14889_v16 = vpop.f32.mrf.mxu1  ;;  %v14891_v46 = vpop.f32.mrf.mxu0 }
 0x18f   : > { %v14893_v9 = vadd.f32 %v12212_v41, %v1919_v4  ;;  %18261 = vst [vmem:[#allocation16_spill] sm:$0xff] %v14940_v37  ;;  %12351 = vmatpush3.msra.mxu1 %v14940_v37  ;;  %v14962_v41 = vsub.f32 %v3340_v26, %v14940_v37 }
 0x190   : > { %v12193_v27 = vpop.f32.mrf.mxu1  ;;  %v14895_v63 = vpop.f32.mrf.mxu0  ;;  %12352 = vmatprep.subr.mxu1 %v18250_v20 }
 0x191   : > { %v1922_v39 = vadd.f32 %v12193_v27, %v12173_v31  ;;  %v14944_v31 = vsub.f32 %v3341_v10, %v14926_v17  ;;  %18264 = vst [vmem:[#allocation19_spill] sm:$0xff] %v14962_v41  ;;  %v3336_v27 = vld [vmem:[%s18060_s12 + $0x8] sm:$0xff] }
 0x192   : > { %v1913_v13 = vpop.f32.mrf.mxu1  ;;  %v14897_v62 = vpop.f32.mrf.mxu0 }
 0x193   : > { %v14899_v33 = vadd.f32 %v12213_v58, %v1922_v39  ;;  %v1914_v55 = vadd.f32 %v1913_v13, %v1780_v60  ;;  %18262 = vst [vmem:[#allocation17_spill] sm:$0xff] %v14944_v31  ;;  %12387 = vmatpush3.msra.mxu0 %v14944_v31  ;;  %v3335_v39 = vld [vmem:[%s18060_s12] sm:$0xff] }
 0x194   : > { %v12196_v50 = vpop.f32.mrf.mxu1  ;;  %v14901_v42 = vpop.f32.mrf.mxu0  ;;  %12388 = vmatprep.subr.mxu0 %v18250_v20 }
 0x195   : > { %v14903_v15 = vadd.f32 %v2075_v23, %v1914_v55  ;;  %v1935_v24 = vadd.f32 %v12196_v50, %v12176_v47  ;;  %12389 = vmatpush3.msra.mxu0 %v14962_v41 }
 0x196   : > { %v14905_v54 = vpop.f32.mrf.mxu1  ;;  %v14907_v59 = vpop.f32.mrf.mxu0  ;;  %12390 = vmatprep.subr.mxu0 %v18250_v20 }
 0x197   : > { %v14909_v21 = vadd.f32 %v12216_v8, %v1935_v24  ;;  %v3338_v8 = vld [vmem:[%s18060_s12 + $0x18] sm:$0xff] }
 0x198   : > { %v12197_v19 = vpop.f32.mrf.mxu1  ;;  %v14911_v14 = vpop.f32.mrf.mxu0 }
 0x199   : > { %v1938_v45 = vadd.f32 %v12197_v19, %v12177_v22  ;;  %v3339_v22 = vld [vmem:[%s18060_s12 + $0x20] sm:$0xff] }
 0x19a   : > { %v1929_v3 = vpop.f32.mrf.mxu1  ;;  %v14918_v34 = vpop.f32.mrf.mxu0 }
 0x19b   : > { %v14923_v53 = vadd.f32 %v12217_v12, %v1938_v45  ;;  %v1930_v1 = vadd.f32 %v1929_v3, %v1796_v28  ;;  %v14958_v28 = vand.u32 4294901760, %v3339_v22  ;;  %v15005_v45 = vand.u32 4294901760, %v3336_v27 }
 0x19c   : > { %v12200_v44 = vpop.f32.mrf.mxu1  ;;  %v14931_v30 = vpop.f32.mrf.mxu0 }
 0x19d   : > { %v14937_v61 = vadd.f32 %v2091_v2, %v1930_v1  ;;  %v1951_v5 = vadd.f32 %v12200_v44, %v12180_v35  ;;  %18263 = vst [vmem:[#allocation18_spill] sm:$0xff] %v14958_v28  ;;  %12353 = vmatpush3.msra.mxu1 %v14958_v28  ;;  %v14974_v2 = vand.u32 4294901760, %v3338_v8  ;;  %v14977_v32 = vsub.f32 %v3339_v22, %v14958_v28 }
 0x19e   : > { %v14946_v60 = vpop.f32.mrf.mxu1  ;;  %v14948_v47 = vpop.f32.mrf.mxu0  ;;  %12354 = vmatprep.subr.mxu1 %v18250_v20  ;;  %18269 = vst [vmem:[#allocation24_spill] sm:$0xff] %v15005_v45  ;;  %v15024_v26 = vsub.f32 %v3336_v27, %v15005_v45 }
 0x19f   : > { %v14955_v35 = vadd.f32 %v12220_v0, %v1951_v5  ;;  %18265 = vst [vmem:[#allocation20_spill] sm:$0xff] %v14974_v2  ;;  %18266 = vst [vmem:[#allocation21_spill] sm:$0xff] %v14977_v32  ;;  %12355 = vmatpush3.msra.mxu1 %v14974_v2  ;;  %12391 = vmatpush3.msra.mxu0 %v14977_v32  ;;  %v14999_v50 = vsub.f32 %v3338_v8, %v14974_v2 }
 0x1a0   : > { %v12201_v58 = vpop.f32.mrf.mxu1  ;;  %v14964_v23 = vpop.f32.mrf.mxu0  ;;  %12392 = vmatprep.subr.mxu0 %v18250_v20  ;;  %12356 = vmatprep.subr.mxu1 %v18250_v20  ;;  %18272 = vst [vmem:[#allocation27_spill] sm:$0xff] %v15024_v26 }
 0x1a1   : > { %v1954_v12 = vadd.f32 %v12201_v58, %v14873_v51  ;;  %v3337_v51 = vld [vmem:[%s18060_s12 + $0x10] sm:$0xff]  ;;  %18267 = vst [vmem:[#allocation22_spill] sm:$0xff] %v14999_v50  ;;  %12393 = vmatpush3.msra.mxu0 %v14999_v50 }
 0x1a2   : > { %v1945_v0 = vpop.f32.mrf.mxu1  ;;  %v14979_v4 = vpop.f32.mrf.mxu0  ;;  %v15001_v24 = vand.u32 4294901760, %v3337_v51  ;;  %12394 = vmatprep.subr.mxu0 %v18250_v20 }
 0x1a3   : > { %v14993_v13 = vadd.f32 %v14895_v63, %v1954_v12  ;;  %v1946_v55 = vadd.f32 %v1945_v0, %v14877_v25  ;;  %v15007_v63 = vand.u32 4294901760, %v3335_v39 }
 0x1a4   : > { %18268 = vst [vmem:[#allocation23_spill] sm:$0xff] %v15001_v24  ;;  %v12204_v19 = vpop.f32.mrf.mxu1  ;;  %v12256_v48 = vpop.f32.mrf.mxu0  ;;  %12357 = vmatpush3.msra.mxu1 %v15001_v24  ;;  %v15016_v10 = vsub.f32 %v3337_v51, %v15001_v24 }
 0x1a5   : > { %18270 = vst [vmem:[#allocation25_spill] sm:$0xff] %v15007_v63  ;;  %v15010_v25 = vadd.f32 %v14897_v62, %v1946_v55  ;;  %v1967_v3 = vadd.f32 %v12204_v19, %v14879_v6  ;;  %12358 = vmatprep.subr.mxu1 %v18250_v20  ;;  %v15031_v62 = vsub.f32 %v3335_v39, %v15007_v63 }
 0x1a6   : > { %18271 = vst [vmem:[#allocation26_spill] sm:$0xff] %v15016_v10  ;;  %v15018_v1 = vpop.f32.mrf.mxu1  ;;  %v15020_v44 = vpop.f32.mrf.mxu0  ;;  %12395 = vmatpush3.msra.mxu0 %v15016_v10  ;;  %12359 = vmatpush3.msra.mxu1 %v15005_v45 }
 0x1a7   : > { %v2149_v6 = vadd.f32 %v14901_v42, %v1967_v3  ;;  %18273 = vst [vmem:[#allocation28_spill] sm:$0xff] %v15031_v62  ;;  %12396 = vmatprep.subr.mxu0 %v18250_v20  ;;  %12360 = vmatprep.subr.mxu1 %v18250_v20 }
 0x1a8   : > { %v12205_v5 = vpop.f32.mrf.mxu1  ;;  %v12257_v22 = vpop.f32.mrf.mxu0  ;;  %12397 = vmatpush3.msra.mxu0 %v15024_v26  ;;  %12361 = vmatpush3.msra.mxu1 %v15007_v63 }
 0x1a9   : > { %v1970_v58 = vadd.f32 %v12205_v5, %v14885_v38  ;;  %12398 = vmatprep.subr.mxu0 %v18250_v20  ;;  %12365 = vmatprep.subr.mxu1 %v18250_v20 }
 0x1aa   : > { %v1961_v42 = vpop.f32.mrf.mxu1  ;;  %v2447_v8 = vpop.f32.mrf.mxu0  ;;  %12399 = vmatpush3.msra.mxu0 %v15031_v62 }
 0x1ab   : > { %v15041_v12 = vadd.f32 %v14911_v14, %v1970_v58  ;;  %v1962_v0 = vadd.f32 %v1961_v42, %v14887_v36  ;;  %12422 = vmatprep.subr.mxu0 %v18250_v20 }
 0x1ac   : > { %v12232_v51 = vpop.f32.mrf.mxu1  ;;  %v12260_v27 = vpop.f32.mrf.mxu0 }
 0x1ad   : > { %v15047_v38 = vadd.f32 %v14918_v34, %v1962_v0  ;;  %v2315_v39 = vadd.f32 %v12232_v51, %v14893_v9 }
 0x1ae   : > { %v15050_v55 = vpop.f32.mrf.mxu1  ;;  %v15052_v19 = vpop.f32.mrf.mxu0 }
 0x1af   : > { %18274 = vst [vmem:[#allocation29_spill] sm:$0xff] %v15047_v38  ;;  %v15055_v14 = vadd.f32 %v14931_v30, %v2315_v39 }
 0x1b0   : > { %v12233_v3 = vpop.f32.mrf.mxu1  ;;  %v15057_v36 = vpop.f32.mrf.mxu0 }
 0x1b1   : > { %v2316_v5 = vadd.f32 %v12233_v3, %v14899_v33 }
 0x1b2   : > { %v2253_v58 = vpop.f32.mrf.mxu1  ;;  %v15060_v42 = vpop.f32.mrf.mxu0 }
 0x1b3   : > { %v15063_v34 = vadd.f32 %v14964_v23, %v2316_v5  ;;  %v2314_v9 = vadd.f32 %v2253_v58, %v14903_v15 }
 0x1b4   : > { %v12236_v0 = vpop.f32.mrf.mxu1  ;;  %v12264_v51 = vpop.f32.mrf.mxu0 }
 0x1b5   : > { %v15067_v63 = vadd.f32 %v14979_v4, %v2314_v9  ;;  %v2319_v30 = vadd.f32 %v12236_v0, %v14909_v21 }
 0x1b6   : > { %v15070_v39 = vpop.f32.mrf.mxu1  ;;  %v15072_v45 = vpop.f32.mrf.mxu0 }
 0x1b7   : > { %v15074_v33 = vadd.f32 %v12256_v48, %v2319_v30 }
 0x1b8   : > { %v12237_v3 = vpop.f32.mrf.mxu1  ;;  %v15076_v24 = vpop.f32.mrf.mxu0 }
 0x1b9   : > { %18275 = vst [vmem:[#allocation30_spill] sm:$0xff] %v15076_v24  ;;  %v2320_v23 = vadd.f32 %v12237_v3, %v14923_v53 }
 0x1ba   : > { %v2269_v5 = vpop.f32.mrf.mxu1  ;;  %v15079_v15 = vpop.f32.mrf.mxu0 }
 0x1bb   : > { %18276 = vst [vmem:[#allocation31_spill] sm:$0xff] %v15079_v15  ;;  %v15081_v58 = vadd.f32 %v12257_v22, %v2320_v23  ;;  %v2318_v4 = vadd.f32 %v2269_v5, %v14937_v61 }
 0x1bc   : > { %v12240_v9 = vpop.f32.mrf.mxu1  ;;  %v15084_v21 = vpop.f32.mrf.mxu0 }
 0x1bd   : > { %v15086_v0 = vadd.f32 %v2447_v8, %v2318_v4  ;;  %v2323_v48 = vadd.f32 %v12240_v9, %v14955_v35 }
 0x1be   : > { %v15089_v30 = vpop.f32.mrf.mxu1  ;;  %v15091_v2 = vpop.f32.mrf.mxu0 }
 0x1bf   : > { %v15093_v28 = vadd.f32 %v12260_v27, %v2323_v48 }
 0x1c0   : > { %v15095_v53 = vpop.f32.mrf.mxu1  ;;  %v15097_v3 = vpop.f32.mrf.mxu0 }
 0x1c2   : > { %v15099_v22 = vpop.f32.mrf.mxu1  ;;  %v15101_v61 = vpop.f32.mrf.mxu0 }
 0x1c4   : > { %v12244_v23 = vpop.f32.mrf.mxu1  ;;  %v15103_v5 = vpop.f32.mrf.mxu0 }
 0x1c5   : > { %v2327_v8 = vadd.f32 %v12244_v23, %v2149_v6 }
 0x1c6   : > { %v15105_v4 = vpop.f32.mrf.mxu1  ;;  %v15107_v35 = vpop.f32.mrf.mxu0 }
 0x1c7   : > { %v15109_v9 = vadd.f32 %v12264_v51, %v2327_v8 }
 0x1c8   : > { %v15111_v27 = vpop.f32.mrf.mxu1  ;;  %v15113_v48 = vpop.f32.mrf.mxu0 }
 0x1c9   : > { %18277 = vst [vmem:[#allocation32_spill] sm:$0xff] %v15109_v9  ;;  %18278 = vst [vmem:[#allocation33_spill] sm:$0xff] %v15113_v48 }
 0x1ca   : > { %v15115_v37 = vpop.f32.mrf.mxu1  ;;  %v15117_v17 = vpop.f32.mrf.mxu0 }
 0x1cb   : > { %18279 = vst [vmem:[#allocation34_spill] sm:$0xff] %v15115_v37  ;;  %18280 = vst [vmem:[#allocation35_spill] sm:$0xff] %v15117_v17 }
 0x1cc   : > { %v12272_v56 = vpop.f32.mrf.mxu1  ;;  %v15119_v62 = vpop.f32.mrf.mxu0 }
 0x1cd   : > { %18281 = vst [vmem:[#allocation36_spill] sm:$0xff] %v15119_v62 }
 0x1ce   : > { %v2606_v26 = vpop.f32.mrf.mxu1  ;;  %v15121_v10 = vpop.f32.mrf.mxu0 }
 0x1cf   : > { %18282 = vst [vmem:[#allocation37_spill] sm:$0xff] %v15121_v10 }
 0x1d0   : > { %v12273_v6 = vpop.f32.mrf.mxu1  ;;  %v15123_v23 = vpop.f32.mrf.mxu0 }
 0x1d1   : > { %18283 = vst [vmem:[#allocation38_spill] sm:$0xff] %v15123_v23 }
 0x1d2   : > { %v2609_v50 = vpop.f32.mrf.mxu1  ;;  %v15125_v51 = vpop.f32.mrf.mxu0 }
 0x1d3   : > { %18284 = vst [vmem:[#allocation39_spill] sm:$0xff] %v15125_v51  ;;  %v1911_v51 = vadd.f32 %v14889_v16, %v14859_v7  ;;  %v1927_v16 = vadd.f32 %v14905_v54, %v14869_v40 }
 0x1d4   : > { %v12276_v8 = vpop.f32.mrf.mxu1  ;;  %v15127_v32 = vpop.f32.mrf.mxu0 }
 0x1d5   : > { %18285 = vst [vmem:[#allocation40_spill] sm:$0xff] %v15127_v32  ;;  %v2135_v37 = vadd.f32 %v14875_v18, %v1911_v51  ;;  %v2671_v51 = vadd.f32 %v12272_v56, %v15055_v14 }
 0x1d6   : > { %v2622_v20 = vpop.f32.mrf.mxu1  ;;  %v15129_v41 = vpop.f32.mrf.mxu0 }
 0x1d7   : > { %18286 = vst [vmem:[#allocation41_spill] sm:$0xff] %v15129_v41  ;;  %v2313_v24 = vadd.f32 %v15050_v55, %v2135_v37 }
 0x1d8   : > { %v15131_v31 = vpop.f32.mrf.mxu1  ;;  %v15133_v49 = vpop.f32.mrf.mxu0 }
 0x1d9   : > { %18287 = vst [vmem:[#allocation42_spill] sm:$0xff] %v15133_v49  ;;  %v3250_v49 = vrot.slane %v14834_v57, %v14213_v43  ;;  %v2491_v57 = vadd.f32 %v14948_v47, %v2313_v24 }
 0x1da   : > { %v15135_v15 = vpop.f32.mrf.mxu1  ;;  %v15137_v9 = vpop.f32.mrf.mxu0 }
 0x1db   : > { %18288 = vst [vmem:[#allocation43_spill] sm:$0xff] %v15137_v9  ;;  %v3258_v40 = vrot.slane %v3250_v49, %v14213_v43 }
 0x1dc   : > { %v15139_v10 = vpop.f32.mrf.mxu1  ;;  %v12332_v23 = vpop.f32.mrf.mxu0 }
 0x1de   : > { %v15143_v62 = vpop.f32.mrf.mxu1  ;;  %v3141_v32 = vpop.f32.mrf.mxu0 }
 0x1df   : > { %18289 = vst [vmem:[#allocation44_spill] sm:$0xff] %v15143_v62 }
 0x1e0   : > { %v15145_v17 = vpop.f32.mrf.mxu1  ;;  %v12333_v41 = vpop.f32.mrf.mxu0 }
 0x1e1   : > { %18290 = vst [vmem:[#allocation45_spill] sm:$0xff] %v15145_v17  ;;  %v3251_v17 = vcombine.high %v3250_v49, %v3250_v49  ;;  %v2670_v49 = vadd.f32 %v2609_v50, %v15067_v63 }
 0x1e2   : > { %v15150_v38 = vpop.f32.mrf.mxu1  ;;  %v15152_v9 = vpop.f32.mrf.mxu0 }
 0x1e3   : > { %18291 = vst [vmem:[#allocation46_spill] sm:$0xff] %v15150_v38  ;;  %v1943_v38 = vadd.f32 %v14946_v60, %v14871_v29  ;;  %v3265_v54 = vrot.slane %v3251_v17, %v14213_v43  ;;  %v2850_v29 = vadd.f32 %v15084_v21, %v2671_v51  ;;  %v2672_v60 = vadd.f32 %v12273_v6, %v15063_v34 }
 0x1e4   : > { %v15155_v48 = vpop.f32.mrf.mxu1  ;;  %v15157_v7 = vpop.f32.mrf.mxu0  ;;  %v2324_v21 = vadd.f32 %v15095_v53, %v14993_v13  ;;  %v2676_v13 = vadd.f32 %v15131_v31, %v15081_v58 }
 0x1e5   : > { %18292 = vst [vmem:[#allocation47_spill] sm:$0xff] %v15155_v48  ;;  %18293 = vst [vmem:[#allocation48_spill] sm:$0xff] %v15157_v7  ;;  %v2139_v48 = vadd.f32 %v14883_v11, %v1927_v16  ;;  %v2669_v7 = vadd.f32 %v2606_v26, %v2491_v57  ;;  %v2143_v24 = vadd.f32 %v14891_v46, %v1943_v38 }
 0x1e6   : > { %v15161_v62 = vpop.f32.mrf.mxu1  ;;  %v15163_v18 = vpop.f32.mrf.mxu0  ;;  %v1959_v11 = vadd.f32 %v15018_v1, %v14881_v52  ;;  %v15201_v52 = vld [vmem:[%s18298_s2] ss:$0 sm:$0xff]  ;;  %v2851_v63 = vadd.f32 %v15097_v3, %v2672_v60 }
 0x1e7   : > { %18294 = vst [vmem:[#allocation49_spill] sm:$0xff] %v15161_v62  ;;  %18295 = vst [vmem:[#allocation50_spill] sm:$0xff] %v15163_v18  ;;  %v18296_v62 = vld [vmem:[#allocation11_spill] sm:$0xff]  ;;  %v2317_v56 = vadd.f32 %v15070_v39, %v2139_v48  ;;  %v2848_v14 = vadd.f32 %v15091_v2, %v2669_v7  ;;  %v2321_v34 = vadd.f32 %v15089_v30, %v2143_v24  ;;  %v18300_v24 = vld [vmem:[#allocation30_spill] sm:$0xff] }
 0x1e8   : > { %v15169_v37 = vpop.f32.mrf.mxu1  ;;  %v15171_v55 = vpop.f32.mrf.mxu0  ;;  %v15177_v18 = vsub.s32 0, %v18296_v62  ;;  %v2147_v38 = vadd.f32 %v14907_v59, %v1959_v11  ;;  %v2849_v48 = vadd.f32 %v15101_v61, %v2670_v49  ;;  %v2675_v30 = vadd.f32 %v12276_v8, %v15074_v33  ;;  %v18302_v49 = vld [vmem:[#allocation34_spill] sm:$0xff] }
 0x1e9   : > { %v2495_v50 = vadd.f32 %v15020_v44, %v2317_v56  ;;  %v2499_v3 = vadd.f32 %v15052_v19, %v2321_v34  ;;  %v2322_v59 = vadd.f32 %v15099_v22, %v15010_v25  ;;  %v2328_v19 = vadd.f32 %v15111_v27, %v15041_v12  ;;  %v18299_v27 = vld [vmem:[#allocation33_spill] sm:$0xff] }
 0x1ea   : > { %18297 = vst [vmem:[#allocation51_spill] sm:$0xff] %v15177_v18  ;;  %v15179_v47 = vpop.f32.mrf.mxu1  ;;  %v15188_v17 = vpop.f32.mrf.mxu0  ;;  %v15192_v57 = vrot.slane %v3258_v40, %v15177_v18  ;;  %v15195_v39 = vrot.slane %v3265_v54, %v15177_v18  ;;  %v2854_v25 = vadd.f32 %v15103_v5, %v2675_v30  ;;  %v2674_v22 = vadd.f32 %v15135_v15, %v15086_v0 }
 0x1eb   : > { %v2673_v51 = vadd.f32 %v2622_v20, %v2495_v50  ;;  %v2679_v56 = vadd.f32 %v15139_v10, %v15093_v28  ;;  %v2855_v60 = vadd.f32 %v18299_v27, %v2676_v13  ;;  %v2506_v11 = vadd.f32 %v18300_v24, %v2328_v19  ;;  %v18305_v50 = vld [vmem:[#allocation36_spill] sm:$0xff] }
 0x1ec   : > { %v12312_v26 = vpop.f32.mrf.mxu1  ;;  %v15210_v7 = vpop.f32.mrf.mxu0 }
 0x1ed   : > { %v3028_v16 = vadd.f32 %v12312_v26, %v2850_v29  ;;  %v2852_v58 = vadd.f32 %v15107_v35, %v2673_v51  ;;  %v2500_v29 = vadd.f32 %v15060_v42, %v2322_v59  ;;  %v18303_v26 = vld [vmem:[#allocation35_spill] sm:$0xff] }
 0x1ee   : > { %v2963_v46 = vpop.f32.mrf.mxu1  ;;  %v15229_v31 = vpop.f32.mrf.mxu0 }
 0x1ef   : > { %v3206_v2 = vadd.f32 %v12332_v23, %v3028_v16  ;;  %v3026_v1 = vadd.f32 %v2963_v46, %v2848_v14  ;;  %v2325_v23 = vadd.f32 %v15105_v4, %v2147_v38  ;;  %v18304_v14 = vld [vmem:[#allocation48_spill] sm:$0xff] }
 0x1f0   : > { %v12313_v6 = vpop.f32.mrf.mxu1  ;;  %v12341_v46 = vpop.f32.mrf.mxu0 }
 0x1f1   : > { %v3229_v40 = vadd.f32 %v15201_v52, %v3206_v2  ;;  %v3204_v44 = vadd.f32 %v3141_v32, %v3026_v1  ;;  %v3029_v54 = vadd.f32 %v12313_v6, %v2851_v63  ;;  %v2502_v32 = vadd.f32 %v15057_v36, %v2324_v21  ;;  %v18306_v1 = vld [vmem:[#allocation50_spill] sm:$0xff]  ;;  %v18308_v6 = vld [vmem:[#allocation45_spill] sm:$0xff] }
 0x1f2   : > { %v2966_v53 = vpop.f32.mrf.mxu1  ;;  %v2503_v12 = vadd.f32 %v15072_v45, %v2325_v23  ;;  %v2853_v45 = vadd.f32 %v18303_v26, %v2674_v22  ;;  %v2858_v63 = vadd.f32 %v18305_v50, %v2679_v56  ;;  %v18310_v56 = vld [vmem:[#allocation37_spill] sm:$0xff] }
 0x1f3   : > { %v15220_v33 = vadd.f32 %v15192_v57, %v3229_v40  ;;  %v3227_v20 = vadd.f32 %v15201_v52, %v3204_v44  ;;  %v3207_v61 = vadd.f32 %v12333_v41, %v3029_v54  ;;  %v3027_v8 = vadd.f32 %v2966_v53, %v2849_v48  ;;  %v18307_v48 = vld [vmem:[#allocation44_spill] sm:$0xff] }
 0x1f4   : > { %v12316_v4 = vpop.f32.mrf.mxu1  ;;  %v2677_v30 = vadd.f32 %v18307_v48, %v2499_v3  ;;  %v2680_v51 = vadd.f32 %v18308_v6, %v2502_v32 }
 0x1f5   : > { %v3230_v41 = vadd.f32 %v15201_v52, %v3207_v61  ;;  %v3205_v36 = vadd.f32 %v15152_v9, %v3027_v8  ;;  %v15239_v5 = vadd.f32 %v15192_v57, %v3227_v20  ;;  %v3032_v15 = vadd.f32 %v12316_v4, %v2854_v25  ;;  %v18301_v9 = vld [vmem:[#allocation29_spill] sm:$0xff]  ;;  %v18309_v20 = vld [vmem:[#allocation46_spill] sm:$0xff]  ;;  %v3176_v25 = vpop.f32.mrf.mxu0 }
 0x1f6   : > { %v2979_v0 = vpop.f32.mrf.mxu1  ;;  %v2326_v42 = vadd.f32 %v18302_v49, %v18301_v9  ;;  %v2678_v61 = vadd.f32 %v18309_v20, %v2500_v29  ;;  %v3296_v3 = vsel %vm3292_vm5, %v15220_v33, 0.0  ;;  %v18315_v49 = vld [vmem:[#allocation39_spill] sm:$0xff]  ;;  %v2684_v20 = vadd.f32 %v15169_v37, %v2506_v11 }
 0x1f7   : > { %v15243_v35 = vadd.f32 %v15192_v57, %v3230_v41  ;;  %v3228_v28 = vadd.f32 %v15201_v52, %v3205_v36  ;;  %v3030_v10 = vadd.f32 %v2979_v0, %v2852_v58  ;;  %v3210_v16 = vadd.f32 %v18304_v14, %v3032_v15  ;;  %v18311_v36 = vld [vmem:[#allocation38_spill] sm:$0xff]  ;;  %v18312_v15 = vld [vmem:[#allocation32_spill] sm:$0xff]  ;;  %v18313_v0 = vld [vmem:[#allocation47_spill] sm:$0xff] }
 0x1f8   : > { %v12317_v34 = vpop.f32.mrf.mxu1  ;;  %v3293_v40 = vsel %vm3292_vm5, %v15239_v5, 0.0  ;;  %v2856_v41 = vadd.f32 %v18310_v56, %v2677_v30  ;;  %v2859_v29 = vadd.f32 %v18311_v36, %v2680_v51  ;;  %v2683_v27 = vadd.f32 %v18313_v0, %v18312_v15  ;;  %v18317_v30 = vld [vmem:[#allocation31_spill] sm:$0xff] }
 0x1f9   : > { %v15253_v2 = vadd.f32 %v15192_v57, %v3228_v28  ;;  %v3208_v38 = vadd.f32 %v18306_v1, %v3030_v10  ;;  %v3033_v21 = vadd.f32 %v12317_v34, %v2855_v60  ;;  %v3233_v44 = vadd.f32 %v15201_v52, %v3210_v16 }
 0x1fa   : > { %v2982_v54 = vpop.f32.mrf.mxu1  ;;  %v3298_v10 = vsel %vm3292_vm5, %v15243_v35, 0.0  ;;  %v2857_v26 = vadd.f32 %v18315_v49, %v2678_v61  ;;  %v2504_v6 = vadd.f32 %v18317_v30, %v2326_v42 }
 0x1fb   : > { %v3294_v59 = vsel %vm3292_vm5, %v15253_v2, 0.0  ;;  %v3231_v23 = vadd.f32 %v15201_v52, %v3208_v38  ;;  %v3211_v13 = vadd.f32 %v15171_v55, %v3033_v21  ;;  %v3031_v53 = vadd.f32 %v2982_v54, %v2853_v45  ;;  %v18316_v45 = vld [vmem:[#allocation49_spill] sm:$0xff] }
 0x1fc   : > { %v3295_v8 = vadd.f32 %v3294_v59, %v3293_v40  ;;  %v15269_v32 = vadd.f32 %v15192_v57, %v3233_v44  ;;  %v12320_v19 = vpop.f32.mrf.mxu1  ;;  %v2681_v14 = vadd.f32 %v18316_v45, %v2503_v12 }
 0x1fd   : > { %v15272_v22 = vadd.f32 %v15192_v57, %v3231_v23  ;;  %v3234_v4 = vadd.f32 %v15201_v52, %v3211_v13  ;;  %v3209_v58 = vadd.f32 %v15188_v17, %v3031_v53  ;;  %v3036_v55 = vadd.f32 %v12320_v19, %v2858_v63  ;;  %v12344_v63 = vpop.f32.mrf.mxu0  ;;  %v18319_v13 = vld [vmem:[#allocation41_spill] sm:$0xff] }
 0x1fe   : > { %v3297_v60 = vadd.f32 %v3296_v3, %v3295_v8  ;;  %v2995_v28 = vpop.f32.mrf.mxu1  ;;  %v2860_v53 = vadd.f32 %v18319_v13, %v2681_v14 }
 0x1ff   : > { %v15283_v24 = vadd.f32 %v15192_v57, %v3234_v4  ;;  %v3232_v9 = vadd.f32 %v15201_v52, %v3209_v58  ;;  %v3214_v17 = vadd.f32 %v15210_v7, %v3036_v55  ;;  %v3034_v34 = vadd.f32 %v2995_v28, %v2856_v41  ;;  %v18318_v7 = vld [vmem:[#allocation40_spill] sm:$0xff]  ;;  %v3189_v8 = vpop.f32.mrf.mxu0 }
 0x200   : > { %v3299_v16 = vadd.f32 %v3298_v10, %v3297_v60  ;;  %v12321_v50 = vpop.f32.mrf.mxu1  ;;  %v3300_v1 = vsel %vm3292_vm5, %v15272_v22, 0.0  ;;  %v2862_v51 = vadd.f32 %v18318_v7, %v2683_v27  ;;  %v3304_v55 = vsel %vm3292_vm5, %v15269_v32, 0.0  ;;  %v18321_v27 = vld [vmem:[#allocation43_spill] sm:$0xff] }
 0x201   : > { %18314 = vst [vmem:[#allocation33_spill] sm:$0xff] %v15283_v24  ;;  %v15292_v38 = vadd.f32 %v15192_v57, %v3232_v9  ;;  %v3237_v21 = vadd.f32 %v15201_v52, %v3214_v17  ;;  %v3037_v48 = vadd.f32 %v12321_v50, %v2859_v29  ;;  %v3212_v12 = vadd.f32 %v15229_v31, %v3034_v34  ;;  %v18320_v29 = vld [vmem:[#allocation42_spill] sm:$0xff] }
 0x202   : > { %v3301_v40 = vadd.f32 %v3300_v1, %v3299_v16  ;;  %v2998_v44 = vpop.f32.mrf.mxu1  ;;  %v2682_v31 = vadd.f32 %v15179_v47, %v2504_v6  ;;  %v2863_v47 = vadd.f32 %v18320_v29, %v2684_v20  ;;  %v3306_v17 = vsel %vm3292_vm5, %v15283_v24, 0.0 }
 0x203   : > { %v3302_v54 = vsel %vm3292_vm5, %v15292_v38, 0.0  ;;  %v15301_v59 = vadd.f32 %v15195_v39, %v3237_v21  ;;  %v3215_v23 = vadd.f32 %v12341_v46, %v3037_v48  ;;  %v3035_v57 = vadd.f32 %v2998_v44, %v2857_v26 }
 0x204   : > { %v3303_v61 = vadd.f32 %v3302_v54, %v3301_v40  ;;  %v3235_v42 = vadd.f32 %v15201_v52, %v3212_v12  ;;  %v12324_v3 = vpop.f32.mrf.mxu1  ;;  %v2861_v60 = vadd.f32 %v18321_v27, %v2682_v31  ;;  %v18324_v27 = vld [vmem:[#allocation15_spill] sm:$0xff] }
 0x205   : > { %v3238_v19 = vadd.f32 %v15201_v52, %v3215_v23  ;;  %v3213_v4 = vadd.f32 %v3176_v25, %v3035_v57  ;;  %v3040_v58 = vadd.f32 %v12324_v3, %v2862_v51  ;;  %v12345_v25 = vpop.f32.mrf.mxu0  ;;  %v3317_v30 = vsel %vm3292_vm5, %v15301_v59, 0.0 }
 0x206   : > { %v15311_v46 = vadd.f32 %v15195_v39, %v3235_v42  ;;  %v3011_v56 = vpop.f32.mrf.mxu1  ;;  %v3305_v15 = vadd.f32 %v3304_v55, %v3303_v61 }
 0x207   : > { %v15314_v37 = vadd.f32 %v15195_v39, %v3238_v19  ;;  %v3236_v11 = vadd.f32 %v15201_v52, %v3213_v4  ;;  %v3218_v41 = vadd.f32 %v12344_v63, %v3040_v58  ;;  %v3038_v36 = vadd.f32 %v3011_v56, %v2860_v53  ;;  %v3192_v48 = vpop.f32.mrf.mxu0 }
 0x208   : > { %v12325_v0 = vpop.f32.mrf.mxu1  ;;  %v3314_v49 = vsel %vm3292_vm5, %v15311_v46, 0.0  ;;  %v3307_v63 = vadd.f32 %v3306_v17, %v3305_v15 }
 0x209   : > { %v15320_v28 = vadd.f32 %v15195_v39, %v3236_v11  ;;  %v3241_v10 = vadd.f32 %v15201_v52, %v3218_v41  ;;  %v3216_v9 = vadd.f32 %v3189_v8, %v3038_v36  ;;  %v3041_v26 = vadd.f32 %v12325_v0, %v2863_v47 }
 0x20a   : > { %v3014_v45 = vpop.f32.mrf.mxu1  ;;  %v3319_v12 = vsel %vm3292_vm5, %v15314_v37, 0.0  ;;  %v3308_v54 = vrot.slane %v3307_v63, 4 }
 0x20b   : > { %v3315_v14 = vsel %vm3292_vm5, %v15320_v28, 0.0  ;;  %v15330_v16 = vadd.f32 %v15195_v39, %v3241_v10  ;;  %v3239_v34 = vadd.f32 %v15201_v52, %v3216_v9  ;;  %v3039_v50 = vadd.f32 %v3014_v45, %v2861_v60  ;;  %v18326_v9 = vld [vmem:[#allocation17_spill] sm:$0xff]  ;;  %v18328_v45 = vld [vmem:[#allocation19_spill] sm:$0xff] }
 0x20c   : > { %v3316_v1 = vadd.f32 %v3315_v14, %v3314_v49  ;;  %v3219_v21 = vadd.f32 %v12345_v25, %v3041_v26  ;;  %v3309_v42 = vadd.f32 %v3308_v54, %v3307_v63  ;;  %v15361_v60 = vand.u32 4294901760, %v18324_v27 }
 0x20d   : > { %18322 = vst [vmem:[#allocation30_spill] sm:$0xff] %v15330_v16  ;;  %v15336_v6 = vadd.f32 %v15195_v39, %v3239_v34  ;;  %v3217_v7 = vadd.f32 %v3192_v48, %v3039_v50  ;;  %v15367_v17 = vand.u32 4294901760, %v18326_v9  ;;  %v15375_v14 = vand.u32 4294901760, %v18328_v45 }
 0x20e   : > { %v3318_v51 = vadd.f32 %v3317_v30, %v3316_v1  ;;  %v3242_v40 = vadd.f32 %v15201_v52, %v3219_v21  ;;  %v3310_v19 = vrot.slane %v3309_v42, 2  ;;  %18325 = vst [vmem:[#allocation34_spill] sm:$0xff] %v15361_v60  ;;  %v3452_v49 = vsub.f32 %v18324_v27, %v15361_v60  ;;  %v18331_v21 = vld [vmem:[#allocation21_spill] sm:$0xff] }
 0x20f   : > { %v3240_v44 = vadd.f32 %v15201_v52, %v3217_v7  ;;  %v3321_v13 = vsel %vm3292_vm5, %v15336_v6, 0.0  ;;  %v3325_v52 = vsel %vm3292_vm5, %v15330_v16, 0.0  ;;  %18327 = vst [vmem:[#allocation35_spill] sm:$0xff] %v15367_v17  ;;  %18329 = vst [vmem:[#allocation48_spill] sm:$0xff] %v15375_v14  ;;  %v3459_v34 = vsub.f32 %v18326_v9, %v15367_v17 }
 0x210   : > { %v3320_v23 = vadd.f32 %v3319_v12, %v3318_v51  ;;  %v15343_v57 = vadd.f32 %v15195_v39, %v3242_v40  ;;  %v3311_v55 = vadd.f32 %v3310_v19, %v3309_v42  ;;  %v18330_v50 = vmov 0.0   ;;  %v18333_v40 = vld [vmem:[#allocation22_spill] sm:$0xff]  ;;  %v18337_v42 = vld [vmem:[#allocation27_spill] sm:$0xff] }
 0x211   : > { %v15348_v53 = vadd.f32 %v15195_v39, %v3240_v44  ;;  %v15386_v1 = vand.u32 4294901760, %v3452_v49  ;;  %v15389_v48 = vand.u32 4294901760, %v18331_v21  ;;  %v3466_v30 = vsub.f32 %v18328_v45, %v15375_v14  ;;  %v18348_v49 = vld [vmem:[#allocation25_spill] sm:$0xff]  ;;  %5729 = vst.msk [vmem:[#allocation3 + $0x8] sm:$0x3] %vm5728_vm7, %v18330_v50 }
 0x212   : > { %18323 = vst [vmem:[#allocation29_spill] sm:$0xff] %v15343_v57  ;;  %v3322_v20 = vadd.f32 %v3321_v13, %v3320_v23  ;;  %v3327_v31 = vsel %vm3292_vm5, %v15343_v57, 0.0  ;;  %v3312_v11 = vrot.slane %v3311_v55, 1  ;;  %v15395_v51 = vand.u32 4294901760, %v3459_v34  ;;  %v18335_v23 = vld [vmem:[#allocation26_spill] sm:$0xff]  ;;  %v3890_v34 = vld [vmem:[%s18061_s13 + $0x10] sm:$0xff] }
 0x213   : > { %v3323_v61 = vsel %vm3292_vm5, %v15348_v53, 0.0  ;;  %18332 = vst [vmem:[#allocation36_spill] sm:$0xff] %v15389_v48  ;;  %v15398_v12 = vand.u32 4294901760, %v18333_v40  ;;  %v3473_v44 = vsub.f32 %v18331_v21, %v15389_v48  ;;  %v15405_v54 = vand.u32 4294901760, %v3466_v30  ;;  %5731 = vst.msk [vmem:[#allocation3 + $0xa8] sm:$0x3] %vm5728_vm7, %v18330_v50 }
 0x214   : > { %v3324_v3 = vadd.f32 %v3323_v61, %v3322_v20  ;;  %v3313_v29 = vadd.f32 %v3312_v11, %v3311_v55  ;;  %v15408_v13 = vand.u32 4294901760, %v18335_v23  ;;  %v18341_v11 = vld [vmem:[#allocation13_spill] sm:$0xff]  ;;  %v15516_v30 = vand.u32 4294901760, %v3890_v34  ;;  %5734 = vst.msk [vmem:[#allocation3 + $0x98] sm:$0x3] %vm5728_vm7, %v18330_v50 }
 0x215   : > { %18334 = vst [vmem:[#allocation50_spill] sm:$0xff] %v15398_v12  ;;  %v3480_v20 = vsub.f32 %v18333_v40, %v15398_v12  ;;  %v15416_v61 = vand.u32 4294901760, %v3473_v44  ;;  %5736 = vst.msk [vmem:[#allocation3 + $0x138] sm:$0x3] %vm5728_vm7, %v18330_v50 }
 0x216   : > { %v3326_v8 = vadd.f32 %v3325_v52, %v3324_v3  ;;  %18336 = vst [vmem:[#allocation44_spill] sm:$0xff] %v15408_v13  ;;  %v15419_v3 = vand.u32 4294901760, %v18337_v42  ;;  %v3487_v52 = vsub.f32 %v18335_v23, %v15408_v13  ;;  %v15527_v44 = vsub.f32 %v3890_v34, %v15516_v30  ;;  %5738 = vst.msk [vmem:[#allocation3] sm:$0x1] %vm5737_vm8, %v18330_v50 }
 0x217   : > { %5739 = vst.msk [vmem:[#allocation3 + $0x10] sm:$0x1] %vm5737_vm8, %v18330_v50  ;;  %5740 = vst.msk [vmem:[#allocation3 + $0x20] sm:$0x1] %vm5737_vm8, %v18330_v50 }
 0x218   : > { %v3328_v4 = vadd.f32 %v3327_v31, %v3326_v8  ;;  %18338 = vst [vmem:[#allocation45_spill] sm:$0xff] %v15419_v3  ;;  %v15427_v8 = vand.u32 4294901760, %v3480_v20  ;;  %v18339_v31 = vld [vmem:[#allocation28_spill] sm:$0xff]  ;;  %5741 = vst.msk [vmem:[#allocation3 + $0x30] sm:$0x1] %vm5737_vm8, %v18330_v50 }
 0x219   : > { %v15430_v19 = vand.u32 4294901760, %v18339_v31  ;;  %5742 = vst.msk [vmem:[#allocation3 + $0x40] sm:$0x1] %vm5737_vm8, %v18330_v50  ;;  %5743 = vst.msk [vmem:[#allocation3 + $0x50] sm:$0x1] %vm5737_vm8, %v18330_v50 }
 0x21a   : > { %v3329_v58 = vrot.slane %v3328_v4, 4  ;;  %5744 = vst.msk [vmem:[#allocation3 + $0x60] sm:$0x1] %vm5737_vm8, %v18330_v50  ;;  %5745 = vst.msk [vmem:[#allocation3 + $0x70] sm:$0x1] %vm5737_vm8, %v18330_v50 }
 0x21b   : > { %18340 = vst [vmem:[#allocation46_spill] sm:$0xff] %v15430_v19  ;;  %v3501_v55 = vsub.f32 %v18339_v31, %v15430_v19  ;;  %5746 = vst.msk [vmem:[#allocation3 + $0x80] sm:$0x1] %vm5737_vm8, %v18330_v50 }
 0x21c   : > { %v3330_v56 = vadd.f32 %v3329_v58, %v3328_v4  ;;  %v3494_v4 = vsub.f32 %v18337_v42, %v15419_v3  ;;  %v15438_v58 = vand.u32 4294901760, %v3487_v52  ;;  %v3888_v52 = vld [vmem:[%s18061_s13] sm:$0xff]  ;;  %5747 = vst.msk [vmem:[#allocation3 + $0x90] sm:$0x1] %vm5737_vm8, %v18330_v50  ;;  %5748 = vst.msk [vmem:[#allocation3 + $0xa0] sm:$0x1] %vm5737_vm8, %v18330_v50 }
 0x21d   : > { %v15544_v34 = vand.u32 4294901760, %v3888_v52  ;;  %5749 = vst.msk [vmem:[#allocation3 + $0xb0] sm:$0x1] %vm5737_vm8, %v18330_v50  ;;  %5750 = vst.msk [vmem:[#allocation3 + $0xc0] sm:$0x1] %vm5737_vm8, %v18330_v50 }
 0x21e   : > { %v3331_v39 = vrot.slane %v3330_v56, 2  ;;  %5751 = vst.msk [vmem:[#allocation3 + $0xd0] sm:$0x1] %vm5737_vm8, %v18330_v50  ;;  %5752 = vst.msk [vmem:[#allocation3 + $0xe0] sm:$0x1] %vm5737_vm8, %v18330_v50 }
 0x21f   : > { %5753 = vst.msk [vmem:[#allocation3 + $0xf0] sm:$0x1] %vm5737_vm8, %v18330_v50  ;;  %5754 = vst.msk [vmem:[#allocation3 + $0x100] sm:$0x1] %vm5737_vm8, %v18330_v50 }
 0x220   : > { %v3332_v41 = vadd.f32 %v3331_v39, %v3330_v56  ;;  %v15446_v56 = vand.u32 4294901760, %v3494_v4  ;;  %v15451_v39 = vand.u32 4294901760, %v3501_v55  ;;  %v15539_v55 = vand.u32 4294901760, %v15527_v44  ;;  %5755 = vst.msk [vmem:[#allocation3 + $0x110] sm:$0x1] %vm5737_vm8, %v18330_v50 }
 0x221   : > { %5756 = vst.msk [vmem:[#allocation3 + $0x120] sm:$0x1] %vm5737_vm8, %v18330_v50  ;;  %5757 = vst.msk [vmem:[#allocation3 + $0x130] sm:$0x1] %vm5737_vm8, %v18330_v50 }
 0x222   : > { %v3333_v36 = vrot.slane %v3332_v41, 1  ;;  %5758 = vst.msk [vmem:[#allocation3 + $0x9] sm:$0x1] %vm5737_vm8, %v18330_v50  ;;  %5759 = vst.msk [vmem:[#allocation3 + $0x19] sm:$0x1] %vm5737_vm8, %v18330_v50 }
 0x223   : > { %5760 = vst.msk [vmem:[#allocation3 + $0x29] sm:$0x1] %vm5737_vm8, %v18330_v50  ;;  %5761 = vst.msk [vmem:[#allocation3 + $0x39] sm:$0x1] %vm5737_vm8, %v18330_v50 }
 0x224   : > { %v3334_v47 = vadd.f32 %v3333_v36, %v3332_v41  ;;  %v18342_v41 = vld [vmem:[#allocation14_spill] sm:$0xff]  ;;  %v18343_v36 = vld [vmem:[#allocation16_spill] sm:$0xff]  ;;  %5762 = vst.msk [vmem:[#allocation3 + $0x49] sm:$0x1] %vm5737_vm8, %v18330_v50  ;;  %5763 = vst.msk [vmem:[#allocation3 + $0x59] sm:$0x1] %vm5737_vm8, %v18330_v50 }
 0x225   : > { %5764 = vst.msk [vmem:[#allocation3 + $0x69] sm:$0x1] %vm5737_vm8, %v18330_v50  ;;  %5765 = vst.msk [vmem:[#allocation3 + $0x79] sm:$0x1] %vm5737_vm8, %v18330_v50 }
 0x226   : > { %v3346_v15 = vsel %vm3345_vm6, %v3334_v47, %v3313_v29  ;;  %v18344_v29 = vld [vmem:[#allocation18_spill] sm:$0xff]  ;;  %v18345_v47 = vld [vmem:[#allocation20_spill] sm:$0xff]  ;;  %5766 = vst.msk [vmem:[#allocation3 + $0x89] sm:$0x1] %vm5737_vm8, %v18330_v50  ;;  %5767 = vst.msk [vmem:[#allocation3 + $0x99] sm:$0x1] %vm5737_vm8, %v18330_v50 }
 0x227   : > { %v3347_v0 = vsel %vm3292_vm5, %v3346_v15, 0  ;;  %v18346_v15 = vld [vmem:[#allocation23_spill] sm:$0xff]  ;;  %5768 = vst.msk [vmem:[#allocation3 + $0xa9] sm:$0x1] %vm5737_vm8, %v18330_v50  ;;  %5769 = vst.msk [vmem:[#allocation3 + $0xb9] sm:$0x1] %vm5737_vm8, %v18330_v50 }
 0x228   : > { %v15358_v25 = vand.u32 4294901760, %v3347_v0  ;;  %5770 = vst.msk [vmem:[#allocation3 + $0xc9] sm:$0x1] %vm5737_vm8, %v18330_v50  ;;  %5771 = vst.msk [vmem:[#allocation3 + $0xd9] sm:$0x1] %vm5737_vm8, %v18330_v50 }
 0x229   : > { %5772 = vst.msk [vmem:[#allocation3 + $0xe9] sm:$0x1] %vm5737_vm8, %v18330_v50  ;;  %5773 = vst.msk [vmem:[#allocation3 + $0xf9] sm:$0x1] %vm5737_vm8, %v18330_v50 }
 0x22a   : > { %v15364_v10 = vsub.f32 %v3347_v0, %v15358_v25  ;;  %v18347_v0 = vld [vmem:[#allocation24_spill] sm:$0xff]  ;;  %5774 = vst.msk [vmem:[#allocation3 + $0x109] sm:$0x1] %vm5737_vm8, %v18330_v50  ;;  %5775 = vst.msk [vmem:[#allocation3 + $0x119] sm:$0x1] %vm5737_vm8, %v18330_v50 }
 0x22b   : > { %5776 = vst.msk [vmem:[#allocation3 + $0x129] sm:$0x1] %vm5737_vm8, %v18330_v50  ;;  %5777 = vst.msk [vmem:[#allocation3 + $0x139] sm:$0x1] %vm5737_vm8, %v18330_v50 }
 0x22c   : > { %12401 = vmatmul.mubr.f32.vlgmr.msra.gmra.mxu0 %v15364_v10  ;;  %v3424_v26 = vand.u32 4294901760, %v15364_v10 }
 0x22d   : > { %12423 = vmatpush3.msra.mxu0 %v15361_v60  ;;  %12438 = vmatprep.mubr.msk.f32.mxu0 %vm13807_vm0, %v18330_v50 }
 0x22e   : > { %12424 = vmatprep.subr.mxu0 %v18330_v50  ;;  %v3425_v63 = vsub.f32 %v15364_v10, %v3424_v26  ;;  %v3891_v10 = vld [vmem:[%s18061_s13 + $0x18] sm:$0xff] }
 0x22f   : > { %12425 = vmatpush3.msra.mxu0 %v15367_v17 }
 0x230   : > { %12426 = vmatprep.subr.mxu0 %v18330_v50  ;;  %v3426_v7 = vand.u32 4294901760, %v3425_v63 }
 0x231   : > { %12427 = vmatpush3.msra.mxu0 %v15375_v14 }
 0x232   : > { %12428 = vmatprep.subr.mxu0 %v18330_v50  ;;  %12363 = vmatmul.mubr.f32.vlgmr.msra.gmra.mxu1 %v3426_v7 }
 0x233   : > { %12366 = vmatpush3.msra.mxu1 %v15386_v1  ;;  %12429 = vmatpush3.msra.mxu0 %v15389_v48 }
 0x234   : > { %12367 = vmatprep.subr.mxu1 %v18330_v50  ;;  %12430 = vmatprep.subr.mxu0 %v18330_v50 }
 0x235   : > { %12368 = vmatpush3.msra.mxu1 %v15395_v51  ;;  %12431 = vmatpush3.msra.mxu0 %v15398_v12 }
 0x236   : > { %12369 = vmatprep.subr.mxu1 %v18330_v50  ;;  %12432 = vmatprep.subr.mxu0 %v18330_v50 }
 0x237   : > { %12370 = vmatpush3.msra.mxu1 %v15405_v54  ;;  %12433 = vmatpush3.msra.mxu0 %v15408_v13  ;;  %v15556_v13 = vsub.f32 %v3888_v52, %v15544_v34 }
 0x238   : > { %12371 = vmatprep.subr.mxu1 %v18330_v50  ;;  %12434 = vmatprep.subr.mxu0 %v18330_v50 }
 0x239   : > { %12372 = vmatpush3.msra.mxu1 %v15416_v61  ;;  %12435 = vmatpush3.msra.mxu0 %v15419_v3  ;;  %v15566_v12 = vand.u32 4294901760, %v15556_v13 }
 0x23a   : > { %12373 = vmatprep.subr.mxu1 %v18330_v50  ;;  %12436 = vmatprep.subr.mxu0 %v18330_v50 }
 0x23b   : > { %12374 = vmatpush3.msra.mxu1 %v15427_v8  ;;  %12437 = vmatpush3.msra.mxu0 %v15430_v19  ;;  %v4009_v19 = vsub.f32 %v15527_v44, %v15539_v55  ;;  %v4023_v48 = vsub.f32 %v15556_v13, %v15566_v12 }
 0x23c   : > { %12375 = vmatprep.subr.mxu1 %v18330_v50  ;;  %12439 = vmatmul.mubr.f32.vlgmr.msra.gmra.mxu0 %v15358_v25 }
 0x23d   : > { %12376 = vmatpush3.msra.mxu1 %v15438_v58  ;;  %12381 = vmatprep.mubr.msk.f32.mxu1 %vm13807_vm0, %v18330_v50 }
 0x23e   : > { %12377 = vmatprep.subr.mxu1 %v18330_v50  ;;  %12460 = vmatprep.subr.mxu0 %v18330_v50 }
 0x23f   : > { %12378 = vmatpush3.msra.mxu1 %v15446_v56  ;;  %12468 = vmatprep.mubr.msk.f32.mxu0 %vm13807_vm0, %v18330_v50 }
 0x240   : > { %12379 = vmatprep.subr.mxu1 %v18330_v50 }
 0x241   : > { %12380 = vmatpush3.msra.mxu1 %v15451_v39 }
 0x242   : > { %12382 = vmatmul.mubr.f32.vlgmr.msra.gmra.mxu1 %v15358_v25  ;;  %12403 = vmatprep.subr.mxu1 %v18330_v50 }
 0x243   : > { %12404 = vmatpush3.msra.mxu1 %v18341_v11  ;;  %12419 = vmatprep.mubr.msk.f32.mxu1 %vm13807_vm0, %v18330_v50 }
 0x244   : > { %12405 = vmatprep.subr.mxu1 %v18330_v50 }
 0x245   : > { %12406 = vmatpush3.msra.mxu1 %v18342_v41 }
 0x246   : > { %12407 = vmatprep.subr.mxu1 %v18330_v50 }
 0x247   : > { %12408 = vmatpush3.msra.mxu1 %v18343_v36 }
 0x248   : > { %12409 = vmatprep.subr.mxu1 %v18330_v50 }
 0x249   : > { %12410 = vmatpush3.msra.mxu1 %v18344_v29 }
 0x24a   : > { %12411 = vmatprep.subr.mxu1 %v18330_v50 }
 0x24b   : > { %12412 = vmatpush3.msra.mxu1 %v18345_v47 }
 0x24c   : > { %12413 = vmatprep.subr.mxu1 %v18330_v50 }
 0x24d   : > { %12414 = vmatpush3.msra.mxu1 %v18346_v15 }
 0x24e   : > { %12415 = vmatprep.subr.mxu1 %v18330_v50 }
 0x24f   : > { %12416 = vmatpush3.msra.mxu1 %v18347_v0 }
 0x250   : > { %12417 = vmatprep.subr.mxu1 %v18330_v50 }
 0x251   : > { %12418 = vmatpush3.msra.mxu1 %v18348_v49 }
 0x252   : > { %12420 = vmatmul.mubr.f32.vlgmr.msra.gmra.mxu1 %v3424_v26  ;;  %12441 = vmatprep.subr.mxu1 %v18330_v50  ;;  %v15508_v26 = vand.u32 4294901760, %v3891_v10 }
 0x253   : > { %12442 = vmatpush3.msra.mxu1 %v18341_v11  ;;  %12457 = vmatprep.mubr.msk.f32.mxu1 %vm13807_vm0, %v18330_v50 }
 0x254   : > { %12443 = vmatprep.subr.mxu1 %v18330_v50  ;;  %v15514_v63 = vsub.f32 %v3891_v10, %v15508_v26  ;;  %12461 = vmatpush3.msra.mxu0 %v15508_v26 }
 0x255   : > { %12444 = vmatpush3.msra.mxu1 %v18342_v41  ;;  %12462 = vmatprep.subr.mxu0 %v18330_v50 }
 0x256   : > { %12445 = vmatprep.subr.mxu1 %v18330_v50  ;;  %v15524_v7 = vand.u32 4294901760, %v15514_v63  ;;  %12463 = vmatpush3.msra.mxu0 %v15516_v30 }
 0x257   : > { %12446 = vmatpush3.msra.mxu1 %v18343_v36  ;;  %12464 = vmatprep.subr.mxu0 %v18330_v50 }
 0x258   : > { %12447 = vmatprep.subr.mxu1 %v18330_v50  ;;  %v4002_v4 = vsub.f32 %v15514_v63, %v15524_v7 }
 0x259   : > { %12448 = vmatpush3.msra.mxu1 %v18344_v29 }
 0x25a   : > { %12449 = vmatprep.subr.mxu1 %v18330_v50  ;;  %v15548_v62 = vand.u32 4294901760, %v4002_v4 }
 0x25b   : > { %12450 = vmatpush3.msra.mxu1 %v18345_v47 }
 0x25c   : > { %12451 = vmatprep.subr.mxu1 %v18330_v50  ;;  %18349 = vst [vmem:[#allocation37_spill] sm:$0xff] %v15548_v62 }
 0x25d   : > { %12452 = vmatpush3.msra.mxu1 %v18346_v15 }
 0x25e   : > { %12453 = vmatprep.subr.mxu1 %v18330_v50 }
 0x25f   : > { %12454 = vmatpush3.msra.mxu1 %v18347_v0 }
 0x260   : > { %12455 = vmatprep.subr.mxu1 %v18330_v50 }
 0x261   : > { %12456 = vmatpush3.msra.mxu1 %v18348_v49 }
 0x262   : > { %12458 = vmatmul.mubr.f32.vlgmr.msra.gmra.mxu1 %v15358_v25  ;;  %12471 = vmatprep.subr.mxu1 %v18330_v50  ;;  %v3889_v25 = vld [vmem:[%s18061_s13 + $0x8] sm:$0xff] }
 0x263   : > { %12479 = vmatprep.mubr.msk.f32.mxu1 %vm13807_vm0, %v18330_v50  ;;  %v15529_v20 = vand.u32 4294901760, %v3889_v25  ;;  %12472 = vmatpush3.msra.mxu1 %v15548_v62 }
 0x264   : > { %12473 = vmatprep.subr.mxu1 %v18330_v50 }
 0x265   : > { %v15542_v10 = vsub.f32 %v3889_v25, %v15529_v20  ;;  %12465 = vmatpush3.msra.mxu0 %v15529_v20  ;;  %v15561_v25 = vand.u32 4294901760, %v4009_v19  ;;  %v15576_v19 = vand.u32 4294901760, %v4023_v48 }
 0x266   : > { %12466 = vmatprep.subr.mxu0 %v18330_v50 }
 0x267   : > { %v15553_v3 = vand.u32 4294901760, %v15542_v10  ;;  %12467 = vmatpush3.msra.mxu0 %v15544_v34  ;;  %18350 = vst [vmem:[#allocation38_spill] sm:$0xff] %v15561_v25  ;;  %12474 = vmatpush3.msra.mxu1 %v15561_v25  ;;  %18352 = vst [vmem:[#allocation47_spill] sm:$0xff] %v15576_v19 }
 0x268   : > { %12482 = vmatprep.subr.mxu0 %v18330_v50  ;;  %12475 = vmatprep.subr.mxu1 %v18330_v50 }
 0x269   : > { %v4016_v4 = vsub.f32 %v15542_v10, %v15553_v3 }
 0x26b   : > { %v15570_v52 = vand.u32 4294901760, %v4016_v4 }
 0x26d   : > { %18351 = vst [vmem:[#allocation32_spill] sm:$0xff] %v15570_v52  ;;  %12476 = vmatpush3.msra.mxu1 %v15570_v52 }
 0x26e   : > { %12477 = vmatprep.subr.mxu1 %v18330_v50 }
 0x26f   : > { %12478 = vmatpush3.msra.mxu1 %v15576_v19 }
 0x270   : > { %12493 = vmatprep.subr.mxu1 %v18330_v50 }
 0x2ec   : > { %v3627_v62 = vpop.f32.mrf.mxu0 }
 0x2ee   : > { %v12402_v14 = vpop.f32.mrf.mxu0 }
 0x2f2   : > { %v3428_v25 = vpop.f32.mrf.mxu1 }
 0x2f4   : > { %v12364_v4 = vpop.f32.mrf.mxu1 }
 0x2fc   : > { %v3803_v17 = vpop.f32.mrf.mxu0 }
 0x2fe   : > { %v12440_v60 = vpop.f32.mrf.mxu0 }
 0x302   : > { %v3539_v31 = vpop.f32.mrf.mxu1 }
 0x303   : > { %v3540_v21 = vadd.f32 %v3539_v31, %v3428_v25 }
 0x304   : > { %v12383_v42 = vpop.f32.mrf.mxu1 }
 0x305   : > { %v3628_v52 = vadd.f32 %v3627_v62, %v3540_v21 }
 0x312   : > { %v3708_v23 = vpop.f32.mrf.mxu1 }
 0x313   : > { %v3709_v48 = vadd.f32 %v3708_v23, %v3628_v52 }
 0x314   : > { %v12421_v40 = vpop.f32.mrf.mxu1 }
 0x315   : > { %v3804_v45 = vadd.f32 %v3803_v17, %v3709_v48 }
 0x322   : > { %v3882_v9 = vpop.f32.mrf.mxu1 }
 0x323   : > { %v3883_v27 = vadd.f32 %v3882_v9, %v3804_v45 }
 0x324   : > { %v12459_v57 = vpop.f32.mrf.mxu1 }
 0x325   : > { %v3887_v19 = vmul.f32 0.0078125, %v3883_v27 }
 0x327   : > { %v3893_v16 = vsel %vm1282_vm1, %v3887_v19, 0 }
 0x328   : > { %v3964_v24 = vand.u32 4294901760, %v3893_v16 }
 0x32a   : > { %v3965_v14 = vsub.f32 %v3893_v16, %v3964_v24  ;;  %12480 = vmatmul.mubr.f32.vlgmr.msra.gmra.mxu1 %v3964_v24 }
 0x32b   : > { %12494 = vmatpush3.msra.mxu1 %v15508_v26  ;;  %12501 = vmatprep.mubr.msk.f32.mxu1 %vm13807_vm0, %v18330_v50 }
 0x32c   : > { %12495 = vmatprep.subr.mxu1 %v18330_v50  ;;  %v3966_v60 = vand.u32 4294901760, %v3965_v14 }
 0x32d   : > { %12496 = vmatpush3.msra.mxu1 %v15516_v30 }
 0x32e   : > { %12497 = vmatprep.subr.mxu1 %v18330_v50  ;;  %v3967_v62 = vsub.f32 %v3965_v14, %v3966_v60 }
 0x32f   : > { %12498 = vmatpush3.msra.mxu1 %v15529_v20 }
 0x330   : > { %12499 = vmatprep.subr.mxu1 %v18330_v50  ;;  %v3968_v57 = vand.u32 4294901760, %v3967_v62 }
 0x331   : > { %12500 = vmatpush3.msra.mxu1 %v15544_v34 }
 0x332   : > { %12502 = vmatmul.mubr.f32.vlgmr.msra.gmra.mxu1 %v3966_v60  ;;  %12515 = vmatprep.subr.mxu1 %v18330_v50 }
 0x333   : > { %12469 = vmatmul.mubr.f32.vlgmr.msra.gmra.mxu0 %v3968_v57  ;;  %12516 = vmatpush3.msra.mxu1 %v15508_v26 }
 0x334   : > { %12483 = vmatpush3.msra.mxu0 %v15514_v63  ;;  %12517 = vmatprep.subr.mxu1 %v18330_v50 }
 0x335   : > { %12484 = vmatprep.subr.mxu0 %v18330_v50  ;;  %12518 = vmatpush3.msra.mxu1 %v15516_v30 }
 0x336   : > { %12485 = vmatpush3.msra.mxu0 %v15527_v44  ;;  %12519 = vmatprep.subr.mxu1 %v18330_v50 }
 0x337   : > { %12486 = vmatprep.subr.mxu0 %v18330_v50  ;;  %12520 = vmatpush3.msra.mxu1 %v15529_v20 }
 0x338   : > { %12487 = vmatpush3.msra.mxu0 %v15542_v10  ;;  %12521 = vmatprep.subr.mxu1 %v18330_v50 }
 0x339   : > { %12488 = vmatprep.subr.mxu0 %v18330_v50  ;;  %12490 = vmatprep.mubr.msk.f32.mxu0 %vm13807_vm0, %v18330_v50 }
 0x33a   : > { %12489 = vmatpush3.msra.mxu0 %v15556_v13  ;;  %12522 = vmatpush3.msra.mxu1 %v15544_v34 }
 0x33b   : > { %12523 = vmatprep.mubr.msk.f32.mxu1 %vm13807_vm0, %v18330_v50  ;;  %12491 = vmatmul.mubr.f32.vlgmr.msra.gmra.mxu0 %v3965_v14 }
 0x33c   : > { %12504 = vmatprep.subr.mxu0 %v18330_v50  ;;  %12524 = vmatmul.mubr.f32.vlgmr.msra.gmra.mxu1 %v3964_v24 }
 0x33d   : > { %12505 = vmatpush3.msra.mxu0 %v15524_v7  ;;  %12512 = vmatprep.mubr.msk.f32.mxu0 %vm13807_vm0, %v18330_v50 }
 0x33e   : > { %12506 = vmatprep.subr.mxu0 %v18330_v50  ;;  %12545 = vmatprep.subr.mxu1 %v18330_v50 }
 0x33f   : > { %12507 = vmatpush3.msra.mxu0 %v15539_v55  ;;  %12546 = vmatpush3.msra.mxu1 %v15386_v1 }
 0x340   : > { %12508 = vmatprep.subr.mxu0 %v18330_v50  ;;  %12547 = vmatprep.subr.mxu1 %v18330_v50 }
 0x341   : > { %12509 = vmatpush3.msra.mxu0 %v15553_v3  ;;  %12548 = vmatpush3.msra.mxu1 %v15395_v51 }
 0x342   : > { %12510 = vmatprep.subr.mxu0 %v18330_v50  ;;  %12549 = vmatprep.subr.mxu1 %v18330_v50 }
 0x343   : > { %12511 = vmatpush3.msra.mxu0 %v15566_v12  ;;  %12550 = vmatpush3.msra.mxu1 %v15405_v54 }
 0x344   : > { %12513 = vmatmul.mubr.f32.vlgmr.msra.gmra.mxu0 %v3964_v24  ;;  %12551 = vmatprep.subr.mxu1 %v18330_v50 }
 0x345   : > { %12552 = vmatpush3.msra.mxu1 %v15416_v61  ;;  %12526 = vmatprep.subr.mxu0 %v18330_v50 }
 0x346   : > { %12553 = vmatprep.subr.mxu1 %v18330_v50  ;;  %12527 = vmatpush3.msra.mxu0 %v18341_v11 }
 0x347   : > { %12554 = vmatpush3.msra.mxu1 %v15427_v8  ;;  %12528 = vmatprep.subr.mxu0 %v18330_v50 }
 0x348   : > { %12555 = vmatprep.subr.mxu1 %v18330_v50  ;;  %12529 = vmatpush3.msra.mxu0 %v18342_v41 }
 0x349   : > { %12556 = vmatpush3.msra.mxu1 %v15438_v58  ;;  %12530 = vmatprep.subr.mxu0 %v18330_v50 }
 0x34a   : > { %12557 = vmatprep.subr.mxu1 %v18330_v50  ;;  %12531 = vmatpush3.msra.mxu0 %v18343_v36 }
 0x34b   : > { %12558 = vmatpush3.msra.mxu1 %v15446_v56  ;;  %12532 = vmatprep.subr.mxu0 %v18330_v50 }
 0x34c   : > { %12559 = vmatprep.subr.mxu1 %v18330_v50  ;;  %12533 = vmatpush3.msra.mxu0 %v18344_v29 }
 0x34d   : > { %12560 = vmatpush3.msra.mxu1 %v15451_v39  ;;  %12534 = vmatprep.subr.mxu0 %v18330_v50 }
 0x34e   : > { %12561 = vmatprep.mubr.msk.f32.mxu1 %vm13807_vm0, %v18330_v50  ;;  %12583 = vmatprep.subr.mxu1 %v18330_v50 }
 0x34f   : > { %12535 = vmatpush3.msra.mxu0 %v18345_v47  ;;  %12542 = vmatprep.mubr.msk.f32.mxu0 %vm13807_vm0, %v18330_v50 }
 0x350   : > { %12536 = vmatprep.subr.mxu0 %v18330_v50 }
 0x351   : > { %12537 = vmatpush3.msra.mxu0 %v18346_v15 }
 0x352   : > { %12538 = vmatprep.subr.mxu0 %v18330_v50 }
 0x353   : > { %12539 = vmatpush3.msra.mxu0 %v18347_v0 }
 0x354   : > { %12540 = vmatprep.subr.mxu0 %v18330_v50 }
 0x355   : > { %12541 = vmatpush3.msra.mxu0 %v18348_v49 }
 0x356   : > { %12564 = vmatprep.subr.mxu0 %v18330_v50 }
 0x3ea   : > { %v4061_v24 = vpop.f32.mrf.mxu1 }
 0x3ec   : > { %v12481_v16 = vpop.f32.mrf.mxu1 }
 0x3f2   : > { %v4218_v27 = vpop.f32.mrf.mxu1 }
 0x3f3   : > { %v3970_v9 = vpop.f32.mrf.mxu0 }
 0x3f4   : > { %v12503_v17 = vpop.f32.mrf.mxu1  ;;  %v4062_v51 = vadd.f32 %v4061_v24, %v3970_v9 }
 0x3f5   : > { %v12470_v45 = vpop.f32.mrf.mxu0 }
 0x3fb   : > { %v4141_v1 = vpop.f32.mrf.mxu0 }
 0x3fc   : > { %v4376_v21 = vpop.f32.mrf.mxu1  ;;  %v4142_v23 = vadd.f32 %v4141_v1, %v4062_v51 }
 0x3fd   : > { %v12492_v40 = vpop.f32.mrf.mxu0 }
 0x3fe   : > { %v12525_v54 = vpop.f32.mrf.mxu1  ;;  %v4219_v61 = vadd.f32 %v4218_v27, %v4142_v23 }
 0x404   : > { %v4301_v42 = vpop.f32.mrf.mxu0 }
 0x405   : > { %v4302_v8 = vadd.f32 %v4301_v42, %v4219_v61  ;;  %v18353_v61 = vld [vmem:[#allocation33_spill] sm:$0xff] }
 0x406   : > { %v12514_v31 = vpop.f32.mrf.mxu0 }
 0x407   : > { %v4377_v58 = vadd.f32 %v4376_v21, %v4302_v8 }
 0x409   : > { %v4387_v56 = vrot.slane %v4377_v58, %v14213_v43 }
 0x40b   : > { %v4388_v39 = vcombine.high %v4387_v56, %v4387_v56  ;;  %v4395_v25 = vrot.slane %v4387_v56, %v14213_v43 }
 0x40d   : > { %v4402_v52 = vrot.slane %v4388_v39, %v14213_v43  ;;  %v4406_v19 = vrot.slane %v4395_v25, %v15177_v18 }
 0x40f   : > { %v4410_v4 = vrot.slane %v4402_v52, %v15177_v18  ;;  %v15664_v48 = vsub.f32 %v15239_v5, %v4406_v19  ;;  %v15667_v14 = vsub.f32 %v15253_v2, %v4406_v19  ;;  %v15670_v60 = vsub.f32 %v15220_v33, %v4406_v19  ;;  %v18355_v52 = vld [vmem:[#allocation29_spill] sm:$0xff] }
 0x410   : > { %v15679_v24 = vsub.f32 %v15243_v35, %v4406_v19  ;;  %v15689_v33 = vsub.f32 %v15272_v22, %v4406_v19  ;;  %v15701_v27 = vsub.f32 %v15292_v38, %v4406_v19  ;;  %v15713_v1 = vsub.f32 %v15269_v32, %v4406_v19  ;;  %v18354_v32 = vld [vmem:[#allocation30_spill] sm:$0xff] }
 0x411   : > { %v15673_v62 = vsub.f32 %v15311_v46, %v4410_v4  ;;  %v15676_v57 = vsub.f32 %v15320_v28, %v4410_v4  ;;  %v15682_v16 = vsub.f32 %v15301_v59, %v4410_v4  ;;  %v4429_v5 = vmul.f32 %v15664_v48, %v15664_v48 }
 0x412   : > { %v4430_v2 = vmul.f32 %v15667_v14, %v15667_v14  ;;  %v15692_v46 = vsub.f32 %v15314_v37, %v4410_v4  ;;  %v4431_v28 = vmul.f32 %v15670_v60, %v15670_v60  ;;  %v15704_v9 = vsub.f32 %v15336_v6, %v4410_v4 }
 0x413   : > { %v4437_v35 = vmul.f32 %v15673_v62, %v15673_v62  ;;  %v4438_v59 = vmul.f32 %v15676_v57, %v15676_v57  ;;  %v4432_v22 = vmul.f32 %v15679_v24, %v15679_v24  ;;  %v4439_v37 = vmul.f32 %v15682_v16, %v15682_v16 }
 0x414   : > { %v4445_v17 = vsel %vm3292_vm5, %v4429_v5, 0.0  ;;  %v4446_v45 = vsel %vm3292_vm5, %v4430_v2, 0.0  ;;  %v15716_v21 = vsub.f32 %v15348_v53, %v4410_v4  ;;  %v4433_v38 = vmul.f32 %v15689_v33, %v15689_v33 }
 0x415   : > { %v4447_v6 = vadd.f32 %v4446_v45, %v4445_v17  ;;  %v4440_v51 = vmul.f32 %v15692_v46, %v15692_v46  ;;  %v4448_v40 = vsel %vm3292_vm5, %v4431_v28, 0.0  ;;  %v4466_v54 = vsel %vm3292_vm5, %v4437_v35, 0.0 }
 0x416   : > { %v4467_v23 = vsel %vm3292_vm5, %v4438_v59, 0.0  ;;  %v15726_v42 = vsub.f32 %v18353_v61, %v4406_v19  ;;  %v15729_v8 = vsub.f32 %v18354_v32, %v4410_v4  ;;  %v4434_v58 = vmul.f32 %v15701_v27, %v15701_v27 }
 0x417   : > { %v4449_v53 = vadd.f32 %v4448_v40, %v4447_v6  ;;  %v4468_v31 = vadd.f32 %v4467_v23, %v4466_v54  ;;  %v4441_v56 = vmul.f32 %v15704_v9, %v15704_v9  ;;  %v4450_v39 = vsel %vm3292_vm5, %v4432_v22, 0.0 }
 0x418   : > { %v4469_v25 = vsel %vm3292_vm5, %v4439_v37, 0.0  ;;  %v15738_v5 = vsub.f32 %v18355_v52, %v4410_v4  ;;  %v4435_v28 = vmul.f32 %v15713_v1, %v15713_v1  ;;  %v4442_v35 = vmul.f32 %v15716_v21, %v15716_v21 }
 0x419   : > { %v4451_v19 = vadd.f32 %v4450_v39, %v4449_v53  ;;  %v4470_v2 = vadd.f32 %v4469_v25, %v4468_v31  ;;  %v4452_v59 = vsel %vm3292_vm5, %v4433_v38, 0.0  ;;  %v4471_v17 = vsel %vm3292_vm5, %v4440_v51, 0.0 }
 0x41a   : > { %v4436_v22 = vmul.f32 %v15726_v42, %v15726_v42  ;;  %v4443_v4 = vmul.f32 %v15729_v8, %v15729_v8  ;;  %v4454_v37 = vsel %vm3292_vm5, %v4434_v58, 0.0  ;;  %v4473_v40 = vsel %vm3292_vm5, %v4441_v56, 0.0 }
 0x41b   : > { %v4453_v45 = vadd.f32 %v4452_v59, %v4451_v19  ;;  %v4472_v6 = vadd.f32 %v4471_v17, %v4470_v2  ;;  %v4444_v61 = vmul.f32 %v15738_v5, %v15738_v5  ;;  %v4456_v38 = vsel %vm3292_vm5, %v4435_v28, 0.0 }
 0x41c   : > { %v4475_v51 = vsel %vm3292_vm5, %v4442_v35, 0.0  ;;  %v4458_v31 = vsel %vm3292_vm5, %v4436_v22, 0.0  ;;  %v4477_v39 = vsel %vm3292_vm5, %v4443_v4, 0.0 }
 0x41d   : > { %v4455_v54 = vadd.f32 %v4454_v37, %v4453_v45  ;;  %v4474_v23 = vadd.f32 %v4473_v40, %v4472_v6  ;;  %v4479_v58 = vsel %vm3292_vm5, %v4444_v61, 0.0 }
 0x41f   : > { %v4457_v32 = vadd.f32 %v4456_v38, %v4455_v54  ;;  %v4476_v53 = vadd.f32 %v4475_v51, %v4474_v23 }
 0x421   : > { %v4459_v25 = vadd.f32 %v4458_v31, %v4457_v32  ;;  %v4478_v52 = vadd.f32 %v4477_v39, %v4476_v53  ;;  %v18356_v31 = vld [vmem:[#allocation15_spill] sm:$0xff]  ;;  %v18357_v39 = vld [vmem:[#allocation17_spill] sm:$0xff] }
 0x423   : > { %v4460_v56 = vrot.slane %v4459_v25, 4  ;;  %v4480_v19 = vadd.f32 %v4479_v58, %v4478_v52  ;;  %v18359_v52 = vld [vmem:[#allocation21_spill] sm:$0xff]  ;;  %v18360_v58 = vld [vmem:[#allocation22_spill] sm:$0xff] }
 0x425   : > { %v4461_v2 = vadd.f32 %v4460_v56, %v4459_v25  ;;  %v4481_v59 = vrot.slane %v4480_v19, 4  ;;  %v18358_v25 = vld [vmem:[#allocation19_spill] sm:$0xff]  ;;  %v18361_v56 = vld [vmem:[#allocation26_spill] sm:$0xff] }
 0x427   : > { %v4462_v17 = vrot.slane %v4461_v2, 2  ;;  %v4482_v45 = vadd.f32 %v4481_v59, %v4480_v19  ;;  %v18362_v19 = vld [vmem:[#allocation27_spill] sm:$0xff]  ;;  %v18372_v59 = vld [vmem:[#allocation38_spill] sm:$0xff] }
 0x429   : > { %v4463_v6 = vadd.f32 %v4462_v17, %v4461_v2  ;;  %v4483_v28 = vrot.slane %v4482_v45, 2  ;;  %v18370_v2 = vld [vmem:[#allocation37_spill] sm:$0xff]  ;;  %v18373_v17 = vld [vmem:[#allocation46_spill] sm:$0xff] }
 0x42b   : > { %v4464_v37 = vrot.slane %v4463_v6, 1  ;;  %v4484_v35 = vadd.f32 %v4483_v28, %v4482_v45  ;;  %v18374_v45 = vld [vmem:[#allocation32_spill] sm:$0xff] }
 0x42d   : > { %v4485_v40 = vrot.slane %v4484_v35, 1  ;;  %v4465_v54 = vadd.f32 %v4464_v37, %v4463_v6  ;;  %v18375_v6 = vld [vmem:[#allocation47_spill] sm:$0xff] }
 0x42f   : > { %v4486_v23 = vadd.f32 %v4485_v40, %v4484_v35 }
 0x431   : > { %v4489_v22 = vsel %vm3345_vm6, %v4486_v23, %v4465_v54 }
 0x432   : > { %v4490_v4 = vsel %vm3292_vm5, %v4489_v22, 0 }
 0x433   : > { %v15761_v38 = vand.u32 4294901760, %v4490_v4 }
 0x435   : > { %v4566_v61 = vsub.f32 %v4490_v4, %v15761_v38  ;;  %12562 = vmatmul.mubr.f32.vlgmr.msra.gmra.mxu1 %v15761_v38 }
 0x436   : > { %12584 = vmatpush3.msra.mxu1 %v18341_v11  ;;  %12599 = vmatprep.mubr.msk.f32.mxu1 %vm13807_vm0, %v18330_v50 }
 0x437   : > { %12585 = vmatprep.subr.mxu1 %v18330_v50  ;;  %v4567_v51 = vand.u32 4294901760, %v4566_v61 }
 0x438   : > { %12586 = vmatpush3.msra.mxu1 %v18342_v41 }
 0x439   : > { %12587 = vmatprep.subr.mxu1 %v18330_v50  ;;  %v4568_v32 = vsub.f32 %v4566_v61, %v4567_v51 }
 0x43a   : > { %12588 = vmatpush3.msra.mxu1 %v18343_v36 }
 0x43b   : > { %12589 = vmatprep.subr.mxu1 %v18330_v50  ;;  %v4569_v53 = vand.u32 4294901760, %v4568_v32 }
 0x43c   : > { %12590 = vmatpush3.msra.mxu1 %v18344_v29 }
 0x43d   : > { %12591 = vmatprep.subr.mxu1 %v18330_v50  ;;  %12543 = vmatmul.mubr.f32.vlgmr.msra.gmra.mxu0 %v4569_v53 }
 0x43e   : > { %12565 = vmatpush3.msra.mxu0 %v18356_v31  ;;  %12592 = vmatpush3.msra.mxu1 %v18345_v47 }
 0x43f   : > { %12566 = vmatprep.subr.mxu0 %v18330_v50  ;;  %12593 = vmatprep.subr.mxu1 %v18330_v50 }
 0x440   : > { %12567 = vmatpush3.msra.mxu0 %v18357_v39  ;;  %12594 = vmatpush3.msra.mxu1 %v18346_v15 }
 0x441   : > { %12568 = vmatprep.subr.mxu0 %v18330_v50  ;;  %12595 = vmatprep.subr.mxu1 %v18330_v50 }
 0x442   : > { %12569 = vmatpush3.msra.mxu0 %v18358_v25  ;;  %12596 = vmatpush3.msra.mxu1 %v18347_v0 }
 0x443   : > { %12570 = vmatprep.subr.mxu0 %v18330_v50  ;;  %12597 = vmatprep.subr.mxu1 %v18330_v50 }
 0x444   : > { %12571 = vmatpush3.msra.mxu0 %v18359_v52  ;;  %12598 = vmatpush3.msra.mxu1 %v18348_v49 }
 0x445   : > { %12572 = vmatprep.subr.mxu0 %v18330_v50  ;;  %12600 = vmatmul.mubr.f32.vlgmr.msra.gmra.mxu1 %v4567_v51 }
 0x446   : > { %12621 = vmatprep.subr.mxu1 %v18330_v50  ;;  %12573 = vmatpush3.msra.mxu0 %v18360_v58 }
 0x447   : > { %12622 = vmatpush3.msra.mxu1 %v18341_v11  ;;  %12574 = vmatprep.subr.mxu0 %v18330_v50  ;;  %v18363_v11 = vld [vmem:[#allocation28_spill] sm:$0xff] }
 0x448   : > { %12623 = vmatprep.subr.mxu1 %v18330_v50  ;;  %12575 = vmatpush3.msra.mxu0 %v18361_v56 }
 0x449   : > { %12624 = vmatpush3.msra.mxu1 %v18342_v41  ;;  %12576 = vmatprep.subr.mxu0 %v18330_v50  ;;  %v18364_v41 = vld [vmem:[#allocation34_spill] sm:$0xff] }
 0x44a   : > { %12625 = vmatprep.subr.mxu1 %v18330_v50  ;;  %12577 = vmatpush3.msra.mxu0 %v18362_v19 }
 0x44b   : > { %12626 = vmatpush3.msra.mxu1 %v18343_v36  ;;  %12578 = vmatprep.subr.mxu0 %v18330_v50  ;;  %v18365_v36 = vld [vmem:[#allocation35_spill] sm:$0xff] }
 0x44c   : > { %12627 = vmatprep.subr.mxu1 %v18330_v50  ;;  %12579 = vmatpush3.msra.mxu0 %v18363_v11 }
 0x44d   : > { %12580 = vmatprep.mubr.msk.f32.mxu0 %vm13807_vm0, %v18330_v50  ;;  %12628 = vmatpush3.msra.mxu1 %v18344_v29  ;;  %v18366_v29 = vld [vmem:[#allocation48_spill] sm:$0xff] }
 0x44e   : > { %12581 = vmatmul.mubr.f32.vlgmr.msra.gmra.mxu0 %v4566_v61  ;;  %12602 = vmatprep.subr.mxu0 %v18330_v50 }
 0x44f   : > { %12629 = vmatprep.subr.mxu1 %v18330_v50  ;;  %12603 = vmatpush3.msra.mxu0 %v18364_v41 }
 0x450   : > { %12630 = vmatpush3.msra.mxu1 %v18345_v47  ;;  %12604 = vmatprep.subr.mxu0 %v18330_v50  ;;  %v18367_v47 = vld [vmem:[#allocation36_spill] sm:$0xff] }
 0x451   : > { %12631 = vmatprep.subr.mxu1 %v18330_v50  ;;  %12605 = vmatpush3.msra.mxu0 %v18365_v36 }
 0x452   : > { %12632 = vmatpush3.msra.mxu1 %v18346_v15  ;;  %12606 = vmatprep.subr.mxu0 %v18330_v50  ;;  %v18368_v15 = vld [vmem:[#allocation50_spill] sm:$0xff] }
 0x453   : > { %12633 = vmatprep.subr.mxu1 %v18330_v50  ;;  %12607 = vmatpush3.msra.mxu0 %v18366_v29 }
 0x454   : > { %12634 = vmatpush3.msra.mxu1 %v18347_v0  ;;  %12608 = vmatprep.subr.mxu0 %v18330_v50  ;;  %v18369_v0 = vld [vmem:[#allocation44_spill] sm:$0xff] }
 0x455   : > { %12635 = vmatprep.subr.mxu1 %v18330_v50  ;;  %12609 = vmatpush3.msra.mxu0 %v18367_v47 }
 0x456   : > { %12636 = vmatpush3.msra.mxu1 %v18348_v49  ;;  %12637 = vmatprep.mubr.msk.f32.mxu1 %vm13807_vm0, %v18330_v50  ;;  %v18371_v49 = vld [vmem:[#allocation45_spill] sm:$0xff] }
 0x457   : > { %12610 = vmatprep.subr.mxu0 %v18330_v50  ;;  %12638 = vmatmul.mubr.f32.vlgmr.msra.gmra.mxu1 %v15761_v38 }
 0x458   : > { %12611 = vmatpush3.msra.mxu0 %v18368_v15  ;;  %12618 = vmatprep.mubr.msk.f32.mxu0 %vm13807_vm0, %v18330_v50 }
 0x459   : > { %12612 = vmatprep.subr.mxu0 %v18330_v50  ;;  %12651 = vmatprep.subr.mxu1 %v18330_v50 }
 0x45a   : > { %12613 = vmatpush3.msra.mxu0 %v18369_v0  ;;  %12652 = vmatpush3.msra.mxu1 %v18370_v2 }
 0x45b   : > { %12614 = vmatprep.subr.mxu0 %v18330_v50  ;;  %12653 = vmatprep.subr.mxu1 %v18330_v50 }
 0x45c   : > { %12615 = vmatpush3.msra.mxu0 %v18371_v49  ;;  %12654 = vmatpush3.msra.mxu1 %v18372_v59 }
 0x45d   : > { %12616 = vmatprep.subr.mxu0 %v18330_v50  ;;  %12655 = vmatprep.subr.mxu1 %v18330_v50 }
 0x45e   : > { %12617 = vmatpush3.msra.mxu0 %v18373_v17  ;;  %12656 = vmatpush3.msra.mxu1 %v18374_v45 }
 0x45f   : > { %12619 = vmatmul.mubr.f32.vlgmr.msra.gmra.mxu0 %v15761_v38  ;;  %12657 = vmatprep.subr.mxu1 %v18330_v50 }
 0x460   : > { %12658 = vmatpush3.msra.mxu1 %v18375_v6  ;;  %12640 = vmatprep.subr.mxu0 %v18330_v50 }
 0x461   : > { %12659 = vmatprep.mubr.msk.f32.mxu1 %vm13807_vm0, %v18330_v50  ;;  %12673 = vmatprep.subr.mxu1 %v18330_v50 }
 0x462   : > { %12641 = vmatpush3.msra.mxu0 %v15508_v26  ;;  %12648 = vmatprep.mubr.msk.f32.mxu0 %vm13807_vm0, %v18330_v50 }
 0x463   : > { %12642 = vmatprep.subr.mxu0 %v18330_v50 }
 0x464   : > { %12643 = vmatpush3.msra.mxu0 %v15516_v30 }
 0x465   : > { %12644 = vmatprep.subr.mxu0 %v18330_v50 }
 0x466   : > { %12645 = vmatpush3.msra.mxu0 %v15529_v20 }
 0x467   : > { %12646 = vmatprep.subr.mxu0 %v18330_v50 }
 0x468   : > { %12647 = vmatpush3.msra.mxu0 %v15544_v34 }
 0x469   : > { %12662 = vmatprep.subr.mxu0 %v18330_v50 }
 0x4f5   : > { %v4682_v28 = vpop.f32.mrf.mxu1 }
 0x4f7   : > { %v12563_v37 = vpop.f32.mrf.mxu1 }
 0x4fd   : > { %v4571_v35 = vpop.f32.mrf.mxu0 }
 0x4fe   : > { %v4683_v61 = vadd.f32 %v4682_v28, %v4571_v35 }
 0x4ff   : > { %v12544_v40 = vpop.f32.mrf.mxu0 }
 0x505   : > { %v4851_v54 = vpop.f32.mrf.mxu1 }
 0x507   : > { %v12601_v23 = vpop.f32.mrf.mxu1 }
 0x50e   : > { %v4770_v22 = vpop.f32.mrf.mxu0 }
 0x50f   : > { %v4771_v32 = vadd.f32 %v4770_v22, %v4683_v61 }
 0x510   : > { %v12582_v4 = vpop.f32.mrf.mxu0 }
 0x511   : > { %v4852_v53 = vadd.f32 %v4851_v54, %v4771_v32 }
 0x517   : > { %v5025_v38 = vpop.f32.mrf.mxu1 }
 0x519   : > { %v12639_v51 = vpop.f32.mrf.mxu1 }
 0x51f   : > { %v4946_v31 = vpop.f32.mrf.mxu0 }
 0x520   : > { %v4947_v39 = vadd.f32 %v4946_v31, %v4852_v53 }
 0x521   : > { %v12620_v25 = vpop.f32.mrf.mxu0 }
 0x522   : > { %v5026_v52 = vadd.f32 %v5025_v38, %v4947_v39 }
 0x524   : > { %v5029_v58 = vmul.f32 0.0078125, %v5026_v52 }
 0x526   : > { %v5030_v56 = vadd.f32 1e-05, %v5029_v58  ;;  %v11260_v58 = vld [vmem:[%s18376_s10] ss:$0 sm:$0xff] }
 0x528   : > { %13596 = vrsqrt.f32 %v5030_v56 }
 0x535   : > { %v13597_v19 = vpop.eup %13596 }
 0x536   : > { %v5033_v11 = vsel %vm1282_vm1, %v13597_v19, 0 }
 0x537   : > { %v5104_v41 = vand.u32 4294901760, %v5033_v11 }
 0x539   : > { %v5105_v36 = vsub.f32 %v5033_v11, %v5104_v41  ;;  %12660 = vmatmul.mubr.f32.vlgmr.msra.gmra.mxu1 %v5104_v41 }
 0x53a   : > { %12674 = vmatpush3.msra.mxu1 %v15508_v26  ;;  %12681 = vmatprep.mubr.msk.f32.mxu1 %vm13807_vm0, %v18330_v50 }
 0x53b   : > { %12675 = vmatprep.subr.mxu1 %v18330_v50  ;;  %v5106_v29 = vand.u32 4294901760, %v5105_v36 }
 0x53c   : > { %12676 = vmatpush3.msra.mxu1 %v15516_v30 }
 0x53d   : > { %12677 = vmatprep.subr.mxu1 %v18330_v50  ;;  %v5107_v47 = vsub.f32 %v5105_v36, %v5106_v29 }
 0x53e   : > { %12678 = vmatpush3.msra.mxu1 %v15529_v20 }
 0x53f   : > { %12679 = vmatprep.subr.mxu1 %v18330_v50  ;;  %v5108_v15 = vand.u32 4294901760, %v5107_v47 }
 0x540   : > { %12680 = vmatpush3.msra.mxu1 %v15544_v34 }
 0x541   : > { %12682 = vmatmul.mubr.f32.vlgmr.msra.gmra.mxu1 %v5106_v29  ;;  %12695 = vmatprep.subr.mxu1 %v18330_v50 }
 0x542   : > { %12649 = vmatmul.mubr.f32.vlgmr.msra.gmra.mxu0 %v5108_v15  ;;  %12696 = vmatpush3.msra.mxu1 %v15508_v26  ;;  %v13467_v26 = vld [vmem:[%s18062_s14 + $0x18] sm:$0xff]  }
 0x543   : > { %12663 = vmatpush3.msra.mxu0 %v15514_v63  ;;  %12697 = vmatprep.subr.mxu1 %v18330_v50  ;;  %v13470_v63 = vld [vmem:[%s18062_s14 + $0x28] sm:$0xff]  }
 0x544   : > { %12664 = vmatprep.subr.mxu0 %v18330_v50  ;;  %12698 = vmatpush3.msra.mxu1 %v15516_v30  ;;  %v13471_v30 = vld [vmem:[%s18062_s14 + $0x8] sm:$0xff]  }
 0x545   : > { %12665 = vmatpush3.msra.mxu0 %v15527_v44  ;;  %12699 = vmatprep.subr.mxu1 %v18330_v50  ;;  %v13473_v44 = vld [vmem:[%s18062_s14] sm:$0xff]  }
 0x546   : > { %12666 = vmatprep.subr.mxu0 %v18330_v50  ;;  %12700 = vmatpush3.msra.mxu1 %v15529_v20  ;;  %v16009_v20 = vld [vmem:[%s18062_s14 + $0x58] sm:$0xff]  }
 0x547   : > { %12667 = vmatpush3.msra.mxu0 %v15542_v10  ;;  %12701 = vmatprep.subr.mxu1 %v18330_v50 }
 0x548   : > { %12668 = vmatprep.subr.mxu0 %v18330_v50  ;;  %12670 = vmatprep.mubr.msk.f32.mxu0 %vm13807_vm0, %v18330_v50 }
 0x549   : > { %12669 = vmatpush3.msra.mxu0 %v15556_v13  ;;  %12702 = vmatpush3.msra.mxu1 %v15544_v34  ;;  %v13466_v13 = vld [vmem:[%s18062_s14 + $0x38] sm:$0xff]  }
 0x54a   : > { %12703 = vmatprep.mubr.msk.f32.mxu1 %vm13807_vm0, %v18330_v50  ;;  %12671 = vmatmul.mubr.f32.vlgmr.msra.gmra.mxu0 %v5105_v36 }
 0x54b   : > { %12684 = vmatprep.subr.mxu0 %v18330_v50  ;;  %12704 = vmatmul.mubr.f32.vlgmr.msra.gmra.mxu1 %v5104_v41 }
 0x54c   : > { %12685 = vmatpush3.msra.mxu0 %v15524_v7  ;;  %12692 = vmatprep.mubr.msk.f32.mxu0 %vm13807_vm0, %v18330_v50  ;;  %v13472_v7 = vld [vmem:[%s18062_s14 + $0x20] sm:$0xff]  }
 0x54d   : > { %12686 = vmatprep.subr.mxu0 %v18330_v50  ;;  %12730 = vmatprep.subr.bf16.mxu1 %v13467_v26 }
 0x54e   : > { %12687 = vmatpush3.msra.mxu0 %v15539_v55  ;;  %12731 = vmatpush3.bf16.msra.mxu1 %v13467_v26  ;;  %v16015_v55 = vld [vmem:[%s18062_s14 + $0x78] sm:$0xff]  }
 0x54f   : > { %12688 = vmatprep.subr.mxu0 %v18330_v50 }
 0x550   : > { %12689 = vmatpush3.msra.mxu0 %v15553_v3  ;;  %v13468_v3 = vld [vmem:[%s18062_s14 + $0x30] sm:$0xff]  }
 0x551   : > { %12690 = vmatprep.subr.mxu0 %v18330_v50 }
 0x552   : > { %12691 = vmatpush3.msra.mxu0 %v15566_v12  ;;  %v13469_v12 = vld [vmem:[%s18062_s14 + $0x10] sm:$0xff]  }
 0x553   : > { %12693 = vmatmul.mubr.f32.vlgmr.msra.gmra.mxu0 %v5104_v41  ;;  %12706 = vmatprep.subr.bf16.mxu0 %v13466_v13 }
 0x554   : > { %12707 = vmatpush3.bf16.msra.mxu0 %v13466_v13  ;;  %12732 = vmatprep.subr.bf16.mxu1 %v13469_v12 }
 0x555   : > { %12708 = vmatprep.subr.bf16.mxu0 %v13468_v3  ;;  %12733 = vmatpush3.bf16.msra.mxu1 %v13469_v12 }
 0x556   : > { %12734 = vmatprep.subr.bf16.mxu1 %v13471_v30 }
 0x558   : > { %12709 = vmatpush3.bf16.msra.mxu0 %v13468_v3 }
 0x559   : > { %12710 = vmatprep.subr.bf16.mxu0 %v13470_v63  ;;  %12735 = vmatpush3.bf16.msra.mxu1 %v13471_v30 }
 0x55a   : > { %12736 = vmatprep.subr.bf16.mxu1 %v13473_v44 }
 0x55c   : > { %12711 = vmatpush3.bf16.msra.mxu0 %v13470_v63 }
 0x55d   : > { %12712 = vmatprep.subr.bf16.mxu0 %v13472_v7  ;;  %12737 = vmatpush3.bf16.msra.mxu1 %v13473_v44 }
 0x55e   : > { %12778 = vmatprep.subr.bf16.mxu1 %v16015_v55 }
 0x560   : > { %12713 = vmatpush3.bf16.msra.mxu0 %v13472_v7 }
 0x561   : > { %12754 = vmatprep.subr.bf16.mxu0 %v16009_v20 }
 0x5f9   : > { %v5201_v10 = vpop.f32.mrf.mxu1 }
 0x5fb   : > { %v12661_v34 = vpop.f32.mrf.mxu1 }
 0x601   : > { %v5358_v0 = vpop.f32.mrf.mxu1 }
 0x602   : > { %v5110_v2 = vpop.f32.mrf.mxu0 }
 0x603   : > { %v12683_v49 = vpop.f32.mrf.mxu1  ;;  %v5202_v6 = vadd.f32 %v5201_v10, %v5110_v2 }
 0x604   : > { %v12650_v59 = vpop.f32.mrf.mxu0 }
 0x60a   : > { %v5281_v17 = vpop.f32.mrf.mxu0 }
 0x60b   : > { %v5516_v45 = vpop.f32.mrf.mxu1  ;;  %v5282_v35 = vadd.f32 %v5281_v17, %v5202_v6 }
 0x60c   : > { %v12672_v28 = vpop.f32.mrf.mxu0 }
 0x60d   : > { %v12705_v37 = vpop.f32.mrf.mxu1  ;;  %v5359_v40 = vadd.f32 %v5358_v0, %v5282_v35 }
 0x613   : > { %v5441_v54 = vpop.f32.mrf.mxu0 }
 0x614   : > { %v5442_v23 = vadd.f32 %v5441_v54, %v5359_v40 }
 0x615   : > { %v12694_v22 = vpop.f32.mrf.mxu0 }
 0x616   : > { %v5517_v4 = vadd.f32 %v5516_v45, %v5442_v23 }
 0x618   : > { %v5527_v38 = vrot.slane %v5517_v4, %v14213_v43 }
 0x61a   : > { %v5528_v61 = vcombine.high %v5527_v38, %v5527_v38  ;;  %v5535_v51 = vrot.slane %v5527_v38, %v14213_v43 }
 0x61c   : > { %v5542_v32 = vrot.slane %v5528_v61, %v14213_v43  ;;  %v5546_v53 = vrot.slane %v5535_v51, %v15177_v18 }
 0x61e   : > { %v5550_v31 = vrot.slane %v5542_v32, %v15177_v18  ;;  %v5554_v39 = vmul.f32 %v5546_v53, %v15667_v14  ;;  %v5555_v25 = vmul.f32 %v5546_v53, %v15670_v60  ;;  %v5553_v52 = vmul.f32 %v5546_v53, %v15664_v48 }
 0x61f   : > { %v5556_v56 = vmul.f32 %v5546_v53, %v15679_v24  ;;  %v5560_v19 = vmul.f32 %v5546_v53, %v15726_v42  ;;  %v5557_v11 = vmul.f32 %v5546_v53, %v15689_v33  ;;  %v5558_v41 = vmul.f32 %v5546_v53, %v15701_v27  ;;  %v11261_v33 = vld [vmem:[%s18059_s11] ss:$0 sm:$0xff] }
 0x620   : > { %v5566_v36 = vmul.f32 %v5550_v31, %v15716_v21  ;;  %v5567_v14 = vmul.f32 %v5550_v31, %v15729_v8  ;;  %v5568_v60 = vmul.f32 %v5550_v31, %v15738_v5  ;;  %v5577_v29 = vmul.f32 %v11260_v58, %v5554_v39 }
 0x621   : > { %v5578_v48 = vmul.f32 %v11260_v58, %v5555_v25  ;;  %v5559_v47 = vmul.f32 %v5546_v53, %v15713_v1  ;;  %v5561_v15 = vmul.f32 %v5550_v31, %v15673_v62  ;;  %v5562_v24 = vmul.f32 %v5550_v31, %v15676_v57 }
 0x622   : > { %v5576_v13 = vmul.f32 %v11260_v58, %v5553_v52  ;;  %v5563_v27 = vmul.f32 %v5550_v31, %v15682_v16  ;;  %v5564_v21 = vmul.f32 %v5550_v31, %v15692_v46  ;;  %v5579_v42 = vmul.f32 %v11260_v58, %v5556_v56 }
 0x623   : > { %v5583_v8 = vmul.f32 %v11260_v58, %v5560_v19  ;;  %v5580_v5 = vmul.f32 %v11260_v58, %v5557_v11  ;;  %v5581_v26 = vmul.f32 %v11260_v58, %v5558_v41  ;;  %v5589_v3 = vmul.f32 %v11260_v58, %v5566_v36 }
 0x624   : > { %v5590_v12 = vmul.f32 %v11260_v58, %v5567_v14  ;;  %v5591_v1 = vmul.f32 %v11260_v58, %v5568_v60  ;;  %v16044_v63 = vadd.f32 %v11261_v33, %v5577_v29  ;;  %v16046_v62 = vadd.f32 %v11261_v33, %v5578_v48 }
 0x625   : > { %v16048_v57 = vadd.f32 %v11261_v33, %v5583_v8  ;;  %v5582_v30 = vmul.f32 %v11260_v58, %v5559_v47  ;;  %v16050_v7 = vadd.f32 %v11261_v33, %v5589_v3  ;;  %v16054_v16 = vadd.f32 %v11261_v33, %v5576_v13 }
 0x626   : > { %v16052_v44 = vadd.f32 %v11261_v33, %v5590_v12  ;;  %v16056_v46 = vadd.f32 %v11261_v33, %v5591_v1  ;;  %v11263_v10 = vmul.f32 -1.442695, %v16044_v63  ;;  %v11264_v34 = vmul.f32 -1.442695, %v16046_v62 }
 0x627   : > { %v11269_v0 = vmul.f32 -1.442695, %v16048_v57  ;;  %v5565_v2 = vmul.f32 %v5550_v31, %v15704_v9  ;;  %v5584_v49 = vmul.f32 %v11260_v58, %v5561_v15  ;;  %v11275_v59 = vmul.f32 -1.442695, %v16050_v7 }
 0x628   : > { %v16063_v17 = vadd.f32 %v11261_v33, %v5579_v42  ;;  %v5585_v45 = vmul.f32 %v11260_v58, %v5562_v24  ;;  %13598 = vpow2.f32 %v11263_v10  ;;  %v11276_v6 = vmul.f32 -1.442695, %v16052_v44 }
 0x629   : > { %v16066_v28 = vadd.f32 %v11261_v33, %v5580_v5  ;;  %v5586_v37 = vmul.f32 %v11260_v58, %v5563_v27  ;;  %13600 = vpow2.f32 %v11264_v34  ;;  %v11277_v35 = vmul.f32 -1.442695, %v16056_v46 }
 0x62a   : > { %v16069_v40 = vadd.f32 %v11261_v33, %v5581_v26  ;;  %v5587_v54 = vmul.f32 %v11260_v58, %v5564_v21  ;;  %13602 = vpow2.f32 %v11269_v0  ;;  %v11262_v9 = vmul.f32 -1.442695, %v16054_v16 }
 0x62b   : > { %v16072_v23 = vadd.f32 %v11261_v33, %v5582_v30  ;;  %v5588_v22 = vmul.f32 %v11260_v58, %v5565_v2  ;;  %13604 = vpow2.f32 %v11275_v59  ;;  %v11265_v4 = vmul.f32 -1.442695, %v16063_v17 }
 0x62c   : > { %v16075_v38 = vadd.f32 %v11261_v33, %v5584_v49  ;;  %13606 = vpow2.f32 %v11276_v6  ;;  %v11266_v61 = vmul.f32 -1.442695, %v16066_v28  ;;  %v16078_v51 = vadd.f32 %v11261_v33, %v5585_v45 }
 0x62d   : > { %13608 = vpow2.f32 %v11277_v35  ;;  %v11267_v32 = vmul.f32 -1.442695, %v16069_v40  ;;  %v16081_v53 = vadd.f32 %v11261_v33, %v5586_v37  ;;  %v11268_v31 = vmul.f32 -1.442695, %v16072_v23 }
 0x62e   : > { %13610 = vpow2.f32 %v11262_v9  ;;  %v16084_v39 = vadd.f32 %v11261_v33, %v5587_v54  ;;  %v11270_v25 = vmul.f32 -1.442695, %v16075_v38  ;;  %v16087_v52 = vadd.f32 %v11261_v33, %v5588_v22 }
 0x62f   : > { %13612 = vpow2.f32 %v11265_v4  ;;  %v11271_v58 = vmul.f32 -1.442695, %v16078_v51  ;;  %v11272_v56 = vmul.f32 -1.442695, %v16081_v53 }
 0x630   : > { %13614 = vpow2.f32 %v11266_v61  ;;  %v11273_v19 = vmul.f32 -1.442695, %v16084_v39  ;;  %v11274_v11 = vmul.f32 -1.442695, %v16087_v52 }
 0x631   : > { %13616 = vpow2.f32 %v11267_v32 }
 0x632   : > { %13618 = vpow2.f32 %v11268_v31 }
 0x633   : > { %13620 = vpow2.f32 %v11270_v25 }
 0x634   : > { %13622 = vpow2.f32 %v11271_v58 }
 0x635   : > { %v13599_v41 = vpop.eup %13598  ;;  %13624 = vpow2.f32 %v11272_v56 }
 0x636   : > { %v13601_v36 = vpop.eup %13600  ;;  %v5664_v14 = vadd.f32 1.0, %v13599_v41  ;;  %13626 = vpow2.f32 %v11273_v19 }
 0x637   : > { %v13603_v60 = vpop.eup %13602  ;;  %v5665_v29 = vadd.f32 1.0, %v13601_v36  ;;  %13628 = vpow2.f32 %v11274_v11 }
 0x638   : > { %v13605_v48 = vpop.eup %13604  ;;  %v5670_v47 = vadd.f32 1.0, %v13603_v60  ;;  %13630 = vrcp.f32 %v5664_v14 }
 0x639   : > { %v13607_v15 = vpop.eup %13606  ;;  %v5676_v24 = vadd.f32 1.0, %v13605_v48  ;;  %13632 = vrcp.f32 %v5665_v29 }
 0x63a   : > { %v13609_v13 = vpop.eup %13608  ;;  %v5677_v33 = vadd.f32 1.0, %v13607_v15  ;;  %13634 = vrcp.f32 %v5670_v47 }
 0x63b   : > { %v13611_v27 = vpop.eup %13610  ;;  %v5678_v21 = vadd.f32 1.0, %v13609_v13  ;;  %13636 = vrcp.f32 %v5676_v24 }
 0x63c   : > { %v13613_v42 = vpop.eup %13612  ;;  %13638 = vrcp.f32 %v5677_v33  ;;  %v5663_v8 = vadd.f32 1.0, %v13611_v27  ;;  %v5795_v27 = vld [vmem:[#allocation3] sm:$0xff] }
 0x63d   : > { %v13615_v5 = vpop.eup %13614  ;;  %13640 = vrcp.f32 %v5678_v21  ;;  %v5666_v26 = vadd.f32 1.0, %v13613_v42 }
 0x63e   : > { %v13617_v3 = vpop.eup %13616  ;;  %13642 = vrcp.f32 %v5663_v8  ;;  %v5667_v12 = vadd.f32 1.0, %v13615_v5 }
 0x63f   : > { %v13619_v1 = vpop.eup %13618  ;;  %13644 = vrcp.f32 %v5666_v26  ;;  %v5668_v30 = vadd.f32 1.0, %v13617_v3 }
 0x640   : > { %v13621_v10 = vpop.eup %13620  ;;  %13646 = vrcp.f32 %v5667_v12  ;;  %v5669_v34 = vadd.f32 1.0, %v13619_v1 }
 0x641   : > { %v13623_v0 = vpop.eup %13622  ;;  %13648 = vrcp.f32 %v5668_v30  ;;  %v5671_v2 = vadd.f32 1.0, %v13621_v10 }
 0x642   : > { %v13625_v49 = vpop.eup %13624  ;;  %13650 = vrcp.f32 %v5669_v34  ;;  %v5672_v59 = vadd.f32 1.0, %v13623_v0  ;;  %v13476_v34 = vld [vmem:[%s18062_s14 + $0x50] sm:$0xff]  }
 0x643   : > { %v13627_v45 = vpop.eup %13626  ;;  %13652 = vrcp.f32 %v5671_v2  ;;  %v5673_v6 = vadd.f32 1.0, %v13625_v49  ;;  %v13477_v0 = vld [vmem:[%s18062_s14 + $0x70] sm:$0xff]  }
 0x644   : > { %v13629_v37 = vpop.eup %13628  ;;  %13654 = vrcp.f32 %v5672_v59  ;;  %v5674_v35 = vadd.f32 1.0, %v13627_v45  ;;  %v5835_v59 = vld [vmem:[#allocation3 + $0xa1] sm:$0xff] }
 0x645   : > { %v13631_v54 = vpop.eup %13630  ;;  %13656 = vrcp.f32 %v5673_v6  ;;  %v5675_v9 = vadd.f32 1.0, %v13629_v37  ;;  %v13478_v45 = vld [vmem:[%s18062_s14 + $0x48] sm:$0xff]  }
 0x646   : > { %v13633_v22 = vpop.eup %13632  ;;  %v5712_v4 = vmul.f32 %v13631_v54, %v16044_v63  ;;  %13658 = vrcp.f32 %v5674_v35  ;;  %v13479_v6 = vld [vmem:[%s18062_s14 + $0x68] sm:$0xff]   ;;  %v5803_v54 = vld [vmem:[#allocation3 + $0xa0] sm:$0xff] }
 0x647   : > { %v13635_v61 = vpop.eup %13634  ;;  %v5713_v32 = vmul.f32 %v13633_v22, %v16046_v62  ;;  %13660 = vrcp.f32 %v5675_v9 }
 0x648   : > { %v13637_v31 = vpop.eup %13636  ;;  %v5718_v25 = vmul.f32 %v13635_v61, %v16048_v57  ;;  %5780 = vst.msk [vmem:[#allocation3 + $0x21] sm:$0xff] %vm3292_vm5, %v5712_v4 }
 0x649   : > { %v13639_v58 = vpop.eup %13638  ;;  %5781 = vst.msk [vmem:[#allocation3 + $0x31] sm:$0xff] %vm3292_vm5, %v5713_v32  ;;  %v5724_v56 = vmul.f32 %v13637_v31, %v16050_v7  ;;  %v13480_v31 = vld [vmem:[%s18062_s14 + $0x40] sm:$0xff]  }
 0x64a   : > { %v13641_v19 = vpop.eup %13640  ;;  %5786 = vst.msk [vmem:[#allocation3 + $0x81] sm:$0xff] %vm3292_vm5, %v5718_v25  ;;  %v5725_v63 = vmul.f32 %v13639_v58, %v16052_v44  ;;  %v13481_v25 = vld [vmem:[%s18062_s14 + $0x60] sm:$0xff]   ;;  %v13482_v58 = vld [vmem:[%s18062_s14 + $0x98] sm:$0xff]  }
 0x64b   : > { %v13643_v11 = vpop.eup %13642  ;;  %5792 = vst.msk [vmem:[#allocation3 + $0x101] sm:$0xff] %vm3292_vm5, %v5724_v56  ;;  %v5726_v62 = vmul.f32 %v13641_v19, %v16056_v46 }
 0x64c   : > { %v13645_v41 = vpop.eup %13644  ;;  %v5711_v57 = vmul.f32 %v13643_v11, %v16054_v16  ;;  %5793 = vst.msk [vmem:[#allocation3 + $0x111] sm:$0xff] %vm3292_vm5, %v5725_v63  ;;  %v13483_v63 = vld [vmem:[%s18062_s14 + $0xb8] sm:$0xff]  }
 0x64d   : > { %v13647_v36 = vpop.eup %13646  ;;  %v5714_v14 = vmul.f32 %v13645_v41, %v16063_v17  ;;  %5794 = vst.msk [vmem:[#allocation3 + $0x121] sm:$0xff] %vm3292_vm5, %v5726_v62 }
 0x64e   : > { %v13649_v7 = vpop.eup %13648  ;;  %5779 = vst.msk [vmem:[#allocation3 + $0x11] sm:$0xff] %vm3292_vm5, %v5711_v57  ;;  %v5715_v44 = vmul.f32 %v13647_v36, %v16066_v28 }
 0x64f   : > { %v13651_v60 = vpop.eup %13650  ;;  %5782 = vst.msk [vmem:[#allocation3 + $0x41] sm:$0xff] %vm3292_vm5, %v5714_v14  ;;  %v5716_v46 = vmul.f32 %v13649_v7, %v16069_v40  ;;  %v16113_v47 = vld [vmem:[#allocation3 + $0x21] sm:$0xff] }
 0x650   : > { %v13653_v29 = vpop.eup %13652  ;;  %5783 = vst.msk [vmem:[#allocation3 + $0x51] sm:$0xff] %vm3292_vm5, %v5715_v44  ;;  %v5717_v16 = vmul.f32 %v13651_v60, %v16072_v23  ;;  %v16117_v24 = vld [vmem:[#allocation3 + $0x31] sm:$0xff]  ;;  %v16119_v28 = vld [vmem:[#allocation3 + $0x20] sm:$0xff] }
 0x651   : > { %v13655_v48 = vpop.eup %13654  ;;  %5784 = vst.msk [vmem:[#allocation3 + $0x61] sm:$0xff] %vm3292_vm5, %v5716_v46  ;;  %v5719_v17 = vmul.f32 %v13653_v29, %v16075_v38  ;;  %v16121_v13 = vld [vmem:[#allocation3 + $0x30] sm:$0xff]  ;;  %v5827_v23 = vld [vmem:[#allocation3 + $0x1] sm:$0xff]  ;;  %v16135_v26 = vpack.c.bf16 %v16117_v24, %v16113_v47 }
 0x652   : > { %v13657_v15 = vpop.eup %13656  ;;  %5785 = vst.msk [vmem:[#allocation3 + $0x71] sm:$0xff] %vm3292_vm5, %v5717_v16  ;;  %v5720_v40 = vmul.f32 %v13655_v48, %v16078_v51  ;;  %v16139_v51 = vpack.c.bf16 %v16121_v13, %v16119_v28  ;;  %v16267_v29 = vld [vmem:[#allocation3 + $0x101] sm:$0xff] }
 0x653   : > { %v13659_v33 = vpop.eup %13658  ;;  %5787 = vst.msk [vmem:[#allocation3 + $0xb1] sm:$0xff] %vm3292_vm5, %v5719_v17  ;;  %v5721_v21 = vmul.f32 %v13657_v15, %v16081_v53  ;;  %v16269_v16 = vld [vmem:[#allocation3 + $0x111] sm:$0xff]  ;;  %v16271_v48 = vld [vmem:[#allocation3 + $0x100] sm:$0xff] }
 0x654   : > { %v13661_v42 = vpop.eup %13660  ;;  %5788 = vst.msk [vmem:[#allocation3 + $0xc1] sm:$0xff] %vm3292_vm5, %v5720_v40  ;;  %v5722_v38 = vmul.f32 %v13659_v33, %v16084_v39  ;;  %v16273_v17 = vld [vmem:[#allocation3 + $0x110] sm:$0xff]  ;;  %v6150_v15 = vld [vmem:[#allocation3 + $0x2] sm:$0xff]  ;;  %v16279_v33 = vpack.c.bf16 %v16269_v16, %v16267_v29 }
 0x655   : > { %v16129_v8 = vld [vmem:[#allocation3 + $0x11] sm:$0xff]  ;;  %5789 = vst.msk [vmem:[#allocation3 + $0xd1] sm:$0xff] %vm3292_vm5, %v5721_v21  ;;  %v5723_v53 = vmul.f32 %v13661_v42, %v16087_v52  ;;  %v16294_v42 = vld [vmem:[#allocation3 + $0x22] sm:$0xff] }
 0x656   : > { %v16131_v5 = vld [vmem:[#allocation3 + $0x10] sm:$0xff]  ;;  %v5852_v3 = vpack.c.bf16 %v16129_v8, %v5827_v23  ;;  %v16145_v12 = vld [vmem:[#allocation3 + $0x41] sm:$0xff]  ;;  %5790 = vst.msk [vmem:[#allocation3 + $0xe1] sm:$0xff] %vm3292_vm5, %v5722_v38  ;;  %v16283_v23 = vpack.c.bf16 %v16273_v17, %v16271_v48 }
 0x657   : > { %v5819_v39 = vpack.c.bf16 %v16131_v5, %v5795_v27  ;;  %v16147_v1 = vld [vmem:[#allocation3 + $0x40] sm:$0xff]  ;;  %v16150_v30 = vld [vmem:[#allocation3 + $0x51] sm:$0xff]  ;;  %5791 = vst.msk [vmem:[#allocation3 + $0xf1] sm:$0xff] %vm3292_vm5, %v5723_v53  ;;  %v6369_v21 = vpack.c.bf16 %v16119_v28, %v16131_v5 }
 0x658   : > { %v16152_v10 = vld [vmem:[#allocation3 + $0x50] sm:$0xff]  ;;  %12714 = vmatprep.mubr.msk.bf16.mxu0 %vm3292_vm5, %v5852_v3  ;;  %v16159_v52 = vpack.c.bf16 %v16150_v30, %v16145_v12  ;;  %v16181_v49 = vld [vmem:[#allocation3 + $0x61] sm:$0xff]  ;;  %v6370_v5 = vpack.c.bf16 %v16147_v1, %v16121_v13 }
 0x659   : > { %12738 = vmatprep.mubr.msk.bf16.mxu1 %vm3292_vm5, %v5819_v39  ;;  %12715 = vmatmul.mubr.msk.bf16.vlgmr.msra.gmra.mxu0 %vm3292_vm5, %v16135_v26  ;;  %v16173_v2 = vpack.c.bf16 %v16152_v10, %v16147_v1  ;;  %v16191_v37 = vld [vmem:[#allocation3 + $0x60] sm:$0xff]  ;;  %v16193_v35 = vld [vmem:[#allocation3 + $0x70] sm:$0xff]  ;;  %v13486_v1 = vld [vmem:[%s18062_s14 + $0x88] sm:$0xff]  }
 0x65a   : > { %12739 = vmatmul.mubr.msk.bf16.vlgmr.msra.gmra.mxu1 %vm3292_vm5, %v16139_v51  ;;  %12755 = vmatpush3.bf16.msra.mxu0 %v16009_v20  ;;  %v16189_v20 = vld [vmem:[#allocation3 + $0x71] sm:$0xff]  ;;  %v16205_v4 = vpack.c.bf16 %v16193_v35, %v16191_v37  ;;  %v16298_v53 = vld [vmem:[#allocation3 + $0x42] sm:$0xff]  ;;  %v6371_v13 = vpack.c.bf16 %v16191_v37, %v16152_v10 }
 0x65b   : > { %12718 = vmatprep.mubr.msk.bf16.mxu0 %vm3292_vm5, %v16159_v52  ;;  %12742 = vmatprep.mubr.msk.bf16.mxu1 %vm3292_vm5, %v16173_v2  ;;  %v16197_v9 = vld [vmem:[#allocation3 + $0xb0] sm:$0xff]  ;;  %v16201_v22 = vpack.c.bf16 %v16189_v20, %v16181_v49  ;;  %v16224_v56 = vld [vmem:[#allocation3 + $0xc1] sm:$0xff] }
 0x65c   : > { %12779 = vmatpush3.bf16.msra.mxu1 %v16015_v55  ;;  %12756 = vmatprep.subr.bf16.mxu0 %v13476_v34  ;;  %v16195_v55 = vld [vmem:[#allocation3 + $0xb1] sm:$0xff]  ;;  %v5823_v32 = vpack.c.bf16 %v16197_v9, %v5803_v54  ;;  %v16226_v19 = vld [vmem:[#allocation3 + $0xc0] sm:$0xff] }
 0x65d   : > { %12780 = vmatprep.subr.bf16.mxu1 %v13477_v0  ;;  %v5856_v61 = vpack.c.bf16 %v16195_v55, %v5835_v59  ;;  %v16231_v11 = vld [vmem:[#allocation3 + $0xd1] sm:$0xff]  ;;  %v16235_v41 = vld [vmem:[#allocation3 + $0xe1] sm:$0xff] }
 0x65e   : > { %12757 = vmatpush3.bf16.msra.mxu0 %v13476_v34  ;;  %v16233_v62 = vld [vmem:[#allocation3 + $0xd0] sm:$0xff]  ;;  %v16239_v36 = vld [vmem:[#allocation3 + $0xe0] sm:$0xff]  ;;  %v16245_v7 = vpack.c.bf16 %v16231_v11, %v16224_v56  ;;  %v13487_v59 = vld [vmem:[%s18062_s14 + $0xa8] sm:$0xff]  }
 0x65f   : > { %12758 = vmatprep.subr.bf16.mxu0 %v13478_v45  ;;  %v16237_v57 = vld [vmem:[#allocation3 + $0xf1] sm:$0xff]  ;;  %v16249_v44 = vpack.c.bf16 %v16233_v62, %v16226_v19  ;;  %v16336_v10 = vld [vmem:[#allocation3 + $0x80] sm:$0xff] }
 0x660   : > { %12781 = vmatpush3.bf16.msra.mxu1 %v13477_v0  ;;  %v16241_v14 = vld [vmem:[#allocation3 + $0xf0] sm:$0xff]  ;;  %v16253_v60 = vpack.c.bf16 %v16237_v57, %v16235_v41  ;;  %v6158_v37 = vld [vmem:[#allocation3 + $0xa2] sm:$0xff] }
 0x661   : > { %12782 = vmatprep.subr.bf16.mxu1 %v13479_v6  ;;  %12719 = vmatmul.mubr.msk.bf16.gmra.mxu0 %vm3292_vm5, %v16201_v22  ;;  %v16257_v46 = vpack.c.bf16 %v16241_v14, %v16239_v36  ;;  %v16275_v40 = vld [vmem:[#allocation3 + $0x12] sm:$0xff] }
 0x662   : > { %12743 = vmatmul.mubr.msk.bf16.gmra.mxu1 %vm3292_vm5, %v16205_v4  ;;  %12722 = vmatprep.mubr.msk.bf16.mxu0 %vm3292_vm5, %v5856_v61  ;;  %v6175_v27 = vpack.c.bf16 %v16275_v40, %v6150_v15  ;;  %v16296_v38 = vld [vmem:[#allocation3 + $0x32] sm:$0xff] }
 0x663   : > { %12746 = vmatprep.mubr.msk.bf16.mxu1 %vm3292_vm5, %v5823_v32  ;;  %12759 = vmatpush3.bf16.msra.mxu0 %v13478_v45  ;;  %v16300_v3 = vld [vmem:[#allocation3 + $0x52] sm:$0xff]  ;;  %v16304_v28 = vpack.c.bf16 %v16296_v38, %v16294_v42  ;;  %v16332_v45 = vld [vmem:[#allocation3 + $0x62] sm:$0xff]  ;;  %v6372_v32 = vpack.c.bf16 %v16336_v10, %v16193_v35 }
 0x664   : > { %12783 = vmatpush3.bf16.msra.mxu1 %v13479_v6  ;;  %12760 = vmatprep.subr.bf16.mxu0 %v13480_v31  ;;  %v16310_v39 = vpack.c.bf16 %v16300_v3, %v16298_v53  ;;  %v13484_v34 = vld [vmem:[%s18062_s14 + $0x90] sm:$0xff]   ;;  %v13490_v35 = vld [vmem:[%s18062_s14 + $0xd8] sm:$0xff]  }
 0x665   : > { %12784 = vmatprep.subr.bf16.mxu1 %v13481_v25  ;;  %v13485_v0 = vld [vmem:[%s18062_s14 + $0xb0] sm:$0xff]   ;;  %v13491_v15 = vld [vmem:[%s18062_s14 + $0xf8] sm:$0xff]  }
 0x666   : > { %v16334_v6 = vld [vmem:[#allocation3 + $0x72] sm:$0xff] }
 0x667   : > { %12761 = vmatpush3.bf16.msra.mxu0 %v13480_v31  ;;  %v16338_v54 = vld [vmem:[#allocation3 + $0xb2] sm:$0xff]  ;;  %v16342_v61 = vpack.c.bf16 %v16334_v6, %v16332_v45 }
 0x668   : > { %12785 = vmatpush3.bf16.msra.mxu1 %v13481_v25  ;;  %12802 = vmatprep.subr.bf16.mxu0 %v13482_v58  ;;  %v6179_v31 = vpack.c.bf16 %v16338_v54, %v6158_v37  ;;  %v6373_v25 = vpack.c.bf16 %v16226_v19, %v16197_v9  ;;  %v6160_v9 = vld [vmem:[#allocation3 + $0xc2] sm:$0xff]  ;;  %v16363_v19 = vld [vmem:[#allocation3 + $0xd2] sm:$0xff]  ;;  %v6757_v37 = vpack.c.bf16 %v16294_v42, %v16275_v40 }
 0x669   : > { %12826 = vmatprep.subr.bf16.mxu1 %v13483_v63  ;;  %12723 = vmatmul.mubr.msk.bf16.gmra.mxu0 %vm3292_vm5, %v16245_v7  ;;  %v13493_v40 = vld [vmem:[%s18062_s14 + $0xf0] sm:$0xff]   ;;  %v13495_v42 = vld [vmem:[%s18062_s14 + $0xe8] sm:$0xff]  }
 0x66a   : > { %12747 = vmatmul.mubr.msk.bf16.gmra.mxu1 %vm3292_vm5, %v16249_v44  ;;  %12726 = vmatprep.mubr.msk.bf16.mxu0 %vm3292_vm5, %v16253_v60 }
 0x66b   : > { %12750 = vmatprep.mubr.msk.bf16.mxu1 %vm3292_vm5, %v16257_v46 }
 0x671   : > { %12727 = vmatmul.mubr.msk.bf16.gmra.mxu0 %vm3292_vm5, %v16279_v33 }
 0x672   : > { %12751 = vmatmul.mubr.msk.bf16.gmra.mxu1 %vm3292_vm5, %v16283_v23  ;;  %12762 = vmatprep.mubr.msk.bf16.mxu0 %vm3292_vm5, %v6175_v27  ;;  %v16368_v27 = vld [vmem:[#allocation3 + $0xe2] sm:$0xff] }
 0x673   : > { %12786 = vmatprep.mubr.msk.bf16.mxu1 %vm3292_vm5, %v6369_v21  ;;  %v16370_v21 = vld [vmem:[#allocation3 + $0xf2] sm:$0xff] }
 0x679   : > { %12763 = vmatmul.mubr.msk.bf16.vlgmr.msra.gmra.mxu0 %vm3292_vm5, %v16304_v28 }
 0x67a   : > { %12787 = vmatmul.mubr.msk.bf16.vlgmr.msra.gmra.mxu1 %vm3292_vm5, %v6370_v5  ;;  %12803 = vmatpush3.bf16.msra.mxu0 %v13482_v58  ;;  %v13488_v58 = vld [vmem:[%s18062_s14 + $0x80] sm:$0xff]   ;;  %v16373_v5 = vpack.c.bf16 %v16363_v19, %v6160_v9 }
 0x67b   : > { %12766 = vmatprep.mubr.msk.bf16.mxu0 %vm3292_vm5, %v16310_v39  ;;  %12790 = vmatprep.mubr.msk.bf16.mxu1 %vm3292_vm5, %v6371_v13  ;;  %v6375_v13 = vpack.c.bf16 %v16271_v48, %v16241_v14  ;;  %v6563_v48 = vpack.c.bf16 %v16113_v47, %v16129_v8  ;;  %v6565_v47 = vpack.c.bf16 %v16181_v49, %v16150_v30  ;;  %v13492_v8 = vld [vmem:[%s18062_s14 + $0xd0] sm:$0xff]   ;;  %v16428_v30 = vld [vmem:[#allocation3 + $0x81] sm:$0xff] }
 0x67c   : > { %12827 = vmatpush3.bf16.msra.mxu1 %v13483_v63  ;;  %12804 = vmatprep.subr.bf16.mxu0 %v13484_v34  ;;  %v13489_v63 = vld [vmem:[%s18062_s14 + $0xa0] sm:$0xff]  }
 0x67d   : > { %12828 = vmatprep.subr.bf16.mxu1 %v13485_v0  ;;  %v16430_v49 = vld [vmem:[#allocation3 + $0x82] sm:$0xff] }
 0x67e   : > { %12805 = vmatpush3.bf16.msra.mxu0 %v13484_v34  ;;  %v6374_v34 = vpack.c.bf16 %v16239_v36, %v16233_v62  ;;  %v6164_v62 = vld [vmem:[#allocation3 + $0x102] sm:$0xff]  ;;  %v16389_v36 = vld [vmem:[#allocation3 + $0x112] sm:$0xff] }
 0x67f   : > { %12806 = vmatprep.subr.bf16.mxu0 %v13486_v1 }
 0x680   : > { %12829 = vmatpush3.bf16.msra.mxu1 %v13485_v0  ;;  %v16379_v0 = vpack.c.bf16 %v16370_v21, %v16368_v27 }
 0x681   : > { %12830 = vmatprep.subr.bf16.mxu1 %v13487_v59  ;;  %12767 = vmatmul.mubr.msk.bf16.gmra.mxu0 %vm3292_vm5, %v16342_v61 }
 0x682   : > { %12791 = vmatmul.mubr.msk.bf16.gmra.mxu1 %vm3292_vm5, %v6372_v32  ;;  %12770 = vmatprep.mubr.msk.bf16.mxu0 %vm3292_vm5, %v6179_v31  ;;  %v6564_v32 = vpack.c.bf16 %v16145_v12, %v16117_v24  ;;  %v6759_v24 = vpack.c.bf16 %v16332_v45, %v16300_v3  ;;  %v13494_v12 = vld [vmem:[%s18062_s14 + $0xc8] sm:$0xff]   ;;  %v6567_v3 = vpack.c.bf16 %v16224_v56, %v16195_v55  ;;  %v13496_v31 = vld [vmem:[%s18062_s14 + $0xc0] sm:$0xff]  }
 0x683   : > { %12794 = vmatprep.mubr.msk.bf16.mxu1 %vm3292_vm5, %v6373_v25  ;;  %12807 = vmatpush3.bf16.msra.mxu0 %v13486_v1  ;;  %v16391_v1 = vld [vmem:[#allocation3 + $0x120] sm:$0xff]  ;;  %v6761_v45 = vpack.c.bf16 %v6160_v9, %v16338_v54  ;;  %v13499_v55 = vld [vmem:[%s18064_s16 + $0x8] sm:$0xff]   ;;  %v6568_v56 = vpack.c.bf16 %v16235_v41, %v16231_v11  ;;  %v6569_v54 = vpack.c.bf16 %v16267_v29, %v16237_v57  ;;  %v13500_v29 = vld [vmem:[%s18062_s14 + $0x110] sm:$0xff]  }
 0x684   : > { %12831 = vmatpush3.bf16.msra.mxu1 %v13487_v59  ;;  %12808 = vmatprep.subr.bf16.mxu0 %v13488_v58  ;;  %v16394_v59 = vpack.c.bf16 %v16389_v36, %v6164_v62  ;;  %v6376_v14 = vpack.c.bf16 %v16391_v1, %v16273_v17  ;;  %v6758_v17 = vpack.c.bf16 %v16298_v53, %v16296_v38  ;;  %v13497_v25 = vld [vmem:[%s18062_s14 + $0xe0] sm:$0xff]  }
 0x685   : > { %12832 = vmatprep.subr.bf16.mxu1 %v13489_v63  ;;  %v6566_v38 = vpack.c.bf16 %v16428_v30, %v16189_v20  ;;  %v6760_v53 = vpack.c.bf16 %v16430_v49, %v16334_v6  ;;  %v13498_v20 = vld [vmem:[%s18062_s14 + $0x118] sm:$0xff]   ;;  %v6762_v6 = vpack.c.bf16 %v16368_v27, %v16363_v19  ;;  %v6553_v11 = vld [vmem:[#allocation3 + $0x121] sm:$0xff] }
 0x686   : > { %v16469_v41 = vld [vmem:[#allocation3 + $0x122] sm:$0xff] }
 0x687   : > { %12809 = vmatpush3.bf16.msra.mxu0 %v13488_v58  ;;  %v6763_v58 = vpack.c.bf16 %v6164_v62, %v16370_v21  ;;  %v6764_v57 = vpack.c.bf16 %v16469_v41, %v16389_v36  ;;  %v13733_v27 = vld [vmem:[%s14033_s25 + $0x28] sm:$0xff]  ;;  %v13736_v36 = vld [vmem:[%s14033_s25 + $0x40] sm:$0xff] }
 0x688   : > { %12833 = vmatpush3.bf16.msra.mxu1 %v13489_v63  ;;  %12850 = vmatprep.subr.bf16.mxu0 %v13490_v35  ;;  %v6570_v63 = vpack.c.bf16 %v6553_v11, %v16269_v16  ;;  %v13502_v16 = vld [vmem:[%s18064_s16] sm:$0xff]  }
 0x689   : > { %12874 = vmatprep.subr.bf16.mxu1 %v13491_v15  ;;  %12771 = vmatmul.mubr.msk.bf16.gmra.mxu0 %vm3292_vm5, %v16373_v5 }
 0x68a   : > { %12795 = vmatmul.mubr.msk.bf16.gmra.mxu1 %vm3292_vm5, %v6374_v34  ;;  %12774 = vmatprep.mubr.msk.bf16.mxu0 %vm3292_vm5, %v16379_v0  ;;  %v13734_v34 = vld [vmem:[%s14033_s25 + $0x30] sm:$0xff] }
 0x68b   : > { %12798 = vmatprep.mubr.msk.bf16.mxu1 %vm3292_vm5, %v6375_v13  ;;  %v13735_v13 = vld [vmem:[%s14033_s25 + $0x38] sm:$0xff] }
 0x68c   : > { %v7539_v62 = vpack.c.bf16 %v13735_v13, %v13734_v34 }
 0x691   : > { %12775 = vmatmul.mubr.msk.bf16.gmra.mxu0 %vm3292_vm5, %v16394_v59 }
 0x692   : > { %12799 = vmatmul.mubr.msk.bf16.gmra.mxu1 %vm3292_vm5, %v6376_v14  ;;  %12810 = vmatprep.mubr.msk.bf16.mxu0 %vm3292_vm5, %v6563_v48  ;;  %v13739_v48 = vld [vmem:[%s14033_s25 + $0x58] sm:$0xff] }
 0x693   : > { %12834 = vmatprep.mubr.msk.bf16.mxu1 %vm3292_vm5, %v6757_v37 }
 0x699   : > { %12811 = vmatmul.mubr.msk.bf16.vlgmr.msra.gmra.mxu0 %vm3292_vm5, %v6564_v32  ;;  %v13740_v32 = vld [vmem:[%s14033_s25 + $0x60] sm:$0xff] }
 0x69a   : > { %12835 = vmatmul.mubr.msk.bf16.vlgmr.msra.gmra.mxu1 %vm3292_vm5, %v6758_v17  ;;  %12851 = vmatpush3.bf16.msra.mxu0 %v13490_v35  ;;  %v7128_v35 = vld [vmem:[#allocation3 + $0x91] sm:$0xff]  ;;  %v13741_v17 = vld [vmem:[%s14033_s25 + $0x68] sm:$0xff] }
 0x69b   : > { %12814 = vmatprep.mubr.msk.bf16.mxu0 %vm3292_vm5, %v6565_v47  ;;  %12838 = vmatprep.mubr.msk.bf16.mxu1 %vm3292_vm5, %v6759_v24  ;;  %v7542_v47 = vpack.c.bf16 %v13741_v17, %v13740_v32 }
 0x69c   : > { %12875 = vmatpush3.bf16.msra.mxu1 %v13491_v15  ;;  %12852 = vmatprep.subr.bf16.mxu0 %v13492_v8  ;;  %v13732_v15 = vld [vmem:[%s14033_s25 + $0x20] sm:$0xff] }
 0x69d   : > { %12876 = vmatprep.subr.bf16.mxu1 %v13493_v40  ;;  %v7538_v21 = vpack.c.bf16 %v13733_v27, %v13732_v15 }
 0x69e   : > { %12853 = vmatpush3.bf16.msra.mxu0 %v13492_v8  ;;  %v7330_v8 = vld [vmem:[#allocation3 + $0x132] sm:$0xff] }
 0x69f   : > { %12854 = vmatprep.subr.bf16.mxu0 %v13494_v12 }
 0x6a0   : > { %12877 = vmatpush3.bf16.msra.mxu1 %v13493_v40  ;;  %v13743_v40 = vld [vmem:[%s14033_s25 + $0x78] sm:$0xff] }
 0x6a1   : > { %12878 = vmatprep.subr.bf16.mxu1 %v13495_v42  ;;  %12815 = vmatmul.mubr.msk.bf16.gmra.mxu0 %vm3292_vm5, %v6566_v38 }
 0x6a2   : > { %12839 = vmatmul.mubr.msk.bf16.gmra.mxu1 %vm3292_vm5, %v6760_v53  ;;  %12818 = vmatprep.mubr.msk.bf16.mxu0 %vm3292_vm5, %v6567_v3 }
 0x6a3   : > { %12842 = vmatprep.mubr.msk.bf16.mxu1 %vm3292_vm5, %v6761_v45  ;;  %12855 = vmatpush3.bf16.msra.mxu0 %v13494_v12  ;;  %v7347_v12 = vpack.c.bf16 %v7330_v8, %v16469_v41 }
 0x6a4   : > { %12879 = vmatpush3.bf16.msra.mxu1 %v13495_v42  ;;  %12856 = vmatprep.subr.bf16.mxu0 %v13496_v31 }
 0x6a5   : > { %12880 = vmatprep.subr.bf16.mxu1 %v13497_v25 }
 0x6a7   : > { %12857 = vmatpush3.bf16.msra.mxu0 %v13496_v31 }
 0x6a8   : > { %12881 = vmatpush3.bf16.msra.mxu1 %v13497_v25  ;;  %12898 = vmatprep.subr.bf16.mxu0 %v13498_v20 }
 0x6a9   : > { %12922 = vmatprep.subr.bf16.mxu1 %v13499_v55  ;;  %12819 = vmatmul.mubr.msk.bf16.gmra.mxu0 %vm3292_vm5, %v6568_v56 }
 0x6aa   : > { %12843 = vmatmul.mubr.msk.bf16.gmra.mxu1 %vm3292_vm5, %v6762_v6  ;;  %12822 = vmatprep.mubr.msk.bf16.mxu0 %vm3292_vm5, %v6569_v54 }
 0x6ab   : > { %12846 = vmatprep.mubr.msk.bf16.mxu1 %vm3292_vm5, %v6763_v58 }
 0x6b1   : > { %12823 = vmatmul.mubr.msk.bf16.gmra.mxu0 %vm3292_vm5, %v6570_v63 }
 0x6b2   : > { %12847 = vmatmul.mubr.msk.bf16.gmra.mxu1 %vm3292_vm5, %v6764_v57  ;;  %12858 = vmatprep.mubr.msk.bf16.mxu0 %vm3292_vm5, %v16139_v51  ;;  %v6934_v51 = vld [vmem:[#allocation3 + $0x90] sm:$0xff] }
 0x6b3   : > { %12882 = vmatprep.mubr.msk.bf16.mxu1 %vm3292_vm5, %v16135_v26  ;;  %v13501_v26 = vld [vmem:[%s18062_s14 + $0x108] sm:$0xff]  }
 0x6b9   : > { %12859 = vmatmul.mubr.msk.bf16.vlgmr.msra.gmra.mxu0 %vm3292_vm5, %v16173_v2  ;;  %v6955_v2 = vpack.c.bf16 %v6934_v51, %v16336_v10  ;;  %v13729_v10 = vld [vmem:[%s14033_s25 + $0x8] sm:$0xff] }
 0x6ba   : > { %12883 = vmatmul.mubr.msk.bf16.vlgmr.msra.gmra.mxu1 %vm3292_vm5, %v16159_v52  ;;  %12899 = vmatpush3.bf16.msra.mxu0 %v13498_v20  ;;  %v7149_v52 = vpack.c.bf16 %v7128_v35, %v16428_v30 }
 0x6bb   : > { %12862 = vmatprep.mubr.msk.bf16.mxu0 %vm3292_vm5, %v16205_v4  ;;  %12886 = vmatprep.mubr.msk.bf16.mxu1 %vm3292_vm5, %v16201_v22  ;;  %v13503_v22 = vld [vmem:[%s18062_s14 + $0x100] sm:$0xff]   ;;  %v6942_v4 = vld [vmem:[#allocation3 + $0x130] sm:$0xff] }
 0x6bc   : > { %12923 = vmatpush3.bf16.msra.mxu1 %v13499_v55  ;;  %12900 = vmatprep.subr.bf16.mxu0 %v13500_v29  ;;  %v6959_v19 = vpack.c.bf16 %v6942_v4, %v16391_v1  ;;  %v13737_v1 = vld [vmem:[%s14033_s25 + $0x48] sm:$0xff] }
 0x6bd   : > { %12924 = vmatprep.subr.bf16.mxu1 %v13502_v16  ;;  %v7540_v14 = vpack.c.bf16 %v13737_v1, %v13736_v36 }
 0x6be   : > { %12901 = vmatpush3.bf16.msra.mxu0 %v13500_v29 }
 0x6bf   : > { %12902 = vmatprep.subr.bf16.mxu0 %v13501_v26 }
 0x6c0   : > { %12925 = vmatpush3.bf16.msra.mxu1 %v13502_v16 }
 0x6c1   : > { %12961 = vmatprep.subr.mxu1 %v18330_v50  ;;  %12863 = vmatmul.mubr.msk.bf16.gmra.mxu0 %vm3292_vm5, %v6955_v2 }
 0x6c2   : > { %12887 = vmatmul.mubr.msk.bf16.gmra.mxu1 %vm3292_vm5, %v7149_v52  ;;  %12866 = vmatprep.mubr.msk.bf16.mxu0 %vm3292_vm5, %v16249_v44  ;;  %v13728_v44 = vld [vmem:[%s14033_s25] sm:$0xff] }
 0x6c3   : > { %12890 = vmatprep.mubr.msk.bf16.mxu1 %vm3292_vm5, %v16245_v7  ;;  %12903 = vmatpush3.bf16.msra.mxu0 %v13501_v26  ;;  %v7136_v7 = vld [vmem:[#allocation3 + $0x131] sm:$0xff]  ;;  %v7536_v9 = vpack.c.bf16 %v13729_v10, %v13728_v44 }
 0x6c4   : > { %12904 = vmatprep.subr.bf16.mxu0 %v13503_v22 }
 0x6c7   : > { %12905 = vmatpush3.bf16.msra.mxu0 %v13503_v22 }
 0x6c8   : > { %12942 = vmatprep.subr.mxu0 %v18330_v50 }
 0x6c9   : > { %12867 = vmatmul.mubr.msk.bf16.gmra.mxu0 %vm3292_vm5, %v16257_v46  ;;  %v7153_v46 = vpack.c.bf16 %v7136_v7, %v6553_v11 }
 0x6ca   : > { %12891 = vmatmul.mubr.msk.bf16.gmra.mxu1 %vm3292_vm5, %v16253_v60  ;;  %12870 = vmatprep.mubr.msk.bf16.mxu0 %vm3292_vm5, %v16283_v23  ;;  %v13730_v60 = vld [vmem:[%s14033_s25 + $0x10] sm:$0xff] }
 0x6cb   : > { %12894 = vmatprep.mubr.msk.bf16.mxu1 %vm3292_vm5, %v16279_v33  ;;  %v13731_v33 = vld [vmem:[%s14033_s25 + $0x18] sm:$0xff] }
 0x6cc   : > { %v7537_v23 = vpack.c.bf16 %v13731_v33, %v13730_v60 }
 0x6d1   : > { %12871 = vmatmul.mubr.msk.bf16.gmra.mxu0 %vm3292_vm5, %v6959_v19 }
 0x6d2   : > { %12895 = vmatmul.mubr.msk.bf16.gmra.mxu1 %vm3292_vm5, %v7153_v46  ;;  %12906 = vmatprep.mubr.msk.bf16.mxu0 %vm3292_vm5, %v16304_v28  ;;  %v7322_v28 = vld [vmem:[#allocation3 + $0x92] sm:$0xff] }
 0x6d3   : > { %12926 = vmatprep.mubr.msk.bf16.mxu1 %vm1282_vm1, %v7536_v9 }
 0x6d9   : > { %12907 = vmatmul.mubr.msk.bf16.vlgmr.msra.gmra.mxu0 %vm3292_vm5, %v16310_v39  ;;  %v7343_v39 = vpack.c.bf16 %v7322_v28, %v16430_v49 }
 0x6da   : > { %12927 = vmatmul.mubr.msk.bf16.vlgmr.msra.gmra.mxu1 %vm1282_vm1, %v7537_v23  ;;  %12910 = vmatprep.mubr.msk.bf16.mxu0 %vm3292_vm5, %v16342_v61  ;;  %v13738_v61 = vld [vmem:[%s14033_s25 + $0x50] sm:$0xff] }
 0x6db   : > { %12930 = vmatprep.mubr.msk.bf16.mxu1 %vm1282_vm1, %v7538_v21  ;;  %v7541_v37 = vpack.c.bf16 %v13739_v48, %v13738_v61 }
 0x6e1   : > { %12911 = vmatmul.mubr.msk.bf16.gmra.mxu0 %vm3292_vm5, %v7343_v39 }
 0x6e2   : > { %12931 = vmatmul.mubr.msk.bf16.gmra.mxu1 %vm1282_vm1, %v7539_v62  ;;  %12914 = vmatprep.mubr.msk.bf16.mxu0 %vm3292_vm5, %v16373_v5  ;;  %v13742_v5 = vld [vmem:[%s14033_s25 + $0x70] sm:$0xff] }
 0x6e3   : > { %12934 = vmatprep.mubr.msk.bf16.mxu1 %vm1282_vm1, %v7540_v14  ;;  %v7543_v24 = vpack.c.bf16 %v13743_v40, %v13742_v5 }
 0x6e9   : > { %12915 = vmatmul.mubr.msk.bf16.gmra.mxu0 %vm3292_vm5, %v16379_v0 }
 0x6ea   : > { %12935 = vmatmul.mubr.msk.bf16.gmra.mxu1 %vm1282_vm1, %v7541_v37  ;;  %12918 = vmatprep.mubr.msk.bf16.mxu0 %vm3292_vm5, %v16394_v59 }
 0x6eb   : > { %12938 = vmatprep.mubr.msk.bf16.mxu1 %vm1282_vm1, %v7542_v47 }
 0x6f1   : > { %12919 = vmatmul.mubr.msk.bf16.gmra.mxu0 %vm3292_vm5, %v7347_v12 }
 0x6f2   : > { %12939 = vmatmul.mubr.msk.bf16.gmra.mxu1 %vm1282_vm1, %v7543_v24  ;;  %12958 = vmatprep.mubr.msk.f32.mxu0 %vm13807_vm0, %v18330_v50 }
 0x6f3   : > { %12977 = vmatprep.mubr.msk.f32.mxu1 %vm13807_vm0, %v18330_v50 }
 0x719   : > { %v12716_v0 = vpop.f32.mrf.mxu0 }
 0x71a   : > { %v12740_v59 = vpop.f32.mrf.mxu1 }
 0x71b   : > { %v6096_v30 = vadd.f32 %v12740_v59, %v12716_v0  ;;  %v5942_v49 = vpop.f32.mrf.mxu0 }
 0x71c   : > { %v6087_v42 = vpop.f32.mrf.mxu1 }
 0x71d   : > { %v6088_v38 = vadd.f32 %v6087_v42, %v5942_v49  ;;  %v12717_v53 = vpop.f32.mrf.mxu0 }
 0x71e   : > { %v12741_v3 = vpop.f32.mrf.mxu1 }
 0x71f   : > { %v6099_v45 = vadd.f32 %v12741_v3, %v12717_v53  ;;  %v16565_v31 = vpop.f32.mrf.mxu0  ;;  %v7749_v53 = vld [vmem:[%s18060_s12 + $0x38] sm:$0xff] }
 0x720   : > { %v16567_v25 = vpop.f32.mrf.mxu1 }
 0x721   : > { %v12720_v20 = vpop.f32.mrf.mxu0 }
 0x722   : > { %v12744_v55 = vpop.f32.mrf.mxu1 }
 0x723   : > { %v6112_v56 = vadd.f32 %v12744_v55, %v12720_v20  ;;  %v5958_v6 = vpop.f32.mrf.mxu0  ;;  %v16608_v20 = vand.u32 4294901760, %v7749_v53 }
 0x724   : > { %v6103_v54 = vpop.f32.mrf.mxu1 }
 0x725   : > { %v6104_v58 = vadd.f32 %v6103_v54, %v5958_v6  ;;  %v12721_v11 = vpop.f32.mrf.mxu0  ;;  %18377 = vst [vmem:[#allocation39_spill] sm:$0xff] %v16608_v20  ;;  %12943 = vmatpush3.msra.mxu0 %v16608_v20 }
 0x726   : > { %v12745_v41 = vpop.f32.mrf.mxu1  ;;  %12944 = vmatprep.subr.mxu0 %v18330_v50 }
 0x727   : > { %v6115_v63 = vadd.f32 %v12745_v41, %v12721_v11  ;;  %v16569_v57 = vpop.f32.mrf.mxu0 }
 0x728   : > { %v16571_v29 = vpop.f32.mrf.mxu1 }
 0x729   : > { %v12724_v16 = vpop.f32.mrf.mxu0 }
 0x72a   : > { %v12748_v26 = vpop.f32.mrf.mxu1 }
 0x72b   : > { %v6128_v51 = vadd.f32 %v12748_v26, %v12724_v16  ;;  %v5974_v35 = vpop.f32.mrf.mxu0  ;;  %v7747_v16 = vld [vmem:[%s18060_s12 + $0x28] sm:$0xff] }
 0x72c   : > { %v6119_v2 = vpop.f32.mrf.mxu1 }
 0x72d   : > { %v16573_v52 = vadd.f32 %v6119_v2, %v5974_v35  ;;  %v12725_v22 = vpop.f32.mrf.mxu0 }
 0x72e   : > { %v12749_v4 = vpop.f32.mrf.mxu1 }
 0x72f   : > { %v16575_v7 = vadd.f32 %v12749_v4, %v12725_v22  ;;  %v16577_v44 = vpop.f32.mrf.mxu0 }
 0x730   : > { %v16579_v10 = vpop.f32.mrf.mxu1 }
 0x731   : > { %v12728_v9 = vpop.f32.mrf.mxu0 }
 0x732   : > { %v12752_v19 = vpop.f32.mrf.mxu1 }
 0x733   : > { %v16581_v46 = vadd.f32 %v12752_v19, %v12728_v9  ;;  %v5990_v60 = vpop.f32.mrf.mxu0  ;;  %v16637_v9 = vand.u32 4294901760, %v7747_v16  ;;  %v7746_v19 = vld [vmem:[%s18060_s12 + $0x20] sm:$0xff] }
 0x734   : > { %v6135_v33 = vpop.f32.mrf.mxu1 }
 0x735   : > { %v16583_v23 = vadd.f32 %v6135_v33, %v5990_v60  ;;  %v12729_v15 = vpop.f32.mrf.mxu0  ;;  %18382 = vst [vmem:[#allocation42_spill] sm:$0xff] %v16637_v9 }
 0x736   : > { %v12753_v27 = vpop.f32.mrf.mxu1 }
 0x737   : > { %v16585_v21 = vadd.f32 %v12753_v27, %v12729_v15  ;;  %v16587_v28 = vpop.f32.mrf.mxu0 }
 0x738   : > { %v16589_v34 = vpop.f32.mrf.mxu1 }
 0x739   : > { %v12764_v13 = vpop.f32.mrf.mxu0 }
 0x73a   : > { %v12788_v62 = vpop.f32.mrf.mxu1  ;;  %v6330_v36 = vadd.f32 %v12764_v13, %v6096_v30 }
 0x73b   : > { %v6265_v1 = vpop.f32.mrf.mxu0 }
 0x73c   : > { %v6459_v14 = vpop.f32.mrf.mxu1  ;;  %v16591_v39 = vadd.f32 %v12788_v62, %v6330_v36  ;;  %v6328_v61 = vadd.f32 %v6265_v1, %v6088_v38  ;;  %v16652_v62 = vsub.f32 %v7747_v16, %v16637_v9  ;;  %v16654_v36 = vand.u32 4294901760, %v7746_v19  ;;  %v7745_v1 = vld [vmem:[%s18060_s12 + $0x18] sm:$0xff] }
 0x73d   : > { %v12765_v48 = vpop.f32.mrf.mxu0 }
 0x73e   : > { %v12789_v37 = vpop.f32.mrf.mxu1  ;;  %v16593_v32 = vadd.f32 %v6459_v14, %v6328_v61  ;;  %v6331_v17 = vadd.f32 %v12765_v48, %v6099_v45  ;;  %18384 = vst [vmem:[#allocation13_spill] sm:$0xff] %v16652_v62  ;;  %18385 = vst [vmem:[#allocation14_spill] sm:$0xff] %v16654_v36 }
 0x73f   : > { %v16595_v47 = vpop.f32.mrf.mxu0 }
 0x740   : > { %v16597_v8 = vpop.f32.mrf.mxu1  ;;  %v16599_v5 = vadd.f32 %v12789_v37, %v6331_v17 }
 0x741   : > { %v12768_v40 = vpop.f32.mrf.mxu0 }
 0x742   : > { %v12792_v24 = vpop.f32.mrf.mxu1  ;;  %v6334_v12 = vadd.f32 %v12768_v40, %v6112_v56  ;;  %v7748_v56 = vld [vmem:[%s18060_s12 + $0x30] sm:$0xff]  ;;  %v16672_v40 = vand.u32 4294901760, %v16652_v62 }
 0x743   : > { %v6281_v0 = vpop.f32.mrf.mxu0  ;;  %v16623_v11 = vand.u32 4294901760, %v7748_v56 }
 0x744   : > { %v6475_v59 = vpop.f32.mrf.mxu1  ;;  %v16601_v30 = vadd.f32 %v12792_v24, %v6334_v12  ;;  %v6332_v49 = vadd.f32 %v6281_v0, %v6104_v58  ;;  %v16621_v58 = vsub.f32 %v7749_v53, %v16608_v20  ;;  %18387 = vst [vmem:[#allocation18_spill] sm:$0xff] %v16672_v40  ;;  %v16676_v24 = vsub.f32 %v7746_v19, %v16654_v36  ;;  %v7744_v12 = vld [vmem:[%s18060_s12 + $0x10] sm:$0xff]  ;;  %v7743_v0 = vld [vmem:[%s18060_s12 + $0x8] sm:$0xff] }
 0x745   : > { %v12769_v42 = vpop.f32.mrf.mxu0  ;;  %18379 = vst [vmem:[#allocation31_spill] sm:$0xff] %v16623_v11  ;;  %12945 = vmatpush3.msra.mxu0 %v16623_v11  ;;  %v16634_v2 = vsub.f32 %v7748_v56, %v16623_v11  ;;  %v7872_v56 = vsub.f32 %v16652_v62, %v16672_v40  ;;  %v16707_v16 = vand.u32 4294901760, %v7743_v0 }
 0x746   : > { %v12793_v38 = vpop.f32.mrf.mxu1  ;;  %v16606_v3 = vadd.f32 %v6475_v59, %v6332_v49  ;;  %v6335_v45 = vadd.f32 %v12769_v42, %v6115_v63  ;;  %18378 = vst [vmem:[#allocation49_spill] sm:$0xff] %v16621_v58  ;;  %v16630_v35 = vand.u32 4294901760, %v16621_v58  ;;  %12946 = vmatprep.subr.mxu0 %v18330_v50  ;;  %18388 = vst [vmem:[#allocation20_spill] sm:$0xff] %v16676_v24  ;;  %v7742_v59 = vld [vmem:[%s18060_s12] sm:$0xff] }
 0x747   : > { %v16610_v55 = vpop.f32.mrf.mxu0  ;;  %18381 = vst [vmem:[#allocation41_spill] sm:$0xff] %v16634_v2  ;;  %v16648_v15 = vand.u32 4294901760, %v16634_v2  ;;  %12947 = vmatpush3.msra.mxu0 %v16637_v9  ;;  %18394 = vst [vmem:[#allocation29_spill] sm:$0xff] %v16707_v16 }
 0x748   : > { %v16612_v6 = vpop.f32.mrf.mxu1  ;;  %v16617_v54 = vadd.f32 %v12793_v38, %v6335_v45  ;;  %18380 = vst [vmem:[#allocation40_spill] sm:$0xff] %v16630_v35  ;;  %v7858_v33 = vsub.f32 %v16621_v58, %v16630_v35  ;;  %12948 = vmatprep.subr.mxu0 %v18330_v50  ;;  %v16695_v38 = vand.u32 4294901760, %v7744_v12 }
 0x749   : > { %v12772_v41 = vpop.f32.mrf.mxu0  ;;  %18383 = vst [vmem:[#allocation43_spill] sm:$0xff] %v16648_v15  ;;  %v7865_v48 = vsub.f32 %v16634_v2, %v16648_v15  ;;  %12949 = vmatpush3.msra.mxu0 %v16654_v36 }
 0x74a   : > { %v12796_v63 = vpop.f32.mrf.mxu1  ;;  %v6338_v26 = vadd.f32 %v12772_v41, %v6128_v51  ;;  %v16662_v61 = vand.u32 4294901760, %v7858_v33  ;;  %12950 = vmatprep.subr.mxu0 %v18330_v50  ;;  %18391 = vst [vmem:[#allocation25_spill] sm:$0xff] %v16695_v38  ;;  %v16701_v41 = vand.u32 4294901760, %v16676_v24  ;;  %v16718_v33 = vand.u32 4294901760, %v7872_v56 }
 0x74b   : > { %v6297_v22 = vpop.f32.mrf.mxu0  ;;  %v16692_v42 = vand.u32 4294901760, %v7865_v48 }
 0x74c   : > { %v6491_v4 = vpop.f32.mrf.mxu1  ;;  %v16642_v60 = vadd.f32 %v12796_v63, %v6338_v26  ;;  %v6336_v51 = vadd.f32 %v6297_v22, %v16573_v52  ;;  %18386 = vst [vmem:[#allocation16_spill] sm:$0xff] %v16662_v61  ;;  %12962 = vmatpush3.msra.mxu1 %v16662_v61  ;;  %18392 = vst [vmem:[#allocation33_spill] sm:$0xff] %v16701_v41  ;;  %v16712_v22 = vsub.f32 %v7744_v12, %v16695_v38 }
 0x74d   : > { %v12773_v27 = vpop.f32.mrf.mxu0  ;;  %18390 = vst [vmem:[#allocation24_spill] sm:$0xff] %v16692_v42  ;;  %12963 = vmatprep.subr.mxu1 %v18330_v50  ;;  %18397 = vst [vmem:[#allocation19_spill] sm:$0xff] %v16718_v33 }
 0x74e   : > { %v12797_v13 = vpop.f32.mrf.mxu1  ;;  %v16659_v52 = vadd.f32 %v6491_v4, %v6336_v51  ;;  %v6339_v14 = vadd.f32 %v12773_v27, %v16575_v7  ;;  %v16678_v7 = vand.u32 4294901760, %v7745_v1  ;;  %12964 = vmatpush3.msra.mxu1 %v16692_v42  ;;  %18395 = vst [vmem:[#allocation15_spill] sm:$0xff] %v16712_v22  ;;  %v16715_v4 = vand.u32 4294901760, %v7742_v59 }
 0x74f   : > { %v16667_v37 = vpop.f32.mrf.mxu0  ;;  %12965 = vmatprep.subr.mxu1 %v18330_v50  ;;  %v7879_v27 = vsub.f32 %v16676_v24, %v16701_v41  ;;  %v16733_v48 = vand.u32 4294901760, %v16712_v22 }
 0x750   : > { %v16669_v17 = vpop.f32.mrf.mxu1  ;;  %18389 = vst [vmem:[#allocation23_spill] sm:$0xff] %v16678_v7  ;;  %v16689_v49 = vadd.f32 %v12797_v13, %v6339_v14  ;;  %12951 = vmatpush3.msra.mxu0 %v16678_v7  ;;  %v16705_v63 = vsub.f32 %v7745_v1, %v16678_v7  ;;  %18396 = vst [vmem:[#allocation17_spill] sm:$0xff] %v16715_v4  ;;  %v16727_v13 = vsub.f32 %v7743_v0, %v16707_v16 }
 0x751   : > { %v12776_v53 = vpop.f32.mrf.mxu0  ;;  %12952 = vmatprep.subr.mxu0 %v18330_v50  ;;  %18400 = vst [vmem:[#allocation26_spill] sm:$0xff] %v16733_v48  ;;  %v16736_v12 = vsub.f32 %v7742_v59, %v16715_v4  ;;  %12966 = vmatpush3.msra.mxu1 %v16718_v33  ;;  %v16740_v18 = vand.u32 4294901760, %v7879_v27 }
 0x752   : > { %v12800_v45 = vpop.f32.mrf.mxu1  ;;  %18393 = vst [vmem:[#allocation30_spill] sm:$0xff] %v16705_v63  ;;  %v6342_v26 = vadd.f32 %v12776_v53, %v16581_v46  ;;  %v16723_v46 = vand.u32 4294901760, %v16705_v63  ;;  %12953 = vmatpush3.msra.mxu0 %v16695_v38  ;;  %18399 = vst [vmem:[#allocation22_spill] sm:$0xff] %v16727_v13  ;;  %12967 = vmatprep.subr.mxu1 %v18330_v50 }
 0x753   : > { %v6313_v19 = vpop.f32.mrf.mxu0  ;;  %18401 = vst [vmem:[#allocation27_spill] sm:$0xff] %v16736_v12  ;;  %12954 = vmatprep.subr.mxu0 %v18330_v50  ;;  %18402 = vst [vmem:[#allocation28_spill] sm:$0xff] %v16740_v18  ;;  %12968 = vmatpush3.msra.mxu1 %v16740_v18 }
 0x754   : > { %v6507_v51 = vpop.f32.mrf.mxu1  ;;  %18398 = vst [vmem:[#allocation21_spill] sm:$0xff] %v16723_v46  ;;  %v16729_v1 = vadd.f32 %v12800_v45, %v6342_v26  ;;  %v6340_v14 = vadd.f32 %v6313_v19, %v16583_v23  ;;  %v7886_v0 = vsub.f32 %v16705_v63, %v16723_v46  ;;  %v16745_v45 = vand.u32 4294901760, %v16727_v13  ;;  %12955 = vmatpush3.msra.mxu0 %v16707_v16 }
 0x755   : > { %v12777_v53 = vpop.f32.mrf.mxu0  ;;  %v7893_v26 = vsub.f32 %v16712_v22, %v16733_v48  ;;  %v16755_v19 = vand.u32 4294901760, %v16736_v12  ;;  %12956 = vmatprep.subr.mxu0 %v18330_v50  ;;  %12969 = vmatprep.subr.mxu1 %v18330_v50 }
 0x756   : > { %v12801_v56 = vpop.f32.mrf.mxu1  ;;  %18403 = vst [vmem:[#allocation34_spill] sm:$0xff] %v16745_v45  ;;  %v16748_v23 = vadd.f32 %v6507_v51, %v6340_v14  ;;  %v6343_v59 = vadd.f32 %v12777_v53, %v16585_v21  ;;  %v16763_v51 = vand.u32 4294901760, %v7886_v0  ;;  %v7900_v21 = vsub.f32 %v16727_v13, %v16745_v45  ;;  %12957 = vmatpush3.msra.mxu0 %v16715_v4 }
 0x757   : > { %18404 = vst [vmem:[#allocation35_spill] sm:$0xff] %v16755_v19  ;;  %v16758_v27 = vpop.f32.mrf.mxu0  ;;  %v6091_v14 = vadd.f32 %v16567_v25, %v16565_v31  ;;  %v16773_v33 = vand.u32 4294901760, %v7893_v26  ;;  %v7907_v42 = vsub.f32 %v16736_v12, %v16755_v19  ;;  %12980 = vmatprep.subr.mxu0 %v18330_v50 }
 0x758   : > { %v16760_v43 = vpop.f32.mrf.mxu1  ;;  %18405 = vst [vmem:[#allocation48_spill] sm:$0xff] %v16763_v51  ;;  %v16770_v53 = vadd.f32 %v12801_v56, %v6343_v59  ;;  %12970 = vmatpush3.msra.mxu1 %v16763_v51  ;;  %v16779_v61 = vand.u32 4294901760, %v7900_v21 }
 0x759   : > { %18406 = vst [vmem:[#allocation36_spill] sm:$0xff] %v16773_v33  ;;  %v12812_v0 = vpop.f32.mrf.mxu0  ;;  %v6329_v45 = vadd.f32 %v16595_v47, %v6091_v14  ;;  %12971 = vmatprep.subr.mxu1 %v18330_v50  ;;  %v16785_v59 = vand.u32 4294901760, %v7907_v42 }
 0x75a   : > { %v12836_v18 = vpop.f32.mrf.mxu1  ;;  %18407 = vst [vmem:[#allocation50_spill] sm:$0xff] %v16779_v61  ;;  %v6718_v31 = vadd.f32 %v12812_v0, %v16591_v39  ;;  %12972 = vmatpush3.msra.mxu1 %v16773_v33 }
 0x75b   : > { %v6653_v25 = vpop.f32.mrf.mxu0  ;;  %18408 = vst [vmem:[#allocation44_spill] sm:$0xff] %v16785_v59  ;;  %12973 = vmatprep.subr.mxu1 %v18330_v50  ;;  %v6523_v39 = vadd.f32 %v16597_v8, %v6329_v45 }
 0x75c   : > { %v6847_v56 = vpop.f32.mrf.mxu1  ;;  %v16787_v26 = vadd.f32 %v12836_v18, %v6718_v31  ;;  %v6716_v19 = vadd.f32 %v6653_v25, %v16593_v32  ;;  %12974 = vmatpush3.msra.mxu1 %v16779_v61  ;;  %v6107_v18 = vadd.f32 %v16571_v29, %v16569_v57 }
 0x75d   : > { %v12813_v21 = vpop.f32.mrf.mxu0  ;;  %12975 = vmatprep.subr.mxu1 %v18330_v50 }
 0x75e   : > { %v12837_v51 = vpop.f32.mrf.mxu1  ;;  %v16793_v47 = vadd.f32 %v6847_v56, %v6716_v19  ;;  %v6719_v14 = vadd.f32 %v12813_v21, %v16599_v5  ;;  %12976 = vmatpush3.msra.mxu1 %v16785_v59  ;;  %v6333_v45 = vadd.f32 %v16610_v55, %v6107_v18 }
 0x75f   : > { %v6656_v42 = vpop.f32.mrf.mxu0  ;;  %12999 = vmatprep.subr.mxu1 %v18330_v50  ;;  %v6123_v50 = vadd.f32 %v16579_v10, %v16577_v44 }
 0x760   : > { %v6850_v0 = vpop.f32.mrf.mxu1  ;;  %v16800_v32 = vadd.f32 %v12837_v51, %v6719_v14  ;;  %v6717_v31 = vadd.f32 %v6656_v42, %v6523_v39  ;;  %v6527_v51 = vadd.f32 %v16612_v6, %v6333_v45 }
 0x761   : > { %v12816_v25 = vpop.f32.mrf.mxu0 }
 0x762   : > { %v12840_v8 = vpop.f32.mrf.mxu1  ;;  %v16804_v19 = vadd.f32 %v6850_v0, %v6717_v31  ;;  %v6722_v5 = vadd.f32 %v12816_v25, %v16601_v30 }
 0x763   : > { %v6669_v56 = vpop.f32.mrf.mxu0 }
 0x764   : > { %v6863_v21 = vpop.f32.mrf.mxu1  ;;  %v16807_v61 = vadd.f32 %v12840_v8, %v6722_v5  ;;  %v6720_v59 = vadd.f32 %v6669_v56, %v16606_v3 }
 0x765   : > { %v12817_v57 = vpop.f32.mrf.mxu0 }
 0x766   : > { %v12841_v29 = vpop.f32.mrf.mxu1  ;;  %v16811_v39 = vadd.f32 %v6863_v21, %v6720_v59  ;;  %v6723_v14 = vadd.f32 %v12817_v57, %v16617_v54 }
 0x767   : > { %v6672_v42 = vpop.f32.mrf.mxu0 }
 0x768   : > { %v6866_v55 = vpop.f32.mrf.mxu1  ;;  %v16814_v0 = vadd.f32 %v12841_v29, %v6723_v14  ;;  %v6721_v18 = vadd.f32 %v6672_v42, %v6527_v51 }
 0x769   : > { %v12820_v30 = vpop.f32.mrf.mxu0 }
 0x76a   : > { %v12844_v31 = vpop.f32.mrf.mxu1  ;;  %v16816_v25 = vadd.f32 %v6866_v55, %v6721_v18  ;;  %v6726_v8 = vadd.f32 %v12820_v30, %v16642_v60 }
 0x76b   : > { %v6685_v3 = vpop.f32.mrf.mxu0 }
 0x76c   : > { %v16819_v5 = vpop.f32.mrf.mxu1  ;;  %v16821_v56 = vadd.f32 %v12844_v31, %v6726_v8  ;;  %v6724_v10 = vadd.f32 %v6685_v3, %v16659_v52 }
 0x76d   : > { %v12821_v6 = vpop.f32.mrf.mxu0 }
 0x76e   : > { %v16823_v59 = vpop.f32.mrf.mxu1 }
 0x76f   : > { %v6688_v54 = vpop.f32.mrf.mxu0 }
 0x770   : > { %v16825_v45 = vpop.f32.mrf.mxu1 }
 0x771   : > { %v12824_v21 = vpop.f32.mrf.mxu0 }
 0x772   : > { %v12848_v57 = vpop.f32.mrf.mxu1  ;;  %v6730_v29 = vadd.f32 %v12824_v21, %v16729_v1 }
 0x773   : > { %v16828_v51 = vpop.f32.mrf.mxu0 }
 0x774   : > { %v16830_v14 = vpop.f32.mrf.mxu1  ;;  %v16832_v60 = vadd.f32 %v12848_v57, %v6730_v29 }
 0x775   : > { %v12825_v42 = vpop.f32.mrf.mxu0 }
 0x776   : > { %18409 = vst [vmem:[#allocation37_spill] sm:$0xff] %v16832_v60  ;;  %v16834_v55 = vpop.f32.mrf.mxu1 }
 0x777   : > { %v16836_v18 = vpop.f32.mrf.mxu0 }
 0x778   : > { %v16838_v30 = vpop.f32.mrf.mxu1 }
 0x779   : > { %v12860_v31 = vpop.f32.mrf.mxu0 }
 0x77a   : > { %v12884_v8 = vpop.f32.mrf.mxu1 }
 0x77b   : > { %v7042_v33 = vpop.f32.mrf.mxu0 }
 0x77c   : > { %v7236_v48 = vpop.f32.mrf.mxu1 }
 0x77d   : > { %v12861_v46 = vpop.f32.mrf.mxu0 }
 0x77e   : > { %v12885_v41 = vpop.f32.mrf.mxu1 }
 0x77f   : > { %v7045_v1 = vpop.f32.mrf.mxu0 }
 0x780   : > { %v7239_v21 = vpop.f32.mrf.mxu1 }
 0x781   : > { %v12864_v40 = vpop.f32.mrf.mxu0 }
 0x782   : > { %v16840_v15 = vpop.f32.mrf.mxu1 }
 0x783   : > { %v7058_v57 = vpop.f32.mrf.mxu0 }
 0x784   : > { %v16842_v29 = vpop.f32.mrf.mxu1 }
 0x785   : > { %v16844_v35 = vpop.f32.mrf.mxu0 }
 0x786   : > { %v16846_v12 = vpop.f32.mrf.mxu1 }
 0x787   : > { %v16848_v13 = vpop.f32.mrf.mxu0 }
 0x788   : > { %v16850_v22 = vpop.f32.mrf.mxu1 }
 0x789   : > { %v16852_v63 = vpop.f32.mrf.mxu0 }
 0x78a   : > { %v16854_v4 = vpop.f32.mrf.mxu1 }
 0x78b   : > { %v16856_v24 = vpop.f32.mrf.mxu0 }
 0x78c   : > { %v16858_v16 = vpop.f32.mrf.mxu1 }
 0x78d   : > { %18410 = vst [vmem:[#allocation45_spill] sm:$0xff] %v16858_v16  ;;  %v16860_v62 = vpop.f32.mrf.mxu0  ;;  %v7107_v16 = vadd.f32 %v12860_v31, %v16787_v26 }
 0x78e   : > { %v16862_v38 = vpop.f32.mrf.mxu1 }
 0x78f   : > { %18411 = vst [vmem:[#allocation38_spill] sm:$0xff] %v16862_v38  ;;  %v16864_v2 = vpop.f32.mrf.mxu0  ;;  %v6337_v38 = vadd.f32 %v16667_v37, %v6123_v50  ;;  %v7301_v37 = vadd.f32 %v12884_v8, %v7107_v16 }
 0x790   : > { %v16866_v7 = vpop.f32.mrf.mxu1 }
 0x791   : > { %18412 = vst [vmem:[#allocation46_spill] sm:$0xff] %v16866_v7  ;;  %v16868_v58 = vpop.f32.mrf.mxu0  ;;  %v7105_v7 = vadd.f32 %v7042_v33, %v16793_v47  ;;  %v6531_v50 = vadd.f32 %v16669_v17, %v6337_v38  ;;  %v7106_v33 = vadd.f32 %v7045_v1, %v16804_v19  ;;  %v6918_v17 = vadd.f32 %v16819_v5, %v6724_v10 }
 0x792   : > { %18413 = vst [vmem:[#allocation32_spill] sm:$0xff] %v16868_v58  ;;  %v16870_v36 = vpop.f32.mrf.mxu1 }
 0x793   : > { %18414 = vst [vmem:[#allocation47_spill] sm:$0xff] %v16870_v36  ;;  %v16872_v9 = vpop.f32.mrf.mxu0  ;;  %v6139_v36 = vadd.f32 %v16589_v34, %v16587_v28  ;;  %v7299_v26 = vadd.f32 %v7236_v48, %v7105_v7  ;;  %v6727_v28 = vadd.f32 %v12821_v6, %v16689_v49  ;;  %v6725_v31 = vadd.f32 %v6688_v54, %v6531_v50 }
 0x794   : > { %18415 = vst [vmem:[#allocation52_spill] sm:$0xff] %v16872_v9  ;;  %v16874_v11 = vpop.f32.mrf.mxu1  ;;  %v6728_v7 = vadd.f32 %v16828_v51, %v16748_v23  ;;  %v6731_v49 = vadd.f32 %v12825_v42, %v16770_v53  ;;  %v7300_v16 = vadd.f32 %v7239_v21, %v7106_v33  ;;  %v7109_v48 = vadd.f32 %v7058_v57, %v16811_v39 }
 0x795   : > { %18416 = vst [vmem:[#allocation53_spill] sm:$0xff] %v16874_v11  ;;  %v16878_v20 = vpop.f32.mrf.mxu0  ;;  %v7108_v11 = vadd.f32 %v12861_v46, %v16800_v32  ;;  %v6341_v44 = vadd.f32 %v16758_v27, %v6139_v36  ;;  %v16900_v36 = vld [vmem:[%s18065_s17] ss:$0 sm:$0xff]  ;;  %v6921_v32 = vadd.f32 %v16823_v59, %v6727_v28  ;;  %v7111_v23 = vadd.f32 %v12864_v40, %v16807_v61 }
 0x796   : > { %18417 = vst [vmem:[#allocation54_spill] sm:$0xff] %v16878_v20  ;;  %v16880_v60 = vpop.f32.mrf.mxu1  ;;  %v6919_v6 = vadd.f32 %v16825_v45, %v6725_v31  ;;  %v7110_v59 = vadd.f32 %v16848_v13, %v16816_v25  ;;  %v7112_v13 = vadd.f32 %v16844_v35, %v16814_v0  ;;  %v7115_v25 = vadd.f32 %v16852_v63, %v16821_v56 }
 0x797   : > { %18418 = vst [vmem:[#allocation55_spill] sm:$0xff] %v16880_v60  ;;  %v16887_v58 = vpop.f32.mrf.mxu0  ;;  %v6535_v46 = vadd.f32 %v16760_v43, %v6341_v44  ;;  %v7113_v10 = vadd.f32 %v16856_v24, %v6918_v17 }
 0x798   : > { %18419 = vst [vmem:[#allocation56_spill] sm:$0xff] %v16887_v58  ;;  %v16889_v9 = vpop.f32.mrf.mxu1  ;;  %v7306_v33 = vadd.f32 %v16846_v12, %v7112_v13  ;;  %v7114_v24 = vadd.f32 %v16864_v2, %v6919_v6  ;;  %v7309_v31 = vadd.f32 %v16854_v4, %v7115_v25  ;;  %v18426_v2 = vld [vmem:[#allocation45_spill] sm:$0xff] }
 0x799   : > { %18420 = vst [vmem:[#allocation57_spill] sm:$0xff] %v16889_v9  ;;  %v12908_v60 = vpop.f32.mrf.mxu0  ;;  %v7302_v9 = vadd.f32 %v12885_v41, %v7108_v11  ;;  %v16910_v11 = vld [vmem:[%s18063_s15] ss:$0 sm:$0xff]  ;;  %v6729_v19 = vadd.f32 %v16836_v18, %v6535_v46  ;;  %v7303_v18 = vadd.f32 %v16842_v29, %v7109_v48 }
 0x79a   : > { %v12928_v20 = vpop.f32.mrf.mxu1  ;;  %v7495_v58 = vadd.f32 %v12908_v60, %v7301_v37  ;;  %v6922_v60 = vadd.f32 %v16830_v14, %v6728_v7 }
 0x79b   : > { %v7430_v34 = vpop.f32.mrf.mxu0  ;;  %v7630_v51 = vadd.f32 %v12928_v20, %v16900_v36  ;;  %v16934_v14 = vadd.f32 %v16838_v30, %v6729_v19  ;;  %v7304_v30 = vadd.f32 %v16850_v22, %v7110_v59  ;;  %v7116_v22 = vadd.f32 %v16860_v62, %v6921_v32  ;;  %v18428_v19 = vld [vmem:[#allocation46_spill] sm:$0xff] }
 0x79c   : > { %v7621_v47 = vpop.f32.mrf.mxu1  ;;  %v7493_v52 = vadd.f32 %v7430_v34, %v7299_v26  ;;  %v7518_v54 = vadd.f32 %v16910_v11, %v7495_v58 }
 0x79d   : > { %v12909_v38 = vpop.f32.mrf.mxu0  ;;  %v7622_v53 = vadd.f32 %v16900_v36, %v7621_v47 }
 0x79e   : > { %v12929_v41 = vpop.f32.mrf.mxu1  ;;  %v7516_v27 = vadd.f32 %v16910_v11, %v7493_v52  ;;  %v7496_v43 = vadd.f32 %v12909_v38, %v7302_v9  ;;  %v16923_v9 = vadd.f32 %v16834_v55, %v6731_v49  ;;  %v7305_v55 = vadd.f32 %v16840_v15, %v7111_v23 }
 0x79f   : > { %v7433_v3 = vpop.f32.mrf.mxu0  ;;  %v16941_v21 = vadd.f32 %v7630_v51, %v7518_v54  ;;  %v7633_v57 = vadd.f32 %v12929_v41, %v16900_v36  ;;  %v7308_v23 = vadd.f32 %v18428_v19, %v7114_v24  ;;  %v18429_v54 = vld [vmem:[#allocation37_spill] sm:$0xff]  ;;  %v18430_v51 = vld [vmem:[#allocation32_spill] sm:$0xff] }
 0x7a0   : > { %v7624_v5 = vpop.f32.mrf.mxu1  ;;  %v7494_v39 = vadd.f32 %v7433_v3, %v7300_v16  ;;  %v16927_v61 = vadd.f32 %v7622_v53, %v7516_v27  ;;  %v7519_v45 = vadd.f32 %v16910_v11, %v7496_v43  ;;  %v7307_v16 = vadd.f32 %v18426_v2, %v7113_v10  ;;  %v18427_v43 = vld [vmem:[#allocation38_spill] sm:$0xff] }
 0x7a1   : > { %v12912_v40 = vpop.f32.mrf.mxu0  ;;  %v7625_v20 = vadd.f32 %v16900_v36, %v7624_v5  ;;  %18422 = vst [vmem:[#allocation59_spill] sm:$0xff] %v16941_v21  ;;  %v7703_v52 = vsel %vm3292_vm5, %v16941_v21, 0.0  ;;  %v7310_v32 = vadd.f32 %v18427_v43, %v7116_v22  ;;  %v18436_v22 = vld [vmem:[#allocation56_spill] sm:$0xff] }
 0x7a2   : > { %18421 = vst [vmem:[#allocation58_spill] sm:$0xff] %v16927_v61  ;;  %v12932_v42 = vpop.f32.mrf.mxu1  ;;  %v7517_v58 = vadd.f32 %v16910_v11, %v7494_v39  ;;  %v7700_v15 = vsel %vm3292_vm5, %v16927_v61, 0.0  ;;  %v7499_v35 = vadd.f32 %v12912_v40, %v7305_v55  ;;  %v16950_v63 = vadd.f32 %v7633_v57, %v7519_v45 }
 0x7a3   : > { %v7446_v8 = vpop.f32.mrf.mxu0  ;;  %v7646_v12 = vadd.f32 %v12932_v42, %v16900_v36  ;;  %v7119_v39 = vadd.f32 %v18430_v51, %v18429_v54  ;;  %v7118_v24 = vadd.f32 %v18436_v22, %v16934_v14 }
 0x7a4   : > { %v7637_v1 = vpop.f32.mrf.mxu1  ;;  %v16944_v29 = vadd.f32 %v7625_v20, %v7517_v58  ;;  %v7497_v44 = vadd.f32 %v7446_v8, %v7303_v18  ;;  %18424 = vst [vmem:[#allocation61_spill] sm:$0xff] %v16950_v63  ;;  %v7522_v49 = vadd.f32 %v16910_v11, %v7499_v35  ;;  %v7705_v48 = vsel %vm3292_vm5, %v16950_v63, 0.0  ;;  %v18432_v18 = vld [vmem:[#allocation52_spill] sm:$0xff] }
 0x7a5   : > { %v12913_v0 = vpop.f32.mrf.mxu0  ;;  %v7638_v26 = vadd.f32 %v16900_v36, %v7637_v1  ;;  %v7117_v45 = vadd.f32 %v18432_v18, %v6922_v60 }
 0x7a6   : > { %18423 = vst [vmem:[#allocation60_spill] sm:$0xff] %v16944_v29  ;;  %v12933_v50 = vpop.f32.mrf.mxu1  ;;  %v7701_v56 = vsel %vm3292_vm5, %v16944_v29, 0.0  ;;  %v7520_v37 = vadd.f32 %v16910_v11, %v7497_v44  ;;  %v7500_v38 = vadd.f32 %v12913_v0, %v7306_v33  ;;  %v16980_v58 = vadd.f32 %v7646_v12, %v7522_v49 }
 0x7a7   : > { %v7702_v28 = vadd.f32 %v7701_v56, %v7700_v15  ;;  %v7449_v34 = vpop.f32.mrf.mxu0  ;;  %v7649_v8 = vadd.f32 %v12933_v50, %v16900_v36  ;;  %v18434_v56 = vld [vmem:[#allocation47_spill] sm:$0xff] }
 0x7a8   : > { %v7640_v47 = vpop.f32.mrf.mxu1  ;;  %v16962_v46 = vadd.f32 %v7638_v26, %v7520_v37  ;;  %v7498_v17 = vadd.f32 %v7449_v34, %v7304_v30  ;;  %18433 = vst [vmem:[#allocation38_spill] sm:$0xff] %v16980_v58  ;;  %v7523_v55 = vadd.f32 %v16910_v11, %v7500_v38  ;;  %v7313_v37 = vadd.f32 %v18434_v56, %v7119_v39  ;;  %v18435_v26 = vld [vmem:[#allocation54_spill] sm:$0xff] }
 0x7a9   : > { %v7704_v7 = vadd.f32 %v7703_v52, %v7702_v28  ;;  %v12916_v62 = vpop.f32.mrf.mxu0  ;;  %v7641_v27 = vadd.f32 %v16900_v36, %v7640_v47  ;;  %v7120_v50 = vadd.f32 %v18435_v26, %v16923_v9  ;;  %v7711_v49 = vsel %vm3292_vm5, %v16980_v58, 0.0 }
 0x7aa   : > { %18425 = vst [vmem:[#allocation62_spill] sm:$0xff] %v16962_v46  ;;  %v12936_v41 = vpop.f32.mrf.mxu1  ;;  %v7521_v4 = vadd.f32 %v16910_v11, %v7498_v17  ;;  %v7503_v3 = vadd.f32 %v12916_v62, %v7309_v31  ;;  %v7707_v59 = vsel %vm3292_vm5, %v16962_v46, 0.0  ;;  %v16995_v28 = vadd.f32 %v7649_v8, %v7523_v55  ;;  %v18439_v17 = vld [vmem:[#allocation53_spill] sm:$0xff] }
 0x7ab   : > { %v7706_v53 = vadd.f32 %v7705_v48, %v7704_v7  ;;  %v7462_v5 = vpop.f32.mrf.mxu0  ;;  %v7662_v60 = vadd.f32 %v12936_v41, %v16900_v36  ;;  %v7311_v7 = vadd.f32 %v18439_v17, %v7117_v45 }
 0x7ac   : > { %v7653_v6 = vpop.f32.mrf.mxu1  ;;  %v16977_v40 = vadd.f32 %v7641_v27, %v7521_v4  ;;  %v7501_v42 = vadd.f32 %v7462_v5, %v7307_v16  ;;  %v7526_v10 = vadd.f32 %v16910_v11, %v7503_v3  ;;  %18437 = vst [vmem:[#allocation46_spill] sm:$0xff] %v16995_v28  ;;  %v18441_v16 = vld [vmem:[#allocation55_spill] sm:$0xff] }
 0x7ad   : > { %v7708_v20 = vadd.f32 %v7707_v59, %v7706_v53  ;;  %v12917_v13 = vpop.f32.mrf.mxu0  ;;  %v7654_v15 = vadd.f32 %v16900_v36, %v7653_v6  ;;  %v7314_v48 = vadd.f32 %v18441_v16, %v7120_v50 }
 0x7ae   : > { %18431 = vst [vmem:[#allocation45_spill] sm:$0xff] %v16977_v40  ;;  %v12937_v25 = vpop.f32.mrf.mxu1  ;;  %v7709_v1 = vsel %vm3292_vm5, %v16977_v40, 0.0  ;;  %v7524_v57 = vadd.f32 %v16910_v11, %v7501_v42  ;;  %v7504_v44 = vadd.f32 %v12917_v13, %v7310_v32  ;;  %v17005_v62 = vadd.f32 %v7662_v60, %v7526_v10  ;;  %v18443_v32 = vld [vmem:[#allocation57_spill] sm:$0xff] }
 0x7af   : > { %v7710_v30 = vadd.f32 %v7709_v1, %v7708_v20  ;;  %v7465_v35 = vpop.f32.mrf.mxu0  ;;  %v7665_v14 = vadd.f32 %v12937_v25, %v16900_v36  ;;  %v7312_v19 = vadd.f32 %v18443_v32, %v7118_v24 }
 0x7b0   : > { %v7656_v0 = vpop.f32.mrf.mxu1  ;;  %v7502_v33 = vadd.f32 %v7465_v35, %v7308_v23  ;;  %v16997_v34 = vadd.f32 %v7654_v15, %v7524_v57  ;;  %v7527_v47 = vadd.f32 %v16910_v11, %v7504_v44  ;;  %18440 = vst [vmem:[#allocation32_spill] sm:$0xff] %v17005_v62  ;;  %v7713_v23 = vsel %vm3292_vm5, %v16995_v28, 0.0 }
 0x7b1   : > { %v12920_v31 = vpop.f32.mrf.mxu0  ;;  %v7657_v9 = vadd.f32 %v16900_v36, %v7656_v0  ;;  %v7712_v38 = vadd.f32 %v7711_v49, %v7710_v30  ;;  %v7724_v18 = vsel %vm3292_vm5, %v17005_v62, 0.0 }
 0x7b2   : > { %18438 = vst [vmem:[#allocation37_spill] sm:$0xff] %v16997_v34  ;;  %v12940_v52 = vpop.f32.mrf.mxu1  ;;  %v7525_v12 = vadd.f32 %v16910_v11, %v7502_v33  ;;  %v7507_v27 = vadd.f32 %v12920_v31, %v7313_v37  ;;  %v7721_v53 = vsel %vm3292_vm5, %v16997_v34, 0.0  ;;  %v17016_v3 = vadd.f32 %v7665_v14, %v7527_v47 }
 0x7b3   : > { %v7478_v41 = vpop.f32.mrf.mxu0  ;;  %v7714_v42 = vadd.f32 %v7713_v23, %v7712_v38  ;;  %v7678_v25 = vadd.f32 %v12940_v52, %v16900_v36  ;;  %v18450_v23 = vmov 0.0  }
 0x7b4   : > { %v7669_v2 = vpop.f32.mrf.mxu1  ;;  %v17009_v4 = vadd.f32 %v7657_v9, %v7525_v12  ;;  %v7505_v43 = vadd.f32 %v7478_v41, %v7311_v7  ;;  %18444 = vst [vmem:[#allocation47_spill] sm:$0xff] %v17016_v3  ;;  %v7530_v13 = vadd.f32 %v16910_v11, %v7507_v27  ;;  %v7726_v44 = vsel %vm3292_vm5, %v17016_v3, 0.0 }
 0x7b5   : > { %v12921_v5 = vpop.f32.mrf.mxu0  ;;  %v7670_v39 = vadd.f32 %v16900_v36, %v7669_v2  ;;  %v7715_v15 = vrot.slane %v7714_v42, 4 }
 0x7b6   : > { %18442 = vst [vmem:[#allocation52_spill] sm:$0xff] %v17009_v4  ;;  %v12941_v6 = vpop.f32.mrf.mxu1  ;;  %v7722_v54 = vsel %vm3292_vm5, %v17009_v4, 0.0  ;;  %v7528_v51 = vadd.f32 %v16910_v11, %v7505_v43  ;;  %v7508_v59 = vadd.f32 %v12921_v5, %v7314_v48  ;;  %v17033_v0 = vadd.f32 %v7678_v25, %v7530_v13  ;;  %v18451_v5 = vld [vmem:[#allocation31_spill] sm:$0xff]  ;;  %v18460_v13 = vld [vmem:[#allocation20_spill] sm:$0xff]  ;;  %v18461_v25 = vld [vmem:[#allocation17_spill] sm:$0xff] }
 0x7b7   : > { %v7723_v45 = vadd.f32 %v7722_v54, %v7721_v53  ;;  %v7481_v20 = vpop.f32.mrf.mxu0  ;;  %v7681_v37 = vadd.f32 %v12941_v6, %v16900_v36  ;;  %v18452_v54 = vld [vmem:[#allocation42_spill] sm:$0xff] }
 0x7b8   : > { %v7672_v55 = vpop.f32.mrf.mxu1  ;;  %v17026_v8 = vadd.f32 %v7670_v39, %v7528_v51  ;;  %v7506_v1 = vadd.f32 %v7481_v20, %v7312_v19  ;;  %v7531_v30 = vadd.f32 %v16910_v11, %v7508_v59  ;;  %18446 = vst [vmem:[#allocation56_spill] sm:$0xff] %v17033_v0  ;;  %v7732_v47 = vsel %vm3292_vm5, %v17033_v0, 0.0  ;;  %v18449_v19 = vld [vmem:[#allocation39_spill] sm:$0xff]  ;;  %v18453_v39 = vld [vmem:[#allocation14_spill] sm:$0xff]  ;;  %v18454_v59 = vld [vmem:[#allocation49_spill] sm:$0xff] }
 0x7b9   : > { %v7725_v57 = vadd.f32 %v7724_v18, %v7723_v45  ;;  %v7673_v60 = vadd.f32 %v16900_v36, %v7672_v55  ;;  %v18456_v18 = vld [vmem:[#allocation41_spill] sm:$0xff] }
 0x7ba   : > { %18445 = vst [vmem:[#allocation54_spill] sm:$0xff] %v17026_v8  ;;  %v7529_v10 = vadd.f32 %v16910_v11, %v7506_v1  ;;  %v7728_v56 = vsel %vm3292_vm5, %v17026_v8, 0.0  ;;  %v17040_v33 = vadd.f32 %v7681_v37, %v7531_v30  ;;  %v7716_v11 = vadd.f32 %v7715_v15, %v7714_v42  ;;  %v18455_v42 = vld [vmem:[#allocation23_spill] sm:$0xff]  ;;  %v18457_v45 = vld [vmem:[#allocation25_spill] sm:$0xff]  ;;  %v18462_v1 = vld [vmem:[#allocation30_spill] sm:$0xff] }
 0x7bb   : > { %v7727_v35 = vadd.f32 %v7726_v44, %v7725_v57  ;;  %v18458_v20 = vld [vmem:[#allocation13_spill] sm:$0xff]  ;;  %v18463_v57 = vld [vmem:[#allocation15_spill] sm:$0xff]  ;;  %v18464_v44 = vld [vmem:[#allocation22_spill] sm:$0xff] }
 0x7bc   : > { %v17038_v26 = vadd.f32 %v7673_v60, %v7529_v10  ;;  %18448 = vst [vmem:[#allocation55_spill] sm:$0xff] %v17040_v33  ;;  %v7734_v52 = vsel %vm3292_vm5, %v17040_v33, 0.0  ;;  %v7717_v17 = vrot.slane %v7716_v11, 2  ;;  %v18459_v55 = vld [vmem:[#allocation29_spill] sm:$0xff]  ;;  %v18465_v30 = vld [vmem:[#allocation27_spill] sm:$0xff]  ;;  %v18466_v10 = vld [vmem:[#allocation40_spill] sm:$0xff] }
 0x7bd   : > { %v7729_v50 = vadd.f32 %v7728_v56, %v7727_v35  ;;  %v18467_v60 = vld [vmem:[#allocation43_spill] sm:$0xff]  ;;  %v18468_v15 = vld [vmem:[#allocation18_spill] sm:$0xff]  ;;  %v18469_v35 = vld [vmem:[#allocation33_spill] sm:$0xff] }
 0x7be   : > { %18447 = vst [vmem:[#allocation53_spill] sm:$0xff] %v17038_v26  ;;  %v7730_v22 = vsel %vm3292_vm5, %v17038_v26, 0.0  ;;  %v7718_v49 = vadd.f32 %v7717_v17, %v7716_v11  ;;  %v18470_v56 = vld [vmem:[#allocation21_spill] sm:$0xff]  ;;  %v18471_v37 = vld [vmem:[#allocation26_spill] sm:$0xff]  ;;  %v8294_v17 = vld [vmem:[%s18061_s13 + $0x8] sm:$0xff] }
 0x7bf   : > { %v7731_v24 = vadd.f32 %v7730_v22, %v7729_v50  ;;  %v18472_v50 = vld [vmem:[#allocation34_spill] sm:$0xff]  ;;  %v18473_v22 = vld [vmem:[#allocation35_spill] sm:$0xff] }
 0x7c0   : > { %v7719_v38 = vrot.slane %v7718_v49, 1  ;;  %v8296_v11 = vld [vmem:[%s18061_s13 + $0x18] sm:$0xff] }
 0x7c1   : > { %v7733_v31 = vadd.f32 %v7732_v47, %v7731_v24  ;;  %v17135_v24 = vand.u32 4294901760, %v8296_v11  ;;  %v8295_v47 = vld [vmem:[%s18061_s13 + $0x10] sm:$0xff] }
 0x7c2   : > { %v7720_v2 = vadd.f32 %v7719_v38, %v7718_v49  ;;  %v17156_v49 = vand.u32 4294901760, %v8294_v17 }
 0x7c3   : > { %v7735_v7 = vadd.f32 %v7734_v52, %v7733_v31  ;;  %v17141_v31 = vsub.f32 %v8296_v11, %v17135_v24  ;;  %v17143_v52 = vand.u32 4294901760, %v8295_v47 }
 0x7c5   : > { %v7736_v36 = vrot.slane %v7735_v7, 4 }
 0x7c7   : > { %v7737_v12 = vadd.f32 %v7736_v36, %v7735_v7  ;;  %v17151_v7 = vand.u32 4294901760, %v17141_v31  ;;  %v17154_v36 = vsub.f32 %v8295_v47, %v17143_v52 }
 0x7c9   : > { %v7738_v9 = vrot.slane %v7737_v12, 2  ;;  %v17166_v38 = vand.u32 4294901760, %v17154_v36 }
 0x7cb   : > { %v7739_v14 = vadd.f32 %v7738_v9, %v7737_v12  ;;  %v8293_v12 = vld [vmem:[%s18061_s13] sm:$0xff]  ;;  %v8407_v9 = vsub.f32 %v17141_v31, %v17151_v7 }
 0x7cd   : > { %v7740_v41 = vrot.slane %v7739_v14, 1 }
 0x7cf   : > { %v7741_v16 = vadd.f32 %v7740_v41, %v7739_v14  ;;  %v17169_v14 = vsub.f32 %v8294_v17, %v17156_v49  ;;  %v17171_v41 = vand.u32 4294901760, %v8293_v12 }
 0x7d1   : > { %v7752_v48 = vsel %vm3345_vm6, %v7741_v16, %v7720_v2  ;;  %v17175_v2 = vand.u32 4294901760, %v8407_v9  ;;  %v8414_v16 = vsub.f32 %v17154_v36, %v17166_v38 }
 0x7d2   : > { %v7753_v27 = vsel %vm3292_vm5, %v7752_v48, 0  ;;  %v17180_v48 = vand.u32 4294901760, %v17169_v14 }
 0x7d3   : > { %v17050_v43 = vand.u32 4294901760, %v7753_v27  ;;  %18474 = vst [vmem:[#allocation57_spill] sm:$0xff] %v17175_v2 }
 0x7d4   : > { %18475 = vst [vmem:[#allocation39_spill] sm:$0xff] %v17180_v48 }
 0x7d5   : > { %v7829_v32 = vsub.f32 %v7753_v27, %v17050_v43  ;;  %12978 = vmatmul.mubr.f32.vlgmr.msra.gmra.mxu1 %v17050_v43  ;;  %v17183_v27 = vsub.f32 %v8293_v12, %v17171_v41 }
 0x7d6   : > { %13000 = vmatpush3.msra.mxu1 %v18449_v19  ;;  %13015 = vmatprep.mubr.msk.f32.mxu1 %vm13807_vm0, %v18450_v23 }
 0x7d7   : > { %13001 = vmatprep.subr.mxu1 %v18450_v23  ;;  %v7830_v53 = vand.u32 4294901760, %v7829_v32 }
 0x7d8   : > { %13002 = vmatpush3.msra.mxu1 %v18451_v5 }
 0x7d9   : > { %13003 = vmatprep.subr.mxu1 %v18450_v23  ;;  %v7831_v6 = vsub.f32 %v7829_v32, %v7830_v53 }
 0x7da   : > { %13004 = vmatpush3.msra.mxu1 %v18452_v54 }
 0x7db   : > { %13005 = vmatprep.subr.mxu1 %v18450_v23  ;;  %v7832_v51 = vand.u32 4294901760, %v7831_v6 }
 0x7dc   : > { %13006 = vmatpush3.msra.mxu1 %v18453_v39 }
 0x7dd   : > { %13007 = vmatprep.subr.mxu1 %v18450_v23  ;;  %12959 = vmatmul.mubr.f32.vlgmr.msra.gmra.mxu0 %v7832_v51 }
 0x7de   : > { %12981 = vmatpush3.msra.mxu0 %v18454_v59  ;;  %13008 = vmatpush3.msra.mxu1 %v18455_v42 }
 0x7df   : > { %12982 = vmatprep.subr.mxu0 %v18450_v23  ;;  %13009 = vmatprep.subr.mxu1 %v18450_v23 }
 0x7e0   : > { %12983 = vmatpush3.msra.mxu0 %v18456_v18  ;;  %13010 = vmatpush3.msra.mxu1 %v18457_v45 }
 0x7e1   : > { %12984 = vmatprep.subr.mxu0 %v18450_v23  ;;  %13011 = vmatprep.subr.mxu1 %v18450_v23 }
 0x7e2   : > { %12985 = vmatpush3.msra.mxu0 %v18458_v20  ;;  %13012 = vmatpush3.msra.mxu1 %v18459_v55 }
 0x7e3   : > { %12986 = vmatprep.subr.mxu0 %v18450_v23  ;;  %13013 = vmatprep.subr.mxu1 %v18450_v23 }
 0x7e4   : > { %12987 = vmatpush3.msra.mxu0 %v18460_v13  ;;  %13014 = vmatpush3.msra.mxu1 %v18461_v25 }
 0x7e5   : > { %12988 = vmatprep.subr.mxu0 %v18450_v23  ;;  %13016 = vmatmul.mubr.f32.vlgmr.msra.gmra.mxu1 %v7830_v53  ;;  %v17193_v53 = vand.u32 4294901760, %v17183_v27 }
 0x7e6   : > { %13037 = vmatprep.subr.mxu1 %v18450_v23  ;;  %12989 = vmatpush3.msra.mxu0 %v18462_v1 }
 0x7e7   : > { %13038 = vmatpush3.msra.mxu1 %v18449_v19  ;;  %12990 = vmatprep.subr.mxu0 %v18450_v23  ;;  %18477 = vst [vmem:[#allocation42_spill] sm:$0xff] %v17193_v53  ;;  %v8428_v51 = vsub.f32 %v17183_v27, %v17193_v53 }
 0x7e8   : > { %13039 = vmatprep.subr.mxu1 %v18450_v23  ;;  %12991 = vmatpush3.msra.mxu0 %v18463_v57 }
 0x7e9   : > { %13040 = vmatpush3.msra.mxu1 %v18451_v5  ;;  %12992 = vmatprep.subr.mxu0 %v18450_v23  ;;  %v17203_v11 = vand.u32 4294901760, %v8428_v51 }
 0x7ea   : > { %13041 = vmatprep.subr.mxu1 %v18450_v23  ;;  %12993 = vmatpush3.msra.mxu0 %v18464_v44 }
 0x7eb   : > { %13042 = vmatpush3.msra.mxu1 %v18452_v54  ;;  %12994 = vmatprep.subr.mxu0 %v18450_v23  ;;  %18479 = vst [vmem:[#allocation49_spill] sm:$0xff] %v17203_v11 }
 0x7ec   : > { %13043 = vmatprep.subr.mxu1 %v18450_v23  ;;  %12995 = vmatpush3.msra.mxu0 %v18465_v30 }
 0x7ed   : > { %12996 = vmatprep.mubr.msk.f32.mxu0 %vm13807_vm0, %v18450_v23  ;;  %13044 = vmatpush3.msra.mxu1 %v18453_v39 }
 0x7ee   : > { %12997 = vmatmul.mubr.f32.vlgmr.msra.gmra.mxu0 %v7829_v32  ;;  %13018 = vmatprep.subr.mxu0 %v18450_v23  ;;  %v8421_v32 = vsub.f32 %v17169_v14, %v17180_v48 }
 0x7ef   : > { %13045 = vmatprep.subr.mxu1 %v18450_v23  ;;  %13019 = vmatpush3.msra.mxu0 %v18466_v10 }
 0x7f0   : > { %13046 = vmatpush3.msra.mxu1 %v18455_v42  ;;  %13020 = vmatprep.subr.mxu0 %v18450_v23  ;;  %v17197_v6 = vand.u32 4294901760, %v8421_v32 }
 0x7f1   : > { %13047 = vmatprep.subr.mxu1 %v18450_v23  ;;  %13021 = vmatpush3.msra.mxu0 %v18467_v60 }
 0x7f2   : > { %13048 = vmatpush3.msra.mxu1 %v18457_v45  ;;  %13022 = vmatprep.subr.mxu0 %v18450_v23  ;;  %18478 = vst [vmem:[#allocation14_spill] sm:$0xff] %v17197_v6 }
 0x7f3   : > { %13049 = vmatprep.subr.mxu1 %v18450_v23  ;;  %13023 = vmatpush3.msra.mxu0 %v18468_v15 }
 0x7f4   : > { %13050 = vmatpush3.msra.mxu1 %v18459_v55  ;;  %13024 = vmatprep.subr.mxu0 %v18450_v23 }
 0x7f5   : > { %13051 = vmatprep.subr.mxu1 %v18450_v23  ;;  %13025 = vmatpush3.msra.mxu0 %v18469_v35 }
 0x7f6   : > { %13052 = vmatpush3.msra.mxu1 %v18461_v25  ;;  %13053 = vmatprep.mubr.msk.f32.mxu1 %vm13807_vm0, %v18450_v23 }
 0x7f7   : > { %13026 = vmatprep.subr.mxu0 %v18450_v23  ;;  %13054 = vmatmul.mubr.f32.vlgmr.msra.gmra.mxu1 %v17050_v43 }
 0x7f8   : > { %13027 = vmatpush3.msra.mxu0 %v18470_v56  ;;  %13034 = vmatprep.mubr.msk.f32.mxu0 %vm13807_vm0, %v18450_v23 }
 0x7f9   : > { %13028 = vmatprep.subr.mxu0 %v18450_v23  ;;  %13067 = vmatprep.subr.mxu1 %v18450_v23 }
 0x7fa   : > { %13029 = vmatpush3.msra.mxu0 %v18471_v37  ;;  %13075 = vmatprep.mubr.msk.f32.mxu1 %vm13807_vm0, %v18450_v23 }
 0x7fb   : > { %13030 = vmatprep.subr.mxu0 %v18450_v23  ;;  %13068 = vmatpush3.msra.mxu1 %v17175_v2 }
 0x7fc   : > { %13031 = vmatpush3.msra.mxu0 %v18472_v50  ;;  %13069 = vmatprep.subr.mxu1 %v18450_v23 }
 0x7fd   : > { %13032 = vmatprep.subr.mxu0 %v18450_v23 }
 0x7fe   : > { %13033 = vmatpush3.msra.mxu0 %v18473_v22 }
 0x7ff   : > { %13035 = vmatmul.mubr.f32.vlgmr.msra.gmra.mxu0 %v17050_v43  ;;  %13056 = vmatprep.subr.mxu0 %v18450_v23  ;;  %v17188_v43 = vand.u32 4294901760, %v8414_v16 }
 0x800   : > { %13064 = vmatprep.mubr.msk.f32.mxu0 %vm13807_vm0, %v18450_v23  ;;  %13057 = vmatpush3.msra.mxu0 %v17135_v24 }
 0x801   : > { %13058 = vmatprep.subr.mxu0 %v18450_v23  ;;  %18476 = vst [vmem:[#allocation31_spill] sm:$0xff] %v17188_v43  ;;  %13070 = vmatpush3.msra.mxu1 %v17188_v43 }
 0x802   : > { %13059 = vmatpush3.msra.mxu0 %v17143_v52  ;;  %13071 = vmatprep.subr.mxu1 %v18450_v23 }
 0x803   : > { %13060 = vmatprep.subr.mxu0 %v18450_v23  ;;  %13072 = vmatpush3.msra.mxu1 %v17197_v6 }
 0x804   : > { %13061 = vmatpush3.msra.mxu0 %v17156_v49  ;;  %13073 = vmatprep.subr.mxu1 %v18450_v23 }
 0x805   : > { %13062 = vmatprep.subr.mxu0 %v18450_v23  ;;  %13074 = vmatpush3.msra.mxu1 %v17203_v11 }
 0x806   : > { %13063 = vmatpush3.msra.mxu0 %v17171_v41  ;;  %13089 = vmatprep.subr.mxu1 %v18450_v23 }
 0x807   : > { %13078 = vmatprep.subr.mxu0 %v18450_v23 }
 0x895   : > { %v7945_v47 = vpop.f32.mrf.mxu1 }
 0x897   : > { %v12979_v17 = vpop.f32.mrf.mxu1 }
 0x89d   : > { %v7834_v12 = vpop.f32.mrf.mxu0 }
 0x89e   : > { %v7946_v2 = vadd.f32 %v7945_v47, %v7834_v12 }
 0x89f   : > { %v12960_v9 = vpop.f32.mrf.mxu0 }
 0x8a5   : > { %v8114_v16 = vpop.f32.mrf.mxu1 }
 0x8a7   : > { %v13017_v32 = vpop.f32.mrf.mxu1 }
 0x8ae   : > { %v8033_v22 = vpop.f32.mrf.mxu0 }
 0x8af   : > { %v8034_v6 = vadd.f32 %v8033_v22, %v7946_v2  ;;  %v18485_v22 = vld [vmem:[#allocation36_spill] sm:$0xff] }
 0x8b0   : > { %v12998_v43 = vpop.f32.mrf.mxu0  ;;  %v18487_v2 = vld [vmem:[#allocation44_spill] sm:$0xff] }
 0x8b1   : > { %v8115_v51 = vadd.f32 %v8114_v16, %v8034_v6 }
 0x8b7   : > { %v8288_v50 = vpop.f32.mrf.mxu1 }
 0x8b9   : > { %v13055_v37 = vpop.f32.mrf.mxu1 }
 0x8bf   : > { %v8209_v56 = vpop.f32.mrf.mxu0 }
 0x8c0   : > { %v8210_v35 = vadd.f32 %v8209_v56, %v8115_v51  ;;  %v18483_v56 = vld [vmem:[#allocation28_spill] sm:$0xff] }
 0x8c1   : > { %v13036_v15 = vpop.f32.mrf.mxu0 }
 0x8c2   : > { %v8289_v60 = vadd.f32 %v8288_v50, %v8210_v35  ;;  %v18481_v15 = vld [vmem:[#allocation24_spill] sm:$0xff]  ;;  %v18482_v35 = vld [vmem:[#allocation19_spill] sm:$0xff] }
 0x8c3   : > { %v18484_v50 = vld [vmem:[#allocation48_spill] sm:$0xff] }
 0x8c4   : > { %v8292_v11 = vmul.f32 0.0078125, %v8289_v60 }
 0x8c6   : > { %v8298_v10 = vsel %vm1282_vm1, %v8292_v11, 0 }
 0x8c7   : > { %v8369_v30 = vand.u32 4294901760, %v8298_v10 }
 0x8c9   : > { %v8370_v17 = vsub.f32 %v8298_v10, %v8369_v30  ;;  %13076 = vmatmul.mubr.f32.vlgmr.msra.gmra.mxu1 %v8369_v30  ;;  %v18480_v10 = vld [vmem:[#allocation16_spill] sm:$0xff] }
 0x8ca   : > { %13090 = vmatpush3.msra.mxu1 %v17135_v24  ;;  %13097 = vmatprep.mubr.msk.f32.mxu1 %vm13807_vm0, %v18450_v23 }
 0x8cb   : > { %v8371_v43 = vand.u32 4294901760, %v8370_v17  ;;  %13091 = vmatprep.subr.mxu1 %v18450_v23 }
 0x8cc   : > { %13092 = vmatpush3.msra.mxu1 %v17143_v52 }
 0x8cd   : > { %v8372_v37 = vsub.f32 %v8370_v17, %v8371_v43  ;;  %13093 = vmatprep.subr.mxu1 %v18450_v23 }
 0x8ce   : > { %13094 = vmatpush3.msra.mxu1 %v17156_v49 }
 0x8cf   : > { %v8373_v60 = vand.u32 4294901760, %v8372_v37  ;;  %13095 = vmatprep.subr.mxu1 %v18450_v23 }
 0x8d0   : > { %13096 = vmatpush3.msra.mxu1 %v17171_v41 }
 0x8d1   : > { %13098 = vmatmul.mubr.f32.vlgmr.msra.gmra.mxu1 %v8371_v43  ;;  %13111 = vmatprep.subr.mxu1 %v18450_v23 }
 0x8d2   : > { %13065 = vmatmul.mubr.f32.vlgmr.msra.gmra.mxu0 %v8373_v60  ;;  %13112 = vmatpush3.msra.mxu1 %v17135_v24 }
 0x8d3   : > { %13079 = vmatpush3.msra.mxu0 %v17141_v31  ;;  %13113 = vmatprep.subr.mxu1 %v18450_v23 }
 0x8d4   : > { %13080 = vmatprep.subr.mxu0 %v18450_v23  ;;  %13114 = vmatpush3.msra.mxu1 %v17143_v52 }
 0x8d5   : > { %13081 = vmatpush3.msra.mxu0 %v17154_v36  ;;  %13115 = vmatprep.subr.mxu1 %v18450_v23 }
 0x8d6   : > { %13082 = vmatprep.subr.mxu0 %v18450_v23  ;;  %13116 = vmatpush3.msra.mxu1 %v17156_v49 }
 0x8d7   : > { %13083 = vmatpush3.msra.mxu0 %v17169_v14  ;;  %13117 = vmatprep.subr.mxu1 %v18450_v23 }
 0x8d8   : > { %13084 = vmatprep.subr.mxu0 %v18450_v23  ;;  %13086 = vmatprep.mubr.msk.f32.mxu0 %vm13807_vm0, %v18450_v23 }
 0x8d9   : > { %13085 = vmatpush3.msra.mxu0 %v17183_v27  ;;  %13118 = vmatpush3.msra.mxu1 %v17171_v41 }
 0x8da   : > { %13119 = vmatprep.mubr.msk.f32.mxu1 %vm13807_vm0, %v18450_v23  ;;  %13087 = vmatmul.mubr.f32.vlgmr.msra.gmra.mxu0 %v8370_v17 }
 0x8db   : > { %13100 = vmatprep.subr.mxu0 %v18450_v23  ;;  %13120 = vmatmul.mubr.f32.vlgmr.msra.gmra.mxu1 %v8369_v30 }
 0x8dc   : > { %13101 = vmatpush3.msra.mxu0 %v17151_v7  ;;  %13108 = vmatprep.mubr.msk.f32.mxu0 %vm13807_vm0, %v18450_v23 }
 0x8dd   : > { %13102 = vmatprep.subr.mxu0 %v18450_v23  ;;  %13141 = vmatprep.subr.mxu1 %v18450_v23 }
 0x8de   : > { %13103 = vmatpush3.msra.mxu0 %v17166_v38  ;;  %13142 = vmatpush3.msra.mxu1 %v18480_v10 }
 0x8df   : > { %13104 = vmatprep.subr.mxu0 %v18450_v23  ;;  %13143 = vmatprep.subr.mxu1 %v18450_v23 }
 0x8e0   : > { %13105 = vmatpush3.msra.mxu0 %v17180_v48  ;;  %13144 = vmatpush3.msra.mxu1 %v18481_v15 }
 0x8e1   : > { %13106 = vmatprep.subr.mxu0 %v18450_v23  ;;  %13145 = vmatprep.subr.mxu1 %v18450_v23 }
 0x8e2   : > { %13107 = vmatpush3.msra.mxu0 %v17193_v53  ;;  %13146 = vmatpush3.msra.mxu1 %v18482_v35 }
 0x8e3   : > { %13109 = vmatmul.mubr.f32.vlgmr.msra.gmra.mxu0 %v8369_v30  ;;  %13147 = vmatprep.subr.mxu1 %v18450_v23  ;;  %v18486_v30 = vld [vmem:[#allocation50_spill] sm:$0xff] }
 0x8e4   : > { %13148 = vmatpush3.msra.mxu1 %v18483_v56  ;;  %13122 = vmatprep.subr.mxu0 %v18450_v23 }
 0x8e5   : > { %13149 = vmatprep.subr.mxu1 %v18450_v23  ;;  %13123 = vmatpush3.msra.mxu0 %v18449_v19 }
 0x8e6   : > { %13150 = vmatpush3.msra.mxu1 %v18484_v50  ;;  %13124 = vmatprep.subr.mxu0 %v18450_v23 }
 0x8e7   : > { %13151 = vmatprep.subr.mxu1 %v18450_v23  ;;  %13125 = vmatpush3.msra.mxu0 %v18451_v5 }
 0x8e8   : > { %13152 = vmatpush3.msra.mxu1 %v18485_v22  ;;  %13126 = vmatprep.subr.mxu0 %v18450_v23  ;;  %v18488_v22 = vld [vmem:[#allocation12_spill] sm:$0xff] }
 0x8e9   : > { %13153 = vmatprep.subr.mxu1 %v18450_v23  ;;  %13127 = vmatpush3.msra.mxu0 %v18452_v54 }
 0x8ea   : > { %13154 = vmatpush3.msra.mxu1 %v18486_v30  ;;  %13128 = vmatprep.subr.mxu0 %v18450_v23 }
 0x8eb   : > { %13155 = vmatprep.subr.mxu1 %v18450_v23  ;;  %13129 = vmatpush3.msra.mxu0 %v18453_v39 }
 0x8ec   : > { %13156 = vmatpush3.msra.mxu1 %v18487_v2  ;;  %13130 = vmatprep.subr.mxu0 %v18450_v23 }
 0x8ed   : > { %13157 = vmatprep.mubr.msk.f32.mxu1 %vm13807_vm0, %v18450_v23  ;;  %13179 = vmatprep.subr.mxu1 %v18450_v23 }
 0x8ee   : > { %13131 = vmatpush3.msra.mxu0 %v18455_v42  ;;  %13138 = vmatprep.mubr.msk.f32.mxu0 %vm13807_vm0, %v18450_v23 }
 0x8ef   : > { %13132 = vmatprep.subr.mxu0 %v18450_v23 }
 0x8f0   : > { %13133 = vmatpush3.msra.mxu0 %v18457_v45 }
 0x8f1   : > { %13134 = vmatprep.subr.mxu0 %v18450_v23 }
 0x8f2   : > { %13135 = vmatpush3.msra.mxu0 %v18459_v55 }
 0x8f3   : > { %13136 = vmatprep.subr.mxu0 %v18450_v23 }
 0x8f4   : > { %13137 = vmatpush3.msra.mxu0 %v18461_v25 }
 0x8f5   : > { %13160 = vmatprep.subr.mxu0 %v18450_v23 }
 0x989   : > { %v8466_v6 = vpop.f32.mrf.mxu1 }
 0x98b   : > { %v13077_v11 = vpop.f32.mrf.mxu1 }
 0x991   : > { %v8623_v47 = vpop.f32.mrf.mxu1 }
 0x992   : > { %v8375_v12 = vpop.f32.mrf.mxu0 }
 0x993   : > { %v13099_v9 = vpop.f32.mrf.mxu1  ;;  %v8467_v17 = vadd.f32 %v8466_v6, %v8375_v12 }
 0x994   : > { %v13066_v16 = vpop.f32.mrf.mxu0  ;;  %v18489_v9 = vld [vmem:[#allocation51_spill] sm:$0xff] }
 0x99a   : > { %v8546_v32 = vpop.f32.mrf.mxu0 }
 0x99b   : > { %v8781_v51 = vpop.f32.mrf.mxu1  ;;  %v8547_v60 = vadd.f32 %v8546_v32, %v8467_v17 }
 0x99c   : > { %v13088_v43 = vpop.f32.mrf.mxu0 }
 0x99d   : > { %v13121_v37 = vpop.f32.mrf.mxu1  ;;  %v8624_v10 = vadd.f32 %v8623_v47, %v8547_v60 }
 0x9a3   : > { %v8706_v15 = vpop.f32.mrf.mxu0 }
 0x9a4   : > { %v8707_v35 = vadd.f32 %v8706_v15, %v8624_v10 }
 0x9a5   : > { %v13110_v56 = vpop.f32.mrf.mxu0 }
 0x9a6   : > { %v8782_v50 = vadd.f32 %v8781_v51, %v8707_v35 }
 0x9a8   : > { %v8792_v30 = vrot.slane %v8782_v50, %v18488_v22 }
 0x9aa   : > { %v8793_v2 = vcombine.high %v8792_v30, %v8792_v30  ;;  %v8800_v11 = vrot.slane %v8792_v30, %v18488_v22 }
 0x9ac   : > { %v8807_v53 = vrot.slane %v8793_v2, %v18488_v22  ;;  %v8811_v16 = vrot.slane %v8800_v11, %v18489_v9 }
 0x9ae   : > { %v8815_v48 = vrot.slane %v8807_v53, %v18489_v9  ;;  %v17291_v6 = vsub.f32 %v16927_v61, %v8811_v16  ;;  %v17294_v47 = vsub.f32 %v16944_v29, %v8811_v16  ;;  %v17297_v12 = vsub.f32 %v16941_v21, %v8811_v16 }
 0x9af   : > { %v17306_v17 = vsub.f32 %v16950_v63, %v8811_v16  ;;  %v17316_v60 = vsub.f32 %v16962_v46, %v8811_v16  ;;  %v17328_v50 = vsub.f32 %v16977_v40, %v8811_v16 }
 0x9b0   : > { %v17300_v32 = vsub.f32 %v16997_v34, %v8815_v48  ;;  %v17303_v51 = vsub.f32 %v17009_v4, %v8815_v48  ;;  %v17309_v53 = vsub.f32 %v17005_v62, %v8815_v48  ;;  %v8834_v43 = vmul.f32 %v17291_v6, %v17291_v6 }
 0x9b1   : > { %v8835_v37 = vmul.f32 %v17294_v47, %v17294_v47  ;;  %v17319_v10 = vsub.f32 %v17016_v3, %v8815_v48  ;;  %v8836_v15 = vmul.f32 %v17297_v12, %v17297_v12  ;;  %v17331_v30 = vsub.f32 %v17026_v8, %v8815_v48 }
 0x9b2   : > { %v8842_v35 = vmul.f32 %v17300_v32, %v17300_v32  ;;  %v8843_v56 = vmul.f32 %v17303_v51, %v17303_v51  ;;  %v8837_v2 = vmul.f32 %v17306_v17, %v17306_v17  ;;  %v8844_v11 = vmul.f32 %v17309_v53, %v17309_v53 }
 0x9b3   : > { %18490 = vst [vmem:[#allocation23_spill] sm:$0xff] %v17331_v30  ;;  %v8850_v4 = vsel %vm3292_vm5, %v8834_v43, 0.0  ;;  %v8851_v3 = vsel %vm3292_vm5, %v8835_v37, 0.0  ;;  %v17340_v34 = vsub.f32 %v16980_v58, %v8811_v16  ;;  %v17343_v62 = vsub.f32 %v17038_v26, %v8815_v48 }
 0x9b4   : > { %v8838_v8 = vmul.f32 %v17316_v60, %v17316_v60  ;;  %v8852_v40 = vadd.f32 %v8851_v3, %v8850_v4  ;;  %v8845_v46 = vmul.f32 %v17319_v10, %v17319_v10  ;;  %v8853_v29 = vsel %vm3292_vm5, %v8836_v15, 0.0 }
 0x9b5   : > { %18491 = vst [vmem:[#allocation41_spill] sm:$0xff] %v17343_v62  ;;  %v8871_v63 = vsel %vm3292_vm5, %v8842_v35, 0.0  ;;  %v8872_v43 = vsel %vm3292_vm5, %v8843_v56, 0.0  ;;  %v17353_v37 = vsub.f32 %v16995_v28, %v8811_v16  ;;  %v17356_v58 = vsub.f32 %v17033_v0, %v8815_v48 }
 0x9b6   : > { %v8854_v26 = vadd.f32 %v8853_v29, %v8852_v40  ;;  %v8873_v61 = vadd.f32 %v8872_v43, %v8871_v63  ;;  %v8839_v4 = vmul.f32 %v17328_v50, %v17328_v50  ;;  %v8846_v3 = vmul.f32 %v17331_v30, %v17331_v30 }
 0x9b7   : > { %18492 = vst [vmem:[#allocation25_spill] sm:$0xff] %v17356_v58  ;;  %v8855_v15 = vsel %vm3292_vm5, %v8837_v2, 0.0  ;;  %v8874_v35 = vsel %vm3292_vm5, %v8844_v11, 0.0  ;;  %v17365_v56 = vsub.f32 %v17040_v33, %v8815_v48  ;;  %v8840_v0 = vmul.f32 %v17340_v34, %v17340_v34 }
 0x9b8   : > { %v8856_v16 = vadd.f32 %v8855_v15, %v8854_v26  ;;  %v8875_v28 = vadd.f32 %v8874_v35, %v8873_v61  ;;  %v8847_v29 = vmul.f32 %v17343_v62, %v17343_v62  ;;  %v8857_v63 = vsel %vm3292_vm5, %v8838_v8, 0.0 }
 0x9b9   : > { %18493 = vst [vmem:[#allocation13_spill] sm:$0xff] %v17365_v56  ;;  %v8876_v40 = vsel %vm3292_vm5, %v8845_v46, 0.0  ;;  %v8841_v2 = vmul.f32 %v17353_v37, %v17353_v37  ;;  %v8848_v48 = vmul.f32 %v17356_v58, %v17356_v58  ;;  %v8859_v61 = vsel %vm3292_vm5, %v8839_v4, 0.0 }
 0x9ba   : > { %v8858_v43 = vadd.f32 %v8857_v63, %v8856_v16  ;;  %v8877_v21 = vadd.f32 %v8876_v40, %v8875_v28  ;;  %v8878_v26 = vsel %vm3292_vm5, %v8846_v3, 0.0  ;;  %v8849_v35 = vmul.f32 %v17365_v56, %v17365_v56 }
 0x9bb   : > { %v8861_v8 = vsel %vm3292_vm5, %v8840_v0, 0.0  ;;  %v8880_v46 = vsel %vm3292_vm5, %v8847_v29, 0.0  ;;  %v8863_v63 = vsel %vm3292_vm5, %v8841_v2, 0.0  ;;  %v8882_v40 = vsel %vm3292_vm5, %v8848_v48, 0.0 }
 0x9bc   : > { %v8860_v11 = vadd.f32 %v8859_v61, %v8858_v43  ;;  %v8879_v15 = vadd.f32 %v8878_v26, %v8877_v21  ;;  %v8884_v4 = vsel %vm3292_vm5, %v8849_v35, 0.0 }
 0x9be   : > { %v8862_v28 = vadd.f32 %v8861_v8, %v8860_v11  ;;  %v8881_v16 = vadd.f32 %v8880_v46, %v8879_v15 }
 0x9c0   : > { %v8864_v33 = vadd.f32 %v8863_v63, %v8862_v28  ;;  %v8883_v58 = vadd.f32 %v8882_v40, %v8881_v16 }
 0x9c2   : > { %v8865_v3 = vrot.slane %v8864_v33, 4  ;;  %v8885_v43 = vadd.f32 %v8884_v4, %v8883_v58 }
 0x9c4   : > { %v8866_v21 = vadd.f32 %v8865_v3, %v8864_v33  ;;  %v8886_v61 = vrot.slane %v8885_v43, 4 }
 0x9c6   : > { %v8867_v26 = vrot.slane %v8866_v21, 2  ;;  %v8887_v56 = vadd.f32 %v8886_v61, %v8885_v43 }
 0x9c8   : > { %v8868_v62 = vadd.f32 %v8867_v26, %v8866_v21  ;;  %v8888_v0 = vrot.slane %v8887_v56, 2 }
 0x9ca   : > { %v8869_v30 = vrot.slane %v8868_v62, 1  ;;  %v8889_v29 = vadd.f32 %v8888_v0, %v8887_v56 }
 0x9cc   : > { %v8890_v11 = vrot.slane %v8889_v29, 1  ;;  %v8870_v15 = vadd.f32 %v8869_v30, %v8868_v62 }
 0x9ce   : > { %v8891_v8 = vadd.f32 %v8890_v11, %v8889_v29 }
 0x9d0   : > { %v8894_v2 = vsel %vm3345_vm6, %v8891_v8, %v8870_v15 }
 0x9d1   : > { %v8895_v48 = vsel %vm3292_vm5, %v8894_v2, 0 }
 0x9d2   : > { %v17388_v46 = vand.u32 4294901760, %v8895_v48 }
 0x9d4   : > { %v8971_v35 = vsub.f32 %v8895_v48, %v17388_v46  ;;  %13158 = vmatmul.mubr.f32.vlgmr.msra.gmra.mxu1 %v17388_v46 }
 0x9d5   : > { %13180 = vmatpush3.msra.mxu1 %v18449_v19  ;;  %13195 = vmatprep.mubr.msk.f32.mxu1 %vm13807_vm0, %v18450_v23 }
 0x9d6   : > { %13181 = vmatprep.subr.mxu1 %v18450_v23  ;;  %v8972_v58 = vand.u32 4294901760, %v8971_v35 }
 0x9d7   : > { %13182 = vmatpush3.msra.mxu1 %v18451_v5 }
 0x9d8   : > { %13183 = vmatprep.subr.mxu1 %v18450_v23  ;;  %v8973_v62 = vsub.f32 %v8971_v35, %v8972_v58 }
 0x9d9   : > { %13184 = vmatpush3.msra.mxu1 %v18452_v54 }
 0x9da   : > { %13185 = vmatprep.subr.mxu1 %v18450_v23  ;;  %v8974_v33 = vand.u32 4294901760, %v8973_v62 }
 0x9db   : > { %13186 = vmatpush3.msra.mxu1 %v18453_v39 }
 0x9dc   : > { %13187 = vmatprep.subr.mxu1 %v18450_v23  ;;  %13139 = vmatmul.mubr.f32.vlgmr.msra.gmra.mxu0 %v8974_v33 }
 0x9dd   : > { %13161 = vmatpush3.msra.mxu0 %v18454_v59  ;;  %13188 = vmatpush3.msra.mxu1 %v18455_v42  ;;  %v18498_v59 = vld [vmem:[#allocation33_spill] sm:$0xff] }
 0x9de   : > { %13162 = vmatprep.subr.mxu0 %v18450_v23  ;;  %13189 = vmatprep.subr.mxu1 %v18450_v23 }
 0x9df   : > { %13163 = vmatpush3.msra.mxu0 %v18456_v18  ;;  %13190 = vmatpush3.msra.mxu1 %v18457_v45  ;;  %v18500_v18 = vld [vmem:[#allocation26_spill] sm:$0xff] }
 0x9e0   : > { %13164 = vmatprep.subr.mxu0 %v18450_v23  ;;  %13191 = vmatprep.subr.mxu1 %v18450_v23 }
 0x9e1   : > { %13165 = vmatpush3.msra.mxu0 %v18458_v20  ;;  %13192 = vmatpush3.msra.mxu1 %v18459_v55  ;;  %v18502_v20 = vld [vmem:[#allocation34_spill] sm:$0xff] }
 0x9e2   : > { %13166 = vmatprep.subr.mxu0 %v18450_v23  ;;  %13193 = vmatprep.subr.mxu1 %v18450_v23 }
 0x9e3   : > { %13167 = vmatpush3.msra.mxu0 %v18460_v13  ;;  %13194 = vmatpush3.msra.mxu1 %v18461_v25  ;;  %v18504_v13 = vld [vmem:[#allocation35_spill] sm:$0xff] }
 0x9e4   : > { %13168 = vmatprep.subr.mxu0 %v18450_v23  ;;  %13196 = vmatmul.mubr.f32.vlgmr.msra.gmra.mxu1 %v8972_v58 }
 0x9e5   : > { %13217 = vmatprep.subr.mxu1 %v18450_v23  ;;  %13169 = vmatpush3.msra.mxu0 %v18462_v1  ;;  %v18506_v1 = vld [vmem:[#allocation49_spill] sm:$0xff] }
 0x9e6   : > { %13218 = vmatpush3.msra.mxu1 %v18449_v19  ;;  %13170 = vmatprep.subr.mxu0 %v18450_v23  ;;  %v18494_v19 = vld [vmem:[#allocation27_spill] sm:$0xff] }
 0x9e7   : > { %13219 = vmatprep.subr.mxu1 %v18450_v23  ;;  %13171 = vmatpush3.msra.mxu0 %v18463_v57 }
 0x9e8   : > { %13220 = vmatpush3.msra.mxu1 %v18451_v5  ;;  %13172 = vmatprep.subr.mxu0 %v18450_v23  ;;  %v18495_v5 = vld [vmem:[#allocation40_spill] sm:$0xff] }
 0x9e9   : > { %13221 = vmatprep.subr.mxu1 %v18450_v23  ;;  %13173 = vmatpush3.msra.mxu0 %v18464_v44 }
 0x9ea   : > { %13222 = vmatpush3.msra.mxu1 %v18452_v54  ;;  %13174 = vmatprep.subr.mxu0 %v18450_v23  ;;  %v18496_v54 = vld [vmem:[#allocation43_spill] sm:$0xff] }
 0x9eb   : > { %13223 = vmatprep.subr.mxu1 %v18450_v23  ;;  %13175 = vmatpush3.msra.mxu0 %v18494_v19 }
 0x9ec   : > { %13176 = vmatprep.mubr.msk.f32.mxu0 %vm13807_vm0, %v18450_v23  ;;  %13224 = vmatpush3.msra.mxu1 %v18453_v39  ;;  %v18497_v39 = vld [vmem:[#allocation18_spill] sm:$0xff] }
 0x9ed   : > { %13177 = vmatmul.mubr.f32.vlgmr.msra.gmra.mxu0 %v8971_v35  ;;  %13198 = vmatprep.subr.mxu0 %v18450_v23 }
 0x9ee   : > { %13225 = vmatprep.subr.mxu1 %v18450_v23  ;;  %13199 = vmatpush3.msra.mxu0 %v18495_v5 }
 0x9ef   : > { %13226 = vmatpush3.msra.mxu1 %v18455_v42  ;;  %13200 = vmatprep.subr.mxu0 %v18450_v23  ;;  %v18499_v42 = vld [vmem:[#allocation21_spill] sm:$0xff] }
 0x9f0   : > { %13227 = vmatprep.subr.mxu1 %v18450_v23  ;;  %13201 = vmatpush3.msra.mxu0 %v18496_v54 }
 0x9f1   : > { %13228 = vmatpush3.msra.mxu1 %v18457_v45  ;;  %13202 = vmatprep.subr.mxu0 %v18450_v23  ;;  %v18501_v45 = vld [vmem:[#allocation57_spill] sm:$0xff] }
 0x9f2   : > { %13229 = vmatprep.subr.mxu1 %v18450_v23  ;;  %13203 = vmatpush3.msra.mxu0 %v18497_v39 }
 0x9f3   : > { %13230 = vmatpush3.msra.mxu1 %v18459_v55  ;;  %13204 = vmatprep.subr.mxu0 %v18450_v23  ;;  %v18503_v55 = vld [vmem:[#allocation31_spill] sm:$0xff] }
 0x9f4   : > { %13231 = vmatprep.subr.mxu1 %v18450_v23  ;;  %13205 = vmatpush3.msra.mxu0 %v18498_v59 }
 0x9f5   : > { %13232 = vmatpush3.msra.mxu1 %v18461_v25  ;;  %13233 = vmatprep.mubr.msk.f32.mxu1 %vm13807_vm0, %v18450_v23  ;;  %v18505_v25 = vld [vmem:[#allocation14_spill] sm:$0xff] }
 0x9f6   : > { %13206 = vmatprep.subr.mxu0 %v18450_v23  ;;  %13234 = vmatmul.mubr.f32.vlgmr.msra.gmra.mxu1 %v17388_v46 }
 0x9f7   : > { %13207 = vmatpush3.msra.mxu0 %v18499_v42  ;;  %13214 = vmatprep.mubr.msk.f32.mxu0 %vm13807_vm0, %v18450_v23 }
 0x9f8   : > { %13208 = vmatprep.subr.mxu0 %v18450_v23  ;;  %13247 = vmatprep.subr.mxu1 %v18450_v23 }
 0x9f9   : > { %13209 = vmatpush3.msra.mxu0 %v18500_v18  ;;  %13248 = vmatpush3.msra.mxu1 %v18501_v45 }
 0x9fa   : > { %13210 = vmatprep.subr.mxu0 %v18450_v23  ;;  %13249 = vmatprep.subr.mxu1 %v18450_v23 }
 0x9fb   : > { %13211 = vmatpush3.msra.mxu0 %v18502_v20  ;;  %13250 = vmatpush3.msra.mxu1 %v18503_v55 }
 0x9fc   : > { %13212 = vmatprep.subr.mxu0 %v18450_v23  ;;  %13251 = vmatprep.subr.mxu1 %v18450_v23 }
 0x9fd   : > { %13213 = vmatpush3.msra.mxu0 %v18504_v13  ;;  %13252 = vmatpush3.msra.mxu1 %v18505_v25 }
 0x9fe   : > { %13215 = vmatmul.mubr.f32.vlgmr.msra.gmra.mxu0 %v17388_v46  ;;  %13253 = vmatprep.subr.mxu1 %v18450_v23 }
 0x9ff   : > { %13254 = vmatpush3.msra.mxu1 %v18506_v1  ;;  %13236 = vmatprep.subr.mxu0 %v18450_v23 }
 0xa00   : > { %13255 = vmatprep.mubr.msk.f32.mxu1 %vm13807_vm0, %v18450_v23  ;;  %13269 = vmatprep.subr.mxu1 %v18450_v23 }
 0xa01   : > { %13237 = vmatpush3.msra.mxu0 %v17135_v24  ;;  %13244 = vmatprep.mubr.msk.f32.mxu0 %vm13807_vm0, %v18450_v23 }
 0xa02   : > { %13238 = vmatprep.subr.mxu0 %v18450_v23 }
 0xa03   : > { %13239 = vmatpush3.msra.mxu0 %v17143_v52 }
 0xa04   : > { %13240 = vmatprep.subr.mxu0 %v18450_v23 }
 0xa05   : > { %13241 = vmatpush3.msra.mxu0 %v17156_v49 }
 0xa06   : > { %13242 = vmatprep.subr.mxu0 %v18450_v23 }
 0xa07   : > { %13243 = vmatpush3.msra.mxu0 %v17171_v41 }
 0xa08   : > { %13258 = vmatprep.subr.mxu0 %v18450_v23 }
 0xa94   : > { %v9087_v57 = vpop.f32.mrf.mxu1 }
 0xa96   : > { %v13159_v44 = vpop.f32.mrf.mxu1 }
 0xa9c   : > { %v8976_v30 = vpop.f32.mrf.mxu0 }
 0xa9d   : > { %v9088_v3 = vadd.f32 %v9087_v57, %v8976_v30 }
 0xa9e   : > { %v13140_v56 = vpop.f32.mrf.mxu0 }
 0xaa4   : > { %v9256_v28 = vpop.f32.mrf.mxu1 }
 0xaa6   : > { %v13197_v16 = vpop.f32.mrf.mxu1 }
 0xaad   : > { %v9175_v63 = vpop.f32.mrf.mxu0 }
 0xaae   : > { %v9176_v21 = vadd.f32 %v9175_v63, %v9088_v3 }
 0xaaf   : > { %v13178_v40 = vpop.f32.mrf.mxu0 }
 0xab0   : > { %v9257_v61 = vadd.f32 %v9256_v28, %v9176_v21  ;;  %v17556_v40 = vld [vmem:[%s18066_s18] ss:$0 sm:$0xff] }
 0xab6   : > { %v9430_v4 = vpop.f32.mrf.mxu1 }
 0xab8   : > { %v13235_v43 = vpop.f32.mrf.mxu1 }
 0xab9   : > { %v17563_v43 = vld [vmem:[%s18067_s19] ss:$0 sm:$0xff] }
 0xabe   : > { %v9351_v26 = vpop.f32.mrf.mxu0 }
 0xabf   : > { %v9352_v0 = vadd.f32 %v9351_v26, %v9257_v61 }
 0xac0   : > { %v13216_v29 = vpop.f32.mrf.mxu0 }
 0xac1   : > { %v9431_v11 = vadd.f32 %v9430_v4, %v9352_v0 }
 0xac3   : > { %v9434_v15 = vmul.f32 0.0078125, %v9431_v11 }
 0xac5   : > { %v9435_v8 = vadd.f32 1e-05, %v9434_v15 }
 0xac7   : > { %13662 = vrsqrt.f32 %v9435_v8 }
 0xad4   : > { %v13663_v2 = vpop.eup %13662 }
 0xad5   : > { %v9438_v48 = vsel %vm1282_vm1, %v13663_v2, 0 }
 0xad6   : > { %v9509_v46 = vand.u32 4294901760, %v9438_v48 }
 0xad8   : > { %v9510_v35 = vsub.f32 %v9438_v48, %v9509_v46  ;;  %13256 = vmatmul.mubr.f32.vlgmr.msra.gmra.mxu1 %v9509_v46 }
 0xad9   : > { %13270 = vmatpush3.msra.mxu1 %v17135_v24  ;;  %13277 = vmatprep.mubr.msk.f32.mxu1 %vm13807_vm0, %v18450_v23 }
 0xada   : > { %13271 = vmatprep.subr.mxu1 %v18450_v23  ;;  %v9511_v58 = vand.u32 4294901760, %v9510_v35 }
 0xadb   : > { %13272 = vmatpush3.msra.mxu1 %v17143_v52 }
 0xadc   : > { %13273 = vmatprep.subr.mxu1 %v18450_v23  ;;  %v9512_v62 = vsub.f32 %v9510_v35, %v9511_v58 }
 0xadd   : > { %13274 = vmatpush3.msra.mxu1 %v17156_v49 }
 0xade   : > { %13275 = vmatprep.subr.mxu1 %v18450_v23  ;;  %v9513_v33 = vand.u32 4294901760, %v9512_v62 }
 0xadf   : > { %13276 = vmatpush3.msra.mxu1 %v17171_v41 }
 0xae0   : > { %13278 = vmatmul.mubr.f32.vlgmr.msra.gmra.mxu1 %v9511_v58  ;;  %13291 = vmatprep.subr.mxu1 %v18450_v23 }
 0xae1   : > { %13245 = vmatmul.mubr.f32.vlgmr.msra.gmra.mxu0 %v9513_v33  ;;  %13292 = vmatpush3.msra.mxu1 %v17135_v24  ;;  %v18507_v24 = vld [vmem:[#allocation39_spill] sm:$0xff] }
 0xae2   : > { %13259 = vmatpush3.msra.mxu0 %v17141_v31  ;;  %13293 = vmatprep.subr.mxu1 %v18450_v23  ;;  %v18508_v31 = vld [vmem:[#allocation42_spill] sm:$0xff] }
 0xae3   : > { %13260 = vmatprep.subr.mxu0 %v18450_v23  ;;  %13294 = vmatpush3.msra.mxu1 %v17143_v52  ;;  %v13506_v52 = vld [vmem:[%s18068_s20 + $0x34] ss:$8 sps:$4 sm:$0xff]  }
 0xae4   : > { %13261 = vmatpush3.msra.mxu0 %v17154_v36  ;;  %13295 = vmatprep.subr.mxu1 %v18450_v23  ;;  %v13509_v36 = vld [vmem:[%s18068_s20 + $0x24] ss:$8 sps:$4 sm:$0xff]  }
 0xae5   : > { %13262 = vmatprep.subr.mxu0 %v18450_v23  ;;  %13296 = vmatpush3.msra.mxu1 %v17156_v49  ;;  %v13512_v49 = vld [vmem:[%s18068_s20 + $0x14] ss:$8 sps:$4 sm:$0xff]  }
 0xae6   : > { %13263 = vmatpush3.msra.mxu0 %v17169_v14  ;;  %13297 = vmatprep.subr.mxu1 %v18450_v23  ;;  %v13515_v14 = vld [vmem:[%s18068_s20 + $0x4] ss:$8 sps:$4 sm:$0xff]  }
 0xae7   : > { %13264 = vmatprep.subr.mxu0 %v18450_v23  ;;  %13266 = vmatprep.mubr.msk.f32.mxu0 %vm13807_vm0, %v18450_v23 }
 0xae8   : > { %13265 = vmatpush3.msra.mxu0 %v17183_v27  ;;  %13298 = vmatpush3.msra.mxu1 %v17171_v41  ;;  %v13513_v41 = vld [vmem:[%s18068_s20] ss:$8 sps:$4 sm:$0xff]   ;;  %v13809_v27 = vmov 0  }
 0xae9   : > { %13299 = vmatprep.mubr.msk.f32.mxu1 %vm13807_vm0, %v18450_v23  ;;  %13267 = vmatmul.mubr.f32.vlgmr.msra.gmra.mxu0 %v9510_v35 }
 0xaea   : > { %13280 = vmatprep.subr.mxu0 %v18450_v23  ;;  %13300 = vmatmul.mubr.f32.vlgmr.msra.gmra.mxu1 %v9509_v46 }
 0xaeb   : > { %13281 = vmatpush3.msra.mxu0 %v17151_v7  ;;  %13288 = vmatprep.mubr.msk.f32.mxu0 %vm13807_vm0, %v18450_v23  ;;  %v13504_v7 = vld [vmem:[%s18068_s20 + $0x30] ss:$8 sps:$4 sm:$0xff]  }
 0xaec   : > { %13282 = vmatprep.subr.mxu0 %v18450_v23 }
 0xaed   : > { %13283 = vmatpush3.msra.mxu0 %v17166_v38  ;;  %v13510_v38 = vld [vmem:[%s18068_s20 + $0x10] ss:$8 sps:$4 sm:$0xff]  }
 0xaee   : > { %13284 = vmatprep.subr.mxu0 %v18450_v23 }
 0xaef   : > { %13285 = vmatpush3.msra.mxu0 %v18507_v24 }
 0xaf0   : > { %13286 = vmatprep.subr.mxu0 %v18450_v23  ;;  %v13507_v23 = vld [vmem:[%s18068_s20 + $0x20] ss:$8 sps:$4 sm:$0xff]  }
 0xaf1   : > { %13287 = vmatpush3.msra.mxu0 %v18508_v31 }
 0xaf2   : > { %13289 = vmatmul.mubr.f32.vlgmr.msra.gmra.mxu0 %v9509_v46  ;;  %10120 = vmatprep.subr.bf16.mxu0 %v13506_v52 }
 0xaf3   : > { %10121 = vmatpush1.bf16.msra.mxu0 %v13504_v7  ;;  %10144 = vmatprep.mubr.bf16.mxu0 %v13809_v27 }
 0xaf4   : > { %10122 = vmatprep.subr.bf16.mxu0 %v13509_v36 }
 0xaf7   : > { %10123 = vmatpush1.bf16.msra.mxu0 %v13507_v23 }
 0xaf8   : > { %10124 = vmatprep.subr.bf16.mxu0 %v13512_v49 }
 0xafb   : > { %10125 = vmatpush1.bf16.msra.mxu0 %v13510_v38 }
 0xafc   : > { %10126 = vmatprep.subr.bf16.mxu0 %v13515_v14 }
 0xaff   : > { %10127 = vmatpush1.bf16.msra.mxu0 %v13513_v41 }
 0xb98   : > { %v9606_v19 = vpop.f32.mrf.mxu1 }
 0xb9a   : > { %v13257_v5 = vpop.f32.mrf.mxu1 }
 0xba0   : > { %v9763_v54 = vpop.f32.mrf.mxu1 }
 0xba1   : > { %v9515_v39 = vpop.f32.mrf.mxu0 }
 0xba2   : > { %v13279_v59 = vpop.f32.mrf.mxu1  ;;  %v9607_v20 = vadd.f32 %v9606_v19, %v9515_v39 }
 0xba3   : > { %v13246_v42 = vpop.f32.mrf.mxu0 }
 0xba9   : > { %v9686_v18 = vpop.f32.mrf.mxu0 }
 0xbaa   : > { %v9921_v45 = vpop.f32.mrf.mxu1  ;;  %v9687_v25 = vadd.f32 %v9686_v18, %v9607_v20  ;;  %v18509_v18 = vld [vmem:[#allocation23_spill] sm:$0xff]  ;;  %v18510_v20 = vld [vmem:[#allocation41_spill] sm:$0xff] }
 0xbab   : > { %v13268_v55 = vpop.f32.mrf.mxu0 }
 0xbac   : > { %v13301_v13 = vpop.f32.mrf.mxu1  ;;  %v9764_v1 = vadd.f32 %v9763_v54, %v9687_v25 }
 0xbb2   : > { %v9846_v57 = vpop.f32.mrf.mxu0 }
 0xbb3   : > { %v9847_v44 = vadd.f32 %v9846_v57, %v9764_v1  ;;  %v18511_v57 = vld [vmem:[#allocation25_spill] sm:$0xff] }
 0xbb4   : > { %v13290_v30 = vpop.f32.mrf.mxu0 }
 0xbb5   : > { %v9922_v56 = vadd.f32 %v9921_v45, %v9847_v44  ;;  %v18512_v30 = vld [vmem:[#allocation13_spill] sm:$0xff] }
 0xbb7   : > { %v9932_v28 = vrot.slane %v9922_v56, %v18488_v22 }
 0xbb9   : > { %v9940_v16 = vrot.slane %v9932_v28, %v18488_v22  ;;  %v9933_v48 = vcombine.high %v9932_v28, %v9932_v28 }
 0xbbb   : > { %v9951_v63 = vrot.slane %v9940_v16, %v18489_v9  ;;  %v9947_v62 = vrot.slane %v9933_v48, %v18488_v22 }
 0xbbd   : > { %v9958_v4 = vmul.f32 %v9951_v63, %v17291_v6  ;;  %v9959_v3 = vmul.f32 %v9951_v63, %v17294_v47  ;;  %v9960_v26 = vmul.f32 %v9951_v63, %v17297_v12  ;;  %v9961_v0 = vmul.f32 %v9951_v63, %v17306_v17 }
 0xbbe   : > { %v9962_v12 = vmul.f32 %v9951_v63, %v17316_v60  ;;  %v9963_v17 = vmul.f32 %v9951_v63, %v17328_v50  ;;  %v9964_v60 = vmul.f32 %v9951_v63, %v17340_v34  ;;  %v9965_v50 = vmul.f32 %v9951_v63, %v17353_v37 }
 0xbbf   : > { %v9981_v21 = vmul.f32 %v17556_v40, %v9958_v4  ;;  %v9982_v61 = vmul.f32 %v17556_v40, %v9959_v3  ;;  %v9983_v47 = vmul.f32 %v17556_v40, %v9960_v26  ;;  %v9984_v15 = vmul.f32 %v17556_v40, %v9961_v0 }
 0xbc0   : > { %v9985_v35 = vmul.f32 %v17556_v40, %v9962_v12  ;;  %v9986_v58 = vmul.f32 %v17556_v40, %v9963_v17  ;;  %v9955_v31 = vrot.slane %v9947_v62, %v18489_v9  ;;  %v9987_v7 = vmul.f32 %v17556_v40, %v9964_v60 }
 0xbc1   : > { %v10004_v29 = vadd.f32 %v17563_v43, %v9981_v21  ;;  %v10005_v11 = vadd.f32 %v17563_v43, %v9982_v61  ;;  %v10006_v8 = vadd.f32 %v17563_v43, %v9983_v47  ;;  %v10007_v2 = vadd.f32 %v17563_v43, %v9984_v15  ;;  %v10036_v61 = vld [vmem:[%s18069_s21] sm:$0x3] }
 0xbc2   : > { %v10008_v33 = vadd.f32 %v17563_v43, %v9985_v35  ;;  %v10009_v24 = vadd.f32 %v17563_v43, %v9986_v58  ;;  %v9988_v36 = vmul.f32 %v17556_v40, %v9965_v50  ;;  %v10010_v22 = vadd.f32 %v17563_v43, %v9987_v7 }
 0xbc3   : > { %v10028_v6 = vpack.c.bf16 %v10005_v11, %v10004_v29  ;;  %v10029_v46 = vpack.c.bf16 %v10007_v2, %v10006_v8  ;;  %v9966_v49 = vmul.f32 %v9955_v31, %v17300_v32  ;;  %v9967_v34 = vmul.f32 %v9955_v31, %v17303_v51 }
 0xbc4   : > { %v10030_v52 = vpack.c.bf16 %v10009_v24, %v10008_v33  ;;  %v10011_v23 = vadd.f32 %v17563_v43, %v9988_v36  ;;  %v9968_v5 = vmul.f32 %v9955_v31, %v17309_v53  ;;  %v9969_v54 = vmul.f32 %v9955_v31, %v17319_v10 }
 0xbc5   : > { %11472 = vmatmul.mubr.msk.bf16.vlgmr.msra.gmra.mxu0 %vm3292_vm5, %v10028_v6  ;;  %v9989_v38 = vmul.f32 %v17556_v40, %v9966_v49  ;;  %v9990_v14 = vmul.f32 %v17556_v40, %v9967_v34  ;;  %v9970_v45 = vmul.f32 %v9955_v31, %v18509_v18  ;;  %v9971_v55 = vmul.f32 %v9955_v31, %v18510_v20 }
 0xbc6   : > { %10154 = vmatprep.mubr.bf16.mxu0 %v13809_v27  ;;  %v10031_v37 = vpack.c.bf16 %v10011_v23, %v10010_v22  ;;  %v9991_v51 = vmul.f32 %v17556_v40, %v9968_v5  ;;  %v9992_v39 = vmul.f32 %v17556_v40, %v9969_v54  ;;  %v9972_v44 = vmul.f32 %v9955_v31, %v18511_v57  ;;  %v18513_v23 = vld [vmem:[#allocation11_spill] sm:$0xff] }
 0xbc7   : > { %v10012_v41 = vadd.f32 %v17563_v43, %v9989_v38  ;;  %v10013_v19 = vadd.f32 %v17563_v43, %v9990_v14  ;;  %v9993_v10 = vmul.f32 %v17556_v40, %v9970_v45  ;;  %v9994_v13 = vmul.f32 %v17556_v40, %v9971_v55 }
 0xbc8   : > { %v10014_v59 = vadd.f32 %v17563_v43, %v9991_v51  ;;  %v10015_v42 = vadd.f32 %v17563_v43, %v9992_v39  ;;  %v9973_v56 = vmul.f32 %v9955_v31, %v18512_v30  ;;  %v9995_v16 = vmul.f32 %v17556_v40, %v9972_v44 }
 0xbc9   : > { %v10032_v32 = vpack.c.bf16 %v10013_v19, %v10012_v41  ;;  %v10016_v25 = vadd.f32 %v17563_v43, %v9993_v10  ;;  %v10017_v1 = vadd.f32 %v17563_v43, %v9994_v13  ;;  %v17632_v26 = vrot.slane %v10036_v61, %v18489_v9 }
 0xbca   : > { %v10033_v53 = vpack.c.bf16 %v10015_v42, %v10014_v59  ;;  %v9996_v63 = vmul.f32 %v17556_v40, %v9973_v56  ;;  %v10018_v4 = vadd.f32 %v17563_v43, %v9995_v16  ;;  %v10044_v49 = vsub.s32 1, %v18513_v23 }
 0xbcb   : > { %v10034_v28 = vpack.c.bf16 %v10017_v1, %v10016_v25 }
 0xbcc   : > { %v10019_v3 = vadd.f32 %v17563_v43, %v9996_v63  ;;  %v17659_v41 = vrot.slane %v10036_v61, %v10044_v49 }
 0xbcd   : > { %11473 = vmatmul.mubr.msk.bf16.gmra.mxu0 %vm3292_vm5, %v10029_v46 }
 0xbce   : > { %10164 = vmatprep.mubr.bf16.mxu0 %v13809_v27  ;;  %v10035_v21 = vpack.c.bf16 %v10019_v3, %v10018_v4 }
 0xbd5   : > { %11474 = vmatmul.mubr.msk.bf16.gmra.mxu0 %vm3292_vm5, %v10030_v52 }
 0xbd6   : > { %10174 = vmatprep.mubr.bf16.mxu0 %v13809_v27 }
 0xbdd   : > { %11475 = vmatmul.mubr.msk.bf16.gmra.mxu0 %vm3292_vm5, %v10031_v37 }
 0xbde   : > { %10184 = vmatprep.mubr.bf16.mxu0 %v13809_v27 }
 0xbe5   : > { %11476 = vmatmul.mubr.msk.bf16.gmra.mxu0 %vm3292_vm5, %v10032_v32 }
 0xbe6   : > { %10194 = vmatprep.mubr.bf16.mxu0 %v13809_v27 }
 0xbed   : > { %11477 = vmatmul.mubr.msk.bf16.gmra.mxu0 %vm3292_vm5, %v10033_v53 }
 0xbee   : > { %10204 = vmatprep.mubr.bf16.mxu0 %v13809_v27 }
 0xbf5   : > { %11478 = vmatmul.mubr.msk.bf16.gmra.mxu0 %vm3292_vm5, %v10034_v28 }
 0xbf6   : > { %10214 = vmatprep.mubr.bf16.mxu0 %v13809_v27 }
 0xbfd   : > { %11479 = vmatmul.mubr.msk.bf16.gmra.mxu0 %vm3292_vm5, %v10035_v21 }
 0xc85   : > { %v10146_v0 = vpop.f32.mrf.mxu0 }
 0xc86   : > { %v10147_v29 = vadd.f32 %v10146_v0, %v17632_v26 }
 0xc87   : > { %v17634_v40 = vpop.f32.mrf.mxu0 }
 0xc88   : > { %v10225_v43 = vmul.f32 0.125, %v10147_v29 }
 0xc89   : > { %v10150_v27 = vpop.f32.mrf.mxu0 }
 0xc8a   : > { %v10151_v11 = vadd.f32 %v10150_v27, %v17632_v26 }
 0xc8b   : > { %v10152_v6 = vpop.f32.mrf.mxu0 }
 0xc8c   : > { %v10226_v47 = vmul.f32 0.125, %v10151_v11  ;;  %v10249_v60 = vpack.c.bf16 %v10151_v11, %v10147_v29  ;;  %v10153_v16 = vadd.f32 %v10152_v6, %v17659_v41  ;;  %v10149_v29 = vadd.f32 %v17634_v40, %v17659_v41 }
 0xc8d   : > { %v10156_v15 = vpop.f32.mrf.mxu0 }
 0xc8e   : > { %v10241_v8 = vpack.c.bf16 %v10226_v47, %v10225_v43  ;;  %v10157_v12 = vadd.f32 %v10156_v15, %v17632_v26  ;;  %v10643_v43 = vpack.c.bf16 %v10153_v16, %v10149_v29 }
 0xc8f   : > { %v10158_v2 = vpop.f32.mrf.mxu0 }
 0xc90   : > { %13310 = vmatprep.mubr.msk.bf16.mxu1 %vm3292_vm5, %v10241_v8  ;;  %v17641_v46 = vmul.f32 0.125, %v10157_v12  ;;  %v10159_v56 = vadd.f32 %v10158_v2, %v17659_v41 }
 0xc91   : > { %v10160_v9 = vpop.f32.mrf.mxu0 }
 0xc92   : > { %v10161_v17 = vadd.f32 %v10160_v9, %v17632_v26 }
 0xc93   : > { %v10162_v48 = vpop.f32.mrf.mxu0 }
 0xc94   : > { %v17643_v35 = vmul.f32 0.125, %v10161_v17  ;;  %v10250_v58 = vpack.c.bf16 %v10161_v17, %v10157_v12  ;;  %v10163_v10 = vadd.f32 %v10162_v48, %v17659_v41 }
 0xc95   : > { %v10166_v62 = vpop.f32.mrf.mxu0 }
 0xc96   : > { %v10242_v33 = vpack.c.bf16 %v17643_v35, %v17641_v46  ;;  %10263 = vrot.lane.b32.xlu1 %v10250_v58, %s13810_s29  ;;  %v10167_v50 = vadd.f32 %v10166_v62, %v17632_v26  ;;  %v10644_v4 = vpack.c.bf16 %v10163_v10, %v10159_v56 }
 0xc97   : > { %v10168_v24 = vpop.f32.mrf.mxu0 }
 0xc98   : > { %v17651_v36 = vmul.f32 0.125, %v10167_v50  ;;  %v10169_v20 = vadd.f32 %v10168_v24, %v17659_v41 }
 0xc99   : > { %v10170_v31 = vpop.f32.mrf.mxu0 }
 0xc9a   : > { %v10171_v52 = vadd.f32 %v10170_v31, %v17632_v26  ;;  %10261 = vrot.lane.b32.xlu1 %v10249_v60, %s13810_s29 }
 0xc9b   : > { %v10172_v7 = vpop.f32.mrf.mxu0 }
 0xc9c   : > { %v17653_v22 = vmul.f32 0.125, %v10171_v52  ;;  %v10173_v54 = vadd.f32 %v10172_v7, %v17659_v41  ;;  %v10251_v25 = vpack.c.bf16 %v10171_v52, %v10167_v50 }
 0xc9d   : > { %v10176_v34 = vpop.f32.mrf.mxu0 }
 0xc9e   : > { %v10243_v37 = vpack.c.bf16 %v17653_v22, %v17651_v36  ;;  %v10177_v38 = vadd.f32 %v10176_v34, %v17632_v26  ;;  %v10645_v1 = vpack.c.bf16 %v10173_v54, %v10169_v20 }
 0xc9f   : > { %v10178_v14 = vpop.f32.mrf.mxu0 }
 0xca0   : > { %v17663_v32 = vmul.f32 0.125, %v10177_v38  ;;  %v10179_v39 = vadd.f32 %v10178_v14, %v17659_v41 }
 0xca1   : > { %v10180_v19 = vpop.f32.mrf.mxu0 }
 0xca2   : > { %v10181_v5 = vadd.f32 %v10180_v19, %v17632_v26 }
 0xca3   : > { %v10182_v51 = vpop.f32.mrf.mxu0 }
 0xca4   : > { %v17666_v59 = vmul.f32 0.125, %v10181_v5  ;;  %v10183_v42 = vadd.f32 %v10182_v51, %v17659_v41  ;;  %v10252_v18 = vpack.c.bf16 %v10181_v5, %v10177_v38 }
 0xca5   : > { %v10186_v45 = vpop.f32.mrf.mxu0 }
 0xca6   : > { %v10244_v55 = vpack.c.bf16 %v17666_v59, %v17663_v32  ;;  %v10646_v53 = vpack.c.bf16 %v10183_v42, %v10179_v39  ;;  %10267 = vrot.lane.b32.xlu0 %v10252_v18, %s13810_s29  ;;  %v10187_v57 = vadd.f32 %v10186_v45, %v17632_v26 }
 0xca7   : > { %v10188_v13 = vpop.f32.mrf.mxu0 }
 0xca8   : > { %v10189_v44 = vadd.f32 %v10188_v13, %v17659_v41  ;;  %13334 = vmatprep.subr.bf16.mxu0 %v10646_v53  ;;  %v17680_v3 = vmul.f32 0.125, %v10187_v57 }
 0xca9   : > { %v10190_v30 = vpop.f32.mrf.mxu0  ;;  %13335 = vmatpush3.bf16.msra.mxu0 %v10646_v53 }
 0xcaa   : > { %v10191_v28 = vadd.f32 %v10190_v30, %v17632_v26  ;;  %13336 = vmatprep.subr.bf16.mxu0 %v10645_v1  ;;  %10265 = vrot.lane.b32.xlu0 %v10251_v25, %s13810_s29 }
 0xcab   : > { %v10192_v63 = vpop.f32.mrf.mxu0 }
 0xcac   : > { %v17682_v21 = vmul.f32 0.125, %v10191_v28  ;;  %v10193_v61 = vadd.f32 %v10192_v63, %v17659_v41  ;;  %v10253_v51 = vpack.c.bf16 %v10191_v28, %v10187_v57 }
 0xcad   : > { %v10196_v0 = vpop.f32.mrf.mxu0  ;;  %13337 = vmatpush3.bf16.msra.mxu0 %v10645_v1 }
 0xcae   : > { %v10245_v27 = vpack.c.bf16 %v17682_v21, %v17680_v3  ;;  %v17689_v11 = vpack.c.bf16 %v10193_v61, %v10189_v44  ;;  %13338 = vmatprep.subr.bf16.mxu0 %v10644_v4  ;;  %v10197_v47 = vadd.f32 %v10196_v0, %v17632_v26 }
 0xcaf   : > { %v10198_v6 = vpop.f32.mrf.mxu0 }
 0xcb0   : > { %v10199_v15 = vadd.f32 %v10198_v6, %v17659_v41  ;;  %v17694_v9 = vmul.f32 0.125, %v10197_v47 }
 0xcb1   : > { %v10200_v8 = vpop.f32.mrf.mxu0  ;;  %13339 = vmatpush3.bf16.msra.mxu0 %v10644_v4 }
 0xcb2   : > { %v10201_v2 = vadd.f32 %v10200_v8, %v17632_v26  ;;  %13340 = vmatprep.subr.bf16.mxu0 %v10643_v43 }
 0xcb3   : > { %v10202_v12 = vpop.f32.mrf.mxu0 }
 0xcb4   : > { %v17696_v40 = vmul.f32 0.125, %v10201_v2  ;;  %v10203_v17 = vadd.f32 %v10202_v12, %v17659_v41  ;;  %v10254_v57 = vpack.c.bf16 %v10201_v2, %v10197_v47 }
 0xcb5   : > { %v10206_v48 = vpop.f32.mrf.mxu0  ;;  %13341 = vmatpush3.bf16.msra.mxu0 %v10643_v43 }
 0xcb6   : > { %v10246_v58 = vpack.c.bf16 %v17696_v40, %v17694_v9  ;;  %v17701_v62 = vpack.c.bf16 %v10203_v17, %v10199_v15  ;;  %v10207_v60 = vadd.f32 %v10206_v48, %v17632_v26 }
 0xcb7   : > { %v10208_v24 = vpop.f32.mrf.mxu0 }
 0xcb8   : > { %v10209_v50 = vadd.f32 %v10208_v24, %v17659_v41  ;;  %v17706_v23 = vmul.f32 0.125, %v10207_v60 }
 0xcb9   : > { %v10210_v31 = vpop.f32.mrf.mxu0 }
 0xcba   : > { %v10211_v52 = vadd.f32 %v10210_v31, %v17632_v26 }
 0xcbb   : > { %v10212_v7 = vpop.f32.mrf.mxu0 }
 0xcbc   : > { %v17708_v49 = vmul.f32 0.125, %v10211_v52  ;;  %v10255_v34 = vpack.c.bf16 %v10211_v52, %v10207_v60  ;;  %v10213_v38 = vadd.f32 %v10212_v7, %v17659_v41 }
 0xcbd   : > { %v10216_v14 = vpop.f32.mrf.mxu0 }
 0xcbe   : > { %v10247_v19 = vpack.c.bf16 %v17708_v49, %v17706_v23  ;;  %v10649_v5 = vpack.c.bf16 %v10213_v38, %v10209_v50  ;;  %10366 = vrot.lane.b32.xlu1 %v10255_v34, %s13810_s29  ;;  %v10217_v39 = vadd.f32 %v10216_v14, %v17632_v26 }
 0xcbf   : > { %v10218_v54 = vpop.f32.mrf.mxu0 }
 0xcc0   : > { %v10219_v42 = vadd.f32 %v10218_v54, %v17659_v41  ;;  %v10239_v53 = vmul.f32 0.125, %v10217_v39 }
 0xcc1   : > { %v10220_v18 = vpop.f32.mrf.mxu0 }
 0xcc2   : > { %v10221_v45 = vadd.f32 %v10220_v18, %v17632_v26  ;;  %10362 = vrot.lane.b32.xlu1 %v10253_v51, %s13810_s29 }
 0xcc3   : > { %v10222_v20 = vpop.f32.mrf.mxu0 }
 0xcc4   : > { %v10240_v10 = vmul.f32 0.125, %v10221_v45  ;;  %v10256_v13 = vpack.c.bf16 %v10221_v45, %v10217_v39  ;;  %v10223_v25 = vadd.f32 %v10222_v20, %v17659_v41 }
 0xcc6   : > { %v10248_v1 = vpack.c.bf16 %v10240_v10, %v10239_v53  ;;  %v10650_v44 = vpack.c.bf16 %v10223_v25, %v10219_v42  ;;  %10368 = vrot.lane.b32.xlu0 %v10256_v13, %s13810_s29 }
 0xcca   : > { %10364 = vrot.lane.b32.xlu0 %v10254_v57, %s13810_s29  ;;  %s11111_s29 = sshll.u32 %s745_s27, 7 }
 0xccb   : > { %s17934_s8 = scalar_lea.vmem [#allocation4], %s11111_s29 }
 0xccc   : > { %s11036_s1 = sshll.u32 %s17934_s8, 4  ;;  %s17999_s1 = int_to_ptr.vmem [resolvable:$true] %s11036_s1 }
 0xccd   : > { %s13744_s29 = scalar_lea.vmem %s17999_s1, 2048  ;;  %p13751_p0 = scmp.lt.s32.totalorder %s17999_s1, %s13749_s7 }
 0xcce   : > { %p13745_p11 = scmp.ne.s32.totalorder %s17999_s1, %s13744_s29  ;;  %p13752_p1 = scmp.lt.s32.totalorder %s13750_s9, %s13744_s29 }
 0xcd0   : > { %p13746_p12 = pnand %p13745_p11, %p13977_p5  ;;  %p13753_p2 = por %p13752_p1, %p13751_p0 }
 0xcd2   : > { %p13747_p13 = pneg %p13746_p12 }
 0xcd4   : > { %p13754_p3 = pnand %p13753_p2, %p13747_p13 }
 0xd08   : > { %v10264_v16 = vpop.permute.xlu1 %10263 }
 0xd09   : > { %v10285_v41 = vsel %vm3292_vm5, %v10264_v16, 0 }
 0xd0c   : > { %v10262_v63 = vpop.permute.xlu1 %10261 }
 0xd0d   : > { %v10282_v4 = vsel %vm3292_vm5, %v10262_v63, 0 }
 0xd18   : > { %v10268_v30 = vpop.permute.xlu0 %10267 }
 0xd19   : > { %v10291_v56 = vsel %vm3292_vm5, %v10268_v30, 0  ;;  %13394 = vmatprep.subr.msk.bf16.mxu1 %vm3292_vm5, %v10268_v30 }
 0xd1a   : > { %13303 = vmatpush3.bf16.xpose.msra.mxu1 %v10291_v56 }
 0xd1c   : > { %v10266_v26 = vpop.permute.xlu0 %10265 }
 0xd1d   : > { %13395 = vmatprep.subr.msk.bf16.mxu1 %vm3292_vm5, %v10266_v26  ;;  %v10288_v28 = vsel %vm3292_vm5, %v10266_v26, 0 }
 0xd22   : > { %13305 = vmatpush3.bf16.xpose.msra.mxu1 %v10288_v28 }
 0xd23   : > { %13396 = vmatprep.subr.msk.bf16.mxu1 %vm3292_vm5, %v10264_v16 }
 0xd2a   : > { %13307 = vmatpush3.bf16.xpose.msra.mxu1 %v10285_v41 }
 0xd2b   : > { %13397 = vmatprep.subr.msk.bf16.mxu1 %vm3292_vm5, %v10262_v63 }
 0xd30   : > { %v10367_v29 = vpop.permute.xlu1 %10366 }
 0xd31   : > { %v10389_v6 = vsel %vm3292_vm5, %v10367_v29, 0 }
 0xd32   : > { %13309 = vmatpush3.bf16.xpose.msra.mxu1 %v10282_v4 }
 0xd38   : > { %v10369_v61 = vpop.permute.xlu0 %10368 }
 0xd39   : > { %v10392_v0 = vsel %vm3292_vm5, %v10369_v61, 0  ;;  %13311 = vmatmul.mubr.msk.bf16.vlgmr.msra.gmra.mxu1 %vm3292_vm5, %v10242_v33  ;;  %13398 = vmatprep.subr.msk.bf16.mxu1 %vm3292_vm5, %v10369_v61  ;;  %v10363_v33 = vpop.permute.xlu1 %10362 }
 0xd3a   : > { %13314 = vmatprep.mubr.msk.bf16.mxu1 %vm3292_vm5, %v10243_v37  ;;  %13319 = vmatpush3.bf16.xpose.msra.mxu1 %v10392_v0  ;;  %v10383_v36 = vsel %vm3292_vm5, %v10363_v33, 0 }
 0xd3b   : > { %13399 = vmatprep.subr.msk.bf16.mxu1 %vm3292_vm5, %v10367_v29 }
 0xd3c   : > { %v10365_v46 = vpop.permute.xlu0 %10364 }
 0xd3d   : > { %v10386_v35 = vsel %vm3292_vm5, %v10365_v46, 0 }
 0xd41   : > { %13315 = vmatmul.mubr.msk.bf16.gmra.mxu1 %vm3292_vm5, %v10244_v55 }
 0xd42   : > { %13321 = vmatpush3.bf16.xpose.msra.mxu1 %v10389_v6  ;;  %13326 = vmatprep.mubr.msk.bf16.mxu1 %vm3292_vm5, %v10245_v27 }
 0xd43   : > { %13400 = vmatprep.subr.msk.bf16.mxu1 %vm3292_vm5, %v10365_v46 }
 0xd4a   : > { %13323 = vmatpush3.bf16.xpose.msra.mxu1 %v10386_v35 }
 0xd4b   : > { %13401 = vmatprep.subr.msk.bf16.mxu1 %vm3292_vm5, %v10363_v33 }
 0xd52   : > { %13325 = vmatpush3.bf16.xpose.msra.mxu1 %v10383_v36 }
 0xd53   : > { %13350 = vmatprep.subr.bf16.mxu1 %v10650_v44 }
 0xd59   : > { %13327 = vmatmul.mubr.msk.bf16.vlgmr.msra.gmra.mxu1 %vm3292_vm5, %v10246_v58 }
 0xd5a   : > { %13330 = vmatprep.mubr.msk.bf16.mxu1 %vm3292_vm5, %v10247_v19  ;;  %13351 = vmatpush3.bf16.msra.mxu1 %v10650_v44 }
 0xd5b   : > { %13352 = vmatprep.subr.bf16.mxu1 %v10649_v5 }
 0xd5e   : > { %13353 = vmatpush3.bf16.msra.mxu1 %v10649_v5 }
 0xd5f   : > { %13354 = vmatprep.subr.bf16.mxu1 %v17701_v62 }
 0xd61   : > { %13331 = vmatmul.mubr.msk.bf16.gmra.mxu1 %vm3292_vm5, %v10248_v1 }
 0xd62   : > { %13355 = vmatpush3.bf16.msra.mxu1 %v17701_v62 }
 0xd63   : > { %13356 = vmatprep.subr.bf16.mxu1 %v17689_v11 }
 0xd66   : > { %13357 = vmatpush3.bf16.msra.mxu1 %v17689_v11 }
 0xdf9   : > { %v13312_v22 = vpop.f32.mrf.mxu1 }
 0xdfa   : > { %v10465_v3 = vsel %vm3292_vm5, %v13312_v22, -inf }
 0xdfb   : > { %v10327_v37 = vpop.f32.mrf.mxu1 }
 0xdfc   : > { %v10459_v32 = vsel %vm3292_vm5, %v10327_v37, -inf }
 0xdfd   : > { %10460 = vmax.xlane.f32.xlu0 %v10459_v32  ;;  %v13313_v59 = vpop.f32.mrf.mxu1 }
 0xdfe   : > { %v10468_v47 = vsel %vm3292_vm5, %v13313_v59, -inf }
 0xdff   : > { %v10330_v55 = vpop.f32.mrf.mxu1 }
 0xe00   : > { %v10462_v21 = vsel %vm3292_vm5, %v10330_v55, -inf }
 0xe01   : > { %10466 = vmax.xlane.f32.xlu0 %v10465_v3  ;;  %10463 = vmax.xlane.f32.xlu1 %v10462_v21  ;;  %v13316_v27 = vpop.f32.mrf.mxu1 }
 0xe02   : > { %v10477_v2 = vsel %vm3292_vm5, %v13316_v27, -inf }
 0xe03   : > { %v10343_v43 = vpop.f32.mrf.mxu1 }
 0xe04   : > { %v10471_v15 = vsel %vm3292_vm5, %v10343_v43, -inf }
 0xe05   : > { %10469 = vmax.xlane.f32.xlu0 %v10468_v47  ;;  %10472 = vmax.xlane.f32.xlu1 %v10471_v15  ;;  %v17768_v11 = vpop.f32.mrf.mxu1 }
 0xe06   : > { %v10480_v9 = vsel %vm3292_vm5, %v17768_v11, -inf }
 0xe07   : > { %v10346_v8 = vpop.f32.mrf.mxu1 }
 0xe08   : > { %v10474_v12 = vsel %vm3292_vm5, %v10346_v8, -inf }
 0xe09   : > { %10478 = vmax.xlane.f32.xlu1 %v10477_v2  ;;  %10475 = vmax.xlane.f32.xlu0 %v10474_v12 }
 0xe0d   : > { %10481 = vmax.xlane.f32.xlu0 %v10480_v9 }
 0xe19   : > { %v17774_v40 = vpop.f32.mrf.mxu1 }
 0xe1a   : > { %v10489_v24 = vsel %vm3292_vm5, %v17774_v40, -inf }
 0xe1b   : > { %v17776_v17 = vpop.f32.mrf.mxu1 }
 0xe1c   : > { %v10483_v48 = vsel %vm3292_vm5, %v17776_v17, -inf }
 0xe1d   : > { %10484 = vmax.xlane.f32.xlu1 %v10483_v48  ;;  %v17780_v58 = vpop.f32.mrf.mxu1 }
 0xe1e   : > { %v10492_v52 = vsel %vm3292_vm5, %v17780_v58, -inf }
 0xe1f   : > { %v17782_v62 = vpop.f32.mrf.mxu1 }
 0xe20   : > { %v10486_v60 = vsel %vm3292_vm5, %v17782_v62, -inf }
 0xe21   : > { %10490 = vmax.xlane.f32.xlu1 %v10489_v24  ;;  %10487 = vmax.xlane.f32.xlu0 %v10486_v60  ;;  %v17788_v50 = vpop.f32.mrf.mxu1 }
 0xe22   : > { %v10501_v34 = vsel %vm3292_vm5, %v17788_v50, -inf }
 0xe23   : > { %v17790_v31 = vpop.f32.mrf.mxu1 }
 0xe24   : > { %v10495_v7 = vsel %vm3292_vm5, %v17790_v31, -inf }
 0xe25   : > { %10493 = vmax.xlane.f32.xlu0 %v10492_v52  ;;  %10496 = vmax.xlane.f32.xlu1 %v10495_v7  ;;  %v17796_v23 = vpop.f32.mrf.mxu1 }
 0xe26   : > { %v10504_v14 = vsel %vm3292_vm5, %v17796_v23, -inf }
 0xe27   : > { %v17798_v49 = vpop.f32.mrf.mxu1 }
 0xe28   : > { %v10498_v38 = vsel %vm3292_vm5, %v17798_v49, -inf }
 0xe29   : > { %10502 = vmax.xlane.f32.xlu1 %v10501_v34  ;;  %10499 = vmax.xlane.f32.xlu0 %v10498_v38 }
 0xe2d   : > { %10505 = vmax.xlane.f32.xlu0 %v10504_v14 }
 0xe86   : > { %v10461_v19 = vpop.xlane.xlu0 %10460 }
 0xe87   : > { %v10507_v5 = vsub.f32 %v10327_v37, %v10461_v19 }
 0xe89   : > { %v10523_v54 = vmul.f32 1.442695, %v10507_v5 }
 0xe8a   : > { %v10467_v51 = vpop.xlane.xlu0 %10466  ;;  %v10464_v39 = vpop.xlane.xlu1 %10463 }
 0xe8b   : > { %13664 = vpow2.f32 %v10523_v54  ;;  %v10509_v42 = vsub.f32 %v13312_v22, %v10467_v51  ;;  %v10508_v18 = vsub.f32 %v10330_v55, %v10464_v39 }
 0xe8d   : > { %v10527_v45 = vmul.f32 1.442695, %v10509_v42  ;;  %v10525_v20 = vmul.f32 1.442695, %v10508_v18 }
 0xe8e   : > { %v10470_v53 = vpop.xlane.xlu0 %10469  ;;  %v10473_v10 = vpop.xlane.xlu1 %10472 }
 0xe8f   : > { %13666 = vpow2.f32 %v10527_v45  ;;  %v10510_v13 = vsub.f32 %v13313_v59, %v10470_v53  ;;  %v10511_v25 = vsub.f32 %v10343_v43, %v10473_v10 }
 0xe90   : > { %13668 = vpow2.f32 %v10525_v20 }
 0xe91   : > { %v10529_v1 = vmul.f32 1.442695, %v10510_v13  ;;  %v10531_v44 = vmul.f32 1.442695, %v10511_v25 }
 0xe92   : > { %v10479_v57 = vpop.xlane.xlu1 %10478  ;;  %v10476_v30 = vpop.xlane.xlu0 %10475 }
 0xe93   : > { %13670 = vpow2.f32 %v10529_v1  ;;  %v10513_v56 = vsub.f32 %v13316_v27, %v10479_v57  ;;  %v10512_v26 = vsub.f32 %v10346_v8, %v10476_v30  ;;  %v13516_v30 = vld [vmem:[%s18070_s22 + $0x18] sm:$0xff]  }
 0xe94   : > { %13672 = vpow2.f32 %v10531_v44  ;;  %13366 = vmatprep.subr.bf16.mxu0 %v13516_v30 }
 0xe95   : > { %v10535_v28 = vmul.f32 1.442695, %v10513_v56  ;;  %v10533_v16 = vmul.f32 1.442695, %v10512_v26 }
 0xe96   : > { %v10482_v41 = vpop.xlane.xlu0 %10481 }
 0xe97   : > { %13674 = vpow2.f32 %v10535_v28  ;;  %v10514_v63 = vsub.f32 %v17768_v11, %v10482_v41 }
 0xe98   : > { %v17807_v4 = vpop.eup %13664  ;;  %13676 = vpow2.f32 %v10533_v16 }
 0xe99   : > { %v10537_v61 = vmul.f32 1.442695, %v10514_v63  ;;  %v10555_v0 = vsel %vm3292_vm5, %v17807_v4, 0.0 }
 0xe9a   : > { %10556 = vadd.xlane.f32.xlu1 %v10555_v0 }
 0xe9b   : > { %13678 = vpow2.f32 %v10537_v61 }
 0xe9c   : > { %v17811_v29 = vpop.eup %13666 }
 0xe9d   : > { %v17813_v6 = vpop.eup %13668  ;;  %v10561_v46 = vsel %vm3292_vm5, %v17811_v29, 0.0 }
 0xe9e   : > { %10562 = vadd.xlane.f32.xlu1 %v10561_v46  ;;  %v10558_v35 = vsel %vm3292_vm5, %v17813_v6, 0.0 }
 0xe9f   : > { %10559 = vadd.xlane.f32.xlu0 %v10558_v35 }
 0xea0   : > { %v17819_v33 = vpop.eup %13670 }
 0xea1   : > { %v17821_v36 = vpop.eup %13672  ;;  %v10564_v22 = vsel %vm3292_vm5, %v17819_v33, 0.0 }
 0xea2   : > { %v10567_v37 = vsel %vm3292_vm5, %v17821_v36, 0.0 }
 0xea3   : > { %10568 = vadd.xlane.f32.xlu1 %v10567_v37  ;;  %10565 = vadd.xlane.f32.xlu0 %v10564_v22 }
 0xea4   : > { %v17827_v32 = vpop.eup %13674 }
 0xea5   : > { %v17829_v59 = vpop.eup %13676  ;;  %v10573_v55 = vsel %vm3292_vm5, %v17827_v32, 0.0 }
 0xea6   : > { %v10485_v3 = vpop.xlane.xlu1 %10484  ;;  %v10570_v21 = vsel %vm3292_vm5, %v17829_v59, 0.0 }
 0xea7   : > { %v10515_v27 = vsub.f32 %v17776_v17, %v10485_v3  ;;  %10574 = vadd.xlane.f32.xlu1 %v10573_v55  ;;  %10571 = vadd.xlane.f32.xlu0 %v10570_v21 }
 0xea8   : > { %v17836_v43 = vpop.eup %13678 }
 0xea9   : > { %v10539_v47 = vmul.f32 1.442695, %v10515_v27  ;;  %v10576_v15 = vsel %vm3292_vm5, %v17836_v43, 0.0 }
 0xeaa   : > { %v10491_v11 = vpop.xlane.xlu1 %10490  ;;  %v10488_v8 = vpop.xlane.xlu0 %10487 }
 0xeab   : > { %13680 = vpow2.f32 %v10539_v47  ;;  %v10517_v2 = vsub.f32 %v17774_v40, %v10491_v11  ;;  %v10516_v12 = vsub.f32 %v17782_v62, %v10488_v8  ;;  %10577 = vadd.xlane.f32.xlu0 %v10576_v15  ;;  %v13517_v8 = vld [vmem:[%s18070_s22 + $0x10] sm:$0xff]  }
 0xead   : > { %v10543_v9 = vmul.f32 1.442695, %v10517_v2  ;;  %v10541_v48 = vmul.f32 1.442695, %v10516_v12 }
 0xeae   : > { %v10494_v24 = vpop.xlane.xlu0 %10493  ;;  %v10497_v17 = vpop.xlane.xlu1 %10496 }
 0xeaf   : > { %13682 = vpow2.f32 %v10543_v9  ;;  %v10518_v60 = vsub.f32 %v17780_v58, %v10494_v24  ;;  %v10519_v52 = vsub.f32 %v17790_v31, %v10497_v17 }
 0xeb0   : > { %13684 = vpow2.f32 %v10541_v48 }
 0xeb1   : > { %v10545_v7 = vmul.f32 1.442695, %v10518_v60  ;;  %v10547_v34 = vmul.f32 1.442695, %v10519_v52 }
 0xeb2   : > { %v10503_v38 = vpop.xlane.xlu1 %10502  ;;  %v10500_v14 = vpop.xlane.xlu0 %10499 }
 0xeb3   : > { %13686 = vpow2.f32 %v10545_v7  ;;  %v10521_v40 = vsub.f32 %v17788_v50, %v10503_v38  ;;  %v10520_v62 = vsub.f32 %v17798_v49, %v10500_v14 }
 0xeb4   : > { %13688 = vpow2.f32 %v10547_v34 }
 0xeb5   : > { %v10551_v19 = vmul.f32 1.442695, %v10521_v40  ;;  %v10549_v5 = vmul.f32 1.442695, %v10520_v62 }
 0xeb6   : > { %v10506_v54 = vpop.xlane.xlu0 %10505 }
 0xeb7   : > { %13690 = vpow2.f32 %v10551_v19  ;;  %v10522_v51 = vsub.f32 %v17796_v23, %v10506_v54 }
 0xeb8   : > { %v17847_v58 = vpop.eup %13680  ;;  %13692 = vpow2.f32 %v10549_v5 }
 0xeb9   : > { %v10553_v31 = vmul.f32 1.442695, %v10522_v51  ;;  %v10579_v39 = vsel %vm3292_vm5, %v17847_v58, 0.0 }
 0xeba   : > { %10580 = vadd.xlane.f32.xlu1 %v10579_v39 }
 0xebb   : > { %13694 = vpow2.f32 %v10553_v31 }
 0xebc   : > { %v17851_v42 = vpop.eup %13682 }
 0xebd   : > { %v17853_v50 = vpop.eup %13684  ;;  %v10585_v49 = vsel %vm3292_vm5, %v17851_v42, 0.0 }
 0xebe   : > { %10586 = vadd.xlane.f32.xlu1 %v10585_v49  ;;  %v10582_v23 = vsel %vm3292_vm5, %v17853_v50, 0.0 }
 0xebf   : > { %10583 = vadd.xlane.f32.xlu0 %v10582_v23 }
 0xec0   : > { %v17859_v18 = vpop.eup %13686 }
 0xec1   : > { %v17861_v45 = vpop.eup %13688  ;;  %v10588_v20 = vsel %vm3292_vm5, %v17859_v18, 0.0 }
 0xec2   : > { %v10591_v53 = vsel %vm3292_vm5, %v17861_v45, 0.0 }
 0xec3   : > { %10592 = vadd.xlane.f32.xlu1 %v10591_v53  ;;  %10589 = vadd.xlane.f32.xlu0 %v10588_v20 }
 0xec4   : > { %v17867_v10 = vpop.eup %13690 }
 0xec5   : > { %v17869_v13 = vpop.eup %13692  ;;  %v10597_v25 = vsel %vm3292_vm5, %v17867_v10, 0.0 }
 0xec6   : > { %v10594_v1 = vsel %vm3292_vm5, %v17869_v13, 0.0 }
 0xec7   : > { %10598 = vadd.xlane.f32.xlu1 %v10597_v25  ;;  %10595 = vadd.xlane.f32.xlu0 %v10594_v1 }
 0xec8   : > { %v17875_v44 = vpop.eup %13694 }
 0xec9   : > { %v10600_v57 = vsel %vm3292_vm5, %v17875_v44, 0.0 }
 0xecb   : > { %10601 = vadd.xlane.f32.xlu0 %v10600_v57 }
 0xf23   : > { %v10557_v56 = vpop.xlane.xlu1 %10556 }
 0xf24   : > { %13696 = vrcp.f32 %v10557_v56 }
 0xf27   : > { %v10563_v26 = vpop.xlane.xlu1 %10562 }
 0xf28   : > { %v10560_v28 = vpop.xlane.xlu0 %10559 }
 0xf29   : > { %13698 = vrcp.f32 %v10560_v28 }
 0xf2a   : > { %13700 = vrcp.f32 %v10563_v26 }
 0xf2c   : > { %v10569_v16 = vpop.xlane.xlu1 %10568  ;;  %v10566_v41 = vpop.xlane.xlu0 %10565 }
 0xf2d   : > { %13702 = vrcp.f32 %v10566_v41 }
 0xf2e   : > { %13704 = vrcp.f32 %v10569_v16 }
 0xf30   : > { %v10575_v63 = vpop.xlane.xlu1 %10574  ;;  %v10572_v61 = vpop.xlane.xlu0 %10571 }
 0xf31   : > { %13706 = vrcp.f32 %v10572_v61  ;;  %v13697_v0 = vpop.eup %13696 }
 0xf32   : > { %13708 = vrcp.f32 %v10575_v63  ;;  %v10619_v22 = vmul.f32 %v13697_v0, %v17807_v4 }
 0xf34   : > { %v10578_v46 = vpop.xlane.xlu0 %10577 }
 0xf35   : > { %13710 = vrcp.f32 %v10578_v46 }
 0xf36   : > { %v13699_v35 = vpop.eup %13698 }
 0xf37   : > { %v10620_v37 = vmul.f32 %v13699_v35, %v17813_v6  ;;  %v13701_v55 = vpop.eup %13700 }
 0xf38   : > { %v10621_v27 = vmul.f32 %v13701_v55, %v17811_v29 }
 0xf39   : > { %v10635_v3 = vpack.c.bf16 %v10620_v37, %v10619_v22 }
 0xf3a   : > { %v13703_v21 = vpop.eup %13702 }
 0xf3b   : > { %13342 = vmatprep.mubr.msk.bf16.mxu0 %vm3292_vm5, %v10635_v3  ;;  %v10622_v47 = vmul.f32 %v13703_v21, %v17819_v33  ;;  %v13705_v15 = vpop.eup %13704 }
 0xf3c   : > { %v10623_v4 = vmul.f32 %v13705_v15, %v17821_v36 }
 0xf3d   : > { %v10636_v11 = vpack.c.bf16 %v10622_v47, %v10621_v27 }
 0xf3e   : > { %v13707_v2 = vpop.eup %13706 }
 0xf3f   : > { %v13709_v12 = vpop.eup %13708  ;;  %13343 = vmatmul.mubr.msk.bf16.vlgmr.msra.gmra.mxu0 %vm3292_vm5, %v10636_v11  ;;  %v10624_v6 = vmul.f32 %v13707_v2, %v17829_v59  ;;  %v17929_v2 = vld [vmem:[%s18071_s23] ss:$0 sm:$0xff] }
 0xf40   : > { %13367 = vmatpush3.bf16.msra.mxu0 %v13516_v30  ;;  %v10625_v33 = vmul.f32 %v13709_v12, %v17827_v32  ;;  %v18514_v12 = vld [vmem:[#allocation59_spill] sm:$0xff] }
 0xf41   : > { %v10637_v48 = vpack.c.bf16 %v10624_v6, %v10623_v4  ;;  %13368 = vmatprep.subr.bf16.mxu0 %v13517_v8 }
 0xf42   : > { %v13711_v9 = vpop.eup %13710 }
 0xf43   : > { %v10581_v29 = vpop.xlane.xlu1 %10580  ;;  %v10626_v24 = vmul.f32 %v13711_v9, %v17836_v43  ;;  %13346 = vmatprep.mubr.msk.bf16.mxu0 %vm3292_vm5, %v10637_v48  ;;  %v18515_v48 = vld [vmem:[#allocation58_spill] sm:$0xff] }
 0xf44   : > { %13369 = vmatpush3.bf16.msra.mxu0 %v13517_v8  ;;  %13712 = vrcp.f32 %v10581_v29 }
 0xf45   : > { %v10638_v17 = vpack.c.bf16 %v10626_v24, %v10625_v33 }
 0xf47   : > { %v10587_v60 = vpop.xlane.xlu1 %10586  ;;  %13347 = vmatmul.mubr.msk.bf16.gmra.mxu0 %vm3292_vm5, %v10638_v17  ;;  %v18516_v17 = vld [vmem:[#allocation61_spill] sm:$0xff] }
 0xf48   : > { %v10584_v36 = vpop.xlane.xlu0 %10583 }
 0xf49   : > { %13714 = vrcp.f32 %v10584_v36 }
 0xf4a   : > { %13716 = vrcp.f32 %v10587_v60 }
 0xf4c   : > { %v10593_v59 = vpop.xlane.xlu1 %10592  ;;  %v10590_v52 = vpop.xlane.xlu0 %10589 }
 0xf4d   : > { %13718 = vrcp.f32 %v10590_v52  ;;  %v18517_v52 = vld [vmem:[#allocation60_spill] sm:$0xff] }
 0xf4e   : > { %13720 = vrcp.f32 %v10593_v59 }
 0xf50   : > { %v10599_v7 = vpop.xlane.xlu1 %10598  ;;  %v10596_v34 = vpop.xlane.xlu0 %10595 }
 0xf51   : > { %13722 = vrcp.f32 %v10596_v34  ;;  %v13713_v32 = vpop.eup %13712 }
 0xf52   : > { %13724 = vrcp.f32 %v10599_v7  ;;  %v10627_v14 = vmul.f32 %v13713_v32, %v17847_v58 }
 0xf54   : > { %v10602_v43 = vpop.xlane.xlu0 %10601 }
 0xf55   : > { %13726 = vrcp.f32 %v10602_v43  ;;  %v18518_v43 = vld [vmem:[#allocation38_spill] sm:$0xff] }
 0xf56   : > { %v13715_v38 = vpop.eup %13714 }
 0xf57   : > { %v10628_v40 = vmul.f32 %v13715_v38, %v17853_v50  ;;  %v13717_v62 = vpop.eup %13716 }
 0xf58   : > { %v10629_v54 = vmul.f32 %v13717_v62, %v17851_v42  ;;  %v18519_v62 = vld [vmem:[#allocation62_spill] sm:$0xff] }
 0xf59   : > { %v10639_v19 = vpack.c.bf16 %v10628_v40, %v10627_v14 }
 0xf5a   : > { %v13719_v5 = vpop.eup %13718 }
 0xf5b   : > { %13358 = vmatprep.mubr.msk.bf16.mxu1 %vm3292_vm5, %v10639_v19  ;;  %v10630_v51 = vmul.f32 %v13719_v5, %v17859_v18  ;;  %v13721_v31 = vpop.eup %13720  ;;  %v13518_v18 = vld [vmem:[%s18070_s22 + $0x8] sm:$0xff]  }
 0xf5c   : > { %v10631_v20 = vmul.f32 %v13721_v31, %v17861_v45  ;;  %13370 = vmatprep.subr.bf16.mxu0 %v13518_v18  ;;  %v13519_v45 = vld [vmem:[%s18070_s22] sm:$0xff]  }
 0xf5d   : > { %v10640_v39 = vpack.c.bf16 %v10630_v51, %v10629_v54  ;;  %13371 = vmatpush3.bf16.msra.mxu0 %v13518_v18  ;;  %v18520_v51 = vld [vmem:[#allocation46_spill] sm:$0xff]  ;;  %v18523_v18 = vld [vmem:[#allocation37_spill] sm:$0xff] }
 0xf5e   : > { %v13723_v49 = vpop.eup %13722  ;;  %13372 = vmatprep.subr.bf16.mxu0 %v13519_v45 }
 0xf5f   : > { %v13725_v23 = vpop.eup %13724  ;;  %13359 = vmatmul.mubr.msk.bf16.vlgmr.msra.gmra.mxu1 %vm3292_vm5, %v10640_v39  ;;  %v10632_v58 = vmul.f32 %v13723_v49, %v17869_v13 }
 0xf60   : > { %v10633_v25 = vmul.f32 %v13725_v23, %v17867_v10  ;;  %v18521_v23 = vld [vmem:[#allocation45_spill] sm:$0xff] }
 0xf61   : > { %v10641_v53 = vpack.c.bf16 %v10632_v58, %v10631_v20  ;;  %13373 = vmatpush3.bf16.msra.mxu0 %v13519_v45 }
 0xf62   : > { %v13727_v50 = vpop.eup %13726 }
 0xf63   : > { %v10634_v1 = vmul.f32 %v13727_v50, %v17875_v44  ;;  %13362 = vmatprep.mubr.msk.bf16.mxu1 %vm3292_vm5, %v10641_v53  ;;  %v18522_v53 = vld [vmem:[#allocation32_spill] sm:$0xff] }
 0xf65   : > { %v10642_v42 = vpack.c.bf16 %v10634_v1, %v10633_v25 }
 0xf67   : > { %13363 = vmatmul.mubr.msk.bf16.gmra.mxu1 %vm3292_vm5, %v10642_v42 }
 0xfff   : > { %v13344_v10 = vpop.f32.mrf.mxu0 }
0x1001   : > { %v10697_v13 = vpop.f32.mrf.mxu0 }
0x1003   : > { %v13345_v44 = vpop.f32.mrf.mxu0 }
0x1004   : > { %v10814_v56 = vpack.c.bf16 %v13345_v44, %v13344_v10  ;;  %v18524_v44 = vld [vmem:[#allocation47_spill] sm:$0xff] }
0x1005   : > { %v10700_v57 = vpop.f32.mrf.mxu0 }
0x1006   : > { %v10813_v30 = vpack.c.bf16 %v10700_v57, %v10697_v13 }
0x1007   : > { %v13348_v26 = vpop.f32.mrf.mxu0 }
0x1008   : > { %13374 = vmatprep.mubr.msk.bf16.mxu0 %vm3292_vm5, %v10813_v30 }
0x1009   : > { %v10713_v28 = vpop.f32.mrf.mxu0  ;;  %13375 = vmatmul.mubr.msk.bf16.vlgmr.msra.gmra.mxu0 %vm3292_vm5, %v10814_v56 }
0x100b   : > { %v13349_v16 = vpop.f32.mrf.mxu0 }
0x100c   : > { %v10816_v61 = vpack.c.bf16 %v13349_v16, %v13348_v26  ;;  %v18525_v26 = vld [vmem:[#allocation52_spill] sm:$0xff] }
0x100d   : > { %v10716_v41 = vpop.f32.mrf.mxu0 }
0x100e   : > { %v10815_v63 = vpack.c.bf16 %v10716_v41, %v10713_v28 }
0x1010   : > { %13378 = vmatprep.mubr.msk.bf16.mxu0 %vm3292_vm5, %v10815_v63  ;;  %v18526_v63 = vld [vmem:[#allocation56_spill] sm:$0xff] }
0x1011   : > { %13379 = vmatmul.mubr.msk.bf16.gmra.mxu0 %vm3292_vm5, %v10816_v61 }
0x101f   : > { %v13360_v0 = vpop.f32.mrf.mxu1 }
0x1021   : > { %v10774_v46 = vpop.f32.mrf.mxu1 }
0x1023   : > { %v13361_v35 = vpop.f32.mrf.mxu1 }
0x1024   : > { %v10818_v55 = vpack.c.bf16 %v13361_v35, %v13360_v0  ;;  %v18527_v35 = vld [vmem:[#allocation54_spill] sm:$0xff] }
0x1025   : > { %v10777_v22 = vpop.f32.mrf.mxu1 }
0x1026   : > { %v10817_v37 = vpack.c.bf16 %v10777_v22, %v10774_v46 }
0x1027   : > { %v13364_v3 = vpop.f32.mrf.mxu1 }
0x1028   : > { %13382 = vmatprep.mubr.msk.bf16.mxu0 %vm3292_vm5, %v10817_v37 }
0x1029   : > { %v10790_v21 = vpop.f32.mrf.mxu1  ;;  %13383 = vmatmul.mubr.msk.bf16.gmra.mxu0 %vm3292_vm5, %v10818_v55 }
0x102b   : > { %v13365_v27 = vpop.f32.mrf.mxu1 }
0x102c   : > { %v10820_v11 = vpack.c.bf16 %v13365_v27, %v13364_v3  ;;  %v18528_v3 = vld [vmem:[#allocation55_spill] sm:$0xff] }
0x102d   : > { %v10793_v47 = vpop.f32.mrf.mxu1 }
0x102e   : > { %v10819_v15 = vpack.c.bf16 %v10793_v47, %v10790_v21 }
0x1030   : > { %13386 = vmatprep.mubr.msk.bf16.mxu0 %vm3292_vm5, %v10819_v15  ;;  %v18529_v15 = vld [vmem:[#allocation53_spill] sm:$0xff] }
0x1031   : > { %13387 = vmatmul.mubr.msk.bf16.gmra.mxu0 %vm3292_vm5, %v10820_v11 }
0x10c9   : > { %v13376_v8 = vpop.f32.mrf.mxu0 }
0x10ca   : > { %v10968_v4 = vadd.f32 %v13376_v8, %v18514_v12 }
0x10cb   : > { %v10903_v6 = vpop.f32.mrf.mxu0 }
0x10cc   : > { %v10991_v9 = vadd.f32 %v17929_v2, %v10968_v4  ;;  %v10966_v29 = vadd.f32 %v10903_v6, %v18515_v48 }
0x10cd   : > { %v13377_v33 = vpop.f32.mrf.mxu0 }
0x10ce   : > { %11007 = vst.msk [vmem:[%s17934_s8 + $0x10] sm:$0xff] %vm3292_vm5, %v10991_v9  ;;  %v10989_v24 = vadd.f32 %v17929_v2, %v10966_v29  ;;  %v10969_v60 = vadd.f32 %v13377_v33, %v18516_v17 }
0x10cf   : > { %v10906_v36 = vpop.f32.mrf.mxu0 }
0x10d0   : > { %11005 = vst.msk [vmem:[%s17934_s8] sm:$0xff] %vm3292_vm5, %v10989_v24  ;;  %v10992_v59 = vadd.f32 %v17929_v2, %v10969_v60  ;;  %v10967_v7 = vadd.f32 %v10906_v36, %v18517_v52 }
0x10d1   : > { %v13380_v34 = vpop.f32.mrf.mxu0 }
0x10d2   : > { %11008 = vst.msk [vmem:[%s17934_s8 + $0x18] sm:$0xff] %vm3292_vm5, %v10992_v59  ;;  %v10990_v32 = vadd.f32 %v17929_v2, %v10967_v7  ;;  %v10972_v38 = vadd.f32 %v13380_v34, %v18518_v43 }
0x10d3   : > { %v10919_v14 = vpop.f32.mrf.mxu0 }
0x10d4   : > { %11006 = vst.msk [vmem:[%s17934_s8 + $0x8] sm:$0xff] %vm3292_vm5, %v10990_v32  ;;  %v10995_v40 = vadd.f32 %v17929_v2, %v10972_v38  ;;  %v10970_v19 = vadd.f32 %v10919_v14, %v18519_v62 }
0x10d5   : > { %v13381_v5 = vpop.f32.mrf.mxu0 }
0x10d6   : > { %11011 = vst.msk [vmem:[%s17934_s8 + $0x30] sm:$0xff] %vm3292_vm5, %v10995_v40  ;;  %v10993_v54 = vadd.f32 %v17929_v2, %v10970_v19  ;;  %v10973_v31 = vadd.f32 %v13381_v5, %v18520_v51 }
0x10d7   : > { %v10922_v39 = vpop.f32.mrf.mxu0 }
0x10d8   : > { %11009 = vst.msk [vmem:[%s17934_s8 + $0x20] sm:$0xff] %vm3292_vm5, %v10993_v54  ;;  %v10996_v49 = vadd.f32 %v17929_v2, %v10973_v31  ;;  %v10971_v20 = vadd.f32 %v10922_v39, %v18521_v23 }
0x10da   : > { %11012 = vst.msk [vmem:[%s17934_s8 + $0x38] sm:$0xff] %vm3292_vm5, %v10996_v49  ;;  %v10994_v58 = vadd.f32 %v17929_v2, %v10971_v20 }
0x10dc   : > { %11010 = vst.msk [vmem:[%s17934_s8 + $0x28] sm:$0xff] %vm3292_vm5, %v10994_v58 }
0x10e9   : > { %v13384_v50 = vpop.f32.mrf.mxu0 }
0x10ea   : > { %v10976_v25 = vadd.f32 %v13384_v50, %v18522_v53 }
0x10eb   : > { %v10935_v1 = vpop.f32.mrf.mxu0 }
0x10ec   : > { %v10999_v42 = vadd.f32 %v17929_v2, %v10976_v25  ;;  %v10974_v45 = vadd.f32 %v10935_v1, %v18523_v18 }
0x10ed   : > { %v13385_v10 = vpop.f32.mrf.mxu0 }
0x10ee   : > { %11015 = vst.msk [vmem:[%s17934_s8 + $0x50] sm:$0xff] %vm3292_vm5, %v10999_v42  ;;  %v10997_v13 = vadd.f32 %v17929_v2, %v10974_v45  ;;  %v10977_v57 = vadd.f32 %v13385_v10, %v18524_v44 }
0x10ef   : > { %v10938_v30 = vpop.f32.mrf.mxu0 }
0x10f0   : > { %11013 = vst.msk [vmem:[%s17934_s8 + $0x40] sm:$0xff] %vm3292_vm5, %v10997_v13  ;;  %v11000_v56 = vadd.f32 %v17929_v2, %v10977_v57  ;;  %v10975_v28 = vadd.f32 %v10938_v30, %v18525_v26 }
0x10f1   : > { %v13388_v16 = vpop.f32.mrf.mxu0 }
0x10f2   : > { %11016 = vst.msk [vmem:[%s17934_s8 + $0x58] sm:$0xff] %vm3292_vm5, %v11000_v56  ;;  %v10998_v41 = vadd.f32 %v17929_v2, %v10975_v28  ;;  %v10980_v61 = vadd.f32 %v13388_v16, %v18526_v63 }
0x10f3   : > { %v10951_v0 = vpop.f32.mrf.mxu0 }
0x10f4   : > { %11014 = vst.msk [vmem:[%s17934_s8 + $0x48] sm:$0xff] %vm3292_vm5, %v10998_v41  ;;  %v11003_v46 = vadd.f32 %v17929_v2, %v10980_v61  ;;  %v10978_v22 = vadd.f32 %v10951_v0, %v18527_v35 }
0x10f5   : > { %v13389_v37 = vpop.f32.mrf.mxu0 }
0x10f6   : > { %11019 = vst.msk [vmem:[%s17934_s8 + $0x70] sm:$0xff] %vm3292_vm5, %v11003_v46  ;;  %v11001_v55 = vadd.f32 %v17929_v2, %v10978_v22  ;;  %v10981_v21 = vadd.f32 %v13389_v37, %v18528_v3 }
0x10f7   : > { %v10954_v27 = vpop.f32.mrf.mxu0 }
0x10f8   : > { %11017 = vst.msk [vmem:[%s17934_s8 + $0x60] sm:$0xff] %vm3292_vm5, %v11001_v55  ;;  %v11004_v47 = vadd.f32 %v17929_v2, %v10981_v21  ;;  %v10979_v11 = vadd.f32 %v10954_v27, %v18529_v15 }
0x10fa   : > { %11020 = vst.msk [vmem:[%s17934_s8 + $0x78] sm:$0xff] %vm3292_vm5, %v11004_v47  ;;  %v11002_v8 = vadd.f32 %v17929_v2, %v10979_v11 }
0x10fc   : > { %11018 = vst.msk [vmem:[%s17934_s8 + $0x68] sm:$0xff] %vm3292_vm5, %v11002_v8 }
0x10fd   : > { %13757 = shalt.err (!%p13754_p3)
}
0x10fe   : > { %s13758_s27 = scalar_lea.hbm %s17997_s0, 2048  ;;  %s13762_s25 = scalar_lea.hbm %s18072_s24, 4096 }
0x10ff   : > { %p13759_p4 = scmp.ne.s32.totalorder %s17997_s0, %s13758_s27  ;;  %p13763_p9 = scmp.lt.s32.totalorder %s17997_s0, %s18072_s24 }
0x1100   : > { %p13764_p10 = scmp.lt.s32.totalorder %s13762_s25, %s13758_s27 }
0x1101   : > { %p13760_p7 = pnand %p13759_p4, %p13977_p5 }
0x1102   : > { %p13765_p11 = por %p13764_p10, %p13763_p9 }
0x1103   : > { %p13761_p8 = pneg %p13760_p7 }
0x1105   : > { %p13766_p12 = pnand %p13765_p11, %p13761_p8 }
0x1107   : > { %13769 = shalt.err (!%p13766_p12)
}
0x1108   : > { %s13812_s29 = smov 128   ;;  %s13813_s7 = smov 8  }
0x1109   : > { %13402 = dma.vmem_to_hbm [thread:$0]  (%p13977_p5), %s17999_s1, 2048, %s17997_s0, %s18008_s6, %s13812_s29, %s13812_s29, %s13813_s7  }
0x110a PF: > { %p13408_p13 = scmp.ge.s32.totalorder %s13804_s28, 2  ;;  %s11051_s8 = sand.u32 1, %s13792_s26  }
0x110b   : > { %s11052_s10 = scalar_lea.sflag [#allocation5], %s11051_s8 }
0x110c   : > { %p13405_p0 = pnand %p13408_p13, %p13981_p6 }
0x110e   : > { %p13406_p1 = pneg %p13405_p0 }
0x1110   : > { %13787 = dma.done.wait (%p13406_p1), %s11052_s10, 2048  }
0x1111   : > { %13789 = vsyncadd (%p13406_p1), %s11052_s10, 4294965248  ;;  %s18531_s28 = sld [smem:[#allocation8_spill]]  ;;  %s18534_s26 = smov %s13796_s5 }
0x1112   : > { %s18532_s27 = sld [smem:[#allocation7_spill]] }
0x1113   : > { %s18533_s2 = sld [smem:[#allocation9_spill]] }
0x1117   : > { %p34_p2 = scmp.ge.s32.totalorder %s18531_s28, 4  }
0x1118   : > { %s18535_s5 = smov %s18532_s27 }
0x1119   : > { %s18536_s27 = smov %s18533_s2  ;;  %36 = sbr.rel (!%p34_p2) target bundleno = 13 (0xd), region = 176 }
0x111e   :  { %11057 = vsyncpa [#allocation5], 1 }
0x111f   :  { %11059 = vsyncpa [#allocation5 + $0x1], 1 }

</bundles_post_ra>
